<compile_context>
chip_gen: v7x
topology: tpu7x:2x2x1
jax: 0.10.0
libtpu: 0.0.40
codegen_flags: <defaults>
</compile_context>

<pallas_src>
import jax
import jax.numpy as jnp
from jax import lax
from jax.experimental import pallas as pl
from jax.experimental.pallas import tpu as pltpu

F32 = jnp.float32
BF16 = jnp.bfloat16

_VMEM_LIMIT_CACHE = None


def _vmem_limit():
    """Per-generation scoped-VMEM budget (≈75% of physical, ≤100 MiB)."""
    global _VMEM_LIMIT_CACHE
    if _VMEM_LIMIT_CACHE is None:
        cap = 64 * 1024 * 1024            # conservative fallback (v7x-sized)
        try:
            cap = int(pltpu.get_tpu_info().vmem_capacity_bytes)
        except Exception:
            pass
        _VMEM_LIMIT_CACHE = int(min(cap * 3 // 4, 100 * 1024 * 1024))
    return _VMEM_LIMIT_CACHE


# --------------------------------------------------------------------------
# K1: fused dense chain + LFF 1x1 + NonLocal g 1x1 (+ optional residual adds)
# --------------------------------------------------------------------------
def _make_dense_lff_g_kernel(H, W, num_layers, fuse_add, compute_g, add_input):
    HW = H * W
    # tap (dy, dx) -> sublane roll so rolled[r] = feat[r + dy*W + dx]
    shifts = [(-(dy * W + dx)) % HW for dy in (-1, 0, 1) for dx in (-1, 0, 1)]

    def kernel(*refs):
        n_in = 1 + int(fuse_add) + 1 + 2 * num_layers + 2 + (2 if compute_g else 0)
        it = iter(refs[:n_in])
        x_ref = next(it)
        r_ref = next(it) if fuse_add else None
        mask_ref = next(it)
        layer_refs = [(next(it), next(it)) for _ in range(num_layers)]
        lffw_ref, lffb_ref = next(it), next(it)
        gw_ref, gb_ref = (next(it), next(it)) if compute_g else (None, None)
        outs = refs[n_in:]

        x = x_ref[0].astype(F32)
        if fuse_add:
            x = x + r_ref[0].astype(F32)          # yn_1 = yn + G_yn, in VMEM

        # Hoist the nine border-mask column extracts out of all loops.
        masks = mask_ref[...]                      # (HW, 9) 0/1 f32
        mask_cols = [masks[:, t:t + 1] for t in range(9)]

        def taps_of(v):
            # v: (HW, w) f32 -> (HW, 9w) bf16 of shifted + border-masked taps.
            cols = []
            for t in range(9):
                tap = v if shifts[t] == 0 else pltpu.roll(v, shift=shifts[t],
                                                          axis=0)
                if t != 4:                         # center tap never wraps
                    tap = tap * mask_cols[t]
                cols.append(tap.astype(BF16))
            return jnp.concatenate(cols, axis=-1)

        # Persistent patch buffer: only the NEW group's taps are appended each
        # layer (weights were permuted host-side to match this group order).
        patches = taps_of(x)                       # group 0 = input channels
        feats = [x.astype(BF16)]
        for li, (w_ref, b_ref) in enumerate(layer_refs):
            y = jnp.dot(patches, w_ref[...],
                        preferred_element_type=F32) + b_ref[...]
            y = jnp.maximum(y, 0.0)                # ReLU
            feats.append(y.astype(BF16))
            if li + 1 < num_layers:
                patches = jnp.concatenate([patches, taps_of(y)], axis=-1)

        feat = jnp.concatenate(feats, axis=-1)     # (HW, C0 + L*G) bf16
        f = jnp.dot(feat, lffw_ref[...],
                    preferred_element_type=F32) + lffb_ref[...]

        if add_input:                              # non-dual: yn + LFF(...)
            outs[0][0] = (x + f).astype(outs[0].dtype)
        else:
            f_bf = f.astype(BF16)
            outs[0][0] = f_bf.astype(outs[0].dtype)
            if compute_g:
                outs[1][0] = (jnp.dot(f_bf, gw_ref[...],
                                      preferred_element_type=F32)
                              + gb_ref[...]).astype(outs[1].dtype)

    return kernel


def dense_lff_g(x_flat, residual, mask, dense_params, lff_w, lff_b,
                g_params, H, W, add_input=False):
    B, HW, C0 = x_flat.shape
    num_layers = len(dense_params)
    compute_g = g_params is not None
    fuse_add = residual is not None
    kernel = _make_dense_lff_g_kernel(H, W, num_layers, fuse_add,
                                      compute_g, add_input)

    def full_spec(arr):
        nd = arr.ndim
        return pl.BlockSpec(arr.shape, lambda b, _nd=nd: (0,) * _nd)

    img_spec = pl.BlockSpec((1, HW, C0), lambda b: (b, 0, 0))
    inputs, in_specs = [x_flat], [img_spec]
    if fuse_add:
        inputs.append(residual)
        in_specs.append(img_spec)
    inputs.append(mask)
    in_specs.append(full_spec(mask))
    for w, bias in dense_params:
        inputs += [w, bias]
        in_specs += [full_spec(w), full_spec(bias)]
    inputs += [lff_w, lff_b]
    in_specs += [full_spec(lff_w), full_spec(lff_b)]
    if compute_g:
        g_w, g_b = g_params
        inputs += [g_w, g_b]
        in_specs += [full_spec(g_w), full_spec(g_b)]

    if add_input:
        out_shape = jax.ShapeDtypeStruct((B, HW, C0), F32)
        out_specs = img_spec
    else:
        out_shape = [jax.ShapeDtypeStruct((B, HW, C0), BF16)]
        out_specs = [img_spec]
        if compute_g:
            Ci = g_params[0].shape[-1]
            out_shape.append(jax.ShapeDtypeStruct((B, HW, Ci), BF16))
            out_specs.append(pl.BlockSpec((1, HW, Ci), lambda b: (b, 0, 0)))
        out_shape, out_specs = tuple(out_shape), tuple(out_specs)

    return pl.pallas_call(
        kernel,
        out_shape=out_shape,
        grid=(B,),
        in_specs=in_specs,
        out_specs=out_specs,
        compiler_params=pltpu.CompilerParams(
            dimension_semantics=("parallel",),
            vmem_limit_bytes=_vmem_limit()),
    )(*inputs)


# --------------------------------------------------------------------------
# K2: flash non-local attention + fused W-projection / residual epilogue
# --------------------------------------------------------------------------
def _make_flash_nonlocal_kernel(HW, blk_k, key_masked):
    def kernel(q_ref, k_ref, v_ref, ww_ref, wb_ref, o_ref,
               m_ref, l_ref, acc_ref):
        kv = pl.program_id(2)

        @pl.when(kv == 0)
        def _():
            m_ref[...] = jnp.full(m_ref.shape, -jnp.inf, F32)
            l_ref[...] = jnp.zeros(l_ref.shape, F32)
            acc_ref[...] = jnp.zeros(acc_ref.shape, F32)

        q = q_ref[0]                                        # bf16 (TQ, C)
        k = k_ref[0]                                        # bf16 (TK, C)
        s = lax.dot_general(q, k, (((1,), (1,)), ((), ())),
                            preferred_element_type=F32)     # (TQ, TK)
        if key_masked:
            col = kv * blk_k + lax.broadcasted_iota(jnp.int32, s.shape, 1)
            s = jnp.where(col < HW, s, -jnp.inf)

        m_prev = m_ref[...]
        m_new = jnp.maximum(m_prev, jnp.max(s, axis=-1, keepdims=True))
        alpha = jnp.exp(m_prev - m_new)
        # bf16 exp: EUP bf16 throughput on v6e/v7x (accumulation stays f32).
        p = jnp.exp((s - m_new).astype(BF16))
        l_ref[...] = alpha * l_ref[...] + jnp.sum(p.astype(F32), axis=-1,
                                                  keepdims=True)
        acc_ref[...] = alpha * acc_ref[...] + jnp.dot(
            p, v_ref[0], preferred_element_type=F32)
        m_ref[...] = m_new

        @pl.when(kv == pl.num_programs(2) - 1)
        def _():
            y = acc_ref[...] * pl.reciprocal(l_ref[...], approx=False)
            # NonLocal output projection + residual (+f): f is the resident
            # q block, so no extra HBM read.
            z = (jnp.dot(y.astype(BF16), ww_ref[...],
                         preferred_element_type=F32)
                 + wb_ref[...] + q_ref[0].astype(F32))
            o_ref[0] = z.astype(o_ref.dtype)

    return kernel


def _pick_attention_blocks(HW):
    """Return (padded HW, query block, key block)."""
    if HW <= 512:
        return HW, HW, HW                 # single tile, no padding needed
    HWp = ((HW + 127) // 128) * 128       # lane-friendly padding (key-masked)
    blk_k = 512 if HWp % 512 == 0 else (256 if HWp % 256 == 0 else 128)
    blk_q = 256 if HWp % 256 == 0 else 128
    return HWp, blk_q, blk_k


def nonlocal_wproj(f, g, W_w, W_b, HW):
    """z = W(softmax(F F^T) g(F)) + F, flash-style, per batch."""
    B, HWf, C = f.shape
    Ci = g.shape[-1]
    HWp, blk_q, blk_k = _pick_attention_blocks(HWf)
    if HWp != HWf:
        pad = HWp - HWf
        f = jnp.pad(f, ((0, 0), (0, pad), (0, 0)))
        g = jnp.pad(g, ((0, 0), (0, pad), (0, 0)))
    nq, nk = HWp // blk_q, HWp // blk_k
    kernel = _make_flash_nonlocal_kernel(HWf, blk_k, HWp != HWf)

    z = pl.pallas_call(
        kernel,
        out_shape=jax.ShapeDtypeStruct((B, HWp, C), F32),
        grid=(B, nq, nk),
        in_specs=[
            pl.BlockSpec((1, blk_q, C), lambda b, qi, ki: (b, qi, 0)),
            pl.BlockSpec((1, blk_k, C), lambda b, qi, ki: (b, ki, 0)),
            pl.BlockSpec((1, blk_k, Ci), lambda b, qi, ki: (b, ki, 0)),
            pl.BlockSpec(W_w.shape, lambda b, qi, ki: (0, 0)),
            pl.BlockSpec((1, C), lambda b, qi, ki: (0, 0)),
        ],
        out_specs=pl.BlockSpec((1, blk_q, C), lambda b, qi, ki: (b, qi, 0)),
        scratch_shapes=[pltpu.VMEM((blk_q, 1), F32),
                        pltpu.VMEM((blk_q, 1), F32),
                        pltpu.VMEM((blk_q, Ci), F32)],
        compiler_params=pltpu.CompilerParams(
            dimension_semantics=("parallel", "parallel", "arbitrary"),
            vmem_limit_bytes=_vmem_limit()),
    )(f, f, g, W_w, W_b)

    if HWp != HW:
        z = z[:, :HW, :]
    return z


# --------------------------------------------------------------------------
# K3: SELayer (+ fused final combine for the second attention branch)
# --------------------------------------------------------------------------
def _make_se_kernel(combine):
    def kernel(*refs):
        if combine:
            z_ref, yn_ref, gprev_ref, half_ref, w1_ref, w2_ref, o_ref = refs
        else:
            z_ref, w1_ref, w2_ref, o_ref = refs

        z = z_ref[0].astype(F32)                            # (HW, C)
        m = jnp.mean(z, axis=0, keepdims=True)              # global avg pool
        h = jnp.maximum(jnp.dot(m.astype(BF16), w1_ref[...],
                                preferred_element_type=F32), 0.0)
        s = jax.nn.sigmoid(jnp.dot(h.astype(BF16), w2_ref[...],
                                   preferred_element_type=F32))   # (1, C)
        scaled = z * s                                      # SE-rescaled z
        if combine:                                         # yn + 0.5*(G_yn + G_yn_1)
            half = half_ref[0]
            out = yn_ref[0].astype(F32) + half * (gprev_ref[0].astype(F32)
                                                  + scaled)
        else:
            out = scaled
        o_ref[0] = out.astype(o_ref.dtype)

    return kernel


def se_scale(z, se_w1, se_w2, yn=None, gprev=None, half=None):
    B, HW, C = z.shape
    combine = yn is not None
    kernel = _make_se_kernel(combine)
    img_spec = pl.BlockSpec((1, HW, C), lambda b: (b, 0, 0))

    inputs, in_specs = [z], [img_spec]
    if combine:
        inputs += [yn, gprev, half]
        in_specs += [img_spec, img_spec,
                     pl.BlockSpec(memory_space=pltpu.MemorySpace.SMEM)]
    inputs += [se_w1, se_w2]
    in_specs += [pl.BlockSpec(se_w1.shape, lambda b: (0, 0)),
                 pl.BlockSpec(se_w2.shape, lambda b: (0, 0))]

    return pl.pallas_call(
        kernel,
        out_shape=jax.ShapeDtypeStruct((B, HW, C), F32),
        grid=(B,),
        in_specs=in_specs,
        out_specs=img_spec,
        compiler_params=pltpu.CompilerParams(
            dimension_semantics=("parallel",),
            vmem_limit_bytes=_vmem_limit()),
    )(*inputs)


# ----------------------------- module assembly -----------------------------
def _conv_tap_masks(H, W):
    # 0/1 validity per output pixel for each of the 9 conv taps (zero padding).
    ii, jj = jnp.meshgrid(jnp.arange(H), jnp.arange(W), indexing="ij")
    cols = []
    for dy in (-1, 0, 1):
        for dx in (-1, 0, 1):
            valid = ((ii + dy >= 0) & (ii + dy < H) &
                     (jj + dx >= 0) & (jj + dx < W))
            cols.append(valid.reshape(H * W).astype(F32))
    return jnp.stack(cols, axis=-1)               # (HW, 9)


def _group_im2col(w_hwio, group_widths):
    """(3,3,c,G) HWIO weight -> rows ordered group-major / tap / channel,
    matching K1's incrementally-built patch buffer."""
    _, _, c, G = w_hwio.shape
    w9 = w_hwio.reshape(9, c, G)
    pieces, off = [], 0
    for wg in group_widths:
        pieces.append(w9[:, off:off + wg, :].reshape(9 * wg, G))
        off += wg
    return jnp.concatenate(pieces, axis=0)        # (9c, G)


def rdb_forward(x_nchw, params, dual_attention=True):
    B, C, H, W = x_nchw.shape
    HW = H * W
    x = jnp.transpose(x_nchw, (0, 2, 3, 1)).reshape(B, HW, C).astype(F32)
    mask = _conv_tap_masks(H, W)

    if dual_attention:
        def branch(residual, yn=None, gprev=None):
            f, gproj = dense_lff_g(x, residual, mask, params['dense'],
                                   params['lff_w'], params['lff_b'],
                                   (params['g_w'], params['g_b']), H, W)
            z = nonlocal_wproj(f, gproj, params['W_w'], params['W_b'], HW)
            return se_scale(z, params['se_w1'], params['se_w2'],
                            yn=yn, gprev=gprev,
                            half=params['one_half'] if yn is not None else None)

        G_yn = branch(None)
        out = branch(G_yn, yn=x, gprev=G_yn)       # fused final combine
    else:
        out = dense_lff_g(x, None, mask, params['dense'],
                          params['lff_w'], params['lff_b'],
                          None, H, W, add_input=True)   # fused yn + LFF(...)

    return jnp.transpose(out.reshape(B, H, W, C), (0, 3, 1, 2))  # -> NCHW


def init_params(key, in_channels, growth_rate, num_layers):
    # Deterministic synthetic parameters (same shapes/roles as the PyTorch
    # module).  Matmul weights are pre-permuted to the grouped im2col layout
    # and pre-cast to bf16 (f32 accumulation in-kernel); biases stay f32.
    keys = iter(jax.random.split(key, 2 * num_layers + 12))
    dense = []
    c = in_channels
    for i in range(num_layers):
        w = 0.05 * jax.random.normal(next(keys), (3, 3, c, growth_rate), F32)
        b = 0.05 * jax.random.normal(next(keys), (growth_rate,), F32)
        widths = [in_channels] + [growth_rate] * i
        dense.append((_group_im2col(w, widths).astype(BF16), b.reshape(1, -1)))
        c += growth_rate
    params = {'dense': dense}
    params['lff_w'] = (0.05 * jax.random.normal(next(keys),
                                                (c, in_channels), F32)).astype(BF16)
    params['lff_b'] = (0.05 * jax.random.normal(next(keys),
                                                (in_channels,), F32)).reshape(1, -1)
    inter = in_channels // 2
    params['g_w'] = (0.05 * jax.random.normal(next(keys),
                                              (in_channels, inter), F32)).astype(BF16)
    params['g_b'] = (0.05 * jax.random.normal(next(keys),
                                              (inter,), F32)).reshape(1, -1)
    params['W_w'] = (0.05 * jax.random.normal(next(keys),
                                              (inter, in_channels), F32)).astype(BF16)
    params['W_b'] = (0.05 * jax.random.normal(next(keys),
                                              (in_channels,), F32)).reshape(1, -1)
    red = in_channels // 8       # SELayer(in_channels, reduction=8), bias=False
    params['se_w1'] = (0.1 * jax.random.normal(next(keys),
                                               (in_channels, red), F32)).astype(BF16)
    params['se_w2'] = (0.1 * jax.random.normal(next(keys),
                                               (red, in_channels), F32)).astype(BF16)
    params['one_half'] = jnp.array([0.5], F32)
    # NOTE: NonLocalBlock2D.theta / .phi convs exist in __init__ but are never
    # used in the reference forward, so they are intentionally omitted here.
    return params


if __name__ == "__main__":
    key = jax.random.PRNGKey(0)
    kx, kp = jax.random.split(key)
    B, C, H, W = 2, 16, 8, 8          # C divisible by 2 (nonlocal) and 8 (SE)
    growth_rate, num_layers = 8, 3
    x = jax.random.normal(kx, (B, C, H, W), F32)   # NCHW, like the PyTorch ref
    params = init_params(kp, C, growth_rate, num_layers)

    out = jax.jit(lambda v: rdb_forward(v, params, dual_attention=True))(x)
    out = jax.block_until_ready(out)
    assert out.shape == (B, C, H, W) and out.dtype == F32
    assert bool(jnp.all(jnp.isfinite(out)))

    out2 = jax.jit(lambda v: rdb_forward(v, params, dual_attention=False))(x)
    out2 = jax.block_until_ready(out2)
    assert out2.shape == (B, C, H, W) and out2.dtype == F32
    assert bool(jnp.all(jnp.isfinite(out2)))

    print("KERNEL_OK")
</pallas_src>

<mosaic_0001>
module attributes {stable_mosaic.version = 11 : i64} {
  func.func @kernel(%arg0: i32, %arg1: memref<1x64x16xf32, #tpu.memory_space<vmem>>, %arg2: memref<16x2xbf16, #tpu.memory_space<vmem>>, %arg3: memref<2x16xbf16, #tpu.memory_space<vmem>>, %arg4: memref<1x64x16xf32, #tpu.memory_space<vmem>>) attributes {dimension_semantics = [#tpu.dimension_semantics<parallel>], iteration_bounds = array<i64: 2>, scalar_prefetch = 0 : i64, scratch_operands = 0 : i64, tpu.core_type = #tpu.core_type<tc>, window_params = [{transform_indices = @transform_0, window_bounds = array<i64: 1, 64, 16>}, {pipeline_mode = #tpu.pipeline_mode<synchronous>, transform_indices = @transform_1, window_bounds = array<i64: 16, 2>}, {pipeline_mode = #tpu.pipeline_mode<synchronous>, transform_indices = @transform_2, window_bounds = array<i64: 2, 16>}, {transform_indices = @transform_3, window_bounds = array<i64: 1, 64, 16>}]} {
    %c0 = arith.constant 0 : index
    %c0_0 = arith.constant 0 : index
    %c0_1 = arith.constant 0 : index
    %0 = vector.load %arg1[%c0, %c0_0, %c0_1] : memref<1x64x16xf32, #tpu.memory_space<vmem>>, vector<1x64x16xf32>
    %1 = vector.shape_cast %0 : vector<1x64x16xf32> to vector<64x16xf32>
    %cst = arith.constant dense<0.000000e+00> : vector<16xf32>
    %2 = vector.multi_reduction <add>, %1, %cst [0] : vector<64x16xf32> to vector<16xf32>
    %3 = vector.shape_cast %2 : vector<16xf32> to vector<1x16xf32>
    %cst_2 = arith.constant 6.400000e+01 : f32
    %4 = vector.broadcast %cst_2 : f32 to vector<1x16xf32>
    %5 = arith.divf %3, %4 : vector<1x16xf32>
    %6 = arith.truncf %5 : vector<1x16xf32> to vector<1x16xbf16>
    %c0_3 = arith.constant 0 : index
    %c0_4 = arith.constant 0 : index
    %7 = vector.load %arg2[%c0_3, %c0_4] : memref<16x2xbf16, #tpu.memory_space<vmem>>, vector<16x2xbf16>
    %cst_5 = arith.constant dense<0.000000e+00> : vector<1x2xf32>
    %8 = tpu.matmul %6, %7, %cst_5 {dimension_numbers = #tpu.dot_dimension_numbers<[1], [0], [0], [1], [0, 0, 1, 1], [], []>} : vector<1x16xbf16>, vector<16x2xbf16>, vector<1x2xf32> -> vector<1x2xf32>
    %cst_6 = arith.constant 0.000000e+00 : f32
    %9 = vector.broadcast %cst_6 : f32 to vector<1x2xf32>
    %10 = arith.maximumf %8, %9 : vector<1x2xf32>
    %11 = arith.truncf %10 : vector<1x2xf32> to vector<1x2xbf16>
    %c0_7 = arith.constant 0 : index
    %c0_8 = arith.constant 0 : index
    %12 = vector.load %arg3[%c0_7, %c0_8] : memref<2x16xbf16, #tpu.memory_space<vmem>>, vector<2x16xbf16>
    %cst_9 = arith.constant dense<0.000000e+00> : vector<1x16xf32>
    %13 = tpu.matmul %11, %12, %cst_9 {dimension_numbers = #tpu.dot_dimension_numbers<[1], [0], [0], [1], [0, 0, 1, 1], [], []>} : vector<1x2xbf16>, vector<2x16xbf16>, vector<1x16xf32> -> vector<1x16xf32>
    %14 = arith.negf %13 : vector<1x16xf32>
    %15 = math.exp %14 : vector<1x16xf32>
    %cst_10 = arith.constant 1.000000e+00 : f32
    %16 = vector.broadcast %cst_10 : f32 to vector<1x16xf32>
    %17 = arith.addf %16, %15 : vector<1x16xf32>
    %18 = arith.divf %16, %17 : vector<1x16xf32>
    %19 = vector.broadcast %18 : vector<1x16xf32> to vector<64x16xf32>
    %20 = arith.mulf %1, %19 : vector<64x16xf32>
    %c0_11 = arith.constant 0 : index
    %c0_12 = arith.constant 0 : index
    %c0_13 = arith.constant 0 : index
    %21 = vector.load %arg4[%c0_11, %c0_12, %c0_13] : memref<1x64x16xf32, #tpu.memory_space<vmem>>, vector<1x64x16xf32>
    %22 = vector.shape_cast %21 : vector<1x64x16xf32> to vector<64x16xf32>
    %23 = vector.shape_cast %20 : vector<64x16xf32> to vector<1x64x16xf32>
    tpu.vector_store %arg4[%c0_11, %c0_12, %c0_13], %23 {strides = array<i32>} : memref<1x64x16xf32, #tpu.memory_space<vmem>>, vector<1x64x16xf32>,
    return
  }
  func.func @transform_0(%arg0: i32) -> (i32, i32, i32) {
    %c0_i32 = arith.constant 0 : i32
    %c0_i32_0 = arith.constant 0 : i32
    %c0_i32_1 = arith.constant 0 : i32
    return %arg0, %c0_i32, %c0_i32_0 : i32, i32, i32
  }
  func.func @transform_1(%arg0: i32) -> (i32, i32) {
    %c0_i32 = arith.constant 0 : i32
    %c0_i32_0 = arith.constant 0 : i32
    %c0_i32_1 = arith.constant 0 : i32
    return %c0_i32, %c0_i32_0 : i32, i32
  }
  func.func @transform_2(%arg0: i32) -> (i32, i32) {
    %c0_i32 = arith.constant 0 : i32
    %c0_i32_0 = arith.constant 0 : i32
    %c0_i32_1 = arith.constant 0 : i32
    return %c0_i32, %c0_i32_0 : i32, i32
  }
  func.func @transform_3(%arg0: i32) -> (i32, i32, i32) {
    %c0_i32 = arith.constant 0 : i32
    %c0_i32_0 = arith.constant 0 : i32
    %c0_i32_1 = arith.constant 0 : i32
    return %arg0, %c0_i32, %c0_i32_0 : i32, i32, i32
  }
}

module attributes {stable_mosaic.version = 11 : i64} {
  func.func @kernel(%arg0: i32, %arg1: i32, %arg2: i32, %arg3: memref<1x64x16xbf16, #tpu.memory_space<vmem>>, %arg4: memref<1x64x16xbf16, #tpu.memory_space<vmem>>, %arg5: memref<1x64x8xbf16, #tpu.memory_space<vmem>>, %arg6: memref<8x16xbf16, #tpu.memory_space<vmem>>, %arg7: memref<1x16xf32, #tpu.memory_space<vmem>>, %arg8: memref<1x64x16xf32, #tpu.memory_space<vmem>>, %arg9: memref<64x1xf32, #tpu.memory_space<vmem>>, %arg10: memref<64x1xf32, #tpu.memory_space<vmem>>, %arg11: memref<64x8xf32, #tpu.memory_space<vmem>>) attributes {dimension_semantics = [#tpu.dimension_semantics<parallel>, #tpu.dimension_semantics<parallel>, #tpu.dimension_semantics<arbitrary>], iteration_bounds = array<i64: 2, 1, 1>, scalar_prefetch = 0 : i64, scratch_operands = 3 : i64, tpu.core_type = #tpu.core_type<tc>, window_params = [{transform_indices = @transform_0, window_bounds = array<i64: 1, 64, 16>}, {transform_indices = @transform_1, window_bounds = array<i64: 1, 64, 16>}, {transform_indices = @transform_2, window_bounds = array<i64: 1, 64, 8>}, {pipeline_mode = #tpu.pipeline_mode<synchronous>, transform_indices = @transform_3, window_bounds = array<i64: 8, 16>}, {pipeline_mode = #tpu.pipeline_mode<synchronous>, transform_indices = @transform_4, window_bounds = array<i64: 1, 16>}, {transform_indices = @transform_5, window_bounds = array<i64: 1, 64, 16>}]} {
    %c0_i32 = arith.constant 0 : i32
    %0 = arith.cmpi eq, %arg2, %c0_i32 : i32
    %1 = arith.extui %0 : i1 to i32
    %c0_i32_0 = arith.constant 0 : i32
    %2 = arith.cmpi ne, %1, %c0_i32_0 : i32
    scf.if %2 {
      %cst_26 = arith.constant 0xFF800000 : f32
      %37 = vector.broadcast %cst_26 : f32 to vector<64x1xf32>
      %c0_27 = arith.constant 0 : index
      %c0_28 = arith.constant 0 : index
      %38 = vector.load %arg9[%c0_27, %c0_28] : memref<64x1xf32, #tpu.memory_space<vmem>>, vector<64x1xf32>
      tpu.vector_store %arg9[%c0_27, %c0_28], %37 {strides = array<i32>} : memref<64x1xf32, #tpu.memory_space<vmem>>, vector<64x1xf32>,
      %cst_29 = arith.constant 0.000000e+00 : f32
      %39 = vector.broadcast %cst_29 : f32 to vector<64x1xf32>
      %c0_30 = arith.constant 0 : index
      %c0_31 = arith.constant 0 : index
      %40 = vector.load %arg10[%c0_30, %c0_31] : memref<64x1xf32, #tpu.memory_space<vmem>>, vector<64x1xf32>
      tpu.vector_store %arg10[%c0_30, %c0_31], %39 {strides = array<i32>} : memref<64x1xf32, #tpu.memory_space<vmem>>, vector<64x1xf32>,
      %cst_32 = arith.constant 0.000000e+00 : f32
      %41 = vector.broadcast %cst_32 : f32 to vector<64x8xf32>
      %c0_33 = arith.constant 0 : index
      %c0_34 = arith.constant 0 : index
      %42 = vector.load %arg11[%c0_33, %c0_34] : memref<64x8xf32, #tpu.memory_space<vmem>>, vector<64x8xf32>
      tpu.vector_store %arg11[%c0_33, %c0_34], %41 {strides = array<i32>} : memref<64x8xf32, #tpu.memory_space<vmem>>, vector<64x8xf32>,
    } else {
    }
    %c0 = arith.constant 0 : index
    %c0_1 = arith.constant 0 : index
    %c0_2 = arith.constant 0 : index
    %3 = vector.load %arg3[%c0, %c0_1, %c0_2] : memref<1x64x16xbf16, #tpu.memory_space<vmem>>, vector<1x64x16xbf16>
    %4 = vector.shape_cast %3 : vector<1x64x16xbf16> to vector<64x16xbf16>
    %c0_3 = arith.constant 0 : index
    %c0_4 = arith.constant 0 : index
    %c0_5 = arith.constant 0 : index
    %5 = vector.load %arg4[%c0_3, %c0_4, %c0_5] : memref<1x64x16xbf16, #tpu.memory_space<vmem>>, vector<1x64x16xbf16>
    %6 = vector.shape_cast %5 : vector<1x64x16xbf16> to vector<64x16xbf16>
    %cst = arith.constant dense<0.000000e+00> : vector<64x64xf32>
    %7 = tpu.matmul %4, %6, %cst {dimension_numbers = #tpu.dot_dimension_numbers<[1], [1], [0], [0], [0, 0, 1, 0], [], []>} : vector<64x16xbf16>, vector<64x16xbf16>, vector<64x64xf32> -> vector<64x64xf32>
    %c0_6 = arith.constant 0 : index
    %c0_7 = arith.constant 0 : index
    %8 = vector.load %arg9[%c0_6, %c0_7] : memref<64x1xf32, #tpu.memory_space<vmem>>, vector<64x1xf32>
    %cst_8 = arith.constant dense<0xFF800000> : vector<64xf32>
    %9 = vector.multi_reduction <maximumf>, %7, %cst_8 [1] : vector<64x64xf32> to vector<64xf32>
    %10 = vector.shape_cast %9 : vector<64xf32> to vector<64x1xf32>
    %11 = arith.maximumf %8, %10 : vector<64x1xf32>
    %12 = arith.subf %8, %11 : vector<64x1xf32>
    %13 = math.exp %12 : vector<64x1xf32>
    %14 = vector.broadcast %11 : vector<64x1xf32> to vector<64x64xf32>
    %15 = arith.subf %7, %14 : vector<64x64xf32>
    %16 = arith.truncf %15 : vector<64x64xf32> to vector<64x64xbf16>
    %17 = math.exp %16 : vector<64x64xbf16>
    %c0_9 = arith.constant 0 : index
    %c0_10 = arith.constant 0 : index
    %18 = vector.load %arg10[%c0_9, %c0_10] : memref<64x1xf32, #tpu.memory_space<vmem>>, vector<64x1xf32>
    %19 = arith.mulf %13, %18 : vector<64x1xf32>
    %20 = arith.extf %17 : vector<64x64xbf16> to vector<64x64xf32>
    %cst_11 = arith.constant dense<0.000000e+00> : vector<64xf32>
    %21 = vector.multi_reduction <add>, %20, %cst_11 [1] : vector<64x64xf32> to vector<64xf32>
    %22 = vector.shape_cast %21 : vector<64xf32> to vector<64x1xf32>
    %23 = arith.addf %19, %22 : vector<64x1xf32>
    %c0_12 = arith.constant 0 : index
    %c0_13 = arith.constant 0 : index
    %24 = vector.load %arg10[%c0_12, %c0_13] : memref<64x1xf32, #tpu.memory_space<vmem>>, vector<64x1xf32>
    tpu.vector_store %arg10[%c0_12, %c0_13], %23 {strides = array<i32>} : memref<64x1xf32, #tpu.memory_space<vmem>>, vector<64x1xf32>,
    %c0_14 = arith.constant 0 : index
    %c0_15 = arith.constant 0 : index
    %25 = vector.load %arg11[%c0_14, %c0_15] : memref<64x8xf32, #tpu.memory_space<vmem>>, vector<64x8xf32>
    %26 = vector.broadcast %13 : vector<64x1xf32> to vector<64x8xf32>
    %27 = arith.mulf %26, %25 : vector<64x8xf32>
    %c0_16 = arith.constant 0 : index
    %c0_17 = arith.constant 0 : index
    %c0_18 = arith.constant 0 : index
    %28 = vector.load %arg5[%c0_16, %c0_17, %c0_18] : memref<1x64x8xbf16, #tpu.memory_space<vmem>>, vector<1x64x8xbf16>
    %29 = vector.shape_cast %28 : vector<1x64x8xbf16> to vector<64x8xbf16>
    %cst_19 = arith.constant dense<0.000000e+00> : vector<64x8xf32>
    %30 = tpu.matmul %17, %29, %cst_19 {dimension_numbers = #tpu.dot_dimension_numbers<[1], [0], [0], [1], [0, 0, 1, 1], [], []>} : vector<64x64xbf16>, vector<64x8xbf16>, vector<64x8xf32> -> vector<64x8xf32>
    %31 = arith.addf %27, %30 : vector<64x8xf32>
    %c0_20 = arith.constant 0 : index
    %c0_21 = arith.constant 0 : index
    %32 = vector.load %arg11[%c0_20, %c0_21] : memref<64x8xf32, #tpu.memory_space<vmem>>, vector<64x8xf32>
    tpu.vector_store %arg11[%c0_20, %c0_21], %31 {strides = array<i32>} : memref<64x8xf32, #tpu.memory_space<vmem>>, vector<64x8xf32>,
    %c0_22 = arith.constant 0 : index
    %c0_23 = arith.constant 0 : index
    %33 = vector.load %arg9[%c0_22, %c0_23] : memref<64x1xf32, #tpu.memory_space<vmem>>, vector<64x1xf32>
    tpu.vector_store %arg9[%c0_22, %c0_23], %11 {strides = array<i32>} : memref<64x1xf32, #tpu.memory_space<vmem>>, vector<64x1xf32>,
    %c0_i32_24 = arith.constant 0 : i32
    %34 = arith.cmpi eq, %arg2, %c0_i32_24 : i32
    %35 = arith.extui %34 : i1 to i32
    %c0_i32_25 = arith.constant 0 : i32
    %36 = arith.cmpi ne, %35, %c0_i32_25 : i32
    scf.if %36 {
      %c0_26 = arith.constant 0 : index
      %c0_27 = arith.constant 0 : index
      %37 = vector.load %arg11[%c0_26, %c0_27] : memref<64x8xf32, #tpu.memory_space<vmem>>, vector<64x8xf32>
      %c0_28 = arith.constant 0 : index
      %c0_29 = arith.constant 0 : index
      %38 = vector.load %arg10[%c0_28, %c0_29] : memref<64x1xf32, #tpu.memory_space<vmem>>, vector<64x1xf32>
      %39 = tpu.reciprocal %38 : vector<64x1xf32> -> vector<64x1xf32>
      %40 = vector.broadcast %39 : vector<64x1xf32> to vector<64x8xf32>
      %41 = arith.mulf %37, %40 : vector<64x8xf32>
      %42 = arith.truncf %41 : vector<64x8xf32> to vector<64x8xbf16>
      %c0_30 = arith.constant 0 : index
      %c0_31 = arith.constant 0 : index
      %43 = vector.load %arg6[%c0_30, %c0_31] : memref<8x16xbf16, #tpu.memory_space<vmem>>, vector<8x16xbf16>
      %cst_32 = arith.constant dense<0.000000e+00> : vector<64x16xf32>
      %44 = tpu.matmul %42, %43, %cst_32 {dimension_numbers = #tpu.dot_dimension_numbers<[1], [0], [0], [1], [0, 0, 1, 1], [], []>} : vector<64x8xbf16>, vector<8x16xbf16>, vector<64x16xf32> -> vector<64x16xf32>
      %c0_33 = arith.constant 0 : index
      %c0_34 = arith.constant 0 : index
      %45 = vector.load %arg7[%c0_33, %c0_34] : memref<1x16xf32, #tpu.memory_space<vmem>>, vector<1x16xf32>
      %46 = vector.broadcast %45 : vector<1x16xf32> to vector<64x16xf32>
      %47 = arith.addf %44, %46 : vector<64x16xf32>
      %c0_35 = arith.constant 0 : index
      %c0_36 = arith.constant 0 : index
      %c0_37 = arith.constant 0 : index
      %48 = vector.load %arg3[%c0_35, %c0_36, %c0_37] : memref<1x64x16xbf16, #tpu.memory_space<vmem>>, vector<1x64x16xbf16>
      %49 = vector.shape_cast %48 : vector<1x64x16xbf16> to vector<64x16xbf16>
      %50 = arith.extf %49 : vector<64x16xbf16> to vector<64x16xf32>
      %51 = arith.addf %47, %50 : vector<64x16xf32>
      %c0_38 = arith.constant 0 : index
      %c0_39 = arith.constant 0 : index
      %c0_40 = arith.constant 0 : index
      %52 = vector.load %arg8[%c0_38, %c0_39, %c0_40] : memref<1x64x16xf32, #tpu.memory_space<vmem>>, vector<1x64x16xf32>
      %53 = vector.shape_cast %52 : vector<1x64x16xf32> to vector<64x16xf32>
      %54 = vector.shape_cast %51 : vector<64x16xf32> to vector<1x64x16xf32>
      tpu.vector_store %arg8[%c0_38, %c0_39, %c0_40], %54 {strides = array<i32>} : memref<1x64x16xf32, #tpu.memory_space<vmem>>, vector<1x64x16xf32>,
    } else {
    }
    return
  }
  func.func @transform_0(%arg0: i32, %arg1: i32, %arg2: i32) -> (i32, i32, i32) {
    %c0_i32 = arith.constant 0 : i32
    %c0_i32_0 = arith.constant 0 : i32
    return %arg0, %arg1, %c0_i32 : i32, i32, i32
  }
  func.func @transform_1(%arg0: i32, %arg1: i32, %arg2: i32) -> (i32, i32, i32) {
    %c0_i32 = arith.constant 0 : i32
    %c0_i32_0 = arith.constant 0 : i32
    return %arg0, %arg2, %c0_i32 : i32, i32, i32
  }
  func.func @transform_2(%arg0: i32, %arg1: i32, %arg2: i32) -> (i32, i32, i32) {
    %c0_i32 = arith.constant 0 : i32
    %c0_i32_0 = arith.constant 0 : i32
    return %arg0, %arg2, %c0_i32 : i32, i32, i32
  }
  func.func @transform_3(%arg0: i32, %arg1: i32, %arg2: i32) -> (i32, i32) {
    %c0_i32 = arith.constant 0 : i32
    %c0_i32_0 = arith.constant 0 : i32
    %c0_i32_1 = arith.constant 0 : i32
    return %c0_i32, %c0_i32_0 : i32, i32
  }
  func.func @transform_4(%arg0: i32, %arg1: i32, %arg2: i32) -> (i32, i32) {
    %c0_i32 = arith.constant 0 : i32
    %c0_i32_0 = arith.constant 0 : i32
    %c0_i32_1 = arith.constant 0 : i32
    return %c0_i32, %c0_i32_0 : i32, i32
  }
  func.func @transform_5(%arg0: i32, %arg1: i32, %arg2: i32) -> (i32, i32, i32) {
    %c0_i32 = arith.constant 0 : i32
    %c0_i32_0 = arith.constant 0 : i32
    return %arg0, %arg1, %c0_i32 : i32, i32, i32
  }
}

module attributes {stable_mosaic.version = 11 : i64} {
  func.func @kernel(%arg0: i32, %arg1: memref<1x64x16xf32, #tpu.memory_space<vmem>>, %arg2: memref<64x9xf32, #tpu.memory_space<vmem>>, %arg3: memref<144x8xbf16, #tpu.memory_space<vmem>>, %arg4: memref<1x8xf32, #tpu.memory_space<vmem>>, %arg5: memref<216x8xbf16, #tpu.memory_space<vmem>>, %arg6: memref<1x8xf32, #tpu.memory_space<vmem>>, %arg7: memref<288x8xbf16, #tpu.memory_space<vmem>>, %arg8: memref<1x8xf32, #tpu.memory_space<vmem>>, %arg9: memref<40x16xbf16, #tpu.memory_space<vmem>>, %arg10: memref<1x16xf32, #tpu.memory_space<vmem>>, %arg11: memref<16x8xbf16, #tpu.memory_space<vmem>>, %arg12: memref<1x8xf32, #tpu.memory_space<vmem>>, %arg13: memref<1x64x16xbf16, #tpu.memory_space<vmem>>, %arg14: memref<1x64x8xbf16, #tpu.memory_space<vmem>>) attributes {dimension_semantics = [#tpu.dimension_semantics<parallel>], iteration_bounds = array<i64: 2>, scalar_prefetch = 0 : i64, scratch_operands = 0 : i64, tpu.core_type = #tpu.core_type<tc>, window_params = [{transform_indices = @transform_0, window_bounds = array<i64: 1, 64, 16>}, {pipeline_mode = #tpu.pipeline_mode<synchronous>, transform_indices = @transform_1, window_bounds = array<i64: 64, 9>}, {pipeline_mode = #tpu.pipeline_mode<synchronous>, transform_indices = @transform_2, window_bounds = array<i64: 144, 8>}, {pipeline_mode = #tpu.pipeline_mode<synchronous>, transform_indices = @transform_3, window_bounds = array<i64: 1, 8>}, {pipeline_mode = #tpu.pipeline_mode<synchronous>, transform_indices = @transform_4, window_bounds = array<i64: 216, 8>}, {pipeline_mode = #tpu.pipeline_mode<synchronous>, transform_indices = @transform_5, window_bounds = array<i64: 1, 8>}, {pipeline_mode = #tpu.pipeline_mode<synchronous>, transform_indices = @transform_6, window_bounds = array<i64: 288, 8>}, {pipeline_mode = #tpu.pipeline_mode<synchronous>, transform_indices = @transform_7, window_bounds = array<i64: 1, 8>}, {pipeline_mode = #tpu.pipeline_mode<synchronous>, transform_indices = @transform_8, window_bounds = array<i64: 40, 16>}, {pipeline_mode = #tpu.pipeline_mode<synchronous>, transform_indices = @transform_9, window_bounds = array<i64: 1, 16>}, {pipeline_mode = #tpu.pipeline_mode<synchronous>, transform_indices = @transform_10, window_bounds = array<i64: 16, 8>}, {pipeline_mode = #tpu.pipeline_mode<synchronous>, transform_indices = @transform_11, window_bounds = array<i64: 1, 8>}, {transform_indices = @transform_12, window_bounds = array<i64: 1, 64, 16>}, {transform_indices = @transform_13, window_bounds = array<i64: 1, 64, 8>}]} {
    %c0 = arith.constant 0 : index
    %c0_0 = arith.constant 0 : index
    %c0_1 = arith.constant 0 : index
    %0 = vector.load %arg1[%c0, %c0_0, %c0_1] : memref<1x64x16xf32, #tpu.memory_space<vmem>>, vector<1x64x16xf32>
    %1 = vector.shape_cast %0 : vector<1x64x16xf32> to vector<64x16xf32>
    %c0_2 = arith.constant 0 : index
    %c0_3 = arith.constant 0 : index
    %2 = vector.load %arg2[%c0_2, %c0_3] : memref<64x9xf32, #tpu.memory_space<vmem>>, vector<64x9xf32>
    %3 = vector.extract_strided_slice %2 {offsets = [0, 0], sizes = [64, 1], strides = [1, 1]} : vector<64x9xf32> to vector<64x1xf32>
    %4 = vector.extract_strided_slice %2 {offsets = [0, 1], sizes = [64, 1], strides = [1, 1]} : vector<64x9xf32> to vector<64x1xf32>
    %5 = vector.extract_strided_slice %2 {offsets = [0, 2], sizes = [64, 1], strides = [1, 1]} : vector<64x9xf32> to vector<64x1xf32>
    %6 = vector.extract_strided_slice %2 {offsets = [0, 3], sizes = [64, 1], strides = [1, 1]} : vector<64x9xf32> to vector<64x1xf32>
    %7 = vector.extract_strided_slice %2 {offsets = [0, 5], sizes = [64, 1], strides = [1, 1]} : vector<64x9xf32> to vector<64x1xf32>
    %8 = vector.extract_strided_slice %2 {offsets = [0, 6], sizes = [64, 1], strides = [1, 1]} : vector<64x9xf32> to vector<64x1xf32>
    %9 = vector.extract_strided_slice %2 {offsets = [0, 7], sizes = [64, 1], strides = [1, 1]} : vector<64x9xf32> to vector<64x1xf32>
    %10 = vector.extract_strided_slice %2 {offsets = [0, 8], sizes = [64, 1], strides = [1, 1]} : vector<64x9xf32> to vector<64x1xf32>
    %c9_i32 = arith.constant 9 : i32
    %11 = tpu.dynamic_rotate %1 by %c9_i32 dim 0 : vector<64x16xf32>, i32 -> vector<64x16xf32>
    %12 = vector.broadcast %3 : vector<64x1xf32> to vector<64x16xf32>
    %13 = arith.mulf %11, %12 : vector<64x16xf32>
    %14 = arith.truncf %13 : vector<64x16xf32> to vector<64x16xbf16>
    %c8_i32 = arith.constant 8 : i32
    %15 = tpu.dynamic_rotate %1 by %c8_i32 dim 0 : vector<64x16xf32>, i32 -> vector<64x16xf32>
    %16 = vector.broadcast %4 : vector<64x1xf32> to vector<64x16xf32>
    %17 = arith.mulf %15, %16 : vector<64x16xf32>
    %18 = arith.truncf %17 : vector<64x16xf32> to vector<64x16xbf16>
    %c7_i32 = arith.constant 7 : i32
    %19 = tpu.dynamic_rotate %1 by %c7_i32 dim 0 : vector<64x16xf32>, i32 -> vector<64x16xf32>
    %20 = vector.broadcast %5 : vector<64x1xf32> to vector<64x16xf32>
    %21 = arith.mulf %19, %20 : vector<64x16xf32>
    %22 = arith.truncf %21 : vector<64x16xf32> to vector<64x16xbf16>
    %c1_i32 = arith.constant 1 : i32
    %23 = tpu.dynamic_rotate %1 by %c1_i32 dim 0 : vector<64x16xf32>, i32 -> vector<64x16xf32>
    %24 = vector.broadcast %6 : vector<64x1xf32> to vector<64x16xf32>
    %25 = arith.mulf %23, %24 : vector<64x16xf32>
    %26 = arith.truncf %25 : vector<64x16xf32> to vector<64x16xbf16>
    %27 = arith.truncf %1 : vector<64x16xf32> to vector<64x16xbf16>
    %c63_i32 = arith.constant 63 : i32
    %28 = tpu.dynamic_rotate %1 by %c63_i32 dim 0 : vector<64x16xf32>, i32 -> vector<64x16xf32>
    %29 = vector.broadcast %7 : vector<64x1xf32> to vector<64x16xf32>
    %30 = arith.mulf %28, %29 : vector<64x16xf32>
    %31 = arith.truncf %30 : vector<64x16xf32> to vector<64x16xbf16>
    %c57_i32 = arith.constant 57 : i32
    %32 = tpu.dynamic_rotate %1 by %c57_i32 dim 0 : vector<64x16xf32>, i32 -> vector<64x16xf32>
    %33 = vector.broadcast %8 : vector<64x1xf32> to vector<64x16xf32>
    %34 = arith.mulf %32, %33 : vector<64x16xf32>
    %35 = arith.truncf %34 : vector<64x16xf32> to vector<64x16xbf16>
    %c56_i32 = arith.constant 56 : i32
    %36 = tpu.dynamic_rotate %1 by %c56_i32 dim 0 : vector<64x16xf32>, i32 -> vector<64x16xf32>
    %37 = vector.broadcast %9 : vector<64x1xf32> to vector<64x16xf32>
    %38 = arith.mulf %36, %37 : vector<64x16xf32>
    %39 = arith.truncf %38 : vector<64x16xf32> to vector<64x16xbf16>
    %c55_i32 = arith.constant 55 : i32
    %40 = tpu.dynamic_rotate %1 by %c55_i32 dim 0 : vector<64x16xf32>, i32 -> vector<64x16xf32>
    %41 = vector.broadcast %10 : vector<64x1xf32> to vector<64x16xf32>
    %42 = arith.mulf %40, %41 : vector<64x16xf32>
    %43 = arith.truncf %42 : vector<64x16xf32> to vector<64x16xbf16>
    %44 = tpu.concatenate %14, %18, %22, %26, %27, %31, %35, %39, %43 in 1 : vector<64x16xbf16>, vector<64x16xbf16>, vector<64x16xbf16>, vector<64x16xbf16>, vector<64x16xbf16>, vector<64x16xbf16>, vector<64x16xbf16>, vector<64x16xbf16>, vector<64x16xbf16> -> vector<64x144xbf16>
    %45 = arith.truncf %1 : vector<64x16xf32> to vector<64x16xbf16>
    %c0_4 = arith.constant 0 : index
    %c0_5 = arith.constant 0 : index
    %46 = vector.load %arg3[%c0_4, %c0_5] : memref<144x8xbf16, #tpu.memory_space<vmem>>, vector<144x8xbf16>
    %cst = arith.constant dense<0.000000e+00> : vector<64x8xf32>
    %47 = tpu.matmul %44, %46, %cst {dimension_numbers = #tpu.dot_dimension_numbers<[1], [0], [0], [1], [0, 0, 1, 1], [], []>} : vector<64x144xbf16>, vector<144x8xbf16>, vector<64x8xf32> -> vector<64x8xf32>
    %c0_6 = arith.constant 0 : index
    %c0_7 = arith.constant 0 : index
    %48 = vector.load %arg4[%c0_6, %c0_7] : memref<1x8xf32, #tpu.memory_space<vmem>>, vector<1x8xf32>
    %49 = vector.broadcast %48 : vector<1x8xf32> to vector<64x8xf32>
    %50 = arith.addf %47, %49 : vector<64x8xf32>
    %cst_8 = arith.constant 0.000000e+00 : f32
    %51 = vector.broadcast %cst_8 : f32 to vector<64x8xf32>
    %52 = arith.maximumf %50, %51 : vector<64x8xf32>
    %53 = arith.truncf %52 : vector<64x8xf32> to vector<64x8xbf16>
    %c9_i32_9 = arith.constant 9 : i32
    %54 = tpu.dynamic_rotate %52 by %c9_i32_9 dim 0 : vector<64x8xf32>, i32 -> vector<64x8xf32>
    %55 = vector.broadcast %3 : vector<64x1xf32> to vector<64x8xf32>
    %56 = arith.mulf %54, %55 : vector<64x8xf32>
    %57 = arith.truncf %56 : vector<64x8xf32> to vector<64x8xbf16>
    %c8_i32_10 = arith.constant 8 : i32
    %58 = tpu.dynamic_rotate %52 by %c8_i32_10 dim 0 : vector<64x8xf32>, i32 -> vector<64x8xf32>
    %59 = vector.broadcast %4 : vector<64x1xf32> to vector<64x8xf32>
    %60 = arith.mulf %58, %59 : vector<64x8xf32>
    %61 = arith.truncf %60 : vector<64x8xf32> to vector<64x8xbf16>
    %c7_i32_11 = arith.constant 7 : i32
    %62 = tpu.dynamic_rotate %52 by %c7_i32_11 dim 0 : vector<64x8xf32>, i32 -> vector<64x8xf32>
    %63 = vector.broadcast %5 : vector<64x1xf32> to vector<64x8xf32>
    %64 = arith.mulf %62, %63 : vector<64x8xf32>
    %65 = arith.truncf %64 : vector<64x8xf32> to vector<64x8xbf16>
    %c1_i32_12 = arith.constant 1 : i32
    %66 = tpu.dynamic_rotate %52 by %c1_i32_12 dim 0 : vector<64x8xf32>, i32 -> vector<64x8xf32>
    %67 = vector.broadcast %6 : vector<64x1xf32> to vector<64x8xf32>
    %68 = arith.mulf %66, %67 : vector<64x8xf32>
    %69 = arith.truncf %68 : vector<64x8xf32> to vector<64x8xbf16>
    %70 = arith.truncf %52 : vector<64x8xf32> to vector<64x8xbf16>
    %c63_i32_13 = arith.constant 63 : i32
    %71 = tpu.dynamic_rotate %52 by %c63_i32_13 dim 0 : vector<64x8xf32>, i32 -> vector<64x8xf32>
    %72 = vector.broadcast %7 : vector<64x1xf32> to vector<64x8xf32>
    %73 = arith.mulf %71, %72 : vector<64x8xf32>
    %74 = arith.truncf %73 : vector<64x8xf32> to vector<64x8xbf16>
    %c57_i32_14 = arith.constant 57 : i32
    %75 = tpu.dynamic_rotate %52 by %c57_i32_14 dim 0 : vector<64x8xf32>, i32 -> vector<64x8xf32>
    %76 = vector.broadcast %8 : vector<64x1xf32> to vector<64x8xf32>
    %77 = arith.mulf %75, %76 : vector<64x8xf32>
    %78 = arith.truncf %77 : vector<64x8xf32> to vector<64x8xbf16>
    %c56_i32_15 = arith.constant 56 : i32
    %79 = tpu.dynamic_rotate %52 by %c56_i32_15 dim 0 : vector<64x8xf32>, i32 -> vector<64x8xf32>
    %80 = vector.broadcast %9 : vector<64x1xf32> to vector<64x8xf32>
    %81 = arith.mulf %79, %80 : vector<64x8xf32>
    %82 = arith.truncf %81 : vector<64x8xf32> to vector<64x8xbf16>
    %c55_i32_16 = arith.constant 55 : i32
    %83 = tpu.dynamic_rotate %52 by %c55_i32_16 dim 0 : vector<64x8xf32>, i32 -> vector<64x8xf32>
    %84 = vector.broadcast %10 : vector<64x1xf32> to vector<64x8xf32>
    %85 = arith.mulf %83, %84 : vector<64x8xf32>
    %86 = arith.truncf %85 : vector<64x8xf32> to vector<64x8xbf16>
    %87 = tpu.concatenate %57, %61, %65, %69, %70, %74, %78, %82, %86 in 1 : vector<64x8xbf16>, vector<64x8xbf16>, vector<64x8xbf16>, vector<64x8xbf16>, vector<64x8xbf16>, vector<64x8xbf16>, vector<64x8xbf16>, vector<64x8xbf16>, vector<64x8xbf16> -> vector<64x72xbf16>
    %88 = tpu.concatenate %44, %87 in 1 : vector<64x144xbf16>, vector<64x72xbf16> -> vector<64x216xbf16>
    %c0_17 = arith.constant 0 : index
    %c0_18 = arith.constant 0 : index
    %89 = vector.load %arg5[%c0_17, %c0_18] : memref<216x8xbf16, #tpu.memory_space<vmem>>, vector<216x8xbf16>
    %cst_19 = arith.constant dense<0.000000e+00> : vector<64x8xf32>
    %90 = tpu.matmul %88, %89, %cst_19 {dimension_numbers = #tpu.dot_dimension_numbers<[1], [0], [0], [1], [0, 0, 1, 1], [], []>} : vector<64x216xbf16>, vector<216x8xbf16>, vector<64x8xf32> -> vector<64x8xf32>
    %c0_20 = arith.constant 0 : index
    %c0_21 = arith.constant 0 : index
    %91 = vector.load %arg6[%c0_20, %c0_21] : memref<1x8xf32, #tpu.memory_space<vmem>>, vector<1x8xf32>
    %92 = vector.broadcast %91 : vector<1x8xf32> to vector<64x8xf32>
    %93 = arith.addf %90, %92 : vector<64x8xf32>
    %cst_22 = arith.constant 0.000000e+00 : f32
    %94 = vector.broadcast %cst_22 : f32 to vector<64x8xf32>
    %95 = arith.maximumf %93, %94 : vector<64x8xf32>
    %96 = arith.truncf %95 : vector<64x8xf32> to vector<64x8xbf16>
    %c9_i32_23 = arith.constant 9 : i32
    %97 = tpu.dynamic_rotate %95 by %c9_i32_23 dim 0 : vector<64x8xf32>, i32 -> vector<64x8xf32>
    %98 = vector.broadcast %3 : vector<64x1xf32> to vector<64x8xf32>
    %99 = arith.mulf %97, %98 : vector<64x8xf32>
    %100 = arith.truncf %99 : vector<64x8xf32> to vector<64x8xbf16>
    %c8_i32_24 = arith.constant 8 : i32
    %101 = tpu.dynamic_rotate %95 by %c8_i32_24 dim 0 : vector<64x8xf32>, i32 -> vector<64x8xf32>
    %102 = vector.broadcast %4 : vector<64x1xf32> to vector<64x8xf32>
    %103 = arith.mulf %101, %102 : vector<64x8xf32>
    %104 = arith.truncf %103 : vector<64x8xf32> to vector<64x8xbf16>
    %c7_i32_25 = arith.constant 7 : i32
    %105 = tpu.dynamic_rotate %95 by %c7_i32_25 dim 0 : vector<64x8xf32>, i32 -> vector<64x8xf32>
    %106 = vector.broadcast %5 : vector<64x1xf32> to vector<64x8xf32>
    %107 = arith.mulf %105, %106 : vector<64x8xf32>
    %108 = arith.truncf %107 : vector<64x8xf32> to vector<64x8xbf16>
    %c1_i32_26 = arith.constant 1 : i32
    %109 = tpu.dynamic_rotate %95 by %c1_i32_26 dim 0 : vector<64x8xf32>, i32 -> vector<64x8xf32>
    %110 = vector.broadcast %6 : vector<64x1xf32> to vector<64x8xf32>
    %111 = arith.mulf %109, %110 : vector<64x8xf32>
    %112 = arith.truncf %111 : vector<64x8xf32> to vector<64x8xbf16>
    %113 = arith.truncf %95 : vector<64x8xf32> to vector<64x8xbf16>
    %c63_i32_27 = arith.constant 63 : i32
    %114 = tpu.dynamic_rotate %95 by %c63_i32_27 dim 0 : vector<64x8xf32>, i32 -> vector<64x8xf32>
    %115 = vector.broadcast %7 : vector<64x1xf32> to vector<64x8xf32>
    %116 = arith.mulf %114, %115 : vector<64x8xf32>
    %117 = arith.truncf %116 : vector<64x8xf32> to vector<64x8xbf16>
    %c57_i32_28 = arith.constant 57 : i32
    %118 = tpu.dynamic_rotate %95 by %c57_i32_28 dim 0 : vector<64x8xf32>, i32 -> vector<64x8xf32>
    %119 = vector.broadcast %8 : vector<64x1xf32> to vector<64x8xf32>
    %120 = arith.mulf %118, %119 : vector<64x8xf32>
    %121 = arith.truncf %120 : vector<64x8xf32> to vector<64x8xbf16>
    %c56_i32_29 = arith.constant 56 : i32
    %122 = tpu.dynamic_rotate %95 by %c56_i32_29 dim 0 : vector<64x8xf32>, i32 -> vector<64x8xf32>
    %123 = vector.broadcast %9 : vector<64x1xf32> to vector<64x8xf32>
    %124 = arith.mulf %122, %123 : vector<64x8xf32>
    %125 = arith.truncf %124 : vector<64x8xf32> to vector<64x8xbf16>
    %c55_i32_30 = arith.constant 55 : i32
    %126 = tpu.dynamic_rotate %95 by %c55_i32_30 dim 0 : vector<64x8xf32>, i32 -> vector<64x8xf32>
    %127 = vector.broadcast %10 : vector<64x1xf32> to vector<64x8xf32>
    %128 = arith.mulf %126, %127 : vector<64x8xf32>
    %129 = arith.truncf %128 : vector<64x8xf32> to vector<64x8xbf16>
    %130 = tpu.concatenate %100, %104, %108, %112, %113, %117, %121, %125, %129 in 1 : vector<64x8xbf16>, vector<64x8xbf16>, vector<64x8xbf16>, vector<64x8xbf16>, vector<64x8xbf16>, vector<64x8xbf16>, vector<64x8xbf16>, vector<64x8xbf16>, vector<64x8xbf16> -> vector<64x72xbf16>
    %131 = tpu.concatenate %88, %130 in 1 : vector<64x216xbf16>, vector<64x72xbf16> -> vector<64x288xbf16>
    %c0_31 = arith.constant 0 : index
    %c0_32 = arith.constant 0 : index
    %132 = vector.load %arg7[%c0_31, %c0_32] : memref<288x8xbf16, #tpu.memory_space<vmem>>, vector<288x8xbf16>
    %cst_33 = arith.constant dense<0.000000e+00> : vector<64x8xf32>
    %133 = tpu.matmul %131, %132, %cst_33 {dimension_numbers = #tpu.dot_dimension_numbers<[1], [0], [0], [1], [0, 0, 1, 1], [], []>} : vector<64x288xbf16>, vector<288x8xbf16>, vector<64x8xf32> -> vector<64x8xf32>
    %c0_34 = arith.constant 0 : index
    %c0_35 = arith.constant 0 : index
    %134 = vector.load %arg8[%c0_34, %c0_35] : memref<1x8xf32, #tpu.memory_space<vmem>>, vector<1x8xf32>
    %135 = vector.broadcast %134 : vector<1x8xf32> to vector<64x8xf32>
    %136 = arith.addf %133, %135 : vector<64x8xf32>
    %cst_36 = arith.constant 0.000000e+00 : f32
    %137 = vector.broadcast %cst_36 : f32 to vector<64x8xf32>
    %138 = arith.maximumf %136, %137 : vector<64x8xf32>
    %139 = arith.truncf %138 : vector<64x8xf32> to vector<64x8xbf16>
    %140 = tpu.concatenate %45, %53, %96, %139 in 1 : vector<64x16xbf16>, vector<64x8xbf16>, vector<64x8xbf16>, vector<64x8xbf16> -> vector<64x40xbf16>
    %c0_37 = arith.constant 0 : index
    %c0_38 = arith.constant 0 : index
    %141 = vector.load %arg9[%c0_37, %c0_38] : memref<40x16xbf16, #tpu.memory_space<vmem>>, vector<40x16xbf16>
    %cst_39 = arith.constant dense<0.000000e+00> : vector<64x16xf32>
    %142 = tpu.matmul %140, %141, %cst_39 {dimension_numbers = #tpu.dot_dimension_numbers<[1], [0], [0], [1], [0, 0, 1, 1], [], []>} : vector<64x40xbf16>, vector<40x16xbf16>, vector<64x16xf32> -> vector<64x16xf32>
    %c0_40 = arith.constant 0 : index
    %c0_41 = arith.constant 0 : index
    %143 = vector.load %arg10[%c0_40, %c0_41] : memref<1x16xf32, #tpu.memory_space<vmem>>, vector<1x16xf32>
    %144 = vector.broadcast %143 : vector<1x16xf32> to vector<64x16xf32>
    %145 = arith.addf %142, %144 : vector<64x16xf32>
    %146 = arith.truncf %145 : vector<64x16xf32> to vector<64x16xbf16>
    %c0_42 = arith.constant 0 : index
    %c0_43 = arith.constant 0 : index
    %c0_44 = arith.constant 0 : index
    %147 = vector.load %arg13[%c0_42, %c0_43, %c0_44] : memref<1x64x16xbf16, #tpu.memory_space<vmem>>, vector<1x64x16xbf16>
    %148 = vector.shape_cast %147 : vector<1x64x16xbf16> to vector<64x16xbf16>
    %149 = vector.shape_cast %146 : vector<64x16xbf16> to vector<1x64x16xbf16>
    tpu.vector_store %arg13[%c0_42, %c0_43, %c0_44], %149 {strides = array<i32>} : memref<1x64x16xbf16, #tpu.memory_space<vmem>>, vector<1x64x16xbf16>,
    %c0_45 = arith.constant 0 : index
    %c0_46 = arith.constant 0 : index
    %150 = vector.load %arg11[%c0_45, %c0_46] : memref<16x8xbf16, #tpu.memory_space<vmem>>, vector<16x8xbf16>
    %cst_47 = arith.constant dense<0.000000e+00> : vector<64x8xf32>
    %151 = tpu.matmul %146, %150, %cst_47 {dimension_numbers = #tpu.dot_dimension_numbers<[1], [0], [0], [1], [0, 0, 1, 1], [], []>} : vector<64x16xbf16>, vector<16x8xbf16>, vector<64x8xf32> -> vector<64x8xf32>
    %c0_48 = arith.constant 0 : index
    %c0_49 = arith.constant 0 : index
    %152 = vector.load %arg12[%c0_48, %c0_49] : memref<1x8xf32, #tpu.memory_space<vmem>>, vector<1x8xf32>
    %153 = vector.broadcast %152 : vector<1x8xf32> to vector<64x8xf32>
    %154 = arith.addf %151, %153 : vector<64x8xf32>
    %155 = arith.truncf %154 : vector<64x8xf32> to vector<64x8xbf16>
    %c0_50 = arith.constant 0 : index
    %c0_51 = arith.constant 0 : index
    %c0_52 = arith.constant 0 : index
    %156 = vector.load %arg14[%c0_50, %c0_51, %c0_52] : memref<1x64x8xbf16, #tpu.memory_space<vmem>>, vector<1x64x8xbf16>
    %157 = vector.shape_cast %156 : vector<1x64x8xbf16> to vector<64x8xbf16>
    %158 = vector.shape_cast %155 : vector<64x8xbf16> to vector<1x64x8xbf16>
    tpu.vector_store %arg14[%c0_50, %c0_51, %c0_52], %158 {strides = array<i32>} : memref<1x64x8xbf16, #tpu.memory_space<vmem>>, vector<1x64x8xbf16>,
    return
  }
  func.func @transform_0(%arg0: i32) -> (i32, i32, i32) {
    %c0_i32 = arith.constant 0 : i32
    %c0_i32_0 = arith.constant 0 : i32
    %c0_i32_1 = arith.constant 0 : i32
    return %arg0, %c0_i32, %c0_i32_0 : i32, i32, i32
  }
  func.func @transform_1(%arg0: i32) -> (i32, i32) {
    %c0_i32 = arith.constant 0 : i32
    %c0_i32_0 = arith.constant 0 : i32
    %c0_i32_1 = arith.constant 0 : i32
    return %c0_i32, %c0_i32_0 : i32, i32
  }
  func.func @transform_2(%arg0: i32) -> (i32, i32) {
    %c0_i32 = arith.constant 0 : i32
    %c0_i32_0 = arith.constant 0 : i32
    %c0_i32_1 = arith.constant 0 : i32
    return %c0_i32, %c0_i32_0 : i32, i32
  }
  func.func @transform_3(%arg0: i32) -> (i32, i32) {
    %c0_i32 = arith.constant 0 : i32
    %c0_i32_0 = arith.constant 0 : i32
    %c0_i32_1 = arith.constant 0 : i32
    return %c0_i32, %c0_i32_0 : i32, i32
  }
  func.func @transform_4(%arg0: i32) -> (i32, i32) {
    %c0_i32 = arith.constant 0 : i32
    %c0_i32_0 = arith.constant 0 : i32
    %c0_i32_1 = arith.constant 0 : i32
    return %c0_i32, %c0_i32_0 : i32, i32
  }
  func.func @transform_5(%arg0: i32) -> (i32, i32) {
    %c0_i32 = arith.constant 0 : i32
    %c0_i32_0 = arith.constant 0 : i32
    %c0_i32_1 = arith.constant 0 : i32
    return %c0_i32, %c0_i32_0 : i32, i32
  }
  func.func @transform_6(%arg0: i32) -> (i32, i32) {
    %c0_i32 = arith.constant 0 : i32
    %c0_i32_0 = arith.constant 0 : i32
    %c0_i32_1 = arith.constant 0 : i32
    return %c0_i32, %c0_i32_0 : i32, i32
  }
  func.func @transform_7(%arg0: i32) -> (i32, i32) {
    %c0_i32 = arith.constant 0 : i32
    %c0_i32_0 = arith.constant 0 : i32
    %c0_i32_1 = arith.constant 0 : i32
    return %c0_i32, %c0_i32_0 : i32, i32
  }
  func.func @transform_8(%arg0: i32) -> (i32, i32) {
    %c0_i32 = arith.constant 0 : i32
    %c0_i32_0 = arith.constant 0 : i32
    %c0_i32_1 = arith.constant 0 : i32
    return %c0_i32, %c0_i32_0 : i32, i32
  }
  func.func @transform_9(%arg0: i32) -> (i32, i32) {
    %c0_i32 = arith.constant 0 : i32
    %c0_i32_0 = arith.constant 0 : i32
    %c0_i32_1 = arith.constant 0 : i32
    return %c0_i32, %c0_i32_0 : i32, i32
  }
  func.func @transform_10(%arg0: i32) -> (i32, i32) {
    %c0_i32 = arith.constant 0 : i32
    %c0_i32_0 = arith.constant 0 : i32
    %c0_i32_1 = arith.constant 0 : i32
    return %c0_i32, %c0_i32_0 : i32, i32
  }
  func.func @transform_11(%arg0: i32) -> (i32, i32) {
    %c0_i32 = arith.constant 0 : i32
    %c0_i32_0 = arith.constant 0 : i32
    %c0_i32_1 = arith.constant 0 : i32
    return %c0_i32, %c0_i32_0 : i32, i32
  }
  func.func @transform_12(%arg0: i32) -> (i32, i32, i32) {
    %c0_i32 = arith.constant 0 : i32
    %c0_i32_0 = arith.constant 0 : i32
    %c0_i32_1 = arith.constant 0 : i32
    return %arg0, %c0_i32, %c0_i32_0 : i32, i32, i32
  }
  func.func @transform_13(%arg0: i32) -> (i32, i32, i32) {
    %c0_i32 = arith.constant 0 : i32
    %c0_i32_0 = arith.constant 0 : i32
    %c0_i32_1 = arith.constant 0 : i32
    return %arg0, %c0_i32, %c0_i32_0 : i32, i32, i32
  }
}

module attributes {stable_mosaic.version = 11 : i64} {
  func.func @kernel(%arg0: i32, %arg1: memref<1x64x16xf32, #tpu.memory_space<vmem>>, %arg2: memref<1x64x16xf32, #tpu.memory_space<vmem>>, %arg3: memref<64x9xf32, #tpu.memory_space<vmem>>, %arg4: memref<144x8xbf16, #tpu.memory_space<vmem>>, %arg5: memref<1x8xf32, #tpu.memory_space<vmem>>, %arg6: memref<216x8xbf16, #tpu.memory_space<vmem>>, %arg7: memref<1x8xf32, #tpu.memory_space<vmem>>, %arg8: memref<288x8xbf16, #tpu.memory_space<vmem>>, %arg9: memref<1x8xf32, #tpu.memory_space<vmem>>, %arg10: memref<40x16xbf16, #tpu.memory_space<vmem>>, %arg11: memref<1x16xf32, #tpu.memory_space<vmem>>, %arg12: memref<16x8xbf16, #tpu.memory_space<vmem>>, %arg13: memref<1x8xf32, #tpu.memory_space<vmem>>, %arg14: memref<1x64x16xbf16, #tpu.memory_space<vmem>>, %arg15: memref<1x64x8xbf16, #tpu.memory_space<vmem>>) attributes {dimension_semantics = [#tpu.dimension_semantics<parallel>], iteration_bounds = array<i64: 2>, scalar_prefetch = 0 : i64, scratch_operands = 0 : i64, tpu.core_type = #tpu.core_type<tc>, window_params = [{transform_indices = @transform_0, window_bounds = array<i64: 1, 64, 16>}, {transform_indices = @transform_1, window_bounds = array<i64: 1, 64, 16>}, {pipeline_mode = #tpu.pipeline_mode<synchronous>, transform_indices = @transform_2, window_bounds = array<i64: 64, 9>}, {pipeline_mode = #tpu.pipeline_mode<synchronous>, transform_indices = @transform_3, window_bounds = array<i64: 144, 8>}, {pipeline_mode = #tpu.pipeline_mode<synchronous>, transform_indices = @transform_4, window_bounds = array<i64: 1, 8>}, {pipeline_mode = #tpu.pipeline_mode<synchronous>, transform_indices = @transform_5, window_bounds = array<i64: 216, 8>}, {pipeline_mode = #tpu.pipeline_mode<synchronous>, transform_indices = @transform_6, window_bounds = array<i64: 1, 8>}, {pipeline_mode = #tpu.pipeline_mode<synchronous>, transform_indices = @transform_7, window_bounds = array<i64: 288, 8>}, {pipeline_mode = #tpu.pipeline_mode<synchronous>, transform_indices = @transform_8, window_bounds = array<i64: 1, 8>}, {pipeline_mode = #tpu.pipeline_mode<synchronous>, transform_indices = @transform_9, window_bounds = array<i64: 40, 16>}, {pipeline_mode = #tpu.pipeline_mode<synchronous>, transform_indices = @transform_10, window_bounds = array<i64: 1, 16>}, {pipeline_mode = #tpu.pipeline_mode<synchronous>, transform_indices = @transform_11, window_bounds = array<i64: 16, 8>}, {pipeline_mode = #tpu.pipeline_mode<synchronous>, transform_indices = @transform_12, window_bounds = array<i64: 1, 8>}, {transform_indices = @transform_13, window_bounds = array<i64: 1, 64, 16>}, {transform_indices = @transform_14, window_bounds = array<i64: 1, 64, 8>}]} {
    %c0 = arith.constant 0 : index
    %c0_0 = arith.constant 0 : index
    %c0_1 = arith.constant 0 : index
    %0 = vector.load %arg1[%c0, %c0_0, %c0_1] : memref<1x64x16xf32, #tpu.memory_space<vmem>>, vector<1x64x16xf32>
    %1 = vector.shape_cast %0 : vector<1x64x16xf32> to vector<64x16xf32>
    %c0_2 = arith.constant 0 : index
    %c0_3 = arith.constant 0 : index
    %c0_4 = arith.constant 0 : index
    %2 = vector.load %arg2[%c0_2, %c0_3, %c0_4] : memref<1x64x16xf32, #tpu.memory_space<vmem>>, vector<1x64x16xf32>
    %3 = vector.shape_cast %2 : vector<1x64x16xf32> to vector<64x16xf32>
    %4 = arith.addf %1, %3 : vector<64x16xf32>
    %c0_5 = arith.constant 0 : index
    %c0_6 = arith.constant 0 : index
    %5 = vector.load %arg3[%c0_5, %c0_6] : memref<64x9xf32, #tpu.memory_space<vmem>>, vector<64x9xf32>
    %6 = vector.extract_strided_slice %5 {offsets = [0, 0], sizes = [64, 1], strides = [1, 1]} : vector<64x9xf32> to vector<64x1xf32>
    %7 = vector.extract_strided_slice %5 {offsets = [0, 1], sizes = [64, 1], strides = [1, 1]} : vector<64x9xf32> to vector<64x1xf32>
    %8 = vector.extract_strided_slice %5 {offsets = [0, 2], sizes = [64, 1], strides = [1, 1]} : vector<64x9xf32> to vector<64x1xf32>
    %9 = vector.extract_strided_slice %5 {offsets = [0, 3], sizes = [64, 1], strides = [1, 1]} : vector<64x9xf32> to vector<64x1xf32>
    %10 = vector.extract_strided_slice %5 {offsets = [0, 5], sizes = [64, 1], strides = [1, 1]} : vector<64x9xf32> to vector<64x1xf32>
    %11 = vector.extract_strided_slice %5 {offsets = [0, 6], sizes = [64, 1], strides = [1, 1]} : vector<64x9xf32> to vector<64x1xf32>
    %12 = vector.extract_strided_slice %5 {offsets = [0, 7], sizes = [64, 1], strides = [1, 1]} : vector<64x9xf32> to vector<64x1xf32>
    %13 = vector.extract_strided_slice %5 {offsets = [0, 8], sizes = [64, 1], strides = [1, 1]} : vector<64x9xf32> to vector<64x1xf32>
    %c9_i32 = arith.constant 9 : i32
    %14 = tpu.dynamic_rotate %4 by %c9_i32 dim 0 : vector<64x16xf32>, i32 -> vector<64x16xf32>
    %15 = vector.broadcast %6 : vector<64x1xf32> to vector<64x16xf32>
    %16 = arith.mulf %14, %15 : vector<64x16xf32>
    %17 = arith.truncf %16 : vector<64x16xf32> to vector<64x16xbf16>
    %c8_i32 = arith.constant 8 : i32
    %18 = tpu.dynamic_rotate %4 by %c8_i32 dim 0 : vector<64x16xf32>, i32 -> vector<64x16xf32>
    %19 = vector.broadcast %7 : vector<64x1xf32> to vector<64x16xf32>
    %20 = arith.mulf %18, %19 : vector<64x16xf32>
    %21 = arith.truncf %20 : vector<64x16xf32> to vector<64x16xbf16>
    %c7_i32 = arith.constant 7 : i32
    %22 = tpu.dynamic_rotate %4 by %c7_i32 dim 0 : vector<64x16xf32>, i32 -> vector<64x16xf32>
    %23 = vector.broadcast %8 : vector<64x1xf32> to vector<64x16xf32>
    %24 = arith.mulf %22, %23 : vector<64x16xf32>
    %25 = arith.truncf %24 : vector<64x16xf32> to vector<64x16xbf16>
    %c1_i32 = arith.constant 1 : i32
    %26 = tpu.dynamic_rotate %4 by %c1_i32 dim 0 : vector<64x16xf32>, i32 -> vector<64x16xf32>
    %27 = vector.broadcast %9 : vector<64x1xf32> to vector<64x16xf32>
    %28 = arith.mulf %26, %27 : vector<64x16xf32>
    %29 = arith.truncf %28 : vector<64x16xf32> to vector<64x16xbf16>
    %30 = arith.truncf %4 : vector<64x16xf32> to vector<64x16xbf16>
    %c63_i32 = arith.constant 63 : i32
    %31 = tpu.dynamic_rotate %4 by %c63_i32 dim 0 : vector<64x16xf32>, i32 -> vector<64x16xf32>
    %32 = vector.broadcast %10 : vector<64x1xf32> to vector<64x16xf32>
    %33 = arith.mulf %31, %32 : vector<64x16xf32>
    %34 = arith.truncf %33 : vector<64x16xf32> to vector<64x16xbf16>
    %c57_i32 = arith.constant 57 : i32
    %35 = tpu.dynamic_rotate %4 by %c57_i32 dim 0 : vector<64x16xf32>, i32 -> vector<64x16xf32>
    %36 = vector.broadcast %11 : vector<64x1xf32> to vector<64x16xf32>
    %37 = arith.mulf %35, %36 : vector<64x16xf32>
    %38 = arith.truncf %37 : vector<64x16xf32> to vector<64x16xbf16>
    %c56_i32 = arith.constant 56 : i32
    %39 = tpu.dynamic_rotate %4 by %c56_i32 dim 0 : vector<64x16xf32>, i32 -> vector<64x16xf32>
    %40 = vector.broadcast %12 : vector<64x1xf32> to vector<64x16xf32>
    %41 = arith.mulf %39, %40 : vector<64x16xf32>
    %42 = arith.truncf %41 : vector<64x16xf32> to vector<64x16xbf16>
    %c55_i32 = arith.constant 55 : i32
    %43 = tpu.dynamic_rotate %4 by %c55_i32 dim 0 : vector<64x16xf32>, i32 -> vector<64x16xf32>
    %44 = vector.broadcast %13 : vector<64x1xf32> to vector<64x16xf32>
    %45 = arith.mulf %43, %44 : vector<64x16xf32>
    %46 = arith.truncf %45 : vector<64x16xf32> to vector<64x16xbf16>
    %47 = tpu.concatenate %17, %21, %25, %29, %30, %34, %38, %42, %46 in 1 : vector<64x16xbf16>, vector<64x16xbf16>, vector<64x16xbf16>, vector<64x16xbf16>, vector<64x16xbf16>, vector<64x16xbf16>, vector<64x16xbf16>, vector<64x16xbf16>, vector<64x16xbf16> -> vector<64x144xbf16>
    %48 = arith.truncf %4 : vector<64x16xf32> to vector<64x16xbf16>
    %c0_7 = arith.constant 0 : index
    %c0_8 = arith.constant 0 : index
    %49 = vector.load %arg4[%c0_7, %c0_8] : memref<144x8xbf16, #tpu.memory_space<vmem>>, vector<144x8xbf16>
    %cst = arith.constant dense<0.000000e+00> : vector<64x8xf32>
    %50 = tpu.matmul %47, %49, %cst {dimension_numbers = #tpu.dot_dimension_numbers<[1], [0], [0], [1], [0, 0, 1, 1], [], []>} : vector<64x144xbf16>, vector<144x8xbf16>, vector<64x8xf32> -> vector<64x8xf32>
    %c0_9 = arith.constant 0 : index
    %c0_10 = arith.constant 0 : index
    %51 = vector.load %arg5[%c0_9, %c0_10] : memref<1x8xf32, #tpu.memory_space<vmem>>, vector<1x8xf32>
    %52 = vector.broadcast %51 : vector<1x8xf32> to vector<64x8xf32>
    %53 = arith.addf %50, %52 : vector<64x8xf32>
    %cst_11 = arith.constant 0.000000e+00 : f32
    %54 = vector.broadcast %cst_11 : f32 to vector<64x8xf32>
    %55 = arith.maximumf %53, %54 : vector<64x8xf32>
    %56 = arith.truncf %55 : vector<64x8xf32> to vector<64x8xbf16>
    %c9_i32_12 = arith.constant 9 : i32
    %57 = tpu.dynamic_rotate %55 by %c9_i32_12 dim 0 : vector<64x8xf32>, i32 -> vector<64x8xf32>
    %58 = vector.broadcast %6 : vector<64x1xf32> to vector<64x8xf32>
    %59 = arith.mulf %57, %58 : vector<64x8xf32>
    %60 = arith.truncf %59 : vector<64x8xf32> to vector<64x8xbf16>
    %c8_i32_13 = arith.constant 8 : i32
    %61 = tpu.dynamic_rotate %55 by %c8_i32_13 dim 0 : vector<64x8xf32>, i32 -> vector<64x8xf32>
    %62 = vector.broadcast %7 : vector<64x1xf32> to vector<64x8xf32>
    %63 = arith.mulf %61, %62 : vector<64x8xf32>
    %64 = arith.truncf %63 : vector<64x8xf32> to vector<64x8xbf16>
    %c7_i32_14 = arith.constant 7 : i32
    %65 = tpu.dynamic_rotate %55 by %c7_i32_14 dim 0 : vector<64x8xf32>, i32 -> vector<64x8xf32>
    %66 = vector.broadcast %8 : vector<64x1xf32> to vector<64x8xf32>
    %67 = arith.mulf %65, %66 : vector<64x8xf32>
    %68 = arith.truncf %67 : vector<64x8xf32> to vector<64x8xbf16>
    %c1_i32_15 = arith.constant 1 : i32
    %69 = tpu.dynamic_rotate %55 by %c1_i32_15 dim 0 : vector<64x8xf32>, i32 -> vector<64x8xf32>
    %70 = vector.broadcast %9 : vector<64x1xf32> to vector<64x8xf32>
    %71 = arith.mulf %69, %70 : vector<64x8xf32>
    %72 = arith.truncf %71 : vector<64x8xf32> to vector<64x8xbf16>
    %73 = arith.truncf %55 : vector<64x8xf32> to vector<64x8xbf16>
    %c63_i32_16 = arith.constant 63 : i32
    %74 = tpu.dynamic_rotate %55 by %c63_i32_16 dim 0 : vector<64x8xf32>, i32 -> vector<64x8xf32>
    %75 = vector.broadcast %10 : vector<64x1xf32> to vector<64x8xf32>
    %76 = arith.mulf %74, %75 : vector<64x8xf32>
    %77 = arith.truncf %76 : vector<64x8xf32> to vector<64x8xbf16>
    %c57_i32_17 = arith.constant 57 : i32
    %78 = tpu.dynamic_rotate %55 by %c57_i32_17 dim 0 : vector<64x8xf32>, i32 -> vector<64x8xf32>
    %79 = vector.broadcast %11 : vector<64x1xf32> to vector<64x8xf32>
    %80 = arith.mulf %78, %79 : vector<64x8xf32>
    %81 = arith.truncf %80 : vector<64x8xf32> to vector<64x8xbf16>
    %c56_i32_18 = arith.constant 56 : i32
    %82 = tpu.dynamic_rotate %55 by %c56_i32_18 dim 0 : vector<64x8xf32>, i32 -> vector<64x8xf32>
    %83 = vector.broadcast %12 : vector<64x1xf32> to vector<64x8xf32>
    %84 = arith.mulf %82, %83 : vector<64x8xf32>
    %85 = arith.truncf %84 : vector<64x8xf32> to vector<64x8xbf16>
    %c55_i32_19 = arith.constant 55 : i32
    %86 = tpu.dynamic_rotate %55 by %c55_i32_19 dim 0 : vector<64x8xf32>, i32 -> vector<64x8xf32>
    %87 = vector.broadcast %13 : vector<64x1xf32> to vector<64x8xf32>
    %88 = arith.mulf %86, %87 : vector<64x8xf32>
    %89 = arith.truncf %88 : vector<64x8xf32> to vector<64x8xbf16>
    %90 = tpu.concatenate %60, %64, %68, %72, %73, %77, %81, %85, %89 in 1 : vector<64x8xbf16>, vector<64x8xbf16>, vector<64x8xbf16>, vector<64x8xbf16>, vector<64x8xbf16>, vector<64x8xbf16>, vector<64x8xbf16>, vector<64x8xbf16>, vector<64x8xbf16> -> vector<64x72xbf16>
    %91 = tpu.concatenate %47, %90 in 1 : vector<64x144xbf16>, vector<64x72xbf16> -> vector<64x216xbf16>
    %c0_20 = arith.constant 0 : index
    %c0_21 = arith.constant 0 : index
    %92 = vector.load %arg6[%c0_20, %c0_21] : memref<216x8xbf16, #tpu.memory_space<vmem>>, vector<216x8xbf16>
    %cst_22 = arith.constant dense<0.000000e+00> : vector<64x8xf32>
    %93 = tpu.matmul %91, %92, %cst_22 {dimension_numbers = #tpu.dot_dimension_numbers<[1], [0], [0], [1], [0, 0, 1, 1], [], []>} : vector<64x216xbf16>, vector<216x8xbf16>, vector<64x8xf32> -> vector<64x8xf32>
    %c0_23 = arith.constant 0 : index
    %c0_24 = arith.constant 0 : index
    %94 = vector.load %arg7[%c0_23, %c0_24] : memref<1x8xf32, #tpu.memory_space<vmem>>, vector<1x8xf32>
    %95 = vector.broadcast %94 : vector<1x8xf32> to vector<64x8xf32>
    %96 = arith.addf %93, %95 : vector<64x8xf32>
    %cst_25 = arith.constant 0.000000e+00 : f32
    %97 = vector.broadcast %cst_25 : f32 to vector<64x8xf32>
    %98 = arith.maximumf %96, %97 : vector<64x8xf32>
    %99 = arith.truncf %98 : vector<64x8xf32> to vector<64x8xbf16>
    %c9_i32_26 = arith.constant 9 : i32
    %100 = tpu.dynamic_rotate %98 by %c9_i32_26 dim 0 : vector<64x8xf32>, i32 -> vector<64x8xf32>
    %101 = vector.broadcast %6 : vector<64x1xf32> to vector<64x8xf32>
    %102 = arith.mulf %100, %101 : vector<64x8xf32>
    %103 = arith.truncf %102 : vector<64x8xf32> to vector<64x8xbf16>
    %c8_i32_27 = arith.constant 8 : i32
    %104 = tpu.dynamic_rotate %98 by %c8_i32_27 dim 0 : vector<64x8xf32>, i32 -> vector<64x8xf32>
    %105 = vector.broadcast %7 : vector<64x1xf32> to vector<64x8xf32>
    %106 = arith.mulf %104, %105 : vector<64x8xf32>
    %107 = arith.truncf %106 : vector<64x8xf32> to vector<64x8xbf16>
    %c7_i32_28 = arith.constant 7 : i32
    %108 = tpu.dynamic_rotate %98 by %c7_i32_28 dim 0 : vector<64x8xf32>, i32 -> vector<64x8xf32>
    %109 = vector.broadcast %8 : vector<64x1xf32> to vector<64x8xf32>
    %110 = arith.mulf %108, %109 : vector<64x8xf32>
    %111 = arith.truncf %110 : vector<64x8xf32> to vector<64x8xbf16>
    %c1_i32_29 = arith.constant 1 : i32
    %112 = tpu.dynamic_rotate %98 by %c1_i32_29 dim 0 : vector<64x8xf32>, i32 -> vector<64x8xf32>
    %113 = vector.broadcast %9 : vector<64x1xf32> to vector<64x8xf32>
    %114 = arith.mulf %112, %113 : vector<64x8xf32>
    %115 = arith.truncf %114 : vector<64x8xf32> to vector<64x8xbf16>
    %116 = arith.truncf %98 : vector<64x8xf32> to vector<64x8xbf16>
    %c63_i32_30 = arith.constant 63 : i32
    %117 = tpu.dynamic_rotate %98 by %c63_i32_30 dim 0 : vector<64x8xf32>, i32 -> vector<64x8xf32>
    %118 = vector.broadcast %10 : vector<64x1xf32> to vector<64x8xf32>
    %119 = arith.mulf %117, %118 : vector<64x8xf32>
    %120 = arith.truncf %119 : vector<64x8xf32> to vector<64x8xbf16>
    %c57_i32_31 = arith.constant 57 : i32
    %121 = tpu.dynamic_rotate %98 by %c57_i32_31 dim 0 : vector<64x8xf32>, i32 -> vector<64x8xf32>
    %122 = vector.broadcast %11 : vector<64x1xf32> to vector<64x8xf32>
    %123 = arith.mulf %121, %122 : vector<64x8xf32>
    %124 = arith.truncf %123 : vector<64x8xf32> to vector<64x8xbf16>
    %c56_i32_32 = arith.constant 56 : i32
    %125 = tpu.dynamic_rotate %98 by %c56_i32_32 dim 0 : vector<64x8xf32>, i32 -> vector<64x8xf32>
    %126 = vector.broadcast %12 : vector<64x1xf32> to vector<64x8xf32>
    %127 = arith.mulf %125, %126 : vector<64x8xf32>
    %128 = arith.truncf %127 : vector<64x8xf32> to vector<64x8xbf16>
    %c55_i32_33 = arith.constant 55 : i32
    %129 = tpu.dynamic_rotate %98 by %c55_i32_33 dim 0 : vector<64x8xf32>, i32 -> vector<64x8xf32>
    %130 = vector.broadcast %13 : vector<64x1xf32> to vector<64x8xf32>
    %131 = arith.mulf %129, %130 : vector<64x8xf32>
    %132 = arith.truncf %131 : vector<64x8xf32> to vector<64x8xbf16>
    %133 = tpu.concatenate %103, %107, %111, %115, %116, %120, %124, %128, %132 in 1 : vector<64x8xbf16>, vector<64x8xbf16>, vector<64x8xbf16>, vector<64x8xbf16>, vector<64x8xbf16>, vector<64x8xbf16>, vector<64x8xbf16>, vector<64x8xbf16>, vector<64x8xbf16> -> vector<64x72xbf16>
    %134 = tpu.concatenate %91, %133 in 1 : vector<64x216xbf16>, vector<64x72xbf16> -> vector<64x288xbf16>
    %c0_34 = arith.constant 0 : index
    %c0_35 = arith.constant 0 : index
    %135 = vector.load %arg8[%c0_34, %c0_35] : memref<288x8xbf16, #tpu.memory_space<vmem>>, vector<288x8xbf16>
    %cst_36 = arith.constant dense<0.000000e+00> : vector<64x8xf32>
    %136 = tpu.matmul %134, %135, %cst_36 {dimension_numbers = #tpu.dot_dimension_numbers<[1], [0], [0], [1], [0, 0, 1, 1], [], []>} : vector<64x288xbf16>, vector<288x8xbf16>, vector<64x8xf32> -> vector<64x8xf32>
    %c0_37 = arith.constant 0 : index
    %c0_38 = arith.constant 0 : index
    %137 = vector.load %arg9[%c0_37, %c0_38] : memref<1x8xf32, #tpu.memory_space<vmem>>, vector<1x8xf32>
    %138 = vector.broadcast %137 : vector<1x8xf32> to vector<64x8xf32>
    %139 = arith.addf %136, %138 : vector<64x8xf32>
    %cst_39 = arith.constant 0.000000e+00 : f32
    %140 = vector.broadcast %cst_39 : f32 to vector<64x8xf32>
    %141 = arith.maximumf %139, %140 : vector<64x8xf32>
    %142 = arith.truncf %141 : vector<64x8xf32> to vector<64x8xbf16>
    %143 = tpu.concatenate %48, %56, %99, %142 in 1 : vector<64x16xbf16>, vector<64x8xbf16>, vector<64x8xbf16>, vector<64x8xbf16> -> vector<64x40xbf16>
    %c0_40 = arith.constant 0 : index
    %c0_41 = arith.constant 0 : index
    %144 = vector.load %arg10[%c0_40, %c0_41] : memref<40x16xbf16, #tpu.memory_space<vmem>>, vector<40x16xbf16>
    %cst_42 = arith.constant dense<0.000000e+00> : vector<64x16xf32>
    %145 = tpu.matmul %143, %144, %cst_42 {dimension_numbers = #tpu.dot_dimension_numbers<[1], [0], [0], [1], [0, 0, 1, 1], [], []>} : vector<64x40xbf16>, vector<40x16xbf16>, vector<64x16xf32> -> vector<64x16xf32>
    %c0_43 = arith.constant 0 : index
    %c0_44 = arith.constant 0 : index
    %146 = vector.load %arg11[%c0_43, %c0_44] : memref<1x16xf32, #tpu.memory_space<vmem>>, vector<1x16xf32>
    %147 = vector.broadcast %146 : vector<1x16xf32> to vector<64x16xf32>
    %148 = arith.addf %145, %147 : vector<64x16xf32>
    %149 = arith.truncf %148 : vector<64x16xf32> to vector<64x16xbf16>
    %c0_45 = arith.constant 0 : index
    %c0_46 = arith.constant 0 : index
    %c0_47 = arith.constant 0 : index
    %150 = vector.load %arg14[%c0_45, %c0_46, %c0_47] : memref<1x64x16xbf16, #tpu.memory_space<vmem>>, vector<1x64x16xbf16>
    %151 = vector.shape_cast %150 : vector<1x64x16xbf16> to vector<64x16xbf16>
    %152 = vector.shape_cast %149 : vector<64x16xbf16> to vector<1x64x16xbf16>
    tpu.vector_store %arg14[%c0_45, %c0_46, %c0_47], %152 {strides = array<i32>} : memref<1x64x16xbf16, #tpu.memory_space<vmem>>, vector<1x64x16xbf16>,
    %c0_48 = arith.constant 0 : index
    %c0_49 = arith.constant 0 : index
    %153 = vector.load %arg12[%c0_48, %c0_49] : memref<16x8xbf16, #tpu.memory_space<vmem>>, vector<16x8xbf16>
    %cst_50 = arith.constant dense<0.000000e+00> : vector<64x8xf32>
    %154 = tpu.matmul %149, %153, %cst_50 {dimension_numbers = #tpu.dot_dimension_numbers<[1], [0], [0], [1], [0, 0, 1, 1], [], []>} : vector<64x16xbf16>, vector<16x8xbf16>, vector<64x8xf32> -> vector<64x8xf32>
    %c0_51 = arith.constant 0 : index
    %c0_52 = arith.constant 0 : index
    %155 = vector.load %arg13[%c0_51, %c0_52] : memref<1x8xf32, #tpu.memory_space<vmem>>, vector<1x8xf32>
    %156 = vector.broadcast %155 : vector<1x8xf32> to vector<64x8xf32>
    %157 = arith.addf %154, %156 : vector<64x8xf32>
    %158 = arith.truncf %157 : vector<64x8xf32> to vector<64x8xbf16>
    %c0_53 = arith.constant 0 : index
    %c0_54 = arith.constant 0 : index
    %c0_55 = arith.constant 0 : index
    %159 = vector.load %arg15[%c0_53, %c0_54, %c0_55] : memref<1x64x8xbf16, #tpu.memory_space<vmem>>, vector<1x64x8xbf16>
    %160 = vector.shape_cast %159 : vector<1x64x8xbf16> to vector<64x8xbf16>
    %161 = vector.shape_cast %158 : vector<64x8xbf16> to vector<1x64x8xbf16>
    tpu.vector_store %arg15[%c0_53, %c0_54, %c0_55], %161 {strides = array<i32>} : memref<1x64x8xbf16, #tpu.memory_space<vmem>>, vector<1x64x8xbf16>,
    return
  }
  func.func @transform_0(%arg0: i32) -> (i32, i32, i32) {
    %c0_i32 = arith.constant 0 : i32
    %c0_i32_0 = arith.constant 0 : i32
    %c0_i32_1 = arith.constant 0 : i32
    return %arg0, %c0_i32, %c0_i32_0 : i32, i32, i32
  }
  func.func @transform_1(%arg0: i32) -> (i32, i32, i32) {
    %c0_i32 = arith.constant 0 : i32
    %c0_i32_0 = arith.constant 0 : i32
    %c0_i32_1 = arith.constant 0 : i32
    return %arg0, %c0_i32, %c0_i32_0 : i32, i32, i32
  }
  func.func @transform_2(%arg0: i32) -> (i32, i32) {
    %c0_i32 = arith.constant 0 : i32
    %c0_i32_0 = arith.constant 0 : i32
    %c0_i32_1 = arith.constant 0 : i32
    return %c0_i32, %c0_i32_0 : i32, i32
  }
  func.func @transform_3(%arg0: i32) -> (i32, i32) {
    %c0_i32 = arith.constant 0 : i32
    %c0_i32_0 = arith.constant 0 : i32
    %c0_i32_1 = arith.constant 0 : i32
    return %c0_i32, %c0_i32_0 : i32, i32
  }
  func.func @transform_4(%arg0: i32) -> (i32, i32) {
    %c0_i32 = arith.constant 0 : i32
    %c0_i32_0 = arith.constant 0 : i32
    %c0_i32_1 = arith.constant 0 : i32
    return %c0_i32, %c0_i32_0 : i32, i32
  }
  func.func @transform_5(%arg0: i32) -> (i32, i32) {
    %c0_i32 = arith.constant 0 : i32
    %c0_i32_0 = arith.constant 0 : i32
    %c0_i32_1 = arith.constant 0 : i32
    return %c0_i32, %c0_i32_0 : i32, i32
  }
  func.func @transform_6(%arg0: i32) -> (i32, i32) {
    %c0_i32 = arith.constant 0 : i32
    %c0_i32_0 = arith.constant 0 : i32
    %c0_i32_1 = arith.constant 0 : i32
    return %c0_i32, %c0_i32_0 : i32, i32
  }
  func.func @transform_7(%arg0: i32) -> (i32, i32) {
    %c0_i32 = arith.constant 0 : i32
    %c0_i32_0 = arith.constant 0 : i32
    %c0_i32_1 = arith.constant 0 : i32
    return %c0_i32, %c0_i32_0 : i32, i32
  }
  func.func @transform_8(%arg0: i32) -> (i32, i32) {
    %c0_i32 = arith.constant 0 : i32
    %c0_i32_0 = arith.constant 0 : i32
    %c0_i32_1 = arith.constant 0 : i32
    return %c0_i32, %c0_i32_0 : i32, i32
  }
  func.func @transform_9(%arg0: i32) -> (i32, i32) {
    %c0_i32 = arith.constant 0 : i32
    %c0_i32_0 = arith.constant 0 : i32
    %c0_i32_1 = arith.constant 0 : i32
    return %c0_i32, %c0_i32_0 : i32, i32
  }
  func.func @transform_10(%arg0: i32) -> (i32, i32) {
    %c0_i32 = arith.constant 0 : i32
    %c0_i32_0 = arith.constant 0 : i32
    %c0_i32_1 = arith.constant 0 : i32
    return %c0_i32, %c0_i32_0 : i32, i32
  }
  func.func @transform_11(%arg0: i32) -> (i32, i32) {
    %c0_i32 = arith.constant 0 : i32
    %c0_i32_0 = arith.constant 0 : i32
    %c0_i32_1 = arith.constant 0 : i32
    return %c0_i32, %c0_i32_0 : i32, i32
  }
  func.func @transform_12(%arg0: i32) -> (i32, i32) {
    %c0_i32 = arith.constant 0 : i32
    %c0_i32_0 = arith.constant 0 : i32
    %c0_i32_1 = arith.constant 0 : i32
    return %c0_i32, %c0_i32_0 : i32, i32
  }
  func.func @transform_13(%arg0: i32) -> (i32, i32, i32) {
    %c0_i32 = arith.constant 0 : i32
    %c0_i32_0 = arith.constant 0 : i32
    %c0_i32_1 = arith.constant 0 : i32
    return %arg0, %c0_i32, %c0_i32_0 : i32, i32, i32
  }
  func.func @transform_14(%arg0: i32) -> (i32, i32, i32) {
    %c0_i32 = arith.constant 0 : i32
    %c0_i32_0 = arith.constant 0 : i32
    %c0_i32_1 = arith.constant 0 : i32
    return %arg0, %c0_i32, %c0_i32_0 : i32, i32, i32
  }
}

module attributes {stable_mosaic.version = 11 : i64} {
  func.func @kernel(%arg0: i32, %arg1: memref<1x64x16xf32, #tpu.memory_space<vmem>>, %arg2: memref<1x64x16xf32, #tpu.memory_space<vmem>>, %arg3: memref<1x64x16xf32, #tpu.memory_space<vmem>>, %arg4: memref<1xf32, #tpu.memory_space<smem>>, %arg5: memref<16x2xbf16, #tpu.memory_space<vmem>>, %arg6: memref<2x16xbf16, #tpu.memory_space<vmem>>, %arg7: memref<1x64x16xf32, #tpu.memory_space<vmem>>) attributes {dimension_semantics = [#tpu.dimension_semantics<parallel>], iteration_bounds = array<i64: 2>, scalar_prefetch = 0 : i64, scratch_operands = 0 : i64, tpu.core_type = #tpu.core_type<tc>, window_params = [{transform_indices = @transform_0, window_bounds = array<i64: 1, 64, 16>}, {transform_indices = @transform_1, window_bounds = array<i64: 1, 64, 16>}, {transform_indices = @transform_2, window_bounds = array<i64: 1, 64, 16>}, {transform_indices = @transform_3, window_bounds = array<i64: 1>}, {pipeline_mode = #tpu.pipeline_mode<synchronous>, transform_indices = @transform_4, window_bounds = array<i64: 16, 2>}, {pipeline_mode = #tpu.pipeline_mode<synchronous>, transform_indices = @transform_5, window_bounds = array<i64: 2, 16>}, {transform_indices = @transform_6, window_bounds = array<i64: 1, 64, 16>}]} {
    %c0 = arith.constant 0 : index
    %c0_0 = arith.constant 0 : index
    %c0_1 = arith.constant 0 : index
    %0 = vector.load %arg1[%c0, %c0_0, %c0_1] : memref<1x64x16xf32, #tpu.memory_space<vmem>>, vector<1x64x16xf32>
    %1 = vector.shape_cast %0 : vector<1x64x16xf32> to vector<64x16xf32>
    %cst = arith.constant dense<0.000000e+00> : vector<16xf32>
    %2 = vector.multi_reduction <add>, %1, %cst [0] : vector<64x16xf32> to vector<16xf32>
    %3 = vector.shape_cast %2 : vector<16xf32> to vector<1x16xf32>
    %cst_2 = arith.constant 6.400000e+01 : f32
    %4 = vector.broadcast %cst_2 : f32 to vector<1x16xf32>
    %5 = arith.divf %3, %4 : vector<1x16xf32>
    %6 = arith.truncf %5 : vector<1x16xf32> to vector<1x16xbf16>
    %c0_3 = arith.constant 0 : index
    %c0_4 = arith.constant 0 : index
    %7 = vector.load %arg5[%c0_3, %c0_4] : memref<16x2xbf16, #tpu.memory_space<vmem>>, vector<16x2xbf16>
    %cst_5 = arith.constant dense<0.000000e+00> : vector<1x2xf32>
    %8 = tpu.matmul %6, %7, %cst_5 {dimension_numbers = #tpu.dot_dimension_numbers<[1], [0], [0], [1], [0, 0, 1, 1], [], []>} : vector<1x16xbf16>, vector<16x2xbf16>, vector<1x2xf32> -> vector<1x2xf32>
    %cst_6 = arith.constant 0.000000e+00 : f32
    %9 = vector.broadcast %cst_6 : f32 to vector<1x2xf32>
    %10 = arith.maximumf %8, %9 : vector<1x2xf32>
    %11 = arith.truncf %10 : vector<1x2xf32> to vector<1x2xbf16>
    %c0_7 = arith.constant 0 : index
    %c0_8 = arith.constant 0 : index
    %12 = vector.load %arg6[%c0_7, %c0_8] : memref<2x16xbf16, #tpu.memory_space<vmem>>, vector<2x16xbf16>
    %cst_9 = arith.constant dense<0.000000e+00> : vector<1x16xf32>
    %13 = tpu.matmul %11, %12, %cst_9 {dimension_numbers = #tpu.dot_dimension_numbers<[1], [0], [0], [1], [0, 0, 1, 1], [], []>} : vector<1x2xbf16>, vector<2x16xbf16>, vector<1x16xf32> -> vector<1x16xf32>
    %14 = arith.negf %13 : vector<1x16xf32>
    %15 = math.exp %14 : vector<1x16xf32>
    %cst_10 = arith.constant 1.000000e+00 : f32
    %16 = vector.broadcast %cst_10 : f32 to vector<1x16xf32>
    %17 = arith.addf %16, %15 : vector<1x16xf32>
    %18 = arith.divf %16, %17 : vector<1x16xf32>
    %19 = vector.broadcast %18 : vector<1x16xf32> to vector<64x16xf32>
    %20 = arith.mulf %1, %19 : vector<64x16xf32>
    %c0_11 = arith.constant 0 : index
    %21 = memref.load %arg4[%c0_11] : memref<1xf32, #tpu.memory_space<smem>>
    %c0_12 = arith.constant 0 : index
    %c0_13 = arith.constant 0 : index
    %c0_14 = arith.constant 0 : index
    %22 = vector.load %arg2[%c0_12, %c0_13, %c0_14] : memref<1x64x16xf32, #tpu.memory_space<vmem>>, vector<1x64x16xf32>
    %23 = vector.shape_cast %22 : vector<1x64x16xf32> to vector<64x16xf32>
    %c0_15 = arith.constant 0 : index
    %c0_16 = arith.constant 0 : index
    %c0_17 = arith.constant 0 : index
    %24 = vector.load %arg3[%c0_15, %c0_16, %c0_17] : memref<1x64x16xf32, #tpu.memory_space<vmem>>, vector<1x64x16xf32>
    %25 = vector.shape_cast %24 : vector<1x64x16xf32> to vector<64x16xf32>
    %26 = arith.addf %25, %20 : vector<64x16xf32>
    %27 = vector.broadcast %21 : f32 to vector<64x16xf32>
    %28 = arith.mulf %27, %26 : vector<64x16xf32>
    %29 = arith.addf %23, %28 : vector<64x16xf32>
    %c0_18 = arith.constant 0 : index
    %c0_19 = arith.constant 0 : index
    %c0_20 = arith.constant 0 : index
    %30 = vector.load %arg7[%c0_18, %c0_19, %c0_20] : memref<1x64x16xf32, #tpu.memory_space<vmem>>, vector<1x64x16xf32>
    %31 = vector.shape_cast %30 : vector<1x64x16xf32> to vector<64x16xf32>
    %32 = vector.shape_cast %29 : vector<64x16xf32> to vector<1x64x16xf32>
    tpu.vector_store %arg7[%c0_18, %c0_19, %c0_20], %32 {strides = array<i32>} : memref<1x64x16xf32, #tpu.memory_space<vmem>>, vector<1x64x16xf32>,
    return
  }
  func.func @transform_0(%arg0: i32) -> (i32, i32, i32) {
    %c0_i32 = arith.constant 0 : i32
    %c0_i32_0 = arith.constant 0 : i32
    %c0_i32_1 = arith.constant 0 : i32
    return %arg0, %c0_i32, %c0_i32_0 : i32, i32, i32
  }
  func.func @transform_1(%arg0: i32) -> (i32, i32, i32) {
    %c0_i32 = arith.constant 0 : i32
    %c0_i32_0 = arith.constant 0 : i32
    %c0_i32_1 = arith.constant 0 : i32
    return %arg0, %c0_i32, %c0_i32_0 : i32, i32, i32
  }
  func.func @transform_2(%arg0: i32) -> (i32, i32, i32) {
    %c0_i32 = arith.constant 0 : i32
    %c0_i32_0 = arith.constant 0 : i32
    %c0_i32_1 = arith.constant 0 : i32
    return %arg0, %c0_i32, %c0_i32_0 : i32, i32, i32
  }
  func.func @transform_3(%arg0: i32) -> i32 {
    %c0_i32 = arith.constant 0 : i32
    %c0_i32_0 = arith.constant 0 : i32
    return %c0_i32 : i32
  }
  func.func @transform_4(%arg0: i32) -> (i32, i32) {
    %c0_i32 = arith.constant 0 : i32
    %c0_i32_0 = arith.constant 0 : i32
    %c0_i32_1 = arith.constant 0 : i32
    return %c0_i32, %c0_i32_0 : i32, i32
  }
  func.func @transform_5(%arg0: i32) -> (i32, i32) {
    %c0_i32 = arith.constant 0 : i32
    %c0_i32_0 = arith.constant 0 : i32
    %c0_i32_1 = arith.constant 0 : i32
    return %c0_i32, %c0_i32_0 : i32, i32
  }
  func.func @transform_6(%arg0: i32) -> (i32, i32, i32) {
    %c0_i32 = arith.constant 0 : i32
    %c0_i32_0 = arith.constant 0 : i32
    %c0_i32_1 = arith.constant 0 : i32
    return %arg0, %c0_i32, %c0_i32_0 : i32, i32, i32
  }
}

</mosaic_0001>

<bundles_post_ra>
// kernel: _lambda_.8
= control target key start
LH: loop header
LB: loop body
LE: loop exit
PB: predicated region body
PF: predicated region fallthrough
CT: control target
= control target key end

     0   :  { %s466_s12 = smov 0   ;;  %s513_s0 = inlined_call_operand.vmem [shape: f32[2,64,16], index: 0, kind: input, shape index: {}]   ;;  %s514_s1 = inlined_call_operand.vmem [shape: bf16[16,2], index: 1, kind: input, shape index: {}]   ;;  %s515_s2 = inlined_call_operand.vmem [shape: bf16[2,16], index: 2, kind: input, shape index: {}]   ;;  %s516_s3 = inlined_call_operand.vmem [shape: f32[2,64,16], index: 3, kind: output, shape index: {}]  }
   0x1 LB: > { %s388_s13 = sadd.s32 4294967295, %s442_s12   ;;  %p392_p0 = scmp.ge.s32.totalorder %s442_s12, 1  ;;  %s442_s12 = sphi %s466_s12, %s13_s12  }
   0x2   : > { %p137_p1 = scmp.lt.s32.totalorder %s442_s12, 3 }
   0x4   : > { %p138_p2 = pnand %p392_p0, %p137_p1 }
   0x5   : > { %v431_v0 = vld [vmem:[%s514_s1] sm:$0xff] (!%p138_p2)   ;;  %v444_v1 = vmov (!%p138_p2), 0.0   ;;  %p161_p3 = scmp.lt.s32.totalorder (!%p138_p2), %s388_s13, 1  ;;  %vm445_vm0 = vmmov (!%p138_p2), 0   ;;  %vm180_vm1 = vcmask (!%p138_p2), 130048   ;;  %vm263_vm2 = vcmask (!%p138_p2), 1040384  }
   0x6   : > { %141 = sbr.rel (%p138_p2) target bundleno = 510 (0x1fe), region = 32  ;;  %409 = vmatprep.subr.bf16.mxu0 (!%p138_p2), %v444_v1  ;;  %415 = vmatprep.subr.bf16.mxu1 (!%p138_p2), %v444_v1  ;;  %v258_v33 = vld [vmem:[%s515_s2] sm:$0x1] (!%p138_p2)  ;;  %vm259_vm3 = vcmask (!%p138_p2), 15360   ;;  %v313_v48 = vlaneseq (!%p138_p2) }
   0x7   : > { %410 = vmatpush3.bf16.msra.mxu0 (!%p138_p2), %v431_v0  ;;  %411 = vmatprep.mubr.msk.bf16.mxu0 (!%p138_p2), %vm445_vm0, %v444_v1  ;;  %v265_v34 = vsel (!%p138_p2), %vm263_vm2, %v258_v33, 0 }
   0x8   : > { %417 = vmatprep.mubr.msk.bf16.mxu1 (!%p138_p2), %vm445_vm0, %v444_v1  ;;  %416 = vmatpush3.bf16.msra.mxu1 (!%p138_p2), %v265_v34  ;;  %v314_v49 = vshrl.u32 (!%p138_p2), %v313_v48, 7 }
   0xa   : > { %v315_v50 = vsub.s32 (!%p138_p2), 0, %v314_v49 }
   0xd   : > { %s518_s13 = smov (!%p161_p3, %s388_s13), 1 }
   0xe   : > { %s403_s16 = sshll.u32 %s518_s13, 6 }
   0xf   : > { %s165_s19 = scalar_lea.vmem %s513_s0, %s403_s16  ;;  %s170_s24 = scalar_lea.vmem %s516_s3, %s403_s16 }
  0x10   : > { %v172_v2 = vld [vmem:[%s165_s19] sm:$0xff]  ;;  %v173_v3 = vld [vmem:[%s165_s19 + $0x8] sm:$0xff]  ;;  %v174_v4 = vld [vmem:[%s165_s19 + $0x10] sm:$0xff] }
  0x11   : > { %v175_v5 = vld [vmem:[%s165_s19 + $0x18] sm:$0xff]  ;;  %v181_v6 = vsel %vm180_vm1, %v172_v2, 0.0  ;;  %v182_v7 = vsel %vm180_vm1, %v173_v3, 0.0  ;;  %v184_v8 = vsel %vm180_vm1, %v174_v4, 0.0  ;;  %v176_v9 = vld [vmem:[%s165_s19 + $0x20] sm:$0xff]  ;;  %v177_v12 = vld [vmem:[%s165_s19 + $0x28] sm:$0xff] }
  0x12   : > { %v183_v10 = vadd.f32 %v182_v7, %v181_v6  ;;  %v186_v11 = vsel %vm180_vm1, %v175_v5, 0.0  ;;  %v188_v14 = vsel %vm180_vm1, %v176_v9, 0.0  ;;  %v178_v15 = vld [vmem:[%s165_s19 + $0x30] sm:$0xff]  ;;  %v190_v17 = vsel %vm180_vm1, %v177_v12, 0.0  ;;  %v179_v18 = vld [vmem:[%s165_s19 + $0x38] sm:$0xff] }
  0x13   : > { %v192_v20 = vsel %vm180_vm1, %v178_v15, 0.0  ;;  %v194_v22 = vsel %vm180_vm1, %v179_v18, 0.0 }
  0x14   : > { %v185_v13 = vadd.f32 %v184_v8, %v183_v10 }
  0x16   : > { %v187_v16 = vadd.f32 %v186_v11, %v185_v13 }
  0x18   : > { %v189_v19 = vadd.f32 %v188_v14, %v187_v16 }
  0x1a   : > { %v191_v21 = vadd.f32 %v190_v17, %v189_v19 }
  0x1c   : > { %v193_v23 = vadd.f32 %v192_v20, %v191_v21 }
  0x1e   : > { %v195_v24 = vadd.f32 %v194_v22, %v193_v23 }
  0x20   : > { %v196_v25 = vrot.slane %v195_v24, 4 }
  0x22   : > { %v197_v26 = vadd.f32 %v196_v25, %v195_v24 }
  0x24   : > { %v198_v27 = vrot.slane %v197_v26, 2 }
  0x26   : > { %v199_v28 = vadd.f32 %v198_v27, %v197_v26 }
  0x28   : > { %v200_v29 = vrot.slane %v199_v28, 1 }
  0x2a   : > { %v201_v30 = vadd.f32 %v200_v29, %v199_v28 }
  0x2c   : > { %v203_v31 = vmul.f32 0.015625, %v201_v30 }
  0x2e   : > { %v204_v32 = vpack.c.bf16 %v203_v31, %v203_v31 }
  0x30   : > { %412 = vmatmul.mubr.msk.bf16.vlgmr.msra.gmra.mrb[0].mxu0 %vm180_vm1, %v204_v32 }
 0x103   : > { %v250_v35 = vpop.f32.mrb[0].mxu0 }
 0x104   : > { %v256_v36 = vmax.f32 %v250_v35, 0.0  ;;  %v413_v37 = vpop.f32.mrb[1].mxu0 }
 0x105   : > { %v253_v38 = vpop.f32.mrb[2].mxu0 }
 0x106   : > { %v257_v39 = vpack.c.bf16 %v256_v36, %v256_v36  ;;  %v414_v40 = vpop.f32.mrb[3].mxu0 }
 0x108   : > { %418 = vmatmul.mubr.msk.bf16.vlgmr.msra.gmra.mrb[0].mxu1 %vm259_vm3, %v257_v39 }
 0x1db   : > { %v301_v41 = vpop.f32.mrb[0].mxu1 }
 0x1dc   : > { %v400_v42 = vmul.f32 -1.442695, %v301_v41  ;;  %v419_v43 = vpop.f32.mrb[1].mxu1 }
 0x1dd   : > { %v304_v44 = vpop.f32.mrb[2].mxu1 }
 0x1de   : > { %432 = vpow2.f32 %v400_v42  ;;  %v420_v45 = vpop.f32.mrb[3].mxu1 }
 0x1e8   : > { %v433_v46 = vpop.eup %432 }
 0x1e9   : > { %v310_v47 = vadd.f32 1.0, %v433_v46 }
 0x1eb   : > { %434 = vrcp.f32 %v310_v47 }
 0x1f5   : > { %v435_v51 = vpop.eup %434 }
 0x1f6   : > { %v316_v52 = vrot.slane %v435_v51, %v315_v50 }
 0x1f8   : > { %v317_v53 = vmul.f32 %v316_v52, %v172_v2  ;;  %v318_v54 = vmul.f32 %v316_v52, %v173_v3  ;;  %v319_v55 = vmul.f32 %v316_v52, %v174_v4  ;;  %v320_v56 = vmul.f32 %v316_v52, %v175_v5 }
 0x1f9   : > { %v321_v57 = vmul.f32 %v316_v52, %v176_v9  ;;  %v322_v58 = vmul.f32 %v316_v52, %v177_v12  ;;  %v323_v59 = vmul.f32 %v316_v52, %v178_v15  ;;  %v324_v60 = vmul.f32 %v316_v52, %v179_v18 }
 0x1fa   : > { %325 = vst.msk [vmem:[%s170_s24] sm:$0xff] %vm180_vm1, %v317_v53  ;;  %326 = vst.msk [vmem:[%s170_s24 + $0x8] sm:$0xff] %vm180_vm1, %v318_v54 }
 0x1fb   : > { %327 = vst.msk [vmem:[%s170_s24 + $0x10] sm:$0xff] %vm180_vm1, %v319_v55  ;;  %328 = vst.msk [vmem:[%s170_s24 + $0x18] sm:$0xff] %vm180_vm1, %v320_v56 }
 0x1fc   : > { %329 = vst.msk [vmem:[%s170_s24 + $0x20] sm:$0xff] %vm180_vm1, %v321_v57  ;;  %330 = vst.msk [vmem:[%s170_s24 + $0x28] sm:$0xff] %vm180_vm1, %v322_v58 }
 0x1fd   : > { %331 = vst.msk [vmem:[%s170_s24 + $0x30] sm:$0xff] %vm180_vm1, %v323_v59  ;;  %332 = vst.msk [vmem:[%s170_s24 + $0x38] sm:$0xff] %vm180_vm1, %v324_v60 }
 0x1fe PF: > { %s13_s12 = sadd.s32 1, %s442_s12  }
 0x1ff   : > { %p10_p4 = scmp.ge.s32.totalorder %s13_s12, 4  }
 0x201   :  { %12 = sbr.rel (!%p10_p4) target bundleno = 1 (0x1), region = 62 }

// kernel: _lambda_.7
= control target key start
LH: loop header
LB: loop body
LE: loop exit
PB: predicated region body
PF: predicated region fallthrough
CT: control target
= control target key end

     0   :  { %s1499_s18 = smov 0   ;;  %s1501_s19 = smov 0   ;;  %s1809_s0 = inlined_call_operand.vmem [shape: bf16[2,64,16], index: 0, kind: input, shape index: {}, may-alias: {0,1}]   ;;  %s1810_s1 = inlined_call_operand.vmem [shape: bf16[2,64,16], index: 1, kind: input, shape index: {}, may-alias: {0,1}]   ;;  %s1811_s2 = inlined_call_operand.vmem [shape: bf16[2,64,8], index: 2, kind: input, shape index: {}]   ;;  %s1812_s3 = inlined_call_operand.vmem [shape: bf16[8,16], index: 3, kind: input, shape index: {}]   ;;  %s1813_s4 = inlined_call_operand.vmem [shape: f32[1,16], index: 4, kind: input, shape index: {}]   ;;  %s1814_s5 = inlined_call_operand.vmem [shape: f32[2,64,16], index: 5, kind: output, shape index: {}]  }
   0x1   :  { %s1503_s20 = smov 0  }
   0x2 LB: > { %s34_s21 = sadd.s32 1, %s1460_s19  ;;  %p1234_p0 = scmp.ge.s32.totalorder %s1464_s20, 1  ;;  %s1464_s20 = sphi %s1503_s20, %s15_s20   ;;  %s1460_s19 = sphi %s1501_s19, %s1816_s19   ;;  %s1456_s18 = sphi %s1499_s18, %s1815_s18  }
   0x3   : > { %p36_p1 = scmp.ge.s32.totalorder %s34_s21, 2  ;;  %p249_p2 = scmp.lt.s32.totalorder %s1464_s20, 3 }
   0x5   : > { %s1818_s21 = smov (%p36_p1, %s34_s21), 0  ;;  %p250_p3 = pnand %p1234_p0, %p249_p2 }
   0x6   : > { %p304_p4 = scmp.lt.s32.totalorder (!%p250_p3), %s1456_s18, 1  ;;  %vm430_vm0 = vcmask (!%p250_p3), 130048   ;;  %vm348_vm1 = vcmask (!%p250_p3), 7168   ;;  %v1466_v12 = vmov (!%p250_p3), -inf   ;;  %vm528_vm2 = vcmask (!%p250_p3), 523264  }
   0x7   : > { %253 = sbr.rel (%p250_p3) target bundleno = 1097 (0x449), region = 40  ;;  %351 = vst.msk [vmem:[#allocation2 + $0x10] sm:$0xff] (!%p250_p3), %vm348_vm1, %v1466_v12  ;;  %349 = vst.msk [vmem:[#allocation2] sm:$0xff] (!%p250_p3), %vm348_vm1, %v1466_v12  ;;  %v1467_v29 = vmov (!%p250_p3), 0   ;;  %v1468_v30 = vmov (!%p250_p3), 0.0   ;;  %vm365_vm3 = vcmask (!%p250_p3), 64512  }
   0x8   : > { %350 = vst.msk [vmem:[#allocation2 + $0x8] sm:$0xff] (!%p250_p3), %vm348_vm1, %v1466_v12  ;;  %352 = vst.msk [vmem:[#allocation2 + $0x18] sm:$0xff] (!%p250_p3), %vm348_vm1, %v1466_v12  ;;  %1388 = vset.pattern.permute.xlu0 (!%p250_p3), %v1467_v29  ;;  %1389 = vset.pattern.permute.xlu1 (!%p250_p3), %v1467_v29  ;;  %vm1003_vm4 = vcmask (!%p250_p3), 1043456  }
   0x9   : > { %353 = vst.msk [vmem:[#allocation2 + $0x20] sm:$0xff] (!%p250_p3), %vm348_vm1, %v1466_v12  ;;  %354 = vst.msk [vmem:[#allocation2 + $0x28] sm:$0xff] (!%p250_p3), %vm348_vm1, %v1466_v12 }
   0xa   : > { %355 = vst.msk [vmem:[#allocation2 + $0x30] sm:$0xff] (!%p250_p3), %vm348_vm1, %v1466_v12  ;;  %356 = vst.msk [vmem:[#allocation2 + $0x38] sm:$0xff] (!%p250_p3), %vm348_vm1, %v1466_v12 }
   0xb   : > { %358 = vst.msk [vmem:[#allocation3 + $0x8] sm:$0xff] (!%p250_p3), %vm348_vm1, %v1468_v30  ;;  %357 = vst.msk [vmem:[#allocation3] sm:$0xff] (!%p250_p3), %vm348_vm1, %v1468_v30 }
   0xc   : > { %359 = vst.msk [vmem:[#allocation3 + $0x10] sm:$0xff] (!%p250_p3), %vm348_vm1, %v1468_v30  ;;  %360 = vst.msk [vmem:[#allocation3 + $0x18] sm:$0xff] (!%p250_p3), %vm348_vm1, %v1468_v30 }
   0xd   : > { %361 = vst.msk [vmem:[#allocation3 + $0x20] sm:$0xff] (!%p250_p3), %vm348_vm1, %v1468_v30  ;;  %362 = vst.msk [vmem:[#allocation3 + $0x28] sm:$0xff] (!%p250_p3), %vm348_vm1, %v1468_v30 }
   0xe   : > { %s1820_s18 = smov (!%p304_p4, %s1456_s18), 1  ;;  %363 = vst.msk [vmem:[#allocation3 + $0x30] sm:$0xff] %vm348_vm1, %v1468_v30  ;;  %364 = vst.msk [vmem:[#allocation3 + $0x38] sm:$0xff] %vm348_vm1, %v1468_v30  ;;  %v1604_v31 = vld [vmem:[#allocation2 + $0x10] sm:$0xff]  ;;  %v1606_v32 = vld [vmem:[#allocation2] sm:$0xff] }
   0xf   : > { %s1520_s22 = sshll.u32 %s1820_s18, 5  ;;  %v1614_v37 = vld [vmem:[#allocation2 + $0x18] sm:$0xff]  ;;  %v1621_v39 = vld [vmem:[#allocation2 + $0x8] sm:$0xff]  ;;  %367 = vst.msk [vmem:[#allocation4 + $0x8] sm:$0xff] %vm365_vm3, %v1468_v30  ;;  %366 = vst.msk [vmem:[#allocation4] sm:$0xff] %vm365_vm3, %v1468_v30  ;;  %s1273_s11 = sshll.u32 %s1820_s18, 6 }
  0x10   : > { %s321_s25 = scalar_lea.vmem %s1810_s1, %s1520_s22  ;;  %s1530_s28 = scalar_lea.vmem %s1809_s0, %s1520_s22  ;;  %v1639_v46 = vld [vmem:[#allocation2 + $0x20] sm:$0xff]  ;;  %v1645_v49 = vld [vmem:[#allocation2 + $0x28] sm:$0xff]  ;;  %368 = vst.msk [vmem:[#allocation4 + $0x10] sm:$0xff] %vm365_vm3, %v1468_v30  ;;  %369 = vst.msk [vmem:[#allocation4 + $0x18] sm:$0xff] %vm365_vm3, %v1468_v30 }
  0x11   : > { %v1390_v0 = vld [vmem:[%s321_s25] sm:$0xff]   ;;  %v1391_v1 = vld [vmem:[%s321_s25 + $0x8] sm:$0xff]   ;;  %v1392_v5 = vld [vmem:[%s321_s25 + $0x10] sm:$0xff]   ;;  %s331_s6 = scalar_lea.vmem %s1811_s2, %s1520_s22  ;;  %370 = vst.msk [vmem:[#allocation4 + $0x20] sm:$0xff] %vm365_vm3, %v1468_v30  ;;  %s1780_s14 = scalar_lea.vmem %s1814_s5, %s1273_s11 }
  0x12   : > { %1356 = vmatprep.subr.msk.bf16.mxu0 %vm430_vm0, %v1390_v0  ;;  %v444_v2 = vsel %vm430_vm0, %v1390_v0, 0  ;;  %v1394_v3 = vld [vmem:[%s1530_s28] sm:$0xff]   ;;  %v447_v4 = vsel %vm430_vm0, %v1391_v1, 0  ;;  %v450_v6 = vsel %vm430_vm0, %v1392_v5, 0  ;;  %v1393_v7 = vld [vmem:[%s321_s25 + $0x18] sm:$0xff]   ;;  %v1395_v9 = vld [vmem:[%s1530_s28 + $0x8] sm:$0xff]  }
  0x13   : > { %1315 = vmatpush3.bf16.xpose.msra.mxu0 %v444_v2  ;;  %1322 = vmatprep.mubr.msk.bf16.mxu0 %vm430_vm0, %v1394_v3  ;;  %v453_v8 = vsel %vm430_vm0, %v1393_v7, 0  ;;  %v1396_v10 = vld [vmem:[%s1530_s28 + $0x10] sm:$0xff]   ;;  %v1397_v11 = vld [vmem:[%s1530_s28 + $0x18] sm:$0xff]   ;;  %v1398_v56 = vld [vmem:[%s331_s6] sm:$0xff]   ;;  %371 = vst.msk [vmem:[#allocation4 + $0x28] sm:$0xff] %vm365_vm3, %v1468_v30 }
  0x14   : > { %1357 = vmatprep.subr.msk.bf16.mxu0 %vm430_vm0, %v1391_v1  ;;  %v1651_v52 = vld [vmem:[#allocation2 + $0x30] sm:$0xff]  ;;  %v1653_v53 = vld [vmem:[#allocation2 + $0x38] sm:$0xff]  ;;  %1330 = vmatprep.subr.bf16.mxu1 %v1398_v56  ;;  %v1399_v63 = vld [vmem:[%s331_s6 + $0x8] sm:$0xff]   ;;  %372 = vst.msk [vmem:[#allocation4 + $0x30] sm:$0xff] %vm365_vm3, %v1468_v30 }
  0x15   : > { %1331 = vmatpush3.bf16.msra.mxu1 %v1398_v56  ;;  %v1400_v1 = vld [vmem:[%s331_s6 + $0x10] sm:$0xff]   ;;  %v1401_v2 = vld [vmem:[%s331_s6 + $0x18] sm:$0xff]   ;;  %373 = vst.msk [vmem:[#allocation4 + $0x38] sm:$0xff] %vm365_vm3, %v1468_v30 }
  0x16   : > { %1332 = vmatprep.subr.bf16.mxu1 %v1399_v63 }
  0x19   : > { %1333 = vmatpush3.bf16.msra.mxu1 %v1399_v63 }
  0x1a   : > { %1334 = vmatprep.subr.bf16.mxu1 %v1400_v1 }
  0x1b   : > { %1317 = vmatpush3.bf16.xpose.msra.mxu0 %v447_v4 }
  0x1c   : > { %1358 = vmatprep.subr.msk.bf16.mxu0 %vm430_vm0, %v1392_v5 }
  0x1d   : > { %1335 = vmatpush3.bf16.msra.mxu1 %v1400_v1 }
  0x1e   : > { %1336 = vmatprep.subr.bf16.mxu1 %v1401_v2 }
  0x21   : > { %1337 = vmatpush3.bf16.msra.mxu1 %v1401_v2 }
  0x23   : > { %1319 = vmatpush3.bf16.xpose.msra.mxu0 %v450_v6 }
  0x24   : > { %1359 = vmatprep.subr.msk.bf16.mxu0 %vm430_vm0, %v1393_v7 }
  0x2b   : > { %1321 = vmatpush3.bf16.xpose.msra.mxu0 %v453_v8 }
  0x32   : > { %1323 = vmatmul.mubr.msk.bf16.vlgmr.msra.gmra.mrb[0].mxu0 %vm430_vm0, %v1395_v9 }
  0x33   : > { %1326 = vmatprep.mubr.msk.bf16.mxu0 %vm430_vm0, %v1396_v10 }
  0x3a   : > { %1327 = vmatmul.mubr.msk.bf16.gmra.mrb[4].mxu0 %vm430_vm0, %v1397_v11 }
 0x105   : > { %v1556_v13 = vpop.f32.mrb[0].mxu0 }
 0x106   : > { %v1558_v14 = vpop.f32.mrb[1].mxu0  ;;  %v535_v15 = vsel %vm528_vm2, %v1556_v13, -inf }
 0x107   : > { %536 = vmax.xlane.f32.xlu1 %v535_v15  ;;  %v1562_v16 = vpop.f32.mrb[2].mxu0  ;;  %v529_v17 = vsel %vm528_vm2, %v1558_v14, -inf }
 0x108   : > { %530 = vmax.xlane.f32.xlu0 %v529_v17  ;;  %v1566_v18 = vpop.f32.mrb[3].mxu0  ;;  %v538_v19 = vsel %vm528_vm2, %v1562_v16, -inf }
 0x109   : > { %v532_v20 = vsel %vm528_vm2, %v1566_v18, -inf }
 0x10b   : > { %539 = vmax.xlane.f32.xlu1 %v538_v19 }
 0x10c   : > { %533 = vmax.xlane.f32.xlu0 %v532_v20 }
 0x10d   : > { %v1572_v21 = vpop.f32.mrb[4].mxu0 }
 0x10e   : > { %v1574_v22 = vpop.f32.mrb[5].mxu0  ;;  %v547_v27 = vsel %vm528_vm2, %v1572_v21, -inf }
 0x10f   : > { %v1576_v23 = vpop.f32.mrb[6].mxu0  ;;  %v541_v24 = vsel %vm528_vm2, %v1574_v22, -inf }
 0x110   : > { %542 = vmax.xlane.f32.xlu0 %v541_v24  ;;  %v1580_v25 = vpop.f32.mrb[7].mxu0  ;;  %v550_v28 = vsel %vm528_vm2, %v1576_v23, -inf }
 0x111   : > { %v544_v26 = vsel %vm528_vm2, %v1580_v25, -inf }
 0x112   : > { %545 = vmax.xlane.f32.xlu1 %v544_v26 }
 0x114   : > { %548 = vmax.xlane.f32.xlu0 %v547_v27 }
 0x116   : > { %551 = vmax.xlane.f32.xlu1 %v550_v28 }
 0x194   : > { %v537_v33 = vpop.xlane.xlu1 %536 }
 0x195   : > { %v1609_v34 = vmax.f32 %v1604_v31, %v537_v33  ;;  %v531_v35 = vpop.xlane.xlu0 %530 }
 0x196   : > { %v1612_v36 = vmax.f32 %v1606_v32, %v531_v35 }
 0x197   : > { %v563_v38 = vsub.f32 %v1604_v31, %v1609_v34  ;;  %898 = vst.msk [vmem:[#allocation2 + $0x10] sm:$0xff] %vm348_vm1, %v1609_v34  ;;  %597 = vperm.xlu1 %1389, %v1609_v34  }
 0x198   : > { %v561_v40 = vsub.f32 %v1606_v32, %v1612_v36  ;;  %896 = vst.msk [vmem:[#allocation2] sm:$0xff] %vm348_vm1, %v1612_v36  ;;  %v540_v41 = vpop.xlane.xlu1 %539  ;;  %587 = vperm.xlu0 %1388, %v1612_v36  }
 0x199   : > { %v1629_v42 = vmax.f32 %v1614_v37, %v540_v41  ;;  %v534_v43 = vpop.xlane.xlu0 %533 }
 0x19a   : > { %v1632_v44 = vmax.f32 %v1621_v39, %v534_v43 }
 0x19b   : > { %v564_v45 = vsub.f32 %v1614_v37, %v1629_v42  ;;  %899 = vst.msk [vmem:[#allocation2 + $0x18] sm:$0xff] %vm348_vm1, %v1629_v42  ;;  %602 = vperm.xlu1 %1389, %v1629_v42  }
 0x19c   : > { %v562_v47 = vsub.f32 %v1621_v39, %v1632_v44  ;;  %897 = vst.msk [vmem:[#allocation2 + $0x8] sm:$0xff] %vm348_vm1, %v1632_v44 }
 0x19d   : > { %v543_v48 = vpop.xlane.xlu0 %542  ;;  %v575_v31 = vmul.f32 1.442695, %v564_v45 }
 0x19e   : > { %v1648_v50 = vmax.f32 %v1639_v46, %v543_v48 }
 0x19f   : > { %592 = vperm.xlu1 %1389, %v1632_v44   ;;  %v546_v51 = vpop.xlane.xlu1 %545 }
 0x1a0   : > { %v565_v54 = vsub.f32 %v1639_v46, %v1648_v50  ;;  %900 = vst.msk [vmem:[#allocation2 + $0x20] sm:$0xff] %vm348_vm1, %v1648_v50  ;;  %v1664_v55 = vmax.f32 %v1645_v49, %v546_v51  ;;  %v983_v46 = vld [vmem:[%s1812_s3] sm:$0xf] }
 0x1a1   : > { %v549_v57 = vpop.xlane.xlu0 %548  ;;  %1360 = vmatprep.subr.msk.bf16.mxu1 %vm1003_vm4, %v983_v46 }
 0x1a2   : > { %v566_v58 = vsub.f32 %v1645_v49, %v1664_v55  ;;  %901 = vst.msk [vmem:[#allocation2 + $0x28] sm:$0xff] %vm348_vm1, %v1664_v55  ;;  %v1671_v59 = vmax.f32 %v1651_v52, %v549_v57  ;;  %v650_v49 = vld [vmem:[#allocation3 + $0x8] sm:$0xff] }
 0x1a3   : > { %v552_v60 = vpop.xlane.xlu1 %551 }
 0x1a4   : > { %v567_v61 = vsub.f32 %v1651_v52, %v1671_v59  ;;  %902 = vst.msk [vmem:[#allocation2 + $0x30] sm:$0xff] %vm348_vm1, %v1671_v59  ;;  %v1678_v62 = vmax.f32 %v1653_v53, %v552_v60  ;;  %617 = vperm.xlu1 %1389, %v1671_v59   ;;  %v579_v34 = vmul.f32 1.442695, %v566_v58  ;;  %v651_v58 = vld [vmem:[#allocation3 + $0x10] sm:$0xff]  ;;  %v652_v59 = vld [vmem:[#allocation3 + $0x18] sm:$0xff] }
 0x1a6   : > { %v568_v0 = vsub.f32 %v1653_v53, %v1678_v62  ;;  %903 = vst.msk [vmem:[#allocation2 + $0x38] sm:$0xff] %vm348_vm1, %v1678_v62  ;;  %v581_v32 = vmul.f32 1.442695, %v567_v61 }
 0x1a8   : > { %607 = vperm.xlu1 %1389, %v1648_v50   ;;  %v583_v30 = vmul.f32 1.442695, %v568_v0  ;;  %v649_v50 = vld [vmem:[#allocation3] sm:$0xff] }
 0x1ac   : > { %612 = vperm.xlu1 %1389, %v1664_v55  }
 0x1b0   : > { %622 = vperm.xlu1 %1389, %v1678_v62  }
 0x216   : > { %v598_v3 = vpop.permute.xlu1 %597 }
 0x217   : > { %v627_v5 = vsub.f32 %v1556_v13, %v598_v3  ;;  %v588_v7 = vpop.permute.xlu0 %587 }
 0x218   : > { %v625_v10 = vsub.f32 %v1558_v14, %v588_v7 }
 0x21a   : > { %v603_v4 = vpop.permute.xlu1 %602 }
 0x21b   : > { %v628_v6 = vsub.f32 %v1562_v16, %v603_v4 }
 0x21d   : > { %v634_v8 = vpack.c.bf16 %v628_v6, %v627_v5 }
 0x21e   : > { %v593_v9 = vpop.permute.xlu1 %592 }
 0x21f   : > { %v626_v11 = vsub.f32 %v1566_v18, %v593_v9  ;;  %v641_v12 = vmul.bf16 1069105081, %v634_v8  ;;  %v571_v8 = vmul.f32 1.442695, %v562_v47  ;;  %v573_v9 = vmul.f32 1.442695, %v563_v38 }
 0x220   : > { %v1005_v47 = vsel %vm1003_vm4, %v983_v46, 0 }
 0x221   : > { %v633_v15 = vpack.c.bf16 %v626_v11, %v625_v10  ;;  %1402 = vpow.bf16 %v641_v12  ;;  %v569_v10 = vmul.f32 1.442695, %v561_v40  ;;  %v577_v11 = vmul.f32 1.442695, %v565_v54 }
 0x223   : > { %v638_v17 = vmul.bf16 1069105081, %v633_v15  ;;  %v618_v19 = vpop.permute.xlu1 %617 }
 0x224   : > { %v631_v14 = vsub.f32 %v1572_v21, %v618_v19 }
 0x225   : > { %1404 = vpow.bf16 %v638_v17 }
 0x227   : > { %v608_v20 = vpop.permute.xlu1 %607 }
 0x228   : > { %v629_v26 = vsub.f32 %v1574_v22, %v608_v20 }
 0x22b   : > { %v613_v24 = vpop.permute.xlu1 %612 }
 0x22c   : > { %v630_v13 = vsub.f32 %v1580_v25, %v613_v24  ;;  %v1403_v27 = vpop.eup %1402  ;;  %v653_v24 = vld [vmem:[#allocation3 + $0x20] sm:$0xff] }
 0x22d   : > { %v667_v48 = vunpack.c.l.bf16 %v1403_v27  ;;  %v668_v51 = vunpack.c.h.bf16 %v1403_v27 }
 0x22e   : > { %v635_v16 = vpack.c.bf16 %v630_v13, %v629_v26  ;;  %v654_v26 = vld [vmem:[#allocation3 + $0x28] sm:$0xff] }
 0x22f   : > { %v623_v28 = vpop.permute.xlu1 %622  ;;  %v679_v21 = vsel %vm528_vm2, %v667_v48, 0.0 }
 0x230   : > { %v1405_v29 = vpop.eup %1404  ;;  %v644_v33 = vmul.bf16 1069105081, %v635_v16  ;;  %v632_v18 = vsub.f32 %v1576_v23, %v623_v28  ;;  %v682_v23 = vsel %vm528_vm2, %v668_v51, 0.0 }
 0x231   : > { %1338 = vmatprep.mubr.msk.bf16.mxu1 %vm528_vm2, %v1405_v29  ;;  %v666_v35 = vunpack.c.h.bf16 %v1405_v29  ;;  %v665_v41 = vunpack.c.l.bf16 %v1405_v29 }
 0x232   : > { %1406 = vpow.bf16 %v644_v33  ;;  %v636_v43 = vpack.c.bf16 %v632_v18, %v631_v14  ;;  %1339 = vmatmul.mubr.msk.bf16.vlgmr.msra.gmra.mrb[0].mxu1 %vm528_vm2, %v1403_v27  ;;  %v655_v33 = vld [vmem:[#allocation3 + $0x30] sm:$0xff]  ;;  %v656_v18 = vld [vmem:[#allocation3 + $0x38] sm:$0xff] }
 0x233   : > { %v676_v22 = vsel %vm528_vm2, %v666_v35, 0.0  ;;  %v673_v25 = vsel %vm528_vm2, %v665_v41, 0.0  ;;  %1347 = vmatpush3.bf16.msra.mxu1 %v1005_v47 }
 0x234   : > { %v647_v56 = vmul.bf16 1069105081, %v636_v43  ;;  %677 = vadd.xlane.f32.xlu0 %v676_v22  ;;  %674 = vadd.xlane.f32.xlu1 %v673_v25 }
 0x236   : > { %1408 = vpow.bf16 %v647_v56 }
 0x237   : > { %1410 = vpow2.f32 %v571_v8 }
 0x238   : > { %680 = vadd.xlane.f32.xlu0 %v679_v21  ;;  %683 = vadd.xlane.f32.xlu1 %v682_v23  ;;  %1412 = vpow2.f32 %v573_v9 }
 0x239   : > { %1414 = vpow2.f32 %v569_v10 }
 0x23a   : > { %1416 = vpow2.f32 %v577_v11 }
 0x23b   : > { %1418 = vpow2.f32 %v575_v31  ;;  %v716_v31 = vld [vmem:[#allocation4 + $0x10] sm:$0xff] }
 0x23c   : > { %1420 = vpow2.f32 %v581_v32 }
 0x23d   : > { %v1407_v57 = vpop.eup %1406  ;;  %1422 = vpow2.f32 %v579_v34  ;;  %v714_v34 = vld [vmem:[#allocation4] sm:$0xff] }
 0x23e   : > { %1342 = vmatprep.mubr.msk.bf16.mxu1 %vm528_vm2, %v1407_v57  ;;  %v670_v60 = vunpack.c.h.bf16 %v1407_v57  ;;  %v669_v63 = vunpack.c.l.bf16 %v1407_v57  ;;  %1424 = vpow2.f32 %v583_v30 }
 0x240   : > { %v688_v1 = vsel %vm528_vm2, %v670_v60, 0.0  ;;  %v685_v2 = vsel %vm528_vm2, %v669_v63, 0.0 }
 0x241   : > { %v1409_v3 = vpop.eup %1408  ;;  %689 = vadd.xlane.f32.xlu1 %v688_v1  ;;  %686 = vadd.xlane.f32.xlu0 %v685_v2 }
 0x242   : > { %1343 = vmatmul.mubr.msk.bf16.gmra.mrb[4].mxu1 %vm528_vm2, %v1409_v3  ;;  %v672_v4 = vunpack.c.h.bf16 %v1409_v3  ;;  %v671_v5 = vunpack.c.l.bf16 %v1409_v3  ;;  %v1411_v36 = vpop.eup %1410 }
 0x243   : > { %v1413_v37 = vpop.eup %1412  ;;  %v658_v52 = vmul.f32 %v1411_v36, %v650_v49 }
 0x244   : > { %v694_v6 = vsel %vm528_vm2, %v672_v4, 0.0  ;;  %v691_v7 = vsel %vm528_vm2, %v671_v5, 0.0  ;;  %v1415_v38 = vpop.eup %1414  ;;  %v659_v0 = vmul.f32 %v1413_v37, %v651_v58  ;;  %v720_v58 = vld [vmem:[#allocation4 + $0x30] sm:$0xff] }
 0x245   : > { %695 = vadd.xlane.f32.xlu1 %v694_v6  ;;  %692 = vadd.xlane.f32.xlu0 %v691_v7  ;;  %v1417_v39 = vpop.eup %1416  ;;  %v657_v53 = vmul.f32 %v1415_v38, %v649_v50 }
 0x246   : > { %v1419_v40 = vpop.eup %1418  ;;  %v661_v27 = vmul.f32 %v1417_v39, %v653_v24 }
 0x247   : > { %v1421_v42 = vpop.eup %1420  ;;  %v660_v12 = vmul.f32 %v1419_v40, %v652_v59 }
 0x248   : > { %v1423_v44 = vpop.eup %1422  ;;  %v663_v25 = vmul.f32 %v1421_v42, %v655_v33 }
 0x249   : > { %v1425_v45 = vpop.eup %1424  ;;  %v662_v28 = vmul.f32 %v1423_v44, %v654_v26 }
 0x24a   : > { %v664_v48 = vmul.f32 %v1425_v45, %v656_v18 }
 0x256   : > { %729 = vperm.xlu1 %1389, %v1411_v36   ;;  %v717_v36 = vld [vmem:[#allocation4 + $0x18] sm:$0xff] }
 0x25a   : > { %734 = vperm.xlu1 %1389, %v1413_v37   ;;  %v715_v37 = vld [vmem:[#allocation4 + $0x8] sm:$0xff] }
 0x25b   : > { %724 = vperm.xlu0 %1388, %v1415_v38  }
 0x25e   : > { %744 = vperm.xlu1 %1389, %v1417_v39  }
 0x25f   : > { %739 = vperm.xlu0 %1388, %v1419_v40  }
 0x262   : > { %754 = vperm.xlu1 %1389, %v1421_v42  }
 0x263   : > { %749 = vperm.xlu0 %1388, %v1423_v44  }
 0x267   : > { %759 = vperm.xlu0 %1388, %v1425_v45  }
 0x2c1   : > { %v678_v54 = vpop.xlane.xlu0 %677  ;;  %v675_v55 = vpop.xlane.xlu1 %674 }
 0x2c2   : > { %v698_v61 = vadd.f32 %v678_v54, %v658_v52  ;;  %v697_v62 = vadd.f32 %v675_v55, %v657_v53 }
 0x2c4   : > { %707 = vst.msk [vmem:[#allocation3 + $0x8] sm:$0xff] %vm348_vm1, %v698_v61  ;;  %706 = vst.msk [vmem:[#allocation3] sm:$0xff] %vm348_vm1, %v697_v62  ;;  %v718_v61 = vld [vmem:[#allocation4 + $0x20] sm:$0xff]  ;;  %v721_v62 = vld [vmem:[#allocation4 + $0x38] sm:$0xff] }
 0x2c5   : > { %v681_v15 = vpop.xlane.xlu0 %680  ;;  %v684_v17 = vpop.xlane.xlu1 %683 }
 0x2c6   : > { %v699_v19 = vadd.f32 %v681_v15, %v659_v0  ;;  %v700_v20 = vadd.f32 %v684_v17, %v660_v12  ;;  %v719_v12 = vld [vmem:[#allocation4 + $0x28] sm:$0xff] }
 0x2c8   : > { %708 = vst.msk [vmem:[#allocation3 + $0x10] sm:$0xff] %vm348_vm1, %v699_v19  ;;  %709 = vst.msk [vmem:[#allocation3 + $0x18] sm:$0xff] %vm348_vm1, %v700_v20 }
 0x2cb   : > { %v916_v13 = vld [vmem:[#allocation3 + $0x8] sm:$0xff]  ;;  %v915_v16 = vld [vmem:[#allocation3] sm:$0xff] }
 0x2cc   : > { %1426 = vrcp.f32 %v916_v13 }
 0x2cd   : > { %1428 = vrcp.f32 %v915_v16 }
 0x2ce   : > { %v687_v29 = vpop.xlane.xlu0 %686  ;;  %v690_v14 = vpop.xlane.xlu1 %689 }
 0x2cf   : > { %v701_v35 = vadd.f32 %v687_v29, %v661_v27  ;;  %v702_v41 = vadd.f32 %v690_v14, %v662_v28  ;;  %v917_v43 = vld [vmem:[#allocation3 + $0x10] sm:$0xff]  ;;  %v918_v22 = vld [vmem:[#allocation3 + $0x18] sm:$0xff] }
 0x2d0   : > { %1430 = vrcp.f32 %v917_v43 }
 0x2d1   : > { %710 = vst.msk [vmem:[#allocation3 + $0x20] sm:$0xff] %vm348_vm1, %v701_v35  ;;  %711 = vst.msk [vmem:[#allocation3 + $0x28] sm:$0xff] %vm348_vm1, %v702_v41  ;;  %1432 = vrcp.f32 %v918_v22 }
 0x2d2   : > { %v693_v51 = vpop.xlane.xlu0 %692  ;;  %v696_v56 = vpop.xlane.xlu1 %695 }
 0x2d3   : > { %v703_v21 = vadd.f32 %v693_v51, %v663_v25  ;;  %v704_v23 = vadd.f32 %v696_v56, %v664_v48 }
 0x2d5   : > { %712 = vst.msk [vmem:[#allocation3 + $0x30] sm:$0xff] %vm348_vm1, %v703_v21  ;;  %713 = vst.msk [vmem:[#allocation3 + $0x38] sm:$0xff] %vm348_vm1, %v704_v23 }
 0x2d6   : > { %v1427_v57 = vpop.eup %1426  ;;  %v730_v10 = vpop.permute.xlu1 %729 }
 0x2d7   : > { %v1429_v60 = vpop.eup %1428  ;;  %938 = vperm.xlu0 %1388, %v1427_v57   ;;  %v763_v46 = vmul.f32 %v730_v10, %v715_v37 }
 0x2d8   : > { %933 = vperm.xlu1 %1389, %v1429_v60   ;;  %v919_v63 = vld [vmem:[#allocation3 + $0x20] sm:$0xff]  ;;  %v920_v1 = vld [vmem:[#allocation3 + $0x28] sm:$0xff] }
 0x2d9   : > { %1434 = vrcp.f32 %v919_v63 }
 0x2da   : > { %v1431_v2 = vpop.eup %1430  ;;  %1436 = vrcp.f32 %v920_v1  ;;  %v725_v11 = vpop.permute.xlu0 %724 }
 0x2db   : > { %v1433_v3 = vpop.eup %1432  ;;  %v735_v32 = vpop.permute.xlu1 %734  ;;  %v762_v39 = vmul.f32 %v725_v11, %v714_v34  ;;  %v1290_v34 = vld [vmem:[%s1530_s28 + $0x8] sm:$0xff]  }
 0x2dc   : > { %943 = vperm.xlu1 %1389, %v1431_v2   ;;  %948 = vperm.xlu0 %1388, %v1433_v3   ;;  %v921_v4 = vld [vmem:[#allocation3 + $0x30] sm:$0xff]  ;;  %v922_v5 = vld [vmem:[#allocation3 + $0x38] sm:$0xff]  ;;  %v764_v38 = vmul.f32 %v735_v32, %v716_v31  ;;  %v1280_v37 = vunpack.c.l.bf16 %v1290_v34 }
 0x2dd   : > { %1438 = vrcp.f32 %v921_v4 }
 0x2de   : > { %1440 = vrcp.f32 %v922_v5  ;;  %v740_v30 = vpop.permute.xlu0 %739 }
 0x2df   : > { %v765_v42 = vmul.f32 %v740_v30, %v717_v36  ;;  %v745_v54 = vpop.permute.xlu1 %744  ;;  %v1275_v36 = vld [vmem:[%s1530_s28] sm:$0xff]  }
 0x2e0   : > { %v766_v17 = vmul.f32 %v745_v54, %v718_v61  ;;  %v1263_v30 = vld [vmem:[%s1813_s4] ss:$0 sm:$0xff]  ;;  %v1291_v61 = vld [vmem:[%s1530_s28 + $0x10] sm:$0xff]  }
 0x2e2   : > { %v750_v55 = vpop.permute.xlu0 %749 }
 0x2e3   : > { %v1435_v6 = vpop.eup %1434  ;;  %v755_v59 = vpop.permute.xlu1 %754  ;;  %v767_v13 = vmul.f32 %v750_v55, %v719_v12  ;;  %v1284_v12 = vunpack.c.l.bf16 %v1291_v61 }
 0x2e4   : > { %v1437_v7 = vpop.eup %1436  ;;  %953 = vperm.xlu1 %1389, %v1435_v6   ;;  %v768_v15 = vmul.f32 %v755_v59, %v720_v58  ;;  %v1292_v59 = vld [vmem:[%s1530_s28 + $0x18] sm:$0xff]  }
 0x2e5   : > { %958 = vperm.xlu0 %1388, %v1437_v7  }
 0x2e6   : > { %v760_v0 = vpop.permute.xlu0 %759 }
 0x2e7   : > { %v1439_v8 = vpop.eup %1438  ;;  %v769_v20 = vmul.f32 %v760_v0, %v721_v62  ;;  %v1288_v62 = vunpack.c.l.bf16 %v1292_v59 }
 0x2e8   : > { %v1441_v9 = vpop.eup %1440  ;;  %963 = vperm.xlu1 %1389, %v1439_v8  }
 0x2e9   : > { %968 = vperm.xlu0 %1388, %v1441_v9  }
 0x305   : > { %v1340_v40 = vpop.f32.mrb[0].mxu1 }
 0x306   : > { %v881_v44 = vadd.f32 %v1340_v40, %v764_v38  ;;  %v848_v45 = vpop.f32.mrb[1].mxu1 }
 0x307   : > { %v879_v47 = vadd.f32 %v848_v45, %v762_v39  ;;  %v1341_v49 = vpop.f32.mrb[2].mxu1  ;;  %v1276_v39 = vunpack.c.l.bf16 %v1275_v36 }
 0x308   : > { %890 = vst.msk [vmem:[#allocation4 + $0x10] sm:$0xff] %vm365_vm3, %v881_v44  ;;  %v882_v50 = vadd.f32 %v1341_v49, %v765_v42  ;;  %v851_v52 = vpop.f32.mrb[3].mxu1  ;;  %v1281_v44 = vunpack.c.h.bf16 %v1290_v34 }
 0x309   : > { %888 = vst.msk [vmem:[#allocation4] sm:$0xff] %vm365_vm3, %v879_v47  ;;  %v880_v53 = vadd.f32 %v851_v52, %v763_v46  ;;  %v1277_v47 = vunpack.c.h.bf16 %v1275_v36 }
 0x30a   : > { %891 = vst.msk [vmem:[#allocation4 + $0x18] sm:$0xff] %vm365_vm3, %v882_v50 }
 0x30b   : > { %889 = vst.msk [vmem:[#allocation4 + $0x8] sm:$0xff] %vm365_vm3, %v880_v53 }
 0x30f   : > { %v909_v56 = vld [vmem:[#allocation4 + $0x10] sm:$0xff] }
 0x310   : > { %v907_v41 = vld [vmem:[#allocation4] sm:$0xff] }
 0x311   : > { %v910_v48 = vld [vmem:[#allocation4 + $0x18] sm:$0xff] }
 0x312   : > { %v908_v18 = vld [vmem:[#allocation4 + $0x8] sm:$0xff] }
 0x315   : > { %v1344_v19 = vpop.f32.mrb[4].mxu1 }
 0x316   : > { %v885_v24 = vadd.f32 %v1344_v19, %v768_v15  ;;  %v864_v26 = vpop.f32.mrb[5].mxu1  ;;  %v1289_v19 = vunpack.c.h.bf16 %v1292_v59 }
 0x317   : > { %v883_v16 = vadd.f32 %v864_v26, %v766_v17  ;;  %v1345_v27 = vpop.f32.mrb[6].mxu1  ;;  %v1285_v26 = vunpack.c.h.bf16 %v1291_v61 }
 0x318   : > { %894 = vst.msk [vmem:[#allocation4 + $0x30] sm:$0xff] %vm365_vm3, %v885_v24  ;;  %v886_v28 = vadd.f32 %v1345_v27, %v769_v20  ;;  %v867_v29 = vpop.f32.mrb[7].mxu1 }
 0x319   : > { %892 = vst.msk [vmem:[#allocation4 + $0x20] sm:$0xff] %vm365_vm3, %v883_v16  ;;  %v884_v14 = vadd.f32 %v867_v29, %v767_v13 }
 0x31a   : > { %895 = vst.msk [vmem:[#allocation4 + $0x38] sm:$0xff] %vm365_vm3, %v886_v28 }
 0x31b   : > { %893 = vst.msk [vmem:[#allocation4 + $0x28] sm:$0xff] %vm365_vm3, %v884_v14 }
 0x31f   : > { %v913_v7 = vld [vmem:[#allocation4 + $0x30] sm:$0xff] }
 0x320   : > { %v911_v63 = vld [vmem:[#allocation4 + $0x20] sm:$0xff] }
 0x321   : > { %v914_v9 = vld [vmem:[#allocation4 + $0x38] sm:$0xff] }
 0x322   : > { %v912_v2 = vld [vmem:[#allocation4 + $0x28] sm:$0xff] }
 0x356   : > { %v939_v33 = vpop.permute.xlu0 %938 }
 0x357   : > { %v972_v35 = vmul.f32 %v939_v33, %v908_v18  ;;  %v934_v43 = vpop.permute.xlu1 %933 }
 0x358   : > { %v971_v22 = vmul.f32 %v934_v43, %v907_v41 }
 0x35a   : > { %v979_v25 = vpack.c.bf16 %v972_v35, %v971_v22 }
 0x35b   : > { %v949_v51 = vpop.permute.xlu0 %948  ;;  %v944_v21 = vpop.permute.xlu1 %943 }
 0x35c   : > { %v974_v23 = vmul.f32 %v949_v51, %v910_v48  ;;  %v973_v57 = vmul.f32 %v944_v21, %v909_v56  ;;  %1348 = vmatprep.mubr.msk.bf16.mxu1 %vm365_vm3, %v979_v25 }
 0x35e   : > { %v980_v60 = vpack.c.bf16 %v974_v23, %v973_v57 }
 0x360   : > { %1349 = vmatmul.mubr.msk.bf16.vlgmr.msra.gmra.mrb[8].mxu1 %vm365_vm3, %v980_v60 }
 0x363   : > { %v954_v1 = vpop.permute.xlu1 %953 }
 0x364   : > { %v959_v3 = vpop.permute.xlu0 %958  ;;  %v975_v4 = vmul.f32 %v954_v1, %v911_v63 }
 0x365   : > { %v976_v5 = vmul.f32 %v959_v3, %v912_v2 }
 0x367   : > { %v981_v6 = vpack.c.bf16 %v976_v5, %v975_v4  ;;  %v964_v8 = vpop.permute.xlu1 %963 }
 0x368   : > { %v969_v10 = vpop.permute.xlu0 %968  ;;  %v977_v11 = vmul.f32 %v964_v8, %v913_v7 }
 0x369   : > { %v978_v31 = vmul.f32 %v969_v10, %v914_v9  ;;  %1352 = vmatprep.mubr.msk.bf16.mxu1 %vm365_vm3, %v981_v6 }
 0x36b   : > { %v982_v32 = vpack.c.bf16 %v978_v31, %v977_v11 }
 0x36d   : > { %1353 = vmatmul.mubr.msk.bf16.gmra.mrb[12].mxu1 %vm365_vm3, %v982_v32 }
 0x433   : > { %v1350_v38 = vpop.f32.mrb[8].mxu1 }
 0x434   : > { %v1050_v40 = vadd.f32 %v1350_v38, %v1263_v30  ;;  %v1041_v42 = vpop.f32.mrb[9].mxu1 }
 0x435   : > { %v1042_v45 = vadd.f32 %v1263_v30, %v1041_v42  ;;  %v1351_v46 = vpop.f32.mrb[10].mxu1 }
 0x436   : > { %v1090_v49 = vadd.f32 %v1280_v37, %v1050_v40  ;;  %v1053_v50 = vadd.f32 %v1351_v46, %v1263_v30  ;;  %v1044_v52 = vpop.f32.mrb[11].mxu1 }
 0x437   : > { %v1088_v53 = vadd.f32 %v1276_v39, %v1042_v45  ;;  %v1045_v54 = vadd.f32 %v1263_v30, %v1044_v52 }
 0x438   : > { %1098 = vst.msk [vmem:[%s1780_s14 + $0x10] sm:$0xff] %vm430_vm0, %v1090_v49  ;;  %v1091_v55 = vadd.f32 %v1281_v44, %v1053_v50 }
 0x439   : > { %1096 = vst.msk [vmem:[%s1780_s14] sm:$0xff] %vm430_vm0, %v1088_v53  ;;  %v1089_v58 = vadd.f32 %v1277_v47, %v1045_v54 }
 0x43a   : > { %1099 = vst.msk [vmem:[%s1780_s14 + $0x18] sm:$0xff] %vm430_vm0, %v1091_v55 }
 0x43b   : > { %1097 = vst.msk [vmem:[%s1780_s14 + $0x8] sm:$0xff] %vm430_vm0, %v1089_v58 }
 0x440   : > { %v1354_v0 = vpop.f32.mrb[12].mxu1 }
 0x441   : > { %v1066_v15 = vadd.f32 %v1354_v0, %v1263_v30  ;;  %v1057_v17 = vpop.f32.mrb[13].mxu1 }
 0x442   : > { %v1058_v20 = vadd.f32 %v1263_v30, %v1057_v17  ;;  %v1355_v24 = vpop.f32.mrb[14].mxu1 }
 0x443   : > { %v1094_v13 = vadd.f32 %v1288_v62, %v1066_v15  ;;  %v1069_v16 = vadd.f32 %v1355_v24, %v1263_v30  ;;  %v1060_v27 = vpop.f32.mrb[15].mxu1 }
 0x444   : > { %v1092_v28 = vadd.f32 %v1284_v12, %v1058_v20  ;;  %v1061_v29 = vadd.f32 %v1263_v30, %v1060_v27 }
 0x445   : > { %1102 = vst.msk [vmem:[%s1780_s14 + $0x30] sm:$0xff] %vm430_vm0, %v1094_v13  ;;  %v1095_v14 = vadd.f32 %v1289_v19, %v1069_v16 }
 0x446   : > { %1100 = vst.msk [vmem:[%s1780_s14 + $0x20] sm:$0xff] %vm430_vm0, %v1092_v28  ;;  %v1093_v33 = vadd.f32 %v1285_v26, %v1061_v29 }
 0x447   : > { %1103 = vst.msk [vmem:[%s1780_s14 + $0x38] sm:$0xff] %vm430_vm0, %v1095_v14 }
 0x448   : > { %1101 = vst.msk [vmem:[%s1780_s14 + $0x28] sm:$0xff] %vm430_vm0, %v1093_v33 }
 0x449 PF: > { %s15_s20 = sadd.s32 1, %s1464_s20   ;;  %s1815_s18 = smov %s1460_s19 }
 0x44a   : > { %p12_p5 = scmp.ge.s32.totalorder %s15_s20, 4   ;;  %s1816_s19 = smov %s1818_s21 }
 0x44c   :  { %14 = sbr.rel (!%p12_p5) target bundleno = 2 (0x2), region = 84 }

// kernel: _lambda_.11
= control target key start
LH: loop header
LB: loop body
LE: loop exit
PB: predicated region body
PF: predicated region fallthrough
CT: control target
= control target key end

     0   :  { %s976_s0 = inlined_call_operand.vmem [shape: f32[2,64,16], index: 0, kind: input, shape index: {}]   ;;  %s977_s1 = inlined_call_operand.vmem [shape: f32[2,64,16], index: 1, kind: input, shape index: {}]   ;;  %s978_s2 = inlined_call_operand.vmem [shape: f32[2,64,16], index: 2, kind: input, shape index: {}]   ;;  %s979_s3 = inlined_call_operand.<no memory space> [shape: f32[1], index: 3, kind: input, shape index: {}]   ;;  %s980_s4 = inlined_call_operand.vmem [shape: bf16[16,2], index: 4, kind: input, shape index: {}]   ;;  %s981_s5 = inlined_call_operand.vmem [shape: bf16[2,16], index: 5, kind: input, shape index: {}]   ;;  %s982_s6 = inlined_call_operand.hbm [shape: f32[2,64,16], index: 6, kind: output, shape index: {}]  }
   0x1   :  { %11 = sst [smem:[#allocation2]] %s979_s3 }
   0x2   :  { %12 = vsyncpa [#allocation4], 0 }
   0x3   :  { %14 = vsyncpa [#allocation4 + $0x1], 0  ;;  %s790_s23 = smov 0   ;;  %s792_s24 = smov 0  }
   0x4   :  { %s794_s25 = smov 0   ;;  %s796_s26 = smov 0  }
   0x5 LB: > { %s811_s3 = sadd.s32 4294967295, %s745_s26   ;;  %s595_s27 = sadd.s32 4294967294, %s745_s26   ;;  %s745_s26 = sphi %s796_s26, %s988_s26   ;;  %s741_s25 = sphi %s794_s25, %s987_s25   ;;  %s737_s24 = sphi %s792_s24, %s986_s24   ;;  %s733_s23 = sphi %s790_s23, %s985_s23  }
   0x6   : > { %s815_s28 = sadd.s32 1, %s745_s26   ;;  %s168_s29 = sadd.s32 1, %s741_s25 }
   0x7   : > { %s165_s30 = ssub.s32 %s745_s26, %s815_s28  ;;  %p178_p0 = scmp.ne.s32.totalorder %s741_s25, %s737_s24 }
   0x8   : > { %p166_p1 = scmp.eq.s32.totalorder %s165_s30, 0  ;;  %p179_p2 = scmp.eq.s32.totalorder %s811_s3, 1 }
   0x9   : > { %p184_p3 = scmp.ne.s32.totalorder %s737_s24, %s733_s23  ;;  %p185_p4 = scmp.eq.s32.totalorder %s595_s27, 1 }
   0xa   : > { %s826_s7 = scalar_select %p166_p1, %s741_s25, %s168_s29  }
   0xb   : > { %p828_p5 = por %p179_p2, %p178_p0  ;;  %p832_p6 = por %p185_p4, %p184_p3 }
   0xc   : > { %p598_p7 = scmp.ge.s32.totalorder %s745_s26, 1  ;;  %p236_p8 = scmp.lt.s32.totalorder %s745_s26, 3 }
   0xe   : > { %p237_p9 = pnand %p598_p7, %p236_p8 }
   0xf   : > { %v678_v0 = vld [vmem:[%s980_s4] sm:$0xff] (!%p237_p9)   ;;  %v747_v1 = vmov (!%p237_p9), 0.0   ;;  %p276_p10 = scmp.lt.s32.totalorder (!%p237_p9), %s811_s3, 1  ;;  %vm748_vm0 = vmmov (!%p237_p9), 0   ;;  %vm300_vm1 = vcmask (!%p237_p9), 130048   ;;  %vm383_vm2 = vcmask (!%p237_p9), 1040384  }
  0x10   : > { %240 = sbr.rel (%p237_p9) target bundleno = 541 (0x21d), region = 44  ;;  %623 = vmatprep.subr.bf16.mxu0 (!%p237_p9), %v747_v1  ;;  %629 = vmatprep.subr.bf16.mxu1 (!%p237_p9), %v747_v1  ;;  %v378_v33 = vld [vmem:[%s981_s5] sm:$0x1] (!%p237_p9)  ;;  %vm379_vm3 = vcmask (!%p237_p9), 15360   ;;  %v433_v48 = vlaneseq (!%p237_p9)  ;;  %s445_s19 = sld [smem:[#allocation2]] (!%p237_p9) }
  0x11   : > { %624 = vmatpush3.bf16.msra.mxu0 (!%p237_p9), %v678_v0  ;;  %625 = vmatprep.mubr.msk.bf16.mxu0 (!%p237_p9), %vm748_vm0, %v747_v1  ;;  %v385_v34 = vsel (!%p237_p9), %vm383_vm2, %v378_v33, 0  ;;  %s273_s20 = sand.u32 (!%p237_p9), 1, %s737_s24  }
  0x12   : > { %631 = vmatprep.mubr.msk.bf16.mxu1 (!%p237_p9), %vm748_vm0, %v747_v1  ;;  %630 = vmatpush3.bf16.msra.mxu1 (!%p237_p9), %v385_v34  ;;  %v434_v49 = vshrl.u32 (!%p237_p9), %v433_v48, 7  ;;  %s892_s29 = sshll.u32 (!%p237_p9), %s273_s20, 6  ;;  %s935_s17 = scalar_lea.sflag (!%p237_p9), [#allocation4], %s273_s20 }
  0x14   : > { %v435_v50 = vsub.s32 (!%p237_p9), 0, %v434_v49 }
  0x16   : > { %v470_v58 = vstv (!%p237_p9), %s445_s19  ;;  %s749_s19 = smov (!%p237_p9), [#allocation3]  }
  0x17   : > { %s277_s12 = scalar_select %p276_p10, %s811_s3, 1 }
  0x18   : > { %s687_s21 = sshll.u32 %s749_s19, 4  ;;  %s688_s21 = int_to_ptr.vmem [resolvable:$false] %s687_s21 }
  0x19   : > { %s843_s13 = sshll.u32 %s277_s12, 6  ;;  %s618_s12 = sshll.u32 %s811_s3, 10 }
  0x1a   : > { %s280_s16 = scalar_lea.vmem %s976_s0, %s843_s13  ;;  %s290_s27 = scalar_lea.vmem %s978_s2, %s843_s13 }
  0x1b   : > { %v849_v2 = vld [vmem:[%s280_s16] sm:$0xff]  ;;  %v851_v3 = vld [vmem:[%s280_s16 + $0x8] sm:$0xff]  ;;  %v853_v4 = vld [vmem:[%s280_s16 + $0x10] sm:$0xff]  ;;  %s898_s11 = scalar_lea.vmem %s977_s1, %s843_s13  ;;  %s275_s13 = scalar_lea.vmem [#allocation3], %s892_s29 }
  0x1c   : > { %v855_v5 = vld [vmem:[%s280_s16 + $0x18] sm:$0xff]  ;;  %v301_v6 = vsel %vm300_vm1, %v849_v2, 0.0  ;;  %v302_v7 = vsel %vm300_vm1, %v851_v3, 0.0  ;;  %v304_v8 = vsel %vm300_vm1, %v853_v4, 0.0  ;;  %v863_v9 = vld [vmem:[%s280_s16 + $0x20] sm:$0xff]  ;;  %v867_v12 = vld [vmem:[%s280_s16 + $0x28] sm:$0xff] }
  0x1d   : > { %v303_v10 = vadd.f32 %v302_v7, %v301_v6  ;;  %v306_v11 = vsel %vm300_vm1, %v855_v5, 0.0  ;;  %v308_v14 = vsel %vm300_vm1, %v863_v9, 0.0  ;;  %v871_v15 = vld [vmem:[%s280_s16 + $0x30] sm:$0xff]  ;;  %v310_v17 = vsel %vm300_vm1, %v867_v12, 0.0  ;;  %v875_v18 = vld [vmem:[%s280_s16 + $0x38] sm:$0xff]  ;;  %v454_v53 = vld [vmem:[%s290_s27] sm:$0xff]  ;;  %s921_s16 = scalar_lea.hbm %s982_s6, %s618_s12 }
  0x1e   : > { %v312_v20 = vsel %vm300_vm1, %v871_v15, 0.0  ;;  %v314_v22 = vsel %vm300_vm1, %v875_v18, 0.0  ;;  %v455_v54 = vld [vmem:[%s290_s27 + $0x8] sm:$0xff]  ;;  %v456_v55 = vld [vmem:[%s290_s27 + $0x10] sm:$0xff]  ;;  %v457_v56 = vld [vmem:[%s290_s27 + $0x18] sm:$0xff]  ;;  %s509_s14 = sshll.u32 %s275_s13, 4  ;;  %s923_s14 = int_to_ptr.vmem [resolvable:$true] %s509_s14 }
  0x1f   : > { %v305_v13 = vadd.f32 %v304_v8, %v303_v10  ;;  %v458_v57 = vld [vmem:[%s290_s27 + $0x20] sm:$0xff]  ;;  %v459_v63 = vld [vmem:[%s290_s27 + $0x28] sm:$0xff]  ;;  %v460_v0 = vld [vmem:[%s290_s27 + $0x30] sm:$0xff]  ;;  %s683_s18 = scalar_lea.vmem %s923_s14, 1024  ;;  %s689_s22 = scalar_lea.vmem %s688_s21, 2048 }
  0x20   : > { %v461_v1 = vld [vmem:[%s290_s27 + $0x38] sm:$0xff]  ;;  %p684_p11 = scmp.ne.s32.totalorder %s923_s14, %s683_s18  ;;  %p690_p0 = scmp.lt.s32.totalorder %s923_s14, %s688_s21 }
  0x21   : > { %v307_v16 = vadd.f32 %v306_v11, %v305_v13  ;;  %v446_v11 = vld [vmem:[%s898_s11] sm:$0xff]  ;;  %v447_v13 = vld [vmem:[%s898_s11 + $0x8] sm:$0xff]  ;;  %p691_p1 = scmp.lt.s32.totalorder %s689_s22, %s683_s18 }
  0x22   : > { %p685_p12 = pnand %p684_p11, %p828_p5 }
  0x23   : > { %v309_v19 = vadd.f32 %v308_v14, %v307_v16  ;;  %p692_p2 = por %p691_p1, %p690_p0 }
  0x24   : > { %p686_p13 = pneg %p685_p12 }
  0x25   : > { %v311_v21 = vadd.f32 %v310_v17, %v309_v19  ;;  %v449_v19 = vld [vmem:[%s898_s11 + $0x18] sm:$0xff] }
  0x26   : > { %p693_p3 = pnand %p692_p2, %p686_p13 }
  0x27   : > { %v313_v23 = vadd.f32 %v312_v20, %v311_v21  ;;  %v450_v20 = vld [vmem:[%s898_s11 + $0x20] sm:$0xff]  ;;  %v453_v21 = vld [vmem:[%s898_s11 + $0x38] sm:$0xff] }
  0x29   : > { %v315_v24 = vadd.f32 %v314_v22, %v313_v23 }
  0x2b   : > { %v316_v25 = vrot.slane %v315_v24, 4 }
  0x2d   : > { %v317_v26 = vadd.f32 %v316_v25, %v315_v24 }
  0x2f   : > { %v318_v27 = vrot.slane %v317_v26, 2 }
  0x31   : > { %v319_v28 = vadd.f32 %v318_v27, %v317_v26 }
  0x33   : > { %v320_v29 = vrot.slane %v319_v28, 1 }
  0x35   : > { %v321_v30 = vadd.f32 %v320_v29, %v319_v28 }
  0x37   : > { %v323_v31 = vmul.f32 0.015625, %v321_v30 }
  0x39   : > { %v324_v32 = vpack.c.bf16 %v323_v31, %v323_v31 }
  0x3b   : > { %626 = vmatmul.mubr.msk.bf16.vlgmr.msra.gmra.mrb[0].mxu0 %vm300_vm1, %v324_v32 }
 0x10e   : > { %v370_v35 = vpop.f32.mrb[0].mxu0 }
 0x10f   : > { %v376_v36 = vmax.f32 %v370_v35, 0.0  ;;  %v627_v37 = vpop.f32.mrb[1].mxu0 }
 0x110   : > { %v373_v38 = vpop.f32.mrb[2].mxu0 }
 0x111   : > { %v377_v39 = vpack.c.bf16 %v376_v36, %v376_v36  ;;  %v628_v40 = vpop.f32.mrb[3].mxu0 }
 0x113   : > { %632 = vmatmul.mubr.msk.bf16.vlgmr.msra.gmra.mrb[0].mxu1 %vm379_vm3, %v377_v39 }
 0x1e6   : > { %v421_v41 = vpop.f32.mrb[0].mxu1 }
 0x1e7   : > { %v609_v42 = vmul.f32 -1.442695, %v421_v41  ;;  %v633_v43 = vpop.f32.mrb[1].mxu1 }
 0x1e8   : > { %v424_v44 = vpop.f32.mrb[2].mxu1 }
 0x1e9   : > { %679 = vpow2.f32 %v609_v42  ;;  %v634_v45 = vpop.f32.mrb[3].mxu1 }
 0x1f3   : > { %v680_v46 = vpop.eup %679 }
 0x1f4   : > { %v430_v47 = vadd.f32 1.0, %v680_v46 }
 0x1f6   : > { %681 = vrcp.f32 %v430_v47 }
 0x200   : > { %v682_v51 = vpop.eup %681 }
 0x201   : > { %v436_v52 = vrot.slane %v682_v51, %v435_v50 }
 0x203   : > { %v437_v59 = vmul.f32 %v436_v52, %v849_v2  ;;  %v438_v60 = vmul.f32 %v436_v52, %v851_v3  ;;  %v439_v61 = vmul.f32 %v436_v52, %v853_v4  ;;  %v440_v62 = vmul.f32 %v436_v52, %v855_v5 }
 0x204   : > { %v441_v6 = vmul.f32 %v436_v52, %v863_v9  ;;  %v442_v7 = vmul.f32 %v436_v52, %v867_v12  ;;  %v443_v2 = vmul.f32 %v436_v52, %v871_v15  ;;  %v444_v3 = vmul.f32 %v436_v52, %v875_v18  ;;  %v448_v12 = vld [vmem:[%s898_s11 + $0x10] sm:$0xff]  ;;  %v451_v15 = vld [vmem:[%s898_s11 + $0x28] sm:$0xff] }
 0x205   : > { %v462_v8 = vadd.f32 %v454_v53, %v437_v59  ;;  %v463_v4 = vadd.f32 %v455_v54, %v438_v60  ;;  %v464_v5 = vadd.f32 %v456_v55, %v439_v61  ;;  %v465_v10 = vadd.f32 %v457_v56, %v440_v62  ;;  %v452_v18 = vld [vmem:[%s898_s11 + $0x30] sm:$0xff] }
 0x206   : > { %v466_v14 = vadd.f32 %v458_v57, %v441_v6  ;;  %v467_v9 = vadd.f32 %v459_v63, %v442_v7  ;;  %v468_v16 = vadd.f32 %v460_v0, %v443_v2  ;;  %v469_v17 = vadd.f32 %v461_v1, %v444_v3 }
 0x207   : > { %v471_v22 = vmul.f32 %v470_v58, %v462_v8  ;;  %v472_v23 = vmul.f32 %v470_v58, %v463_v4  ;;  %v473_v24 = vmul.f32 %v470_v58, %v464_v5  ;;  %v474_v25 = vmul.f32 %v470_v58, %v465_v10 }
 0x208   : > { %v475_v26 = vmul.f32 %v470_v58, %v466_v14  ;;  %v476_v27 = vmul.f32 %v470_v58, %v467_v9  ;;  %v477_v28 = vmul.f32 %v470_v58, %v468_v16  ;;  %v478_v29 = vmul.f32 %v470_v58, %v469_v17 }
 0x209   : > { %v479_v30 = vadd.f32 %v471_v22, %v446_v11  ;;  %v480_v31 = vadd.f32 %v472_v23, %v447_v13  ;;  %v481_v32 = vadd.f32 %v473_v24, %v448_v12  ;;  %v482_v33 = vadd.f32 %v474_v25, %v449_v19 }
 0x20a   : > { %v483_v34 = vadd.f32 %v475_v26, %v450_v20  ;;  %v484_v35 = vadd.f32 %v476_v27, %v451_v15  ;;  %v485_v36 = vadd.f32 %v477_v28, %v452_v18  ;;  %v486_v37 = vadd.f32 %v478_v29, %v453_v21 }
 0x20b   : > { %487 = vst.msk [vmem:[%s275_s13] sm:$0xff] %vm300_vm1, %v479_v30  ;;  %488 = vst.msk [vmem:[%s275_s13 + $0x8] sm:$0xff] %vm300_vm1, %v480_v31 }
 0x20c   : > { %489 = vst.msk [vmem:[%s275_s13 + $0x10] sm:$0xff] %vm300_vm1, %v481_v32  ;;  %490 = vst.msk [vmem:[%s275_s13 + $0x18] sm:$0xff] %vm300_vm1, %v482_v33 }
 0x20d   : > { %491 = vst.msk [vmem:[%s275_s13 + $0x20] sm:$0xff] %vm300_vm1, %v483_v34  ;;  %492 = vst.msk [vmem:[%s275_s13 + $0x28] sm:$0xff] %vm300_vm1, %v484_v35 }
 0x20e   : > { %493 = vst.msk [vmem:[%s275_s13 + $0x30] sm:$0xff] %vm300_vm1, %v485_v36  ;;  %494 = vst.msk [vmem:[%s275_s13 + $0x38] sm:$0xff] %vm300_vm1, %v486_v37 }
 0x20f   : > { %696 = shalt.err (!%p693_p3)
}
 0x210   : > { %s697_s20 = scalar_lea.hbm %s921_s16, 1024  ;;  %s701_s30 = scalar_lea.hbm %s982_s6, 2048 }
 0x211   : > { %p698_p4 = scmp.ne.s32.totalorder %s921_s16, %s697_s20  ;;  %p702_p9 = scmp.lt.u32.totalorder %s921_s16, %s982_s6 }
 0x212   : > { %p703_p10 = scmp.lt.u32.totalorder %s701_s30, %s697_s20  ;;  %p705_p12 = scmp.lt.u32.totalorder %s697_s20, %s921_s16 }
 0x213   : > { %p699_p7 = pnand %p698_p4, %p828_p5 }
 0x214   : > { %p704_p11 = por %p703_p10, %p702_p9 }
 0x215   : > { %p700_p8 = pneg %p699_p7 }
 0x216   : > { %p706_p13 = por %p705_p12, %p704_p11 }
 0x218   : > { %p707_p0 = pnand %p706_p13, %p700_p8 }
 0x21a   : > { %710 = shalt.err (!%p707_p0)
}
 0x21b   : > { %s750_s12 = smov 128   ;;  %s751_s13 = smov 8  }
 0x21c   : > { %635 = dma.vmem_to_hbm [thread:$0]  (%p828_p5), %s923_s14, 1024, %s921_s16, %s935_s17, %s750_s12, %s750_s12, %s751_s13  }
 0x21d PF: > { %p641_p1 = scmp.ge.s32.totalorder %s745_s26, 2  ;;  %s524_s15 = sand.u32 1, %s733_s23  }
 0x21e   : > { %s525_s3 = scalar_lea.sflag [#allocation4], %s524_s15 }
 0x21f   : > { %p638_p2 = pnand %p641_p1, %p832_p6 }
 0x221   : > { %728 = dma.done.wait (!%p638_p2), %s525_s3, 1024  }
 0x222   : > { %730 = vsyncadd (!%p638_p2), %s525_s3, 4294966272  ;;  %p17_p3 = scmp.ge.s32.totalorder %s815_s28, 4   ;;  %s985_s23 = smov %s737_s24 }
 0x223   : > { %s986_s24 = smov %s741_s25  ;;  %s987_s25 = smov %s826_s7 }
 0x224   : > { %s988_s26 = smov %s815_s28  ;;  %19 = sbr.rel (!%p17_p3) target bundleno = 5 (0x5), region = 85 }
 0x22b   :  { %530 = vsyncpa [#allocation4], 1 }
 0x22c   :  { %532 = vsyncpa [#allocation4 + $0x1], 1 }

// kernel: _lambda_.6
= control target key start
LH: loop header
LB: loop body
LE: loop exit
PB: predicated region body
PF: predicated region fallthrough
CT: control target
= control target key end

     0   :  { %s4948_s0 = inlined_call_operand.vmem [shape: f32[2,64,16], index: 0, kind: input, shape index: {}]   ;;  %s4949_s1 = inlined_call_operand.vmem [shape: f32[64,9], index: 1, kind: input, shape index: {}]   ;;  %s4950_s2 = inlined_call_operand.hbm [shape: bf16[144,8], index: 2, kind: input, shape index: {}]   ;;  %s4951_s3 = inlined_call_operand.hbm [shape: f32[1,8], index: 3, kind: input, shape index: {}]   ;;  %s4952_s4 = inlined_call_operand.hbm [shape: bf16[216,8], index: 4, kind: input, shape index: {}]   ;;  %s4953_s5 = inlined_call_operand.vmem [shape: f32[1,8], index: 5, kind: input, shape index: {}]   ;;  %s4954_s6 = inlined_call_operand.vmem [shape: bf16[288,8], index: 6, kind: input, shape index: {}]   ;;  %s4955_s7 = inlined_call_operand.vmem [shape: f32[1,8], index: 7, kind: input, shape index: {}]   ;;  %s4956_s8 = inlined_call_operand.vmem [shape: bf16[40,16], index: 8, kind: input, shape index: {}]   ;;  %s4957_s9 = inlined_call_operand.vmem [shape: f32[1,16], index: 9, kind: input, shape index: {}]   ;;  %s4958_s10 = inlined_call_operand.vmem [shape: bf16[16,8], index: 10, kind: input, shape index: {}]   ;;  %s4959_s11 = inlined_call_operand.vmem [shape: f32[1,8], index: 11, kind: input, shape index: {}]   ;;  %s4960_s12 = inlined_call_operand.vmem [shape: bf16[2,64,16], index: 12, kind: output, shape index: {0}]   ;;  %s4961_s13 = inlined_call_operand.vmem [shape: bf16[2,64,8], index: 13, kind: output, shape index: {1}]  }
   0x1   :  { %5065 = sst [smem:[#allocation72_spill]] %s4951_s3 }
   0x2   :  { %19 = vsyncpa [#allocation3], 0 }
   0x3   :  { %20 = vsyncpa [#allocation5], 0  ;;  %s3383_s25 = smov 0  }
   0x4 LB: > { %s3288_s26 = smov [#allocation4]   ;;  %s3389_s28 = sadd.s32 4294967295, %s3286_s25   ;;  %s3286_s25 = sphi %s3383_s25, %s26_s25  }
   0x5   : > { %s369_s27 = sshll.u32 %s3288_s26, 4  ;;  %p2828_p0 = scmp.ge.s32.totalorder %s3286_s25, 1  ;;  %s370_s27 = int_to_ptr.vmem [resolvable:$true] %s369_s27 }
   0x6   : > { %p340_p1 = scmp.lt.s32.totalorder %s3286_s25, 3  ;;  %p4962_p2 = scmp.eq.s32.totalorder %s3389_s28, 0 }
   0x7   : > { %s3289_s30 = smov [#allocation2]   ;;  %s3290_s16 = smov [#allocation6]  }
   0x8   : > { %p3394_p3 = pnand %p2828_p0, %p340_p1  ;;  %s355_s14 = sshll.u32 %s3289_s30, 4  ;;  %s3406_s14 = int_to_ptr.vmem [resolvable:$true] %s355_s14 }
   0x9   : > { %s379_s17 = sshll.u32 %s3290_s16, 4  ;;  %s5068_s3 = sld [smem:[#allocation72_spill]]  ;;  %s3408_s17 = int_to_ptr.vmem [resolvable:$true] %s379_s17 }
   0xa   : > { %s5066_s29 = scalar_select %p3394_p3, 1, 0 }
   0xb   : > { %p3057_p4 = pneg %p3394_p3 }
   0xd   : > { %p3402_p5 = pnand %p4962_p2, %p3057_p4 }
   0xf   : > { %s3188_s20 = scalar_lea.hbm %s5068_s3, 16  ;;  %p3418_p7 = pneg %p3402_p5 }
  0x10   : > { %p3189_p6 = scmp.ne.s32.totalorder %s5068_s3, %s3188_s20  ;;  %p3195_p10 = scmp.lt.u32.totalorder %s3188_s20, %s5068_s3 }
  0x12   : > { %p3191_p8 = pnand %p3418_p7, %p3189_p6 }
  0x14   : > { %p3192_p9 = pneg %p3191_p8 }
  0x16   : > { %p3197_p11 = pnand %p3195_p10, %p3192_p9 }
  0x18   : > { %3200 = shalt.err (!%p3197_p11)
}
  0x19   : > { %s3201_s30 = scalar_lea.vmem %s370_s27, 16  ;;  %s3208_s16 = scalar_lea.vmem %s370_s27, 32 }
  0x1a   : > { %p3202_p12 = scmp.ne.s32.totalorder %s370_s27, %s3201_s30  ;;  %p3209_p1 = scmp.lt.s32.totalorder %s370_s27, %s370_s27 }
  0x1b   : > { %p3210_p4 = scmp.lt.s32.totalorder %s3208_s16, %s3201_s30 }
  0x1c   : > { %p3204_p13 = pnand %p3202_p12, %p3418_p7 }
  0x1d   : > { %p3211_p2 = por %p3210_p4, %p3209_p1 }
  0x1e   : > { %p3205_p0 = pneg %p3204_p13 }
  0x20   : > { %p3212_p3 = pnand %p3211_p2, %p3205_p0 }
  0x22   : > { %3215 = shalt.err (!%p3212_p3)
}
  0x23   : > { %3063 = dma.hbm_to_vmem [thread:$0]  (!%p3402_p5), %s5068_s3, 16, %s370_s27, [#allocation5]  }
  0x24   : > { %s3216_s22 = scalar_lea.hbm %s4950_s2, 1152 }
  0x25   : > { %p3217_p6 = scmp.ne.s32.totalorder %s4950_s2, %s3216_s22  ;;  %p3223_p2 = scmp.lt.u32.totalorder %s3216_s22, %s4950_s2 }
  0x27   : > { %p3219_p8 = pnand %p3217_p6, %p3418_p7 }
  0x29   : > { %p3220_p9 = pneg %p3219_p8 }
  0x2b   : > { %p3225_p3 = pnand %p3223_p2, %p3220_p9 }
  0x2d   : > { %3228 = shalt.err (!%p3225_p3)
}
  0x2e   : > { %s3229_s27 = scalar_lea.vmem %s3406_s14, 1152  ;;  %p3237_p13 = scmp.lt.s32.totalorder %s3406_s14, %s3406_s14 }
  0x2f   : > { %p3230_p10 = scmp.ne.s32.totalorder %s3406_s14, %s3229_s27  ;;  %p3238_p0 = scmp.lt.s32.totalorder %s3229_s27, %s3229_s27 }
  0x31   : > { %p3232_p11 = pnand %p3230_p10, %p3418_p7  ;;  %p3239_p1 = por %p3238_p0, %p3237_p13 }
  0x33   : > { %p3233_p12 = pneg %p3232_p11 }
  0x35   : > { %p3240_p4 = pnand %p3239_p1, %p3233_p12 }
  0x37   : > { %3243 = shalt.err (!%p3240_p4)
}
  0x38   : > { %s3291_s18 = smov 64   ;;  %s3292_s19 = smov 4  }
  0x39   : > { %3060 = dma.hbm_to_vmem [thread:$0]  (!%p3402_p5), %s4950_s2, 1152, %s3406_s14, [#allocation3], %s3291_s18, %s3291_s18, %s3292_s19  }
  0x3a   : > { %s3244_s26 = scalar_lea.hbm %s4952_s4, 1728 }
  0x3b   : > { %p3245_p6 = scmp.ne.s32.totalorder %s4952_s4, %s3244_s26  ;;  %p3251_p2 = scmp.lt.u32.totalorder %s3244_s26, %s4952_s4 }
  0x3d   : > { %p3247_p8 = pnand %p3245_p6, %p3418_p7 }
  0x3f   : > { %p3248_p9 = pneg %p3247_p8 }
  0x41   : > { %p3253_p3 = pnand %p3251_p2, %p3248_p9 }
  0x43   : > { %3256 = shalt.err (!%p3253_p3)
}
  0x44   : > { %s3257_s14 = scalar_lea.vmem %s3408_s17, 1728  ;;  %p3265_p13 = scmp.lt.s32.totalorder %s3408_s17, %s3408_s17 }
  0x45   : > { %p3258_p10 = scmp.ne.s32.totalorder %s3408_s17, %s3257_s14  ;;  %p3266_p0 = scmp.lt.s32.totalorder %s3257_s14, %s3257_s14 }
  0x47   : > { %p3260_p11 = pnand %p3258_p10, %p3418_p7  ;;  %p3267_p1 = por %p3266_p0, %p3265_p13 }
  0x49   : > { %p3261_p12 = pneg %p3260_p11 }
  0x4b   : > { %p3268_p4 = pnand %p3267_p1, %p3261_p12 }
  0x4d   : > { %3271 = shalt.err (!%p3268_p4)
}
  0x4e   : > { %3066 = dma.hbm_to_vmem [thread:$0]  (!%p3402_p5), %s4952_s4, 1728, %s3408_s17, [#allocation5], %s3291_s18, %s3291_s18, %s3292_s19  }
  0x4f   : > { %p5070_p6 = scmp.ne.s32.totalorder %s5066_s29, 0 }
  0x51   : > { %424 = sbr.rel (%p5070_p6) target bundleno = 2256 (0x8d0), region = 68 }
  0x58   : > { %p5071_p8 = scmp.eq.s32.totalorder %s3389_s28, 0 }
  0x5a   : > { %3277 = dma.done.wait (%p5071_p8), [#allocation3], 1152   ;;  %p5072_p7 = pmov %p5071_p8 }
  0x5c   : > { %3279 = vsyncadd (%p5072_p7), [#allocation3], 4294966144  ;;  %p5073_p9 = pmov %p5072_p7 }
  0x5d   : > { %p5074_p2 = pmov %p5072_p7 }
  0x5e   : > { %3281 = dma.done.wait (%p5073_p9), [#allocation5], 1744  }
  0x5f   : > { %3283 = vsyncadd (%p5074_p2), [#allocation5], 4294965552  ;;  %v3293_v0 = vmov 2   ;;  %v3294_v1 = vmov 1   ;;  %v3495_v2 = vld [vmem:[%s4949_s1] sm:$0xff]  ;;  %v4968_v3 = vmov 0   ;;  %v521_v26 = vlaneseq }
  0x60   : > { %3107 = vset.pattern.permute.xlu1 %v3293_v0  ;;  %3106 = vset.pattern.permute.xlu0 %v3294_v1  ;;  %v3504_v4 = vld [vmem:[%s4949_s1 + $0x8] sm:$0xff]  ;;  %v3511_v5 = vld [vmem:[%s4949_s1 + $0x18] sm:$0xff]  ;;  %v3296_v6 = vmov 3   ;;  %v3297_v9 = vmov 5   ;;  %v3298_v10 = vmov 6   ;;  %v3537_v11 = vld [vmem:[%s4949_s1 + $0x10] sm:$0xff] }
  0x61   : > { %1159 = vmatprep.subr.bf16.mxu0 %v4968_v3  ;;  %1680 = vmatprep.subr.bf16.mxu1 %v4968_v3  ;;  %v3519_v7 = vld [vmem:[%s4949_s1 + $0x28] sm:$0xff]  ;;  %v3524_v8 = vld [vmem:[%s4949_s1 + $0x38] sm:$0xff]  ;;  %v3543_v12 = vld [vmem:[%s4949_s1 + $0x20] sm:$0xff]  ;;  %v3299_v13 = vmov 7   ;;  %p481_p5 = scmp.lt.s32.totalorder %s3389_s28, 1  ;;  %s3300_s18 = smov 16  }
  0x62   : > { %646 = vperm.xlu1 %3107, %v3495_v2   ;;  %585 = vperm.xlu0 %3106, %v3495_v2   ;;  %v3552_v14 = vld [vmem:[%s4949_s1 + $0x30] sm:$0xff]  ;;  %v3643_v28 = vshrl.u32 %v521_v26, 7  ;;  %v3143_v41 = vld [vmem:[#allocation2] sm:$0xff]   ;;  %v4966_v43 = vmov 8   ;;  %v3144_v45 = vld [vmem:[#allocation2 + $0x8] sm:$0xff]   ;;  %s3302_s19 = smov 48  }
  0x63   : > { %s5240_s28 = smov (!%p481_p5, %s3389_s28), 1  ;;  %1160 = vmatpush1.bf16.msra.mxu0 %v3143_v41  ;;  %v3145_v51 = vld [vmem:[#allocation2 + $0x10] sm:$0xff]   ;;  %v3146_v59 = vld [vmem:[#allocation2 + $0x18] sm:$0xff]   ;;  %s3303_s21 = smov 32   ;;  %vm997_vm2 = vcmask 130048   ;;  %vm1010_vm3 = vcmask 261120  }
  0x64   : > { %s2931_s29 = sshll.u32 %s5240_s28, 6  ;;  %vm523_vm0 = vcmp.lt.s32.totalorder %v3643_v28, 1  ;;  %1161 = vmatprep.subr.bf16.mxu0 %v4968_v3  ;;  %vm636_vm1 = vcmp.lt.s32.totalorder %v3643_v28, 7  ;;  %s3304_s22 = smov 64   ;;  %vm1019_vm4 = vcmask 392192   ;;  %vm1028_vm5 = vcmask 523264  }
  0x65   : > { %s3611_s23 = scalar_lea.vmem %s4948_s0, %s2931_s29  ;;  %s3305_s24 = smov 80   ;;  %vm1037_vm6 = vcmask 654336   ;;  %vm1046_vm7 = vcmask 785408   ;;  %vm1055_vm8 = vcmask 916480   ;;  %vm1460_vm9 = vcmask 64512  }
  0x66   : > { %650 = vperm.xlu1 %3107, %v3504_v4   ;;  %589 = vperm.xlu0 %3106, %v3504_v4   ;;  %v3620_v17 = vld [vmem:[%s3611_s23 + $0x38] sm:$0xff]  ;;  %v3625_v19 = vld [vmem:[%s3611_s23] sm:$0xff]  ;;  %v3646_v29 = vld [vmem:[%s3611_s23 + $0x8] sm:$0xff]  ;;  %s3306_s26 = smov 96   ;;  %s3307_s30 = smov 112   ;;  %vm1481_vm10 = vcmask 195584  }
  0x67   : > { %v513_v31 = vrot.slane %v3625_v19, 7  ;;  %v514_v32 = vrot.slane %v3646_v29, 7  ;;  %v4964_v33 = vrot.slane %v3620_v17, 7  ;;  %v629_v46 = vrot.slane %v3646_v29, 1  ;;  %1162 = vmatpush1.bf16.msra.mxu0 %v3144_v45  ;;  %v3721_v60 = vld [vmem:[%s3611_s23 + $0x10] sm:$0xff]  ;;  %s3308_s16 = smov 56  }
  0x68   : > { %v628_v48 = vrot.slane %v3625_v19, 1  ;;  %v4965_v49 = vrot.slane %v3620_v17, 1  ;;  %1163 = vmatprep.subr.bf16.mxu0 %v4968_v3  ;;  %v630_v62 = vrot.slane %v3721_v60, 1  ;;  %s3309_s27 = smov 8   ;;  %s3310_s14 = smov 40   ;;  %vm1498_vm11 = vcmask 326656  }
  0x69   : > { %v3662_v35 = vsel %vm523_vm0, %v513_v31, %v514_v32  ;;  %v3671_v37 = vsel %vm523_vm0, %v4964_v33, %v513_v31  ;;  %v3759_v31 = vld [vmem:[%s3611_s23 + $0x18] sm:$0xff]  ;;  %s3311_s3 = smov 24   ;;  %vm1515_vm12 = vcmask 457728   ;;  %vm1676_vm13 = vcmask 1043456  }
  0x6a   : > { %3108 = vset.pattern.permute.xlu1 %v3296_v6  ;;  %597 = vperm.xlu0 %3106, %v3511_v5   ;;  %v3696_v52 = vsel %vm636_vm1, %v628_v48, %v629_v46  ;;  %v3707_v54 = vsel %vm636_vm1, %v4965_v49, %v628_v48  ;;  %v631_v45 = vrot.slane %v3759_v31, 1  ;;  %vm1667_vm14 = vcmask 719872  }
  0x6b   : > { %694 = vperm.xlu1 %3108, %v3504_v4   ;;  %1164 = vmatpush1.bf16.msra.mxu0 %v3145_v51  ;;  %vm2565_vm15 = vcmask 125952  }
  0x6c   : > { %1165 = vmatprep.subr.bf16.mxu0 %v4968_v3 }
  0x6e   : > { %605 = vperm.xlu0 %3106, %v3519_v7  }
  0x6f   : > { %3109 = vset.pattern.permute.xlu1 %v3297_v9  ;;  %1166 = vmatpush1.bf16.msra.mxu0 %v3146_v59  ;;  %v3786_v59 = vsel %vm636_vm1, %v630_v62, %v631_v45 }
  0x70   : > { %738 = vperm.xlu1 %3109, %v3495_v2   ;;  %1167 = vmatprep.subr.bf16.mxu0 %v4968_v3 }
  0x72   : > { %613 = vperm.xlu0 %3106, %v3524_v8  }
  0x74   : > { %3110 = vset.pattern.permute.xlu1 %v3298_v10 }
  0x75   : > { %782 = vperm.xlu1 %3110, %v3495_v2  }
  0x76   : > { %3125 = vset.pattern.permute.xlu0 %v3296_v6 }
  0x77   : > { %690 = vperm.xlu0 %3125, %v3495_v2  }
  0x79   : > { %786 = vperm.xlu1 %3110, %v3504_v4  }
  0x7b   : > { %698 = vperm.xlu0 %3125, %v3537_v11  }
  0x7d   : > { %3111 = vset.pattern.permute.xlu1 %v3299_v13 }
  0x7e   : > { %830 = vperm.xlu1 %3111, %v3504_v4  }
  0x7f   : > { %706 = vperm.xlu0 %3125, %v3543_v12  }
  0x82   : > { %3112 = vset.pattern.permute.xlu1 %v3294_v1 }
  0x83   : > { %593 = vperm.xlu1 %3112, %v3537_v11   ;;  %714 = vperm.xlu0 %3125, %v3552_v14  }
  0x87   : > { %3113 = vset.pattern.permute.xlu1 %v3293_v0  ;;  %3127 = vset.pattern.permute.xlu0 %v3297_v9 }
  0x88   : > { %654 = vperm.xlu1 %3113, %v3537_v11   ;;  %742 = vperm.xlu0 %3127, %v3504_v4  }
  0x8c   : > { %658 = vperm.xlu1 %3113, %v3511_v5   ;;  %750 = vperm.xlu0 %3127, %v3511_v5  }
  0x90   : > { %3114 = vset.pattern.permute.xlu1 %v3296_v6  ;;  %758 = vperm.xlu0 %3127, %v3519_v7  }
  0x91   : > { %702 = vperm.xlu1 %3114, %v3511_v5  }
  0x94   : > { %766 = vperm.xlu0 %3127, %v3524_v8  }
  0x95   : > { %3115 = vset.pattern.permute.xlu1 %v3297_v9 }
  0x96   : > { %746 = vperm.xlu1 %3115, %v3537_v11  }
  0x98   : > { %3130 = vset.pattern.permute.xlu0 %v3299_v13 }
  0x99   : > { %826 = vperm.xlu0 %3130, %v3495_v2  }
  0x9a   : > { %3116 = vset.pattern.permute.xlu1 %v3298_v10 }
  0x9b   : > { %790 = vperm.xlu1 %3116, %v3537_v11  }
  0x9d   : > { %834 = vperm.xlu0 %3130, %v3537_v11  }
  0x9f   : > { %794 = vperm.xlu1 %3116, %v3511_v5  }
  0xa1   : > { %842 = vperm.xlu0 %3130, %v3543_v12  }
  0xa3   : > { %3117 = vset.pattern.permute.xlu1 %v3299_v13 }
  0xa4   : > { %838 = vperm.xlu1 %3117, %v3511_v5  }
  0xa5   : > { %850 = vperm.xlu0 %3130, %v3552_v14  }
  0xa8   : > { %3118 = vset.pattern.permute.xlu1 %v3294_v1 }
  0xa9   : > { %601 = vperm.xlu1 %3118, %v3543_v12   ;;  %3134 = vset.pattern.permute.xlu0 %v4968_v3 }
  0xaa   : > { %539 = vperm.xlu0 %3134, %v3504_v4  }
  0xad   : > { %3119 = vset.pattern.permute.xlu1 %v3293_v0 }
  0xae   : > { %662 = vperm.xlu1 %3119, %v3543_v12   ;;  %544 = vperm.xlu0 %3134, %v3537_v11  }
  0xb2   : > { %666 = vperm.xlu1 %3119, %v3519_v7  }
  0xb6   : > { %3120 = vset.pattern.permute.xlu1 %v3296_v6 }
  0xb7   : > { %710 = vperm.xlu1 %3120, %v3519_v7  }
  0xbb   : > { %3121 = vset.pattern.permute.xlu1 %v3297_v9 }
  0xbc   : > { %754 = vperm.xlu1 %3121, %v3543_v12  }
  0xc0   : > { %3122 = vset.pattern.permute.xlu1 %v3298_v10 }
  0xc1   : > { %798 = vperm.xlu1 %3122, %v3543_v12  }
  0xc5   : > { %802 = vperm.xlu1 %3122, %v3519_v7  }
  0xc9   : > { %3123 = vset.pattern.permute.xlu1 %v3299_v13 }
  0xca   : > { %846 = vperm.xlu1 %3123, %v3519_v7  }
  0xce   : > { %3124 = vset.pattern.permute.xlu1 %v3294_v1  ;;  %v3147_v1 = vld [vmem:[#allocation2 + $0x20] sm:$0xff]  }
  0xcf   : > { %609 = vperm.xlu1 %3124, %v3552_v14   ;;  %1168 = vmatpush1.bf16.msra.mxu0 %v3147_v1 }
  0xd0   : > { %1169 = vmatprep.subr.bf16.mxu0 %v4968_v3 }
  0xd3   : > { %3126 = vset.pattern.permute.xlu1 %v3293_v0 }
  0xd4   : > { %670 = vperm.xlu1 %3126, %v3552_v14  }
  0xd8   : > { %674 = vperm.xlu1 %3126, %v3524_v8  }
  0xdc   : > { %3128 = vset.pattern.permute.xlu1 %v3296_v6 }
  0xdd   : > { %718 = vperm.xlu1 %3128, %v3524_v8  }
  0xe1   : > { %3129 = vset.pattern.permute.xlu1 %v3297_v9  ;;  %v3614_v15 = vpop.permute.xlu1 %646  ;;  %v3616_v16 = vpop.permute.xlu0 %585  ;;  %v3743_v9 = vpack.c.bf16 %v3646_v29, %v3625_v19 }
  0xe2   : > { %5075 = vst [vmem:[#allocation9_spill] sm:$0xff] %v3614_v15  ;;  %5076 = vst [vmem:[#allocation10_spill] sm:$0xff] %v3616_v16  ;;  %762 = vperm.xlu1 %3129, %v3552_v14   ;;  %v616_v18 = vmul.f32 %v3616_v16, %v3620_v17  ;;  %v677_v58 = vmul.f32 %v3614_v15, %v3707_v54 }
  0xe3   : > { %5091 = vst [vmem:[#allocation25_spill] sm:$0xff] %v3743_v9 }
  0xe5   : > { %v3627_v20 = vpop.permute.xlu1 %650  ;;  %v3629_v21 = vpop.permute.xlu0 %589 }
  0xe6   : > { %3131 = vset.pattern.permute.xlu1 %v3298_v10  ;;  %v617_v22 = vmul.f32 %v3629_v21, %v3625_v19  ;;  %v678_v55 = vmul.f32 %v3627_v20, %v3696_v52  ;;  %v3148_v10 = vld [vmem:[#allocation2 + $0x28] sm:$0xff]  }
  0xe7   : > { %806 = vperm.xlu1 %3131, %v3552_v14   ;;  %1170 = vmatpush1.bf16.msra.mxu0 %v3148_v10 }
  0xe8   : > { %v624_v23 = vpack.c.bf16 %v617_v22, %v616_v18  ;;  %v685_v61 = vpack.c.bf16 %v678_v55, %v677_v58  ;;  %v515_v18 = vrot.slane %v3721_v60, 7  ;;  %1171 = vmatprep.subr.bf16.mxu0 %v4968_v3  ;;  %v3151_v55 = vld [vmem:[#allocation2 + $0x40] sm:$0xff]   ;;  %v516_v58 = vrot.slane %v3759_v31, 7 }
  0xe9   : > { %v3635_v24 = vpop.permute.xlu0 %597 }
  0xea   : > { %5077 = vst [vmem:[#allocation11_spill] sm:$0xff] %v3635_v24  ;;  %v3637_v25 = vpop.permute.xlu1 %694  ;;  %917 = vrot.lane.b32.xlu0 %v624_v23, %s3300_s18  ;;  %v3149_v23 = vld [vmem:[#allocation2 + $0x30] sm:$0xff]  }
  0xeb   : > { %5078 = vst [vmem:[#allocation12_spill] sm:$0xff] %v3637_v25  ;;  %810 = vperm.xlu1 %3131, %v3524_v8   ;;  %v722_v39 = vmul.f32 %v3637_v25, %v3662_v35  ;;  %1172 = vmatpush1.bf16.msra.mxu0 %v3149_v23 }
  0xec   : > { %1173 = vmatprep.subr.bf16.mxu0 %v4968_v3 }
  0xed   : > { %v3641_v27 = vpop.permute.xlu0 %605 }
  0xee   : > { %5079 = vst [vmem:[#allocation13_spill] sm:$0xff] %v3641_v27 }
  0xef   : > { %3132 = vset.pattern.permute.xlu1 %v3299_v13  ;;  %v3649_v30 = vpop.permute.xlu1 %738 }
  0xf0   : > { %5080 = vst [vmem:[#allocation14_spill] sm:$0xff] %v3649_v30  ;;  %854 = vperm.xlu1 %3132, %v3524_v8   ;;  %v769_v22 = vmul.f32 %v3649_v30, %v3696_v52 }
  0xf1   : > { %v3656_v34 = vpop.permute.xlu0 %613 }
  0xf2   : > { %5081 = vst [vmem:[#allocation15_spill] sm:$0xff] %v3656_v34 }
  0xf4   : > { %3133 = vset.pattern.permute.xlu1 %v4968_v3  ;;  %v3665_v36 = vpop.permute.xlu1 %782 }
  0xf5   : > { %534 = vperm.xlu1 %3133, %v3495_v2   ;;  %v813_v51 = vmul.f32 %v3665_v36, %v3662_v35 }
  0xf6   : > { %v3674_v38 = vpop.permute.xlu0 %690 }
  0xf7   : > { %5082 = vst [vmem:[#allocation16_spill] sm:$0xff] %v3674_v38  ;;  %v721_v40 = vmul.f32 %v3674_v38, %v3671_v37 }
  0xf8   : > { %v3680_v42 = vpop.permute.xlu1 %786 }
  0xf9   : > { %5083 = vst [vmem:[#allocation17_spill] sm:$0xff] %v3680_v42  ;;  %3135 = vset.pattern.permute.xlu1 %v4966_v43  ;;  %v729_v44 = vpack.c.bf16 %v722_v39, %v721_v40  ;;  %v3765_v40 = vsel %vm523_vm0, %v514_v32, %v515_v18  ;;  %v3778_v32 = vld [vmem:[%s3611_s23 + $0x20] sm:$0xff] }
  0xfa   : > { %870 = vperm.xlu1 %3135, %v3495_v2   ;;  %v3685_v47 = vpop.permute.xlu0 %698  ;;  %v3733_v2 = vsel %vm636_vm1, %v629_v46, %v630_v62  ;;  %v814_v46 = vmul.f32 %v3680_v42, %v3765_v40 }
  0xfb   : > { %941 = vrot.lane.b32.xlu0 %v729_v44, %s3302_s19  ;;  %v3150_v44 = vld [vmem:[#allocation2 + $0x38] sm:$0xff]  }
  0xfc   : > { %1174 = vmatpush1.bf16.msra.mxu0 %v3150_v44  ;;  %v821_v23 = vpack.c.bf16 %v814_v46, %v813_v51  ;;  %v619_v44 = vmul.f32 %v3635_v24, %v3721_v60 }
  0xfd   : > { %v3692_v50 = vpop.permute.xlu1 %830  ;;  %1175 = vmatprep.subr.bf16.mxu0 %v4968_v3 }
  0xfe   : > { %5084 = vst [vmem:[#allocation18_spill] sm:$0xff] %v3692_v50  ;;  %874 = vperm.xlu1 %3135, %v3504_v4   ;;  %v3699_v53 = vpop.permute.xlu0 %706  ;;  %v858_v10 = vmul.f32 %v3692_v50, %v3721_v60 }
  0xff   : > { %5085 = vst [vmem:[#allocation19_spill] sm:$0xff] %v3699_v53  ;;  %554 = vperm.xlu0 %3134, %v3543_v12  }
 0x100   : > { %1176 = vmatpush1.bf16.msra.mxu0 %v3151_v55 }
 0x102   : > { %3136 = vset.pattern.permute.xlu1 %v4968_v3  ;;  %v3712_v56 = vpop.permute.xlu1 %593  ;;  %v3714_v57 = vpop.permute.xlu0 %714 }
 0x103   : > { %5086 = vst [vmem:[#allocation20_spill] sm:$0xff] %v3714_v57  ;;  %549 = vperm.xlu1 %3136, %v3511_v5  }
 0x107   : > { %v3725_v63 = vpop.permute.xlu1 %654  ;;  %v3727_v0 = vpop.permute.xlu0 %742  ;;  %929 = vrot.lane.b32.xlu1 %v685_v61, %s3303_s21  ;;  %v632_v61 = vrot.slane %v3778_v32, 1 }
 0x108   : > { %5087 = vst [vmem:[#allocation21_spill] sm:$0xff] %v3725_v63  ;;  %5088 = vst [vmem:[#allocation22_spill] sm:$0xff] %v3727_v0  ;;  %3137 = vset.pattern.permute.xlu1 %v4966_v43  ;;  %v770_v13 = vmul.f32 %v3727_v0, %v3733_v2 }
 0x10a   : > { %v777_v39 = vpack.c.bf16 %v770_v13, %v769_v22  ;;  %v618_v13 = vmul.f32 %v3712_v56, %v3646_v29 }
 0x10b   : > { %v3736_v4 = vpop.permute.xlu1 %658  ;;  %878 = vperm.xlu1 %3137, %v3537_v11   ;;  %v3739_v6 = vpop.permute.xlu0 %750 }
 0x10c   : > { %5089 = vst [vmem:[#allocation23_spill] sm:$0xff] %v3736_v4  ;;  %5090 = vst [vmem:[#allocation24_spill] sm:$0xff] %v3739_v6  ;;  %v680_v33 = vmul.f32 %v3736_v4, %v3786_v59  ;;  %v625_v51 = vpack.c.bf16 %v619_v44, %v618_v13  ;;  %v3835_v13 = vpack.c.bf16 %v3759_v31, %v3721_v60  ;;  %v517_v44 = vrot.slane %v3778_v32, 7 }
 0x10e   : > { %5099 = vst [vmem:[#allocation33_spill] sm:$0xff] %v3835_v13 }
 0x10f   : > { %953 = vrot.lane.b32.xlu1 %v3743_v9, %s3304_s22  ;;  %v3753_v11 = vpop.permute.xlu0 %758 }
 0x110   : > { %5092 = vst [vmem:[#allocation26_spill] sm:$0xff] %v3753_v11  ;;  %v3755_v26 = vpop.permute.xlu1 %702  ;;  %3138 = vset.pattern.permute.xlu1 %v4968_v3 }
 0x111   : > { %5093 = vst [vmem:[#allocation27_spill] sm:$0xff] %v3755_v26 }
 0x113   : > { %965 = vrot.lane.b32.xlu1 %v777_v39, %s3305_s24  ;;  %v3769_v41 = vpop.permute.xlu0 %766  ;;  %v3799_v39 = vsel %vm523_vm0, %v515_v18, %v516_v58  ;;  %v679_v18 = vmul.f32 %v3725_v63, %v3733_v2 }
 0x114   : > { %5094 = vst [vmem:[#allocation28_spill] sm:$0xff] %v3769_v41  ;;  %v724_v46 = vmul.f32 %v3755_v26, %v3799_v39 }
 0x115   : > { %v3774_v48 = vpop.permute.xlu1 %746 }
 0x116   : > { %5095 = vst [vmem:[#allocation29_spill] sm:$0xff] %v3774_v48 }
 0x117   : > { %559 = vperm.xlu1 %3138, %v3519_v7  }
 0x118   : > { %v3789_v1 = vpop.permute.xlu0 %826 }
 0x119   : > { %v857_v22 = vmul.f32 %v3789_v1, %v3646_v29  ;;  %v3810_v29 = vsel %vm636_vm1, %v631_v45, %v632_v61 }
 0x11a   : > { %v3801_v62 = vpop.permute.xlu1 %790  ;;  %v772_v45 = vmul.f32 %v3739_v6, %v3810_v29 }
 0x11b   : > { %5096 = vst [vmem:[#allocation30_spill] sm:$0xff] %v3801_v62  ;;  %977 = vrot.lane.b32.xlu1 %v821_v23, %s3306_s26  ;;  %v865_v49 = vpack.c.bf16 %v858_v10, %v857_v22  ;;  %v723_v10 = vmul.f32 %v3685_v47, %v3765_v40  ;;  %v771_v22 = vmul.f32 %v3774_v48, %v3786_v59 }
 0x11c   : > { %3139 = vset.pattern.permute.xlu1 %v4966_v43  ;;  %v686_v23 = vpack.c.bf16 %v680_v33, %v679_v18  ;;  %v5101_v18 = vmov 0  }
 0x11d   : > { %989 = vrot.lane.b32.xlu0 %v865_v49, %s3307_s30  ;;  %v730_v43 = vpack.c.bf16 %v724_v46, %v723_v10  ;;  %v778_v49 = vpack.c.bf16 %v772_v45, %v771_v22  ;;  %v5103_v46 = vmov 8   ;;  %v502_v10 = vld [vmem:[%s3611_s23 + $0x28] sm:$0xff]  ;;  %v815_v45 = vmul.f32 %v3801_v62, %v3799_v39 }
 0x11e   : > { %v3818_v55 = vpop.permute.xlu1 %794 }
 0x11f   : > { %5097 = vst [vmem:[#allocation31_spill] sm:$0xff] %v3818_v55  ;;  %919 = vrot.lane.b32.xlu1 %v625_v51, %s3300_s18  ;;  %v3853_v51 = vpop.permute.xlu0 %834 }
 0x121   : > { %931 = vrot.lane.b32.xlu0 %v686_v23, %s3303_s21 }
 0x123   : > { %v3828_v3 = vpop.permute.xlu1 %838  ;;  %943 = vrot.lane.b32.xlu1 %v730_v43, %s3302_s19  ;;  %v3845_v43 = vsel %vm523_vm0, %v516_v58, %v517_v44  ;;  %v633_v58 = vrot.slane %v502_v10, 1 }
 0x124   : > { %5098 = vst [vmem:[#allocation32_spill] sm:$0xff] %v3828_v3  ;;  %v860_v23 = vmul.f32 %v3828_v3, %v3778_v32 }
 0x125   : > { %967 = vrot.lane.b32.xlu0 %v778_v49, %s3305_s24  ;;  %v859_v49 = vmul.f32 %v3853_v51, %v3759_v31  ;;  %v3872_v38 = vsel %vm636_vm1, %v632_v61, %v633_v58 }
 0x127   : > { %890 = vperm.xlu1 %3139, %v3519_v7   ;;  %v816_v7 = vmul.f32 %v3818_v55, %v3845_v43 }
 0x128   : > { %v3838_v33 = vpop.permute.xlu1 %601 }
 0x129   : > { %5100 = vst [vmem:[#allocation34_spill] sm:$0xff] %v3838_v33  ;;  %569 = vperm.xlu0 %3134, %v3524_v8   ;;  %v620_v22 = vmul.f32 %v3838_v33, %v3759_v31  ;;  %v822_v9 = vpack.c.bf16 %v816_v7, %v815_v45  ;;  %v866_v45 = vpack.c.bf16 %v860_v23, %v859_v49 }
 0x12a   : > { %v3901_v49 = vpack.c.bf16 %v502_v10, %v3778_v32 }
 0x12b   : > { %955 = vrot.lane.b32.xlu1 %v3835_v13, %s3304_s22 }
 0x12c   : > { %3140 = vset.pattern.permute.xlu1 %v5101_v18  ;;  %v518_v18 = vrot.slane %v502_v10, 7  ;;  %5107 = vst [vmem:[#allocation39_spill] sm:$0xff] %v3901_v49 }
 0x12d   : > { %v3850_v60 = vpop.permute.xlu1 %662  ;;  %3141 = vset.pattern.permute.xlu0 %v5103_v46 }
 0x12e   : > { %5102 = vst [vmem:[#allocation35_spill] sm:$0xff] %v3850_v60  ;;  %882 = vperm.xlu0 %3141, %v3511_v5   ;;  %v621_v5 = vmul.f32 %v3641_v27, %v3778_v32  ;;  %v3878_v15 = vsel %vm523_vm0, %v517_v44, %v518_v18 }
 0x12f   : > { %564 = vperm.xlu1 %3140, %v3552_v14  }
 0x130   : > { %v626_v31 = vpack.c.bf16 %v621_v5, %v620_v22  ;;  %v503_v22 = vld [vmem:[%s3611_s23 + $0x30] sm:$0xff] }
 0x131   : > { %v3866_v13 = vpop.permute.xlu1 %666  ;;  %v634_v23 = vrot.slane %v503_v22, 1 }
 0x132   : > { %5104 = vst [vmem:[#allocation36_spill] sm:$0xff] %v3866_v13  ;;  %886 = vperm.xlu0 %3141, %v3543_v12   ;;  %v682_v7 = vmul.f32 %v3866_v13, %v3872_v38  ;;  %v725_v12 = vmul.f32 %v3699_v53, %v3845_v43 }
 0x133   : > { %979 = vrot.lane.b32.xlu1 %v822_v9, %s3306_s26  ;;  %v681_v9 = vmul.f32 %v3850_v60, %v3810_v29 }
 0x134   : > { %3142 = vset.pattern.permute.xlu1 %v5103_v46 }
 0x135   : > { %v687_v44 = vpack.c.bf16 %v682_v7, %v681_v9  ;;  %v3905_v7 = vsel %vm636_vm1, %v633_v58, %v634_v23 }
 0x136   : > { %v3883_v16 = vpop.permute.xlu1 %710  ;;  %921 = vrot.lane.b32.xlu0 %v626_v31, %s3300_s18  ;;  %v519_v31 = vrot.slane %v503_v22, 7  ;;  %v774_v9 = vmul.f32 %v3753_v11, %v3905_v7 }
 0x137   : > { %5105 = vst [vmem:[#allocation37_spill] sm:$0xff] %v3883_v16  ;;  %v726_v61 = vmul.f32 %v3883_v16, %v3878_v15  ;;  %991 = vrot.lane.b32.xlu1 %v866_v45, %s3307_s30 }
 0x139   : > { %v731_v46 = vpack.c.bf16 %v726_v61, %v725_v12 }
 0x13b   : > { %v3894_v5 = vpop.permute.xlu1 %754  ;;  %933 = vrot.lane.b32.xlu1 %v687_v44, %s3303_s21  ;;  %945 = vrot.lane.b32.xlu0 %v731_v46, %s3302_s19  ;;  %v3926_v46 = vpop.permute.xlu0 %842 }
 0x13c   : > { %5106 = vst [vmem:[#allocation38_spill] sm:$0xff] %v3894_v5  ;;  %v773_v12 = vmul.f32 %v3894_v5, %v3872_v38  ;;  %5110 = vst [vmem:[#allocation42_spill] sm:$0xff] %v3926_v46 }
 0x13e   : > { %v779_v61 = vpack.c.bf16 %v774_v9, %v773_v12  ;;  %v623_v12 = vmul.f32 %v3656_v34, %v503_v22 }
 0x13f   : > { %894 = vperm.xlu1 %3142, %v3552_v14   ;;  %898 = vperm.xlu0 %3141, %v3524_v8   ;;  %v3917_v8 = vsel %vm523_vm0, %v518_v18, %v519_v31  ;;  %v861_v18 = vmul.f32 %v3926_v46, %v502_v10 }
 0x140   : > { %v3907_v45 = vpop.permute.xlu1 %798 }
 0x141   : > { %5108 = vst [vmem:[#allocation40_spill] sm:$0xff] %v3907_v45  ;;  %v817_v32 = vmul.f32 %v3907_v45, %v3878_v15 }
 0x143   : > { %957 = vrot.lane.b32.xlu1 %v3901_v49, %s3304_s22 }
 0x144   : > { %v3919_v14 = vpop.permute.xlu1 %802 }
 0x145   : > { %5109 = vst [vmem:[#allocation41_spill] sm:$0xff] %v3919_v14  ;;  %v818_v58 = vmul.f32 %v3919_v14, %v3917_v8 }
 0x147   : > { %969 = vrot.lane.b32.xlu1 %v779_v61, %s3305_s24  ;;  %v823_v44 = vpack.c.bf16 %v818_v58, %v817_v32  ;;  %v5114_v61 = vrot.slane %v3620_v17, 1 }
 0x149   : > { %v3928_v11 = vpop.permute.xlu1 %846  ;;  %981 = vrot.lane.b32.xlu0 %v823_v44, %s3306_s26  ;;  %v3945_v44 = vsel %vm636_vm1, %v634_v23, %v5114_v61  ;;  %v3961_v23 = vpack.c.bf16 %v3620_v17, %v503_v22  ;;  %v727_v61 = vmul.f32 %v3714_v57, %v3917_v8 }
 0x14a   : > { %5111 = vst [vmem:[#allocation43_spill] sm:$0xff] %v3928_v11  ;;  %v862_v49 = vmul.f32 %v3928_v11, %v503_v22 }
 0x14b   : > { %5118 = vst [vmem:[#allocation48_spill] sm:$0xff] %v3961_v23 }
 0x14c   : > { %v867_v5 = vpack.c.bf16 %v862_v49, %v861_v18 }
 0x14e   : > { %v3933_v25 = vpop.permute.xlu1 %609  ;;  %993 = vrot.lane.b32.xlu1 %v867_v5, %s3307_s30 }
 0x14f   : > { %5112 = vst [vmem:[#allocation44_spill] sm:$0xff] %v3933_v25  ;;  %v622_v9 = vmul.f32 %v3933_v25, %v502_v10  ;;  %v5116_v10 = vrot.slane %v3620_v17, 7 }
 0x151   : > { %v627_v32 = vpack.c.bf16 %v623_v12, %v622_v9  ;;  %v524_v12 = vsel %vm523_vm0, %v519_v31, %v5116_v10  ;;  %v776_v31 = vmul.f32 %v3769_v41, %v3707_v54 }
 0x153   : > { %v3938_v58 = vpop.permute.xlu1 %670  ;;  %923 = vrot.lane.b32.xlu0 %v627_v32, %s3300_s18 }
 0x154   : > { %5113 = vst [vmem:[#allocation45_spill] sm:$0xff] %v3938_v58  ;;  %v683_v5 = vmul.f32 %v3938_v58, %v3905_v7 }
 0x157   : > { %v3947_v49 = vpop.permute.xlu1 %674 }
 0x158   : > { %5115 = vst [vmem:[#allocation46_spill] sm:$0xff] %v3947_v49  ;;  %v684_v18 = vmul.f32 %v3947_v49, %v3945_v44 }
 0x15a   : > { %v688_v9 = vpack.c.bf16 %v684_v18, %v683_v5 }
 0x15c   : > { %v3957_v32 = vpop.permute.xlu1 %718  ;;  %935 = vrot.lane.b32.xlu1 %v688_v9, %s3303_s21 }
 0x15d   : > { %5117 = vst [vmem:[#allocation47_spill] sm:$0xff] %v3957_v32  ;;  %v728_v58 = vmul.f32 %v3957_v32, %v524_v12 }
 0x15f   : > { %v732_v14 = vpack.c.bf16 %v728_v58, %v727_v61  ;;  %v3983_v61 = vpop.permute.xlu0 %850 }
 0x160   : > { %959 = vrot.lane.b32.xlu1 %v3961_v23, %s3304_s22  ;;  %5122 = vst [vmem:[#allocation52_spill] sm:$0xff] %v3983_v61 }
 0x161   : > { %v3968_v49 = vpop.permute.xlu1 %762  ;;  %947 = vrot.lane.b32.xlu0 %v732_v14, %s3302_s19 }
 0x162   : > { %5119 = vst [vmem:[#allocation49_spill] sm:$0xff] %v3968_v49  ;;  %v775_v22 = vmul.f32 %v3968_v49, %v3945_v44 }
 0x164   : > { %v780_v5 = vpack.c.bf16 %v776_v31, %v775_v22  ;;  %v863_v31 = vmul.f32 %v3983_v61, %v3620_v17 }
 0x166   : > { %v3975_v18 = vpop.permute.xlu1 %806  ;;  %971 = vrot.lane.b32.xlu0 %v780_v5, %s3305_s24 }
 0x167   : > { %5120 = vst [vmem:[#allocation50_spill] sm:$0xff] %v3975_v18  ;;  %v819_v58 = vmul.f32 %v3975_v18, %v524_v12 }
 0x16a   : > { %v3978_v10 = vpop.permute.xlu1 %810 }
 0x16b   : > { %5121 = vst [vmem:[#allocation51_spill] sm:$0xff] %v3978_v10  ;;  %v820_v9 = vmul.f32 %v3978_v10, %v3671_v37  ;;  %v3997_v10 = vpop.permute.xlu0 %539 }
 0x16c   : > { %5124 = vst [vmem:[#allocation54_spill] sm:$0xff] %v3997_v10 }
 0x16d   : > { %v824_v14 = vpack.c.bf16 %v820_v9, %v819_v58 }
 0x16f   : > { %v3985_v23 = vpop.permute.xlu1 %854  ;;  %983 = vrot.lane.b32.xlu1 %v824_v14, %s3306_s26 }
 0x170   : > { %v864_v22 = vmul.f32 %v3985_v23, %v3625_v19  ;;  %v4007_v19 = vpop.permute.xlu0 %544 }
 0x172   : > { %v868_v5 = vpack.c.bf16 %v864_v22, %v863_v31 }
 0x174   : > { %995 = vrot.lane.b32.xlu0 %v868_v5, %s3307_s30  ;;  %v3993_v18 = vpop.permute.xlu1 %534  ;;  %v918_v5 = vpop.permute.xlu0 %917 }
 0x175   : > { %5123 = vst [vmem:[#allocation53_spill] sm:$0xff] %v3993_v18  ;;  %v572_v49 = vmul.f32 %v3993_v18, %v524_v12 }
 0x179   : > { %v3995_v41 = vpop.permute.xlu1 %870 }
 0x17a   : > { %v901_v58 = vmul.f32 %v3995_v41, %v3733_v2  ;;  %v573_v2 = vmul.f32 %v3997_v10, %v3671_v37 }
 0x17d   : > { %v4001_v9 = vpop.permute.xlu1 %874 }
 0x17e   : > { %5125 = vst [vmem:[#allocation55_spill] sm:$0xff] %v4001_v9  ;;  %v902_v17 = vmul.f32 %v4001_v9, %v3786_v59  ;;  %v942_v59 = vpop.permute.xlu0 %941 }
 0x180   : > { %v4005_v14 = vpack.c.bf16 %v902_v17, %v901_v58  ;;  %v580_v17 = vpack.c.bf16 %v573_v2, %v572_v49 }
 0x182   : > { %5126 = vst [vmem:[#allocation56_spill] sm:$0xff] %v4005_v14  ;;  %v4009_v31 = vpop.permute.xlu1 %549  ;;  %2853 = vmatprep.mubr.msk.bf16.mxu0 %vm997_vm2, %v4005_v14  ;;  %v4018_v32 = vpop.permute.xlu0 %554  ;;  %v1000_v34 = vsel %vm997_vm2, %v580_v17, %v918_v5 }
 0x183   : > { %5127 = vst [vmem:[#allocation57_spill] sm:$0xff] %v4009_v31  ;;  %5129 = vst [vmem:[#allocation59_spill] sm:$0xff] %v4018_v32 }
 0x186   : > { %v930_v22 = vpop.permute.xlu1 %929 }
 0x187   : > { %v1012_v14 = vsel %vm1010_vm3, %v1000_v34, %v930_v22 }
 0x188   : > { %v1021_v37 = vsel %vm1019_vm4, %v1012_v14, %v942_v59  ;;  %v574_v59 = vmul.f32 %v4007_v19, %v3662_v35 }
 0x18a   : > { %v4013_v61 = vpop.permute.xlu1 %878 }
 0x18b   : > { %5128 = vst [vmem:[#allocation58_spill] sm:$0xff] %v4013_v61 }
 0x18e   : > { %v954_v58 = vpop.permute.xlu1 %953 }
 0x18f   : > { %v990_v10 = vpop.permute.xlu0 %989  ;;  %v1030_v12 = vsel %vm1028_vm5, %v1021_v37, %v954_v58 }
 0x192   : > { %v966_v57 = vpop.permute.xlu1 %965 }
 0x193   : > { %v1039_v49 = vsel %vm1037_vm6, %v1030_v12, %v966_v57  ;;  %v932_v34 = vpop.permute.xlu0 %931  ;;  %v575_v57 = vmul.f32 %v4009_v31, %v3765_v40 }
 0x195   : > { %v581_v12 = vpack.c.bf16 %v575_v57, %v574_v59 }
 0x196   : > { %v4022_v25 = vpop.permute.xlu1 %559 }
 0x197   : > { %5130 = vst [vmem:[#allocation60_spill] sm:$0xff] %v4022_v25  ;;  %v968_v46 = vpop.permute.xlu0 %967 }
 0x19a   : > { %v978_v2 = vpop.permute.xlu1 %977 }
 0x19b   : > { %v1048_v18 = vsel %vm1046_vm7, %v1039_v49, %v978_v2  ;;  %v903_v49 = vmul.f32 %v4013_v61, %v3810_v29 }
 0x19c   : > { %v4029_v5 = vsel %vm1055_vm8, %v1048_v18, %v990_v10 }
 0x19d   : > { %5131 = vst [vmem:[#allocation61_spill] sm:$0xff] %v4029_v5  ;;  %1192 = vmatmul.mubr.bf16.vlgmr.msra.gmra.mrb[0].mxu0 %v4029_v5 }
 0x19e   : > { %v920_v22 = vpop.permute.xlu1 %919 }
 0x19f   : > { %v1003_v18 = vsel %vm997_vm2, %v581_v12, %v920_v22 }
 0x1a0   : > { %v1014_v35 = vsel %vm1010_vm3, %v1003_v18, %v932_v34 }
 0x1a2   : > { %v944_v17 = vpop.permute.xlu1 %943 }
 0x1a3   : > { %v1023_v40 = vsel %vm1019_vm4, %v1014_v35, %v944_v17 }
 0x1a6   : > { %v4032_v14 = vpop.permute.xlu1 %890 }
 0x1a7   : > { %v906_v59 = vmul.f32 %v4032_v14, %v3945_v44 }
 0x1a8   : > { %v4038_v58 = vpop.permute.xlu0 %569 }
 0x1aa   : > { %v956_v37 = vpop.permute.xlu1 %955 }
 0x1ab   : > { %v1032_v57 = vsel %vm1028_vm5, %v1023_v40, %v956_v37  ;;  %v576_v37 = vmul.f32 %v4018_v32, %v3799_v39 }
 0x1ad   : > { %v4041_v10 = vpop.permute.xlu0 %882 }
 0x1ae   : > { %5132 = vst [vmem:[#allocation62_spill] sm:$0xff] %v4041_v10  ;;  %v904_v2 = vmul.f32 %v4041_v10, %v3872_v38  ;;  %v4047_v5 = vpop.permute.xlu1 %564  ;;  %v1041_v38 = vsel %vm1037_vm6, %v1032_v57, %v968_v46  ;;  %v577_v46 = vmul.f32 %v4022_v25, %v3845_v43 }
 0x1b0   : > { %v4050_v45 = vpack.c.bf16 %v904_v2, %v903_v49  ;;  %v582_v40 = vpack.c.bf16 %v577_v46, %v576_v37 }
 0x1b1   : > { %v4055_v22 = vpop.permute.xlu0 %886 }
 0x1b2   : > { %5133 = vst [vmem:[#allocation63_spill] sm:$0xff] %v4050_v45  ;;  %5134 = vst [vmem:[#allocation64_spill] sm:$0xff] %v4055_v22  ;;  %v905_v29 = vmul.f32 %v4055_v22, %v3905_v7  ;;  %v980_v12 = vpop.permute.xlu1 %979  ;;  %2854 = vmatprep.mubr.msk.bf16.mxu0 %vm997_vm2, %v4050_v45 }
 0x1b3   : > { %v1050_v17 = vsel %vm1046_vm7, %v1041_v38, %v980_v12 }
 0x1b4   : > { %v4063_v34 = vpack.c.bf16 %v906_v59, %v905_v29 }
 0x1b5   : > { %v922_v49 = vpop.permute.xlu0 %921 }
 0x1b6   : > { %5135 = vst [vmem:[#allocation65_spill] sm:$0xff] %v4063_v34  ;;  %v992_v18 = vpop.permute.xlu1 %991  ;;  %v1006_v59 = vsel %vm997_vm2, %v582_v40, %v922_v49 }
 0x1b7   : > { %v4067_v44 = vsel %vm1055_vm8, %v1050_v17, %v992_v18 }
 0x1b8   : > { %5136 = vst [vmem:[#allocation66_spill] sm:$0xff] %v4067_v44  ;;  %1200 = vmatmul.mubr.bf16.gmra.mrb[4].mxu0 %v4067_v44 }
 0x1b9   : > { %2855 = vmatprep.mubr.msk.bf16.mxu0 %vm997_vm2, %v4063_v34  ;;  %v946_v2 = vpop.permute.xlu0 %945 }
 0x1ba   : > { %v934_v7 = vpop.permute.xlu1 %933 }
 0x1bb   : > { %v1016_v57 = vsel %vm1010_vm3, %v1006_v59, %v934_v7 }
 0x1bc   : > { %v1025_v38 = vsel %vm1019_vm4, %v1016_v57, %v946_v2  ;;  %v579_v2 = vmul.f32 %v4038_v58, %v3917_v8 }
 0x1be   : > { %v4076_v35 = vpop.permute.xlu1 %894  ;;  %v4080_v12 = vpop.permute.xlu0 %898 }
 0x1bf   : > { %v907_v39 = vmul.f32 %v4076_v35, %v3707_v54  ;;  %v908_v43 = vmul.f32 %v4080_v12, %v3696_v52  ;;  %v578_v52 = vmul.f32 %v4047_v5, %v3878_v15 }
 0x1c1   : > { %v4090_v40 = vpack.c.bf16 %v908_v43, %v907_v39 }
 0x1c2   : > { %v958_v29 = vpop.permute.xlu1 %957  ;;  %v982_v46 = vpop.permute.xlu0 %981 }
 0x1c3   : > { %v1034_v17 = vsel %vm1028_vm5, %v1025_v38, %v958_v29  ;;  %5137 = vst [vmem:[#allocation67_spill] sm:$0xff] %v4090_v40  ;;  %v583_v38 = vpack.c.bf16 %v579_v2, %v578_v52 }
 0x1c6   : > { %v970_v18 = vpop.permute.xlu1 %969  ;;  %v924_v54 = vpop.permute.xlu0 %923 }
 0x1c7   : > { %v1043_v37 = vsel %vm1037_vm6, %v1034_v17, %v970_v18  ;;  %v1009_v17 = vsel %vm997_vm2, %v583_v38, %v924_v54  ;;  %v4112_v54 = vld [vmem:[#allocation4] ss:$0 sm:$0xff] }
 0x1c8   : > { %v1052_v7 = vsel %vm1046_vm7, %v1043_v37, %v982_v46 }
 0x1ca   : > { %v994_v49 = vpop.permute.xlu1 %993 }
 0x1cb   : > { %v4093_v59 = vsel %vm1055_vm8, %v1052_v7, %v994_v49 }
 0x1cc   : > { %5138 = vst [vmem:[#allocation68_spill] sm:$0xff] %v4093_v59  ;;  %1208 = vmatmul.mubr.bf16.gmra.mrb[8].mxu0 %v4093_v59 }
 0x1cd   : > { %2856 = vmatprep.mubr.msk.bf16.mxu0 %vm997_vm2, %v4090_v40 }
 0x1ce   : > { %v936_v57 = vpop.permute.xlu1 %935 }
 0x1cf   : > { %v1018_v39 = vsel %vm1010_vm3, %v1009_v17, %v936_v57 }
 0x1d2   : > { %v960_v18 = vpop.permute.xlu1 %959 }
 0x1d3   : > { %v948_v29 = vpop.permute.xlu0 %947 }
 0x1d4   : > { %v1027_v43 = vsel %vm1019_vm4, %v1018_v39, %v948_v29 }
 0x1d5   : > { %v1036_v49 = vsel %vm1028_vm5, %v1027_v43, %v960_v18 }
 0x1d8   : > { %v972_v37 = vpop.permute.xlu0 %971 }
 0x1d9   : > { %v1045_v7 = vsel %vm1037_vm6, %v1036_v49, %v972_v37 }
 0x1e1   : > { %v984_v46 = vpop.permute.xlu1 %983 }
 0x1e2   : > { %v1054_v15 = vsel %vm1046_vm7, %v1045_v7, %v984_v46 }
 0x1e6   : > { %v996_v40 = vpop.permute.xlu0 %995 }
 0x1e7   : > { %v4109_v8 = vsel %vm1055_vm8, %v1054_v15, %v996_v40 }
 0x1e8   : > { %5139 = vst [vmem:[#allocation69_spill] sm:$0xff] %v4109_v8  ;;  %1216 = vmatmul.mubr.bf16.gmra.mrb[12].mxu0 %v4109_v8 }
 0x270   : > { %v1193_v52 = vpop.f32.mrb[0].mxu0 }
 0x271   : > { %v1194_v2 = vadd.f32 %v4112_v54, %v1193_v52  ;;  %v1195_v57 = vpop.f32.mrb[1].mxu0 }
 0x272   : > { %v1196_v29 = vpop.f32.mrb[2].mxu0 }
 0x273   : > { %v4115_v38 = vmax.f32 %v1194_v2, 0.0  ;;  %v1197_v17 = vadd.f32 %v4112_v54, %v1196_v29  ;;  %v1198_v18 = vpop.f32.mrb[3].mxu0 }
 0x275   : > { %v1225_v39 = vmax.f32 %v1197_v17, 0.0  ;;  %v5025_v43 = vrot.slane %v4115_v38, 1  ;;  %v5031_v46 = vrot.slane %v4115_v38, 7 }
 0x277   : > { %v1277_v37 = vrot.slane %v1225_v39, 1  ;;  %v4120_v40 = vpack.c.bf16 %v1225_v39, %v4115_v38  ;;  %v1237_v49 = vrot.slane %v1225_v39, 7  ;;  %v1340_v8 = vmul.f32 %v1225_v39, %v3789_v1 }
 0x279   : > { %5140 = vst [vmem:[#allocation70_spill] sm:$0xff] %v4120_v40  ;;  %1404 = vrot.lane.b32.xlu0 %v4120_v40, %s3303_s21  ;;  %v4129_v7 = vsel %vm636_vm1, %v5025_v43, %v1277_v37  ;;  %v4135_v15 = vsel %vm523_vm0, %v5031_v46, %v1237_v49  ;;  %v1266_v43 = vmul.f32 %v1225_v39, %v3712_v56 }
 0x28b   : > { %v1201_v52 = vpop.f32.mrb[4].mxu0 }
 0x28c   : > { %v1202_v2 = vadd.f32 %v4112_v54, %v1201_v52  ;;  %v1203_v57 = vpop.f32.mrb[5].mxu0 }
 0x28d   : > { %v1204_v29 = vpop.f32.mrb[6].mxu0 }
 0x28e   : > { %v1226_v17 = vmax.f32 %v1202_v2, 0.0  ;;  %v1205_v18 = vadd.f32 %v4112_v54, %v1204_v29  ;;  %v1206_v40 = vpop.f32.mrb[7].mxu0 }
 0x290   : > { %v1278_v59 = vrot.slane %v1226_v17, 1  ;;  %v4141_v34 = vmax.f32 %v1205_v18, 0.0  ;;  %v1341_v44 = vmul.f32 %v1226_v17, %v3692_v50  ;;  %v1267_v46 = vmul.f32 %v1226_v17, %v3635_v24 }
 0x291   : > { %v1238_v45 = vrot.slane %v1226_v17, 7  ;;  %v1316_v18 = vmul.f32 %v4129_v7, %v3649_v30 }
 0x292   : > { %v1239_v52 = vrot.slane %v4141_v34, 7  ;;  %v1348_v57 = vpack.c.bf16 %v1341_v44, %v1340_v8  ;;  %v4147_v2 = vpack.c.bf16 %v4141_v34, %v1226_v17  ;;  %v1273_v29 = vpack.c.bf16 %v1267_v46, %v1266_v43 }
 0x293   : > { %v1249_v40 = vsel %vm523_vm0, %v1237_v49, %v1238_v45  ;;  %v1289_v39 = vsel %vm636_vm1, %v1277_v37, %v1278_v59  ;;  %v1279_v50 = vrot.slane %v4141_v34, 1  ;;  %v1328_v44 = vmul.f32 %v4135_v15, %v3665_v36 }
 0x294   : > { %5141 = vst [vmem:[#allocation71_spill] sm:$0xff] %v4147_v2  ;;  %1440 = vrot.lane.b32.xlu1 %v1348_v57, %s3308_s16  ;;  %1406 = vrot.lane.b32.xlu0 %v4147_v2, %s3303_s21  ;;  %v1329_v8 = vmul.f32 %v1249_v40, %v3680_v42  ;;  %v1317_v43 = vmul.f32 %v1289_v39, %v3727_v0 }
 0x295   : > { %v1288_v37 = vsel %vm636_vm1, %v1278_v59, %v1279_v50  ;;  %v1352_v46 = vmul.f32 %v1289_v39, %v3995_v41  ;;  %v4168_v49 = vsel %vm523_vm0, %v1238_v45, %v1239_v52  ;;  %v1306_v17 = vmul.f32 %v1249_v40, %v3685_v47 }
 0x296   : > { %v1336_v57 = vpack.c.bf16 %v1329_v8, %v1328_v44  ;;  %v1324_v2 = vpack.c.bf16 %v1317_v43, %v1316_v18  ;;  %v1353_v24 = vmul.f32 %v1288_v37, %v4001_v9  ;;  %v1307_v42 = vmul.f32 %v4168_v49, %v3755_v26  ;;  %v5154_v26 = vld [vmem:[#allocation16_spill] sm:$0xff] }
 0x297   : > { %v1294_v0 = vmul.f32 %v1289_v39, %v3725_v63  ;;  %v1295_v30 = vmul.f32 %v1288_v37, %v3736_v4  ;;  %v4178_v59 = vmul.f32 %v4135_v15, %v4007_v19  ;;  %v4183_v44 = vmul.f32 %v1249_v40, %v4009_v31 }
 0x298   : > { %1370 = vrot.lane.b32.xlu1 %v1273_v29, %s3309_s27  ;;  %1428 = vrot.lane.b32.xlu0 %v1336_v57, %s3302_s19  ;;  %v1360_v45 = vpack.c.bf16 %v1353_v24, %v1352_v46  ;;  %v1313_v18 = vpack.c.bf16 %v1307_v42, %v1306_v17  ;;  %v1342_v40 = vmul.f32 %v4141_v34, %v3853_v51 }
 0x299   : > { %v1301_v8 = vpack.c.bf16 %v1295_v30, %v1294_v0  ;;  %v1318_v39 = vmul.f32 %v1288_v37, %v3774_v48  ;;  %v5148_v48 = vld [vmem:[#allocation10_spill] sm:$0xff] }
 0x29c   : > { %1416 = vrot.lane.b32.xlu1 %v1324_v2, %s3310_s14  ;;  %1452 = vrot.lane.b32.xlu0 %v1360_v45, %s3304_s22  ;;  %v1268_v2 = vmul.f32 %v4141_v34, %v3838_v33  ;;  %v5149_v33 = vld [vmem:[#allocation26_spill] sm:$0xff] }
 0x29f   : > { %v1209_v43 = vpop.f32.mrb[8].mxu0 }
 0x2a0   : > { %v1210_v4 = vadd.f32 %v4112_v54, %v1209_v43  ;;  %v1211_v29 = vpop.f32.mrb[9].mxu0  ;;  %1394 = vrot.lane.b32.xlu1 %v1313_v18, %s3311_s3  ;;  %1382 = vrot.lane.b32.xlu0 %v1301_v8, %s3300_s18  ;;  %v1330_v18 = vmul.f32 %v4168_v49, %v3801_v62 }
 0x2a1   : > { %v1212_v24 = vpop.f32.mrb[10].mxu0 }
 0x2a2   : > { %v1228_v42 = vmax.f32 %v1210_v4, 0.0  ;;  %v1213_v30 = vadd.f32 %v4112_v54, %v1212_v24  ;;  %v1214_v0 = vpop.f32.mrb[11].mxu0 }
 0x2a4   : > { %v4197_v46 = vmax.f32 %v1213_v30, 0.0  ;;  %v1343_v17 = vmul.f32 %v1228_v42, %v3828_v3  ;;  %v1240_v57 = vrot.slane %v1228_v42, 7  ;;  %v1269_v45 = vmul.f32 %v1228_v42, %v3641_v27 }
 0x2a5   : > { %v1280_v4 = vrot.slane %v1228_v42, 1 }
 0x2a6   : > { %v1241_v8 = vrot.slane %v4197_v46, 7  ;;  %v1349_v43 = vpack.c.bf16 %v1343_v17, %v1342_v40  ;;  %v1247_v29 = vsel %vm523_vm0, %v1239_v52, %v1240_v57  ;;  %v1274_v24 = vpack.c.bf16 %v1269_v45, %v1268_v2 }
 0x2a7   : > { %v1331_v34 = vmul.f32 %v1247_v29, %v3818_v55  ;;  %v1281_v30 = vrot.slane %v4197_v46, 1  ;;  %v1287_v0 = vsel %vm636_vm1, %v1279_v50, %v1280_v4  ;;  %v4219_v52 = vmul.f32 %v1247_v29, %v3699_v53 }
 0x2a8   : > { %1442 = vrot.lane.b32.xlu1 %v1349_v43, %s3308_s16  ;;  %v1354_v31 = vmul.f32 %v1287_v0, %v4013_v61  ;;  %v1319_v27 = vmul.f32 %v1287_v0, %v3739_v6  ;;  %v4216_v40 = vsel %vm523_vm0, %v1240_v57, %v1241_v8  ;;  %v4228_v37 = vpack.c.bf16 %v4197_v46, %v1228_v42  ;;  %v5146_v6 = vld [vmem:[#allocation44_spill] sm:$0xff] }
 0x2a9   : > { %v1337_v2 = vpack.c.bf16 %v1331_v34, %v1330_v18  ;;  %v1286_v17 = vsel %vm636_vm1, %v1280_v4, %v1281_v30  ;;  %v4225_v50 = vmul.f32 %v4216_v40, %v3883_v16  ;;  %v4232_v57 = vmul.f32 %v1287_v0, %v3850_v60 }
 0x2aa   : > { %v1355_v45 = vmul.f32 %v1286_v17, %v4041_v10  ;;  %v1325_v43 = vpack.c.bf16 %v1319_v27, %v1318_v39  ;;  %v4235_v53 = vmul.f32 %v1286_v17, %v3866_v13  ;;  %v4244_v34 = vmul.f32 %v1247_v29, %v4022_v25  ;;  %v5144_v25 = vld [vmem:[#allocation40_spill] sm:$0xff]  ;;  %v5145_v13 = vld [vmem:[#allocation42_spill] sm:$0xff]  ;;  %v5147_v10 = vld [vmem:[#allocation15_spill] sm:$0xff] }
 0x2ab   : > { %1430 = vrot.lane.b32.xlu0 %v1337_v2, %s3302_s19  ;;  %v4248_v27 = vmul.f32 %v4168_v49, %v4018_v32  ;;  %v1265_v49 = vmul.f32 %v4115_v38, %v3629_v21  ;;  %v4260_v42 = vmul.f32 %v4115_v38, %v3985_v23  ;;  %v1332_v16 = vmul.f32 %v4216_v40, %v5144_v25 }
 0x2ac   : > { %1372 = vrot.lane.b32.xlu1 %v1274_v24, %s3309_s27  ;;  %v1361_v4 = vpack.c.bf16 %v1355_v45, %v1354_v31  ;;  %v1344_v60 = vmul.f32 %v4197_v46, %v5145_v13 }
 0x2af   : > { %1454 = vrot.lane.b32.xlu0 %v1361_v4, %s3304_s22  ;;  %v1293_v4 = vmul.f32 %v4129_v7, %v3627_v20 }
 0x2b0   : > { %1418 = vrot.lane.b32.xlu1 %v1325_v43, %s3310_s14  ;;  %v5142_v43 = vld [vmem:[#allocation12_spill] sm:$0xff] }
 0x2b1   : > { %v1305_v39 = vmul.f32 %v4135_v15, %v5142_v43  ;;  %v1270_v15 = vmul.f32 %v4197_v46, %v5146_v6  ;;  %v5150_v46 = vrot.slane %v4115_v38, 1 }
 0x2bb   : > { %v1217_v0 = vpop.f32.mrb[12].mxu0 }
 0x2bc   : > { %v1218_v31 = vadd.f32 %v4112_v54, %v1217_v0  ;;  %v1219_v24 = vpop.f32.mrb[13].mxu0  ;;  %v5143_v0 = vld [vmem:[#allocation38_spill] sm:$0xff] }
 0x2bd   : > { %v1220_v2 = vpop.f32.mrb[14].mxu0  ;;  %v1320_v24 = vmul.f32 %v1286_v17, %v5143_v0 }
 0x2be   : > { %v1230_v45 = vmax.f32 %v1218_v31, 0.0  ;;  %v1221_v29 = vadd.f32 %v4112_v54, %v1220_v2  ;;  %v1222_v18 = vpop.f32.mrb[15].mxu0  ;;  %v4269_v31 = vmul.f32 %v4129_v7, %v4080_v12 }
 0x2c0   : > { %v1282_v54 = vrot.slane %v1230_v45, 1  ;;  %v1231_v18 = vmax.f32 %v1221_v29, 0.0  ;;  %v1242_v2 = vrot.slane %v1230_v45, 7  ;;  %v1345_v32 = vmul.f32 %v1230_v45, %v3928_v11 }
 0x2c1   : > { %v1271_v17 = vmul.f32 %v1230_v45, %v5147_v10 }
 0x2c2   : > { %v1243_v0 = vrot.slane %v1231_v18, 7  ;;  %v1264_v7 = vmul.f32 %v1231_v18, %v5148_v48  ;;  %v1283_v61 = vrot.slane %v1231_v18, 1  ;;  %v1285_v29 = vsel %vm636_vm1, %v1281_v30, %v1282_v54  ;;  %v5152_v30 = vld [vmem:[#allocation41_spill] sm:$0xff] }
 0x2c3   : > { %v1321_v11 = vmul.f32 %v1285_v29, %v5149_v33  ;;  %v1245_v25 = vsel %vm523_vm0, %v1241_v8, %v1242_v2  ;;  %v1350_v55 = vpack.c.bf16 %v1345_v32, %v1344_v60  ;;  %v4285_v62 = vpack.c.bf16 %v1231_v18, %v1230_v45  ;;  %v5153_v33 = vld [vmem:[#allocation9_spill] sm:$0xff] }
 0x2c4   : > { %v1272_v13 = vpack.c.bf16 %v1265_v49, %v1264_v7  ;;  %v1291_v10 = vsel %vm636_vm1, %v1283_v61, %v5150_v46  ;;  %v5151_v48 = vrot.slane %v4115_v38, 7  ;;  %v1333_v3 = vmul.f32 %v1245_v25, %v5152_v30 }
 0x2c5   : > { %v1292_v63 = vmul.f32 %v1291_v10, %v5153_v33  ;;  %v1326_v60 = vpack.c.bf16 %v1321_v11, %v1320_v24  ;;  %v1275_v32 = vpack.c.bf16 %v1271_v17, %v1270_v15  ;;  %v1284_v49 = vsel %vm636_vm1, %v1282_v54, %v1283_v61  ;;  %v5155_v33 = vld [vmem:[#allocation20_spill] sm:$0xff]  ;;  %v5157_v24 = vld [vmem:[#allocation45_spill] sm:$0xff] }
 0x2c6   : > { %v1251_v6 = vsel %vm523_vm0, %v1243_v0, %v5151_v48  ;;  %1368 = vrot.lane.b32.xlu1 %v1272_v13, %s3309_s27  ;;  %v1338_v45 = vpack.c.bf16 %v1333_v3, %v1332_v16  ;;  %v1356_v7 = vmul.f32 %v1285_v29, %v4055_v22  ;;  %v1244_v38 = vsel %vm523_vm0, %v1242_v2, %v1243_v0  ;;  %v5158_v13 = vld [vmem:[#allocation46_spill] sm:$0xff]  ;;  %v5159_v16 = vld [vmem:[#allocation49_spill] sm:$0xff]  ;;  %v5160_v54 = vld [vmem:[#allocation28_spill] sm:$0xff] }
 0x2c7   : > { %v1304_v8 = vmul.f32 %v1251_v6, %v5154_v26  ;;  %v1300_v48 = vpack.c.bf16 %v1293_v4, %v1292_v63  ;;  %v1357_v30 = vmul.f32 %v1284_v49, %v4032_v14  ;;  %v1310_v9 = vmul.f32 %v1245_v25, %v5155_v33  ;;  %v5156_v26 = vld [vmem:[#allocation47_spill] sm:$0xff]  ;;  %v5161_v0 = vld [vmem:[#allocation50_spill] sm:$0xff] }
 0x2c8   : > { %v1311_v11 = vmul.f32 %v1244_v38, %v5156_v26  ;;  %v1298_v15 = vmul.f32 %v1285_v29, %v5157_v24  ;;  %v1299_v3 = vmul.f32 %v1284_v49, %v5158_v13  ;;  %v1322_v17 = vmul.f32 %v1284_v49, %v5159_v16  ;;  %v5163_v26 = vld [vmem:[#allocation52_spill] sm:$0xff]  ;;  %v5164_v49 = vld [vmem:[#allocation53_spill] sm:$0xff] }
 0x2c9   : > { %v1312_v46 = vpack.c.bf16 %v1305_v39, %v1304_v8  ;;  %1380 = vrot.lane.b32.xlu0 %v1300_v48, %s3300_s18  ;;  %v1362_v61 = vpack.c.bf16 %v1357_v30, %v1356_v7  ;;  %v1323_v22 = vmul.f32 %v1291_v10, %v5160_v54  ;;  %v1334_v63 = vmul.f32 %v1244_v38, %v5161_v0  ;;  %v5162_v39 = vld [vmem:[#allocation51_spill] sm:$0xff]  ;;  %v5165_v30 = vld [vmem:[#allocation54_spill] sm:$0xff] }
 0x2ca   : > { %v1335_v4 = vmul.f32 %v1251_v6, %v5162_v39  ;;  %v1315_v2 = vpack.c.bf16 %v1311_v11, %v1310_v9  ;;  %v1303_v8 = vpack.c.bf16 %v1299_v3, %v1298_v15  ;;  %v1346_v33 = vmul.f32 %v1231_v18, %v5163_v26  ;;  %v3159_v3 = vld [vmem:[#allocation6 + $0x38] sm:$0xff]  }
 0x2cb   : > { %1392 = vrot.lane.b32.xlu1 %v1312_v46, %s3311_s3  ;;  %v1358_v29 = vmul.f32 %v1291_v10, %v4076_v35  ;;  %v1327_v13 = vpack.c.bf16 %v1323_v22, %v1322_v17  ;;  %v4318_v16 = vmul.f32 %v1244_v38, %v5164_v49  ;;  %v4321_v7 = vmul.f32 %v1251_v6, %v5165_v30 }
 0x2cc   : > { %v1339_v24 = vpack.c.bf16 %v1335_v4, %v1334_v63  ;;  %v1351_v48 = vpack.c.bf16 %v4260_v42, %v1346_v33  ;;  %v4327_v9 = vmul.f32 %v4216_v40, %v4047_v5  ;;  %v4330_v18 = vmul.f32 %v1245_v25, %v4038_v58  ;;  %v3152_v25 = vld [vmem:[#allocation6] sm:$0xff]   ;;  %v3158_v42 = vld [vmem:[#allocation6 + $0x30] sm:$0xff]  }
 0x2cd   : > { %v1363_v54 = vpack.c.bf16 %v4269_v31, %v1358_v29  ;;  %v5166_v10 = vpack.c.bf16 %v4235_v53, %v4232_v57  ;;  %v1260_v6 = vpack.c.bf16 %v4321_v7, %v4318_v16  ;;  %v5167_v33 = vpack.c.bf16 %v4225_v50, %v4219_v52  ;;  %1681 = vmatpush1.bf16.msra.mxu1 %v3152_v25  ;;  %v3153_v53 = vld [vmem:[#allocation6 + $0x8] sm:$0xff]   ;;  %v3155_v52 = vld [vmem:[#allocation6 + $0x18] sm:$0xff]   ;;  %v3156_v50 = vld [vmem:[#allocation6 + $0x20] sm:$0xff]  }
 0x2ce   : > { %v1263_v22 = vpack.c.bf16 %v4330_v18, %v4327_v9  ;;  %v5168_v40 = vmov 0   ;;  %v3157_v57 = vld [vmem:[#allocation6 + $0x28] sm:$0xff]   ;;  %v5169_v17 = vpack.c.bf16 %v4183_v44, %v4178_v59  ;;  %v3160_v63 = vld [vmem:[#allocation6 + $0x40] sm:$0xff]   ;;  %v5170_v7 = vpack.c.bf16 %v4244_v34, %v4248_v27 }
 0x2cf   : > { %1384 = vrot.lane.b32.xlu0 %v5166_v10, %s3300_s18  ;;  %1396 = vrot.lane.b32.xlu1 %v5167_v33, %s3311_s3  ;;  %v3161_v29 = vld [vmem:[#allocation6 + $0x48] sm:$0xff]   ;;  %v3162_v33 = vld [vmem:[#allocation6 + $0x50] sm:$0xff]  }
 0x2d0   : > { %1682 = vmatprep.subr.bf16.mxu1 %v5168_v40 }
 0x2d1   : > { %1683 = vmatpush1.bf16.msra.mxu1 %v3153_v53 }
 0x2d2   : > { %1684 = vmatprep.subr.bf16.mxu1 %v5168_v40 }
 0x2d3   : > { %1408 = vrot.lane.b32.xlu0 %v4228_v37, %s3303_s21  ;;  %1420 = vrot.lane.b32.xlu1 %v1326_v60, %s3310_s14 }
 0x2d7   : > { %1432 = vrot.lane.b32.xlu0 %v1338_v45, %s3302_s19  ;;  %1444 = vrot.lane.b32.xlu1 %v1350_v55, %s3308_s16  ;;  %v3154_v55 = vld [vmem:[#allocation6 + $0x10] sm:$0xff]  }
 0x2d8   : > { %1685 = vmatpush1.bf16.msra.mxu1 %v3154_v55 }
 0x2d9   : > { %1686 = vmatprep.subr.bf16.mxu1 %v5168_v40 }
 0x2db   : > { %1410 = vrot.lane.b32.xlu0 %v4285_v62, %s3303_s21  ;;  %1374 = vrot.lane.b32.xlu1 %v1275_v32, %s3309_s27 }
 0x2dc   : > { %1687 = vmatpush1.bf16.msra.mxu1 %v3155_v52  ;;  %v3163_v52 = vld [vmem:[#allocation6 + $0x58] sm:$0xff]  }
 0x2dd   : > { %1688 = vmatprep.subr.bf16.mxu1 %v5168_v40 }
 0x2df   : > { %1456 = vrot.lane.b32.xlu0 %v1362_v61, %s3304_s22  ;;  %1398 = vrot.lane.b32.xlu1 %v1315_v2, %s3311_s3 }
 0x2e0   : > { %1689 = vmatpush1.bf16.msra.mxu1 %v3156_v50  ;;  %v3164_v50 = vld [vmem:[#allocation6 + $0x60] sm:$0xff]  }
 0x2e1   : > { %1690 = vmatprep.subr.bf16.mxu1 %v5168_v40 }
 0x2e3   : > { %1386 = vrot.lane.b32.xlu0 %v1303_v8, %s3300_s18  ;;  %1422 = vrot.lane.b32.xlu1 %v1327_v13, %s3310_s14 }
 0x2e4   : > { %1691 = vmatpush1.bf16.msra.mxu1 %v3157_v57  ;;  %v3165_v57 = vld [vmem:[#allocation6 + $0x68] ss:$0 sps:$4 sm:$0xff]  }
 0x2e5   : > { %1692 = vmatprep.subr.bf16.mxu1 %v5168_v40 }
 0x2e7   : > { %1434 = vrot.lane.b32.xlu0 %v1339_v24, %s3302_s19  ;;  %1446 = vrot.lane.b32.xlu1 %v1351_v48, %s3308_s16 }
 0x2e8   : > { %1693 = vmatpush1.bf16.msra.mxu1 %v3158_v42  ;;  %v1678_v42 = vsel %vm1676_vm13, %v3165_v57, 0 }
 0x2e9   : > { %1694 = vmatprep.subr.bf16.mxu1 %v5168_v40 }
 0x2eb   : > { %1458 = vrot.lane.b32.xlu0 %v1363_v54, %s3304_s22  ;;  %v1405_v31 = vpop.permute.xlu0 %1404 }
 0x2ec   : > { %1695 = vmatpush1.bf16.msra.mxu1 %v3159_v3 }
 0x2ed   : > { %1696 = vmatprep.subr.bf16.mxu1 %v5168_v40 }
 0x2f0   : > { %1697 = vmatpush1.bf16.msra.mxu1 %v3160_v63 }
 0x2f1   : > { %1698 = vmatprep.subr.bf16.mxu1 %v5168_v40 }
 0x2f4   : > { %1699 = vmatpush1.bf16.msra.mxu1 %v3161_v29 }
 0x2f5   : > { %1700 = vmatprep.subr.bf16.mxu1 %v5168_v40 }
 0x2f8   : > { %1701 = vmatpush1.bf16.msra.mxu1 %v3162_v33 }
 0x2f9   : > { %1702 = vmatprep.subr.bf16.mxu1 %v5168_v40 }
 0x2fc   : > { %1703 = vmatpush1.bf16.msra.mxu1 %v3163_v52 }
 0x2fd   : > { %1704 = vmatprep.subr.bf16.mxu1 %v5168_v40 }
 0x300   : > { %1705 = vmatpush1.bf16.msra.mxu1 %v3164_v50 }
 0x301   : > { %1706 = vmatprep.subr.bf16.mxu1 %v5168_v40 }
 0x304   : > { %1707 = vmatpush1.bf16.msra.mxu1 %v1678_v42 }
 0x306   : > { %v1441_v60 = vpop.permute.xlu1 %1440  ;;  %v1407_v32 = vpop.permute.xlu0 %1406 }
 0x30a   : > { %v1371_v45 = vpop.permute.xlu1 %1370  ;;  %v1429_v38 = vpop.permute.xlu0 %1428 }
 0x30b   : > { %v1466_v61 = vsel %vm1460_vm9, %v5169_v17, %v1371_v45 }
 0x30e   : > { %v1417_v46 = vpop.permute.xlu1 %1416  ;;  %v1453_v11 = vpop.permute.xlu0 %1452 }
 0x312   : > { %v1395_v24 = vpop.permute.xlu1 %1394  ;;  %v1383_v15 = vpop.permute.xlu0 %1382 }
 0x313   : > { %v1476_v54 = vsel %vm997_vm2, %v1466_v61, %v1383_v15 }
 0x314   : > { %v1485_v2 = vsel %vm1481_vm10, %v1476_v54, %v1395_v24 }
 0x315   : > { %v1493_v59 = vsel %vm1010_vm3, %v1485_v2, %v1407_v32 }
 0x31a   : > { %v1443_v13 = vpop.permute.xlu1 %1442 }
 0x31d   : > { %v1431_v8 = vpop.permute.xlu0 %1430 }
 0x31e   : > { %v1373_v4 = vpop.permute.xlu1 %1372 }
 0x321   : > { %v1455_v25 = vpop.permute.xlu0 %1454 }
 0x322   : > { %v1419_v48 = vpop.permute.xlu1 %1418 }
 0x323   : > { %v1502_v44 = vsel %vm1498_vm11, %v1493_v59, %v1419_v48 }
 0x324   : > { %v1510_v10 = vsel %vm1019_vm4, %v1502_v44, %v1431_v8 }
 0x325   : > { %v1519_v53 = vsel %vm1515_vm12, %v1510_v10, %v1443_v13 }
 0x326   : > { %v1527_v55 = vsel %vm1028_vm5, %v1519_v53, %v1455_v25 }
 0x327   : > { %1538 = vrot.lane.b32.xlu0 %v1527_v55, %s3300_s18 }
 0x338   : > { %v1369_v32 = vpop.permute.xlu1 %1368 }
 0x339   : > { %v1463_v45 = vsel %vm1460_vm9, %v1260_v6, %v1369_v32  ;;  %v1469_v6 = vsel %vm1460_vm9, %v5170_v7, %v1373_v4 }
 0x33b   : > { %v1381_v24 = vpop.permute.xlu0 %1380 }
 0x33c   : > { %v1474_v15 = vsel %vm997_vm2, %v1463_v45, %v1381_v24 }
 0x33d   : > { %v1393_v13 = vpop.permute.xlu1 %1392 }
 0x33e   : > { %v1483_v3 = vsel %vm1481_vm10, %v1474_v15, %v1393_v13 }
 0x33f   : > { %v1491_v17 = vsel %vm1010_vm3, %v1483_v3, %v1405_v31  ;;  %v5171_v3 = vld [vmem:[#allocation56_spill] sm:$0xff] }
 0x340   : > { %v1500_v61 = vsel %vm1498_vm11, %v1491_v17, %v1417_v46 }
 0x341   : > { %v1385_v40 = vpop.permute.xlu0 %1384  ;;  %v1397_v54 = vpop.permute.xlu1 %1396  ;;  %v1508_v63 = vsel %vm1019_vm4, %v1500_v61, %v1429_v38  ;;  %v5172_v61 = vld [vmem:[#allocation63_spill] sm:$0xff] }
 0x342   : > { %v1517_v2 = vsel %vm1515_vm12, %v1508_v63, %v1441_v60  ;;  %v1478_v31 = vsel %vm997_vm2, %v1469_v6, %v1385_v40  ;;  %v5174_v63 = vld [vmem:[#allocation66_spill] sm:$0xff]  ;;  %v5177_v6 = vld [vmem:[#allocation68_spill] sm:$0xff] }
 0x343   : > { %v1525_v16 = vsel %vm1028_vm5, %v1517_v2, %v1453_v11  ;;  %v1487_v46 = vsel %vm1481_vm10, %v1478_v31, %v1397_v54  ;;  %v5173_v54 = vld [vmem:[#allocation61_spill] sm:$0xff]  ;;  %v5178_v31 = vld [vmem:[#allocation67_spill] sm:$0xff] }
 0x344   : > { %1536 = vrot.lane.b32.xlu1 %v1525_v16, %s3300_s18  ;;  %v5175_v16 = vld [vmem:[#allocation65_spill] sm:$0xff] }
 0x345   : > { %v1409_v8 = vpop.permute.xlu0 %1408  ;;  %v1421_v29 = vpop.permute.xlu1 %1420 }
 0x346   : > { %v1495_v38 = vsel %vm1010_vm3, %v1487_v46, %v1409_v8  ;;  %v5180_v46 = vld [vmem:[#allocation69_spill] sm:$0xff] }
 0x347   : > { %v1504_v60 = vsel %vm1498_vm11, %v1495_v38, %v1421_v29 }
 0x349   : > { %v1433_v48 = vpop.permute.xlu0 %1432  ;;  %v1445_v59 = vpop.permute.xlu1 %1444 }
 0x34a   : > { %v1512_v44 = vsel %vm1019_vm4, %v1504_v60, %v1433_v48  ;;  %v4452_v48 = vld [vmem:[%s4953_s5] ss:$0 sm:$0xff] }
 0x34b   : > { %v1521_v27 = vsel %vm1515_vm12, %v1512_v44, %v1445_v59 }
 0x34d   : > { %v1411_v11 = vpop.permute.xlu0 %1410  ;;  %v1375_v34 = vpop.permute.xlu1 %1374 }
 0x34e   : > { %v1472_v25 = vsel %vm1460_vm9, %v1263_v22, %v1375_v34 }
 0x351   : > { %v1457_v4 = vpop.permute.xlu0 %1456  ;;  %v1399_v33 = vpop.permute.xlu1 %1398 }
 0x352   : > { %v1529_v10 = vsel %vm1028_vm5, %v1521_v27, %v1457_v4 }
 0x353   : > { %1540 = vrot.lane.b32.xlu1 %v1529_v10, %s3300_s18 }
 0x355   : > { %v1387_v53 = vpop.permute.xlu0 %1386  ;;  %v1423_v52 = vpop.permute.xlu1 %1422 }
 0x356   : > { %v1480_v55 = vsel %vm997_vm2, %v1472_v25, %v1387_v53 }
 0x357   : > { %v1489_v50 = vsel %vm1481_vm10, %v1480_v55, %v1399_v33 }
 0x358   : > { %v1497_v57 = vsel %vm1010_vm3, %v1489_v50, %v1411_v11 }
 0x359   : > { %v1506_v42 = vsel %vm1498_vm11, %v1497_v57, %v1423_v52  ;;  %v1435_v32 = vpop.permute.xlu0 %1434  ;;  %v1447_v24 = vpop.permute.xlu1 %1446 }
 0x35a   : > { %v1514_v45 = vsel %vm1019_vm4, %v1506_v42, %v1435_v32 }
 0x35b   : > { %v1523_v15 = vsel %vm1515_vm12, %v1514_v45, %v1447_v24 }
 0x35d   : > { %v1459_v13 = vpop.permute.xlu0 %1458 }
 0x35e   : > { %v1531_v9 = vsel %vm1028_vm5, %v1523_v15, %v1459_v13 }
 0x35f   : > { %1542 = vrot.lane.b32.xlu0 %v1531_v9, %s3300_s18 }
 0x399   : > { %v1539_v18 = vpop.permute.xlu0 %1538 }
 0x39a   : > { %v4429_v40 = vsel %vm997_vm2, %v5172_v61, %v1539_v18 }
 0x3b6   : > { %v1537_v22 = vpop.permute.xlu1 %1536 }
 0x3b7   : > { %v4423_v17 = vsel %vm997_vm2, %v5171_v3, %v1537_v22 }
 0x3b8   : > { %2872 = vmatprep.mubr.msk.bf16.mxu1 %vm1667_vm14, %v4423_v17 }
 0x3b9   : > { %1713 = vmatmul.mubr.bf16.vlgmr.msra.gmra.mrb[0].mxu1 %v5173_v54 }
 0x3ba   : > { %2873 = vmatprep.mubr.msk.bf16.mxu1 %vm1667_vm14, %v4429_v40 }
 0x3c1   : > { %1721 = vmatmul.mubr.bf16.gmra.mrb[4].mxu1 %v5174_v63 }
 0x3c5   : > { %v1541_v2 = vpop.permute.xlu1 %1540 }
 0x3c6   : > { %v4437_v7 = vsel %vm997_vm2, %v5175_v16, %v1541_v2  ;;  %v5181_v2 = vld [vmem:[#allocation14_spill] sm:$0xff] }
 0x3c7   : > { %5176 = vst [vmem:[#allocation12_spill] sm:$0xff] %v4437_v7  ;;  %2874 = vmatprep.mubr.msk.bf16.mxu1 %vm1667_vm14, %v4437_v7  ;;  %v5217_v7 = vld [vmem:[#allocation16_spill] sm:$0xff] }
 0x3c9   : > { %1729 = vmatmul.mubr.bf16.gmra.mrb[8].mxu1 %v5177_v6 }
 0x3d1   : > { %v1543_v8 = vpop.permute.xlu0 %1542 }
 0x3d2   : > { %v4444_v29 = vsel %vm997_vm2, %v5178_v31, %v1543_v8 }
 0x3d3   : > { %5179 = vst [vmem:[#allocation50_spill] sm:$0xff] %v4444_v29  ;;  %2875 = vmatprep.mubr.msk.bf16.mxu1 %vm1667_vm14, %v4444_v29 }
 0x3d4   : > { %1737 = vmatmul.mubr.bf16.gmra.mrb[12].mxu1 %v5180_v46 }
 0x48c   : > { %v1714_v38 = vpop.f32.mrb[0].mxu1 }
 0x48d   : > { %v1715_v59 = vadd.f32 %v4452_v48, %v1714_v38  ;;  %v1716_v60 = vpop.f32.mrb[1].mxu1 }
 0x48e   : > { %v1717_v11 = vpop.f32.mrb[2].mxu1 }
 0x48f   : > { %v4455_v44 = vmax.f32 %v1715_v59, 0.0  ;;  %v1718_v34 = vadd.f32 %v4452_v48, %v1717_v11  ;;  %v1719_v27 = vpop.f32.mrb[3].mxu1  ;;  %v5182_v59 = vld [vmem:[#allocation18_spill] sm:$0xff]  ;;  %v5183_v11 = vld [vmem:[#allocation11_spill] sm:$0xff] }
 0x491   : > { %v1746_v4 = vmax.f32 %v1718_v34, 0.0  ;;  %v5061_v10 = vrot.slane %v4455_v44, 7  ;;  %v5062_v33 = vrot.slane %v4455_v44, 1  ;;  %v4476_v24 = vmul.f32 %v4455_v44, %v3629_v21 }
 0x492   : > { %v4482_v22 = vmul.f32 %v4455_v44, %v3985_v23 }
 0x493   : > { %v1758_v25 = vrot.slane %v1746_v4, 7  ;;  %v1798_v53 = vrot.slane %v1746_v4, 1  ;;  %v4461_v55 = vpack.c.bf16 %v1746_v4, %v4455_v44  ;;  %v1861_v18 = vmul.f32 %v1746_v4, %v3789_v1 }
 0x494   : > { %v1722_v52 = vpop.f32.mrb[4].mxu1  ;;  %v1787_v3 = vmul.f32 %v1746_v4, %v3712_v56 }
 0x495   : > { %v1723_v50 = vadd.f32 %v4452_v48, %v1722_v52  ;;  %1925 = vrot.lane.b32.xlu0 %v4461_v55, %s3303_s21  ;;  %v1724_v57 = vpop.f32.mrb[5].mxu1  ;;  %v1771_v42 = vsel %vm523_vm0, %v5061_v10, %v1758_v25  ;;  %v1811_v32 = vsel %vm636_vm1, %v5062_v33, %v1798_v53 }
 0x496   : > { %v1725_v45 = vpop.f32.mrb[6].mxu1  ;;  %v1849_v61 = vmul.f32 %v1771_v42, %v3665_v36  ;;  %v1837_v16 = vmul.f32 %v1811_v32, %v5181_v2  ;;  %v4488_v8 = vmul.f32 %v1811_v32, %v3627_v20  ;;  %v4493_v34 = vmul.f32 %v1771_v42, %v5142_v43 }
 0x497   : > { %v1747_v15 = vmax.f32 %v1723_v50, 0.0  ;;  %v1726_v13 = vadd.f32 %v4452_v48, %v1725_v45  ;;  %v1727_v9 = vpop.f32.mrb[7].mxu1  ;;  %v4496_v23 = vmul.f32 %v1811_v32, %v4080_v12  ;;  %v4499_v36 = vmul.f32 %v1771_v42, %v4007_v19  ;;  %v5184_v32 = vld [vmem:[#allocation17_spill] sm:$0xff] }
 0x499   : > { %v1759_v21 = vrot.slane %v1747_v15, 7  ;;  %v1799_v31 = vrot.slane %v1747_v15, 1  ;;  %v1748_v38 = vmax.f32 %v1726_v13, 0.0  ;;  %v1862_v60 = vmul.f32 %v1747_v15, %v5182_v59 }
 0x49a   : > { %v1788_v1 = vmul.f32 %v1747_v15, %v5183_v11 }
 0x49b   : > { %v1760_v56 = vrot.slane %v1748_v38, 7  ;;  %v1800_v27 = vrot.slane %v1748_v38, 1  ;;  %v1869_v20 = vpack.c.bf16 %v1862_v60, %v1861_v18  ;;  %v4501_v4 = vpack.c.bf16 %v1748_v38, %v1747_v15  ;;  %v5185_v15 = vld [vmem:[#allocation22_spill] sm:$0xff] }
 0x49c   : > { %v1730_v52 = vpop.f32.mrb[8].mxu1  ;;  %v1794_v50 = vpack.c.bf16 %v1788_v1, %v1787_v3  ;;  %v4505_v57 = vsel %vm523_vm0, %v1758_v25, %v1759_v21  ;;  %v1810_v43 = vsel %vm636_vm1, %v1798_v53, %v1799_v31  ;;  %v4510_v12 = vmul.f32 %v1748_v38, %v3853_v51  ;;  %v5186_v1 = vld [vmem:[#allocation55_spill] sm:$0xff] }
 0x49d   : > { %v1731_v19 = vadd.f32 %v4452_v48, %v1730_v52  ;;  %v1732_v42 = vpop.f32.mrb[9].mxu1  ;;  %1961 = vrot.lane.b32.xlu1 %v1869_v20, %s3308_s16  ;;  %1927 = vrot.lane.b32.xlu0 %v4501_v4, %s3303_s21  ;;  %v1850_v45 = vmul.f32 %v4505_v57, %v5184_v32  ;;  %v1838_v25 = vmul.f32 %v1810_v43, %v5185_v15  ;;  %v5187_v52 = vld [vmem:[#allocation27_spill] sm:$0xff] }
 0x49e   : > { %v1733_v13 = vpop.f32.mrb[10].mxu1  ;;  %v1809_v53 = vsel %vm636_vm1, %v1799_v31, %v1800_v27  ;;  %v1873_v51 = vmul.f32 %v1810_v43, %v3995_v41  ;;  %v4524_v9 = vsel %vm523_vm0, %v1759_v21, %v1760_v56  ;;  %v1827_v18 = vmul.f32 %v4505_v57, %v3685_v47  ;;  %v5188_v42 = vld [vmem:[#allocation21_spill] sm:$0xff]  ;;  %v5189_v32 = vld [vmem:[#allocation23_spill] sm:$0xff]  ;;  %v5190_v47 = vld [vmem:[#allocation32_spill] sm:$0xff] }
 0x49f   : > { %v1749_v3 = vmax.f32 %v1731_v19, 0.0  ;;  %v1734_v2 = vadd.f32 %v4452_v48, %v1733_v13  ;;  %v1735_v59 = vpop.f32.mrb[11].mxu1  ;;  %v1857_v60 = vpack.c.bf16 %v1850_v45, %v1849_v61  ;;  %v1845_v11 = vpack.c.bf16 %v1838_v25, %v1837_v16  ;;  %v5191_v25 = vld [vmem:[#allocation30_spill] sm:$0xff] }
 0x4a0   : > { %v1874_v20 = vmul.f32 %v1809_v53, %v5186_v1  ;;  %v1828_v31 = vmul.f32 %v4524_v9, %v5187_v52  ;;  %v1815_v41 = vmul.f32 %v1810_v43, %v5188_v42  ;;  %v1816_v15 = vmul.f32 %v1809_v53, %v5189_v32  ;;  %v5194_v32 = vld [vmem:[#allocation13_spill] sm:$0xff] }
 0x4a1   : > { %v1761_v21 = vrot.slane %v1749_v3, 7  ;;  %v1801_v10 = vrot.slane %v1749_v3, 1  ;;  %v4534_v33 = vmax.f32 %v1734_v2, 0.0  ;;  %1891 = vrot.lane.b32.xlu1 %v1794_v50, %s3309_s27  ;;  %1949 = vrot.lane.b32.xlu0 %v1857_v60, %s3302_s19  ;;  %v1864_v61 = vmul.f32 %v1749_v3, %v5190_v47  ;;  %v5192_v50 = vld [vmem:[#allocation31_spill] sm:$0xff]  ;;  %v5193_v60 = vld [vmem:[#allocation34_spill] sm:$0xff] }
 0x4a2   : > { %v1881_v16 = vpack.c.bf16 %v1874_v20, %v1873_v51  ;;  %v1834_v19 = vpack.c.bf16 %v1828_v31, %v1827_v18  ;;  %v1822_v45 = vpack.c.bf16 %v1816_v15, %v1815_v41  ;;  %v1851_v13 = vmul.f32 %v4524_v9, %v5191_v25  ;;  %v5196_v41 = vld [vmem:[#allocation29_spill] sm:$0xff] }
 0x4a3   : > { %v1762_v43 = vrot.slane %v4534_v33, 7  ;;  %v1802_v59 = vrot.slane %v4534_v33, 1  ;;  %v1870_v1 = vpack.c.bf16 %v1864_v61, %v4510_v12  ;;  %v1768_v2 = vsel %vm523_vm0, %v1760_v56, %v1761_v21  ;;  %v5195_v12 = vld [vmem:[#allocation58_spill] sm:$0xff] }
 0x4a4   : > { %v1852_v52 = vmul.f32 %v1768_v2, %v5192_v50  ;;  %v1789_v42 = vmul.f32 %v1748_v38, %v5193_v60  ;;  %v1790_v51 = vmul.f32 %v1749_v3, %v5194_v32  ;;  %v1808_v18 = vsel %vm636_vm1, %v1800_v27, %v1801_v10  ;;  %v5197_v61 = vld [vmem:[#allocation62_spill] sm:$0xff]  ;;  %v5198_v50 = vld [vmem:[#allocation24_spill] sm:$0xff] }
 0x4a5   : > { %1937 = vrot.lane.b32.xlu1 %v1845_v11, %s3310_s14  ;;  %1973 = vrot.lane.b32.xlu0 %v1881_v16, %s3304_s22  ;;  %v1807_v20 = vsel %vm636_vm1, %v1801_v10, %v1802_v59  ;;  %v1875_v31 = vmul.f32 %v1808_v18, %v5195_v12  ;;  %v4557_v56 = vmul.f32 %v1809_v53, %v5196_v41  ;;  %v5199_v16 = vld [vmem:[#allocation35_spill] sm:$0xff]  ;;  %v5200_v10 = vld [vmem:[#allocation36_spill] sm:$0xff] }
 0x4a6   : > { %v1858_v47 = vpack.c.bf16 %v1852_v52, %v1851_v13  ;;  %v1795_v38 = vpack.c.bf16 %v1790_v51, %v1789_v42  ;;  %v1876_v25 = vmul.f32 %v1807_v20, %v5197_v61  ;;  %v4561_v60 = vmul.f32 %v1808_v18, %v5198_v50  ;;  %v5201_v51 = vld [vmem:[#allocation19_spill] sm:$0xff]  ;;  %v5202_v61 = vld [vmem:[#allocation37_spill] sm:$0xff]  ;;  %v5204_v50 = vld [vmem:[#allocation38_spill] sm:$0xff] }
 0x4a7   : > { %v1738_v15 = vpop.f32.mrb[12].mxu1  ;;  %v4565_v32 = vmul.f32 %v1808_v18, %v5199_v16  ;;  %v4568_v46 = vmul.f32 %v1807_v20, %v5200_v10  ;;  %v4571_v53 = vpack.c.bf16 %v4534_v33, %v1749_v3  ;;  %v4577_v42 = vsel %vm523_vm0, %v1761_v21, %v1762_v43  ;;  %v5203_v21 = vld [vmem:[#allocation40_spill] sm:$0xff] }
 0x4a8   : > { %v1739_v27 = vadd.f32 %v4452_v48, %v1738_v15  ;;  %v1740_v11 = vpop.f32.mrb[13].mxu1  ;;  %v1882_v13 = vpack.c.bf16 %v1876_v25, %v1875_v31  ;;  %v1846_v52 = vpack.c.bf16 %v4561_v60, %v4557_v56  ;;  %v4580_v41 = vmul.f32 %v1768_v2, %v5201_v51  ;;  %v5207_v51 = vld [vmem:[#allocation43_spill] sm:$0xff] }
 0x4a9   : > { %v1741_v12 = vpop.f32.mrb[14].mxu1  ;;  %1915 = vrot.lane.b32.xlu1 %v1834_v19, %s3311_s3  ;;  %1903 = vrot.lane.b32.xlu0 %v1822_v45, %s3300_s18  ;;  %v4589_v56 = vmul.f32 %v4577_v42, %v5202_v61  ;;  %v4593_v25 = vmul.f32 %v4577_v42, %v5203_v21  ;;  %v4596_v60 = vmul.f32 %v1807_v20, %v5204_v50  ;;  %v5206_v45 = vld [vmem:[#allocation44_spill] sm:$0xff]  ;;  %v5208_v61 = vld [vmem:[#allocation15_spill] sm:$0xff]  ;;  %v5209_v21 = vld [vmem:[#allocation57_spill] sm:$0xff] }
 0x4aa   : > { %v1751_v18 = vmax.f32 %v1739_v27, 0.0  ;;  %v1742_v15 = vadd.f32 %v4452_v48, %v1741_v12  ;;  %v1743_v3 = vpop.f32.mrb[15].mxu1  ;;  %v5205_v48 = vld [vmem:[#allocation42_spill] sm:$0xff]  ;;  %v4604_v27 = vmul.f32 %v4534_v33, %v5206_v45  ;;  %v4616_v50 = vmul.f32 %v4505_v57, %v5209_v21 }
 0x4ab   : > { %v4600_v19 = vmul.f32 %v4534_v33, %v5205_v48  ;;  %v5210_v48 = vld [vmem:[#allocation60_spill] sm:$0xff] }
 0x4ac   : > { %v1763_v11 = vrot.slane %v1751_v18, 7  ;;  %v1803_v16 = vrot.slane %v1751_v18, 1  ;;  %v1752_v10 = vmax.f32 %v1742_v15, 0.0  ;;  %v4609_v3 = vmul.f32 %v1751_v18, %v5207_v51  ;;  %v5211_v15 = vld [vmem:[#allocation10_spill] sm:$0xff] }
 0x4ad   : > { %v4612_v20 = vmul.f32 %v1751_v18, %v5208_v61  ;;  %v4619_v31 = vmul.f32 %v1768_v2, %v5210_v48  ;;  %1963 = vrot.lane.b32.xlu1 %v1870_v1, %s3308_s16  ;;  %1951 = vrot.lane.b32.xlu0 %v1858_v47, %s3302_s19  ;;  %v5212_v61 = vld [vmem:[#allocation41_spill] sm:$0xff]  ;;  %v5213_v48 = vrot.slane %v4455_v44, 1 }
 0x4ae   : > { %v1764_v33 = vrot.slane %v1752_v10, 7  ;;  %v1804_v45 = vrot.slane %v1752_v10, 1  ;;  %v1785_v12 = vmul.f32 %v1752_v10, %v5211_v15  ;;  %v1766_v51 = vsel %vm523_vm0, %v1762_v43, %v1763_v11 }
 0x4af   : > { %v1854_v29 = vmul.f32 %v1766_v51, %v5212_v61  ;;  %v1806_v57 = vsel %vm636_vm1, %v1802_v59, %v1803_v16  ;;  %v4629_v21 = vpack.c.bf16 %v1752_v10, %v1751_v18  ;;  %v1871_v2 = vpack.c.bf16 %v4609_v3, %v4600_v19  ;;  %v5215_v61 = vld [vmem:[#allocation26_spill] sm:$0xff]  ;;  %v5216_v59 = vld [vmem:[#allocation9_spill] sm:$0xff] }
 0x4b0   : > { %v1812_v1 = vsel %vm636_vm1, %v1804_v45, %v5213_v48  ;;  %v1793_v47 = vpack.c.bf16 %v4476_v24, %v1785_v12  ;;  %v5214_v15 = vrot.slane %v4455_v44, 7  ;;  %v1842_v6 = vmul.f32 %v1806_v57, %v5215_v61  ;;  %v5218_v24 = vld [vmem:[#allocation64_spill] sm:$0xff] }
 0x4b1   : > { %v1813_v18 = vmul.f32 %v1812_v1, %v5216_v59  ;;  %v1859_v19 = vpack.c.bf16 %v1854_v29, %v4593_v25  ;;  %v1805_v3 = vsel %vm636_vm1, %v1803_v16, %v1804_v45  ;;  %1893 = vrot.lane.b32.xlu1 %v1795_v38, %s3309_s27  ;;  %1975 = vrot.lane.b32.xlu0 %v1882_v13, %s3304_s22  ;;  %v5219_v29 = vld [vmem:[#allocation45_spill] sm:$0xff]  ;;  %v5220_v45 = vld [vmem:[#allocation46_spill] sm:$0xff]  ;;  %v5222_v59 = vld [vmem:[#allocation47_spill] sm:$0xff] }
 0x4b2   : > { %v1772_v43 = vsel %vm523_vm0, %v1764_v33, %v5214_v15  ;;  %v1847_v44 = vpack.c.bf16 %v1842_v6, %v4596_v60  ;;  %v1877_v12 = vmul.f32 %v1806_v57, %v5218_v24  ;;  %v1878_v48 = vmul.f32 %v1805_v3, %v4032_v14  ;;  %v5221_v6 = vld [vmem:[#allocation20_spill] sm:$0xff] }
 0x4b3   : > { %v1825_v63 = vmul.f32 %v1772_v43, %v5217_v7  ;;  %v1821_v15 = vpack.c.bf16 %v4488_v8, %v1813_v18  ;;  %v1796_v7 = vpack.c.bf16 %v4612_v20, %v4604_v27  ;;  %v1819_v25 = vmul.f32 %v1806_v57, %v5219_v29  ;;  %v5224_v20 = vld [vmem:[#allocation28_spill] sm:$0xff] }
 0x4b4   : > { %v1883_v16 = vpack.c.bf16 %v1878_v48, %v1877_v12  ;;  %v1820_v38 = vmul.f32 %v1805_v3, %v5220_v45  ;;  %v1765_v13 = vsel %vm523_vm0, %v1763_v11, %v1764_v33  ;;  %v1831_v60 = vmul.f32 %v1766_v51, %v5221_v6  ;;  %v3179_v6 = vld [vmem:[%s4954_s6 + $0x70] sm:$0xff]  }
 0x4b5   : > { %v1833_v61 = vpack.c.bf16 %v4493_v34, %v1825_v63  ;;  %v1832_v24 = vmul.f32 %v1765_v13, %v5222_v59  ;;  %v1855_v14 = vmul.f32 %v1765_v13, %v5161_v0  ;;  %v1856_v8 = vmul.f32 %v1772_v43, %v5162_v39  ;;  %v5223_v63 = vld [vmem:[#allocation49_spill] sm:$0xff]  ;;  %1939 = vrot.lane.b32.xlu1 %v1846_v52, %s3310_s14 }
 0x4b6   : > { %v1843_v34 = vmul.f32 %v1805_v3, %v5223_v63  ;;  %1901 = vrot.lane.b32.xlu0 %v1821_v15, %s3300_s18  ;;  %v1824_v27 = vpack.c.bf16 %v1820_v38, %v1819_v25  ;;  %v1844_v57 = vmul.f32 %v1812_v1, %v5224_v20  ;;  %v1879_v28 = vmul.f32 %v1812_v1, %v4076_v35  ;;  %v5225_v3 = vld [vmem:[#allocation59_spill] sm:$0xff] }
 0x4b7   : > { %v1836_v11 = vpack.c.bf16 %v1832_v24, %v1831_v60  ;;  %v1860_v33 = vpack.c.bf16 %v1856_v8, %v1855_v14  ;;  %v1867_v18 = vmul.f32 %v1752_v10, %v5163_v26  ;;  %v1782_v0 = vpack.c.bf16 %v4616_v50, %v4499_v36  ;;  %v3174_v1 = vld [vmem:[%s4954_s6 + $0x60] sm:$0xff]   ;;  %v3182_v24 = vld [vmem:[%s4954_s6 + $0x88] sm:$0xff]   ;;  %v3180_v8 = vld [vmem:[%s4954_s6 + $0x30] sm:$0xff]  }
 0x4b8   : > { %v1848_v12 = vpack.c.bf16 %v1844_v57, %v1843_v34  ;;  %v1884_v39 = vpack.c.bf16 %v4496_v23, %v1879_v28  ;;  %v4676_v52 = vmul.f32 %v4524_v9, %v5225_v3  ;;  %v4679_v48 = vmul.f32 %v1765_v13, %v5164_v49  ;;  %v3168_v9 = vld [vmem:[%s4954_s6 + $0x48] sm:$0xff]   ;;  %v3181_v34 = vld [vmem:[%s4954_s6 + $0x78] sm:$0xff]  }
 0x4b9   : > { %v1872_v15 = vpack.c.bf16 %v4482_v22, %v1867_v18  ;;  %v4683_v35 = vmul.f32 %v1772_v43, %v5165_v30  ;;  %v4687_v26 = vmul.f32 %v4577_v42, %v4047_v5  ;;  %v4690_v10 = vmul.f32 %v1766_v51, %v4038_v58  ;;  %1889 = vrot.lane.b32.xlu1 %v1793_v47, %s3309_s27  ;;  %v3167_v22 = vld [vmem:[%s4954_s6] sm:$0xff]   ;;  %v3172_v51 = vld [vmem:[%s4954_s6 + $0x58] sm:$0xff]   ;;  %v3177_v43 = vld [vmem:[%s4954_s6 + $0x68] sm:$0xff]  }
 0x4ba   : > { %v5226_v23 = vpack.c.bf16 %v4568_v46, %v4565_v32  ;;  %v1783_v49 = vpack.c.bf16 %v4619_v31, %v4676_v52  ;;  %v5227_v58 = vpack.c.bf16 %v4589_v56, %v4580_v41  ;;  %v3166_v46 = vld [vmem:[%s4954_s6 + $0x40] sm:$0xff]   ;;  %v3169_v32 = vld [vmem:[%s4954_s6 + $0x8] sm:$0xff]   ;;  %v3170_v41 = vld [vmem:[%s4954_s6 + $0x50] sm:$0xff]   ;;  %vm2698_vm0 = vcmask 60416  }
 0x4bb   : > { %v1781_v30 = vpack.c.bf16 %v4683_v35, %v4679_v48  ;;  %v1784_v5 = vpack.c.bf16 %v4690_v10, %v4687_v26  ;;  %2950 = vmatprep.subr.bf16.mxu0 %v3166_v46  ;;  %v3176_v42 = vld [vmem:[%s4954_s6 + $0x80] sm:$0xff]   ;;  %v3171_v56 = vld [vmem:[%s4954_s6 + $0x10] sm:$0xff]   ;;  %v3178_v13 = vld [vmem:[%s4954_s6 + $0x28] sm:$0xff]  }
 0x4bc   : > { %1905 = vrot.lane.b32.xlu0 %v5226_v23, %s3300_s18  ;;  %2951 = vmatpush3.bf16.msra.mxu0 %v3167_v22  ;;  %v3175_v47 = vld [vmem:[%s4954_s6 + $0x20] sm:$0xff]   ;;  %v3183_v50 = vld [vmem:[%s4954_s6 + $0x38] sm:$0xff]  }
 0x4bd   : > { %1913 = vrot.lane.b32.xlu1 %v1833_v61, %s3311_s3  ;;  %2952 = vmatprep.subr.bf16.mxu0 %v3168_v9 }
 0x4be   : > { %3008 = vmatprep.subr.bf16.mxu1 %v3176_v42 }
 0x4bf   : > { %3009 = vmatpush3.bf16.msra.mxu1 %v3176_v42 }
 0x4c0   : > { %1929 = vrot.lane.b32.xlu0 %v4571_v53, %s3303_s21  ;;  %2953 = vmatpush3.bf16.msra.mxu0 %v3169_v32 }
 0x4c1   : > { %1917 = vrot.lane.b32.xlu1 %v5227_v58, %s3311_s3  ;;  %2954 = vmatprep.subr.bf16.mxu0 %v3170_v41 }
 0x4c2   : > { %3010 = vmatprep.subr.bf16.mxu1 %v3182_v24 }
 0x4c3   : > { %3011 = vmatpush3.bf16.msra.mxu1 %v3182_v24 }
 0x4c4   : > { %1953 = vrot.lane.b32.xlu0 %v1859_v19, %s3302_s19  ;;  %2955 = vmatpush3.bf16.msra.mxu0 %v3171_v56 }
 0x4c5   : > { %1941 = vrot.lane.b32.xlu1 %v1847_v44, %s3310_s14  ;;  %2956 = vmatprep.subr.bf16.mxu0 %v3172_v51 }
 0x4c8   : > { %1931 = vrot.lane.b32.xlu0 %v4629_v21, %s3303_s21 }
 0x4c9   : > { %1965 = vrot.lane.b32.xlu1 %v1871_v2, %s3308_s16  ;;  %v3173_v2 = vld [vmem:[%s4954_s6 + $0x18] sm:$0xff]  }
 0x4ca   : > { %2957 = vmatpush3.bf16.msra.mxu0 %v3173_v2 }
 0x4cb   : > { %2958 = vmatprep.subr.bf16.mxu0 %v3174_v1 }
 0x4cc   : > { %1977 = vrot.lane.b32.xlu0 %v1883_v16, %s3304_s22 }
 0x4cd   : > { %1895 = vrot.lane.b32.xlu1 %v1796_v7, %s3309_s27  ;;  %s2932_s27 = sshll.u32 %s5240_s28, 5 }
 0x4ce   : > { %2959 = vmatpush3.bf16.msra.mxu0 %v3175_v47  ;;  %s495_s17 = scalar_lea.vmem %s4961_s13, %s2932_s27 }
 0x4cf   : > { %2960 = vmatprep.subr.bf16.mxu0 %v3177_v43 }
 0x4d0   : > { %1907 = vrot.lane.b32.xlu0 %v1824_v27, %s3300_s18 }
 0x4d1   : > { %1919 = vrot.lane.b32.xlu1 %v1836_v11, %s3311_s3 }
 0x4d2   : > { %2961 = vmatpush3.bf16.msra.mxu0 %v3178_v13 }
 0x4d3   : > { %2962 = vmatprep.subr.bf16.mxu0 %v3179_v6 }
 0x4d4   : > { %1955 = vrot.lane.b32.xlu0 %v1860_v33, %s3302_s19 }
 0x4d5   : > { %1943 = vrot.lane.b32.xlu1 %v1848_v12, %s3310_s14  ;;  %s3312_s14 = smov 88  }
 0x4d6   : > { %2963 = vmatpush3.bf16.msra.mxu0 %v3180_v8 }
 0x4d7   : > { %2964 = vmatprep.subr.bf16.mxu0 %v3181_v34 }
 0x4d8   : > { %1979 = vrot.lane.b32.xlu0 %v1884_v39, %s3304_s22 }
 0x4d9   : > { %1967 = vrot.lane.b32.xlu1 %v1872_v15, %s3308_s16 }
 0x4da   : > { %2965 = vmatpush3.bf16.msra.mxu0 %v3183_v50  ;;  %v5232_v50 = vld [vmem:[#allocation68_spill] sm:$0xff] }
 0x507   : > { %v1926_v19 = vpop.permute.xlu0 %1925 }
 0x50f   : > { %v1962_v44 = vpop.permute.xlu1 %1961  ;;  %v1928_v61 = vpop.permute.xlu0 %1927 }
 0x513   : > { %v1892_v7 = vpop.permute.xlu1 %1891  ;;  %v1950_v29 = vpop.permute.xlu0 %1949 }
 0x514   : > { %v1986_v14 = vsel %vm1460_vm9, %v1782_v0, %v1892_v7 }
 0x517   : > { %v1938_v25 = vpop.permute.xlu1 %1937  ;;  %v1974_v16 = vpop.permute.xlu0 %1973 }
 0x51b   : > { %v1916_v45 = vpop.permute.xlu1 %1915  ;;  %v1904_v38 = vpop.permute.xlu0 %1903 }
 0x51c   : > { %v1996_v63 = vsel %vm997_vm2, %v1986_v14, %v1904_v38 }
 0x51d   : > { %v2004_v36 = vsel %vm1481_vm10, %v1996_v63, %v1916_v45 }
 0x51e   : > { %v2012_v28 = vsel %vm1010_vm3, %v2004_v36, %v1928_v61 }
 0x51f   : > { %v1964_v60 = vpop.permute.xlu1 %1963  ;;  %v1952_v59 = vpop.permute.xlu0 %1951 }
 0x523   : > { %v1894_v27 = vpop.permute.xlu1 %1893  ;;  %v1976_v20 = vpop.permute.xlu0 %1975 }
 0x524   : > { %v1989_v32 = vsel %vm1460_vm9, %v1783_v49, %v1894_v27 }
 0x527   : > { %v1940_v57 = vpop.permute.xlu1 %1939 }
 0x528   : > { %v1902_v11 = vpop.permute.xlu0 %1901  ;;  %v2020_v33 = vsel %vm1498_vm11, %v2012_v28, %v1940_v57  ;;  %v5233_v57 = vld [vmem:[#allocation50_spill] sm:$0xff] }
 0x529   : > { %v2028_v18 = vsel %vm1019_vm4, %v2020_v33, %v1952_v59  ;;  %v3184_v28 = vld [vmem:[%s4956_s8] sm:$0xff]  }
 0x52a   : > { %v2036_v0 = vsel %vm1515_vm12, %v2028_v18, %v1964_v60  ;;  %3020 = vmatprep.subr.bf16.mxu0 %v3184_v28 }
 0x52b   : > { %v1890_v12 = vpop.permute.xlu1 %1889  ;;  %v2044_v3 = vsel %vm1028_vm5, %v2036_v0, %v1976_v20  ;;  %v5231_v20 = vld [vmem:[#allocation12_spill] sm:$0xff] }
 0x52c   : > { %v1983_v15 = vsel %vm1460_vm9, %v1781_v30, %v1890_v12  ;;  %2055 = vrot.lane.b32.xlu0 %v2044_v3, %s3312_s14  ;;  %v2876_v12 = vld [vmem:[%s4955_s7] ss:$0 sm:$0xff] }
 0x52d   : > { %v1994_v58 = vsel %vm997_vm2, %v1983_v15, %v1902_v11  ;;  %v3185_v11 = vld [vmem:[%s4956_s8 + $0x8] sm:$0xff]  }
 0x52e   : > { %v1906_v39 = vpop.permute.xlu0 %1905 }
 0x52f   : > { %v1914_v23 = vpop.permute.xlu1 %1913  ;;  %v1998_v35 = vsel %vm997_vm2, %v1989_v32, %v1906_v39  ;;  %v3186_v32 = vld [vmem:[%s4956_s8 + $0x10] ss:$0 sps:$4 sm:$0xff]  }
 0x530   : > { %v2002_v22 = vsel %vm1481_vm10, %v1994_v58, %v1914_v23 }
 0x531   : > { %v2010_v9 = vsel %vm1010_vm3, %v2002_v22, %v1926_v19 }
 0x532   : > { %v1930_v46 = vpop.permute.xlu0 %1929  ;;  %v2018_v48 = vsel %vm1498_vm11, %v2010_v9, %v1938_v25 }
 0x533   : > { %v1918_v30 = vpop.permute.xlu1 %1917  ;;  %v2026_v41 = vsel %vm1019_vm4, %v2018_v48, %v1950_v29 }
 0x534   : > { %v2006_v56 = vsel %vm1481_vm10, %v1998_v35, %v1918_v30  ;;  %v2034_v51 = vsel %vm1515_vm12, %v2026_v41, %v1962_v44  ;;  %v2466_v30 = vsel %vm1676_vm13, %v3186_v32, 0 }
 0x535   : > { %v2042_v2 = vsel %vm1028_vm5, %v2034_v51, %v1974_v16  ;;  %v2014_v31 = vsel %vm1010_vm3, %v2006_v56, %v1930_v46  ;;  %v5228_v16 = vld [vmem:[#allocation70_spill] sm:$0xff] }
 0x536   : > { %v1954_v42 = vpop.permute.xlu0 %1953  ;;  %2053 = vrot.lane.b32.xlu1 %v2042_v2, %s3312_s14 }
 0x537   : > { %v1942_v1 = vpop.permute.xlu1 %1941 }
 0x538   : > { %v2022_v49 = vsel %vm1498_vm11, %v2014_v31, %v1942_v1 }
 0x539   : > { %v2030_v43 = vsel %vm1019_vm4, %v2022_v49, %v1954_v42 }
 0x53a   : > { %v1932_v52 = vpop.permute.xlu0 %1931 }
 0x53b   : > { %v1966_v47 = vpop.permute.xlu1 %1965 }
 0x53c   : > { %v2038_v61 = vsel %vm1515_vm12, %v2030_v43, %v1966_v47 }
 0x53e   : > { %v1978_v19 = vpop.permute.xlu0 %1977 }
 0x53f   : > { %v2046_v7 = vsel %vm1028_vm5, %v2038_v61, %v1978_v19  ;;  %v1896_v44 = vpop.permute.xlu1 %1895 }
 0x540   : > { %2057 = vrot.lane.b32.xlu1 %v2046_v7, %s3312_s14  ;;  %v1992_v29 = vsel %vm1460_vm9, %v1784_v5, %v1896_v44 }
 0x542   : > { %v1908_v25 = vpop.permute.xlu0 %1907 }
 0x543   : > { %v2000_v45 = vsel %vm997_vm2, %v1992_v29, %v1908_v25  ;;  %v1920_v38 = vpop.permute.xlu1 %1919 }
 0x544   : > { %2374 = vrot.lane.b32.xlu1 %v5228_v16, %s3300_s18  ;;  %v2008_v13 = vsel %vm1481_vm10, %v2000_v45, %v1920_v38 }
 0x545   : > { %v2016_v59 = vsel %vm1010_vm3, %v2008_v13, %v1932_v52 }
 0x546   : > { %v1956_v6 = vpop.permute.xlu0 %1955 }
 0x547   : > { %v1944_v60 = vpop.permute.xlu1 %1943 }
 0x548   : > { %2382 = vrot.lane.b32.xlu1 %v4461_v55, %s3311_s3  ;;  %v2024_v26 = vsel %vm1498_vm11, %v2016_v59, %v1944_v60  ;;  %v5229_v55 = vld [vmem:[#allocation71_spill] sm:$0xff] }
 0x549   : > { %v2032_v5 = vsel %vm1019_vm4, %v2024_v26, %v1956_v6 }
 0x54a   : > { %v1980_v24 = vpop.permute.xlu0 %1979 }
 0x54b   : > { %v1968_v10 = vpop.permute.xlu1 %1967 }
 0x54c   : > { %2378 = vrot.lane.b32.xlu1 %v4228_v37, %s3300_s18  ;;  %v2040_v14 = vsel %vm1515_vm12, %v2032_v5, %v1968_v10 }
 0x54d   : > { %v2048_v8 = vsel %vm1028_vm5, %v2040_v14, %v1980_v24 }
 0x54e   : > { %2059 = vrot.lane.b32.xlu0 %v2048_v8, %s3312_s14  ;;  %s4907_s14 = scalar_lea.vmem %s4960_s12, %s2932_s27 }
 0x552   : > { %2376 = vrot.lane.b32.xlu0 %v5229_v55, %s3300_s18 }
 0x556   : > { %2384 = vrot.lane.b32.xlu0 %v4501_v4, %s3311_s3 }
 0x55a   : > { %2380 = vrot.lane.b32.xlu0 %v4285_v62, %s3300_s18  ;;  %v5230_v62 = vld [vmem:[#allocation66_spill] sm:$0xff] }
 0x59e   : > { %v2056_v37 = vpop.permute.xlu0 %2055 }
 0x59f   : > { %v2065_v27 = vsel %vm1667_vm14, %v4429_v40, %v2056_v37  ;;  %v5234_v40 = vld [vmem:[#allocation69_spill] sm:$0xff] }
 0x5a8   : > { %v2054_v63 = vpop.permute.xlu1 %2053 }
 0x5a9   : > { %3012 = vmatprep.mubr.msk.bf16.mxu1 %vm1010_vm3, %v2054_v63  ;;  %v2062_v34 = vsel %vm1667_vm14, %v4423_v17, %v2054_v63 }
 0x5aa   : > { %2264 = vmatprep.mubr.bf16.mxu0 %v2062_v34  ;;  %3013 = vmatmul.mubr.msk.bf16.vlgmr.msra.gmra.mrb[16].mxu1 %vm1010_vm3, %v2056_v37 }
 0x5ab   : > { %2265 = vmatmul.mubr.bf16.vlgmr.msra.gmra.mrb[16].mxu0 %v5173_v54 }
 0x5ac   : > { %2272 = vmatprep.mubr.bf16.mxu0 %v2065_v27  ;;  %3021 = vmatpush3.bf16.msra.mxu0 %v3184_v28 }
 0x5ad   : > { %3022 = vmatprep.subr.bf16.mxu0 %v3185_v11 }
 0x5b0   : > { %3023 = vmatpush3.bf16.msra.mxu0 %v3185_v11 }
 0x5b1   : > { %3044 = vmatprep.subr.msk.bf16.mxu0 %vm1676_vm13, %v3186_v32 }
 0x5b2   : > { %v2058_v4 = vpop.permute.xlu1 %2057 }
 0x5b3   : > { %3016 = vmatprep.mubr.msk.bf16.mxu1 %vm1010_vm3, %v2058_v4  ;;  %2273 = vmatmul.mubr.bf16.gmra.mrb[20].mxu0 %v5230_v62  ;;  %v2068_v36 = vsel %vm1667_vm14, %v5231_v20, %v2058_v4 }
 0x5b4   : > { %2280 = vmatprep.mubr.bf16.mxu0 %v2068_v36  ;;  %3025 = vmatpush3.bf16.msra.mxu0 %v2466_v30 }
 0x5bb   : > { %2281 = vmatmul.mubr.bf16.gmra.mrb[24].mxu0 %v5232_v50 }
 0x5c0   : > { %v2060_v17 = vpop.permute.xlu0 %2059 }
 0x5c1   : > { %3017 = vmatmul.mubr.msk.bf16.gmra.mrb[20].mxu1 %vm1010_vm3, %v2060_v17  ;;  %v2071_v54 = vsel %vm1667_vm14, %v5233_v57, %v2060_v17 }
 0x5c2   : > { %2288 = vmatprep.mubr.bf16.mxu0 %v2071_v54 }
 0x5c3   : > { %2289 = vmatmul.mubr.bf16.gmra.mrb[28].mxu0 %v5234_v40 }
 0x67d   : > { %v3014_v33 = vpop.f32.mrb[16].mxu1 }
 0x67e   : > { %v2966_v18 = vpop.f32.mrb[16].mxu0  ;;  %v2331_v0 = vpop.f32.mrb[17].mxu1 }
 0x67f   : > { %v2967_v39 = vpop.f32.mrb[17].mxu0  ;;  %v3015_v3 = vpop.f32.mrb[18].mxu1 }
 0x680   : > { %v2968_v15 = vadd.f32 %v2967_v39, %v2966_v18  ;;  %v2969_v23 = vpop.f32.mrb[18].mxu0  ;;  %v2334_v58 = vpop.f32.mrb[19].mxu1 }
 0x681   : > { %v2970_v46 = vpop.f32.mrb[19].mxu0 }
 0x682   : > { %v2267_v22 = vadd.f32 %v2968_v15, %v2876_v12  ;;  %v2971_v9 = vadd.f32 %v2970_v46, %v2969_v23 }
 0x684   : > { %v2332_v48 = vadd.f32 %v2331_v0, %v2267_v22  ;;  %v2270_v35 = vadd.f32 %v2971_v9, %v2876_v12  ;;  %v5236_v22 = vld [vmem:[#allocation33_spill] sm:$0xff] }
 0x686   : > { %v2335_v42 = vadd.f32 %v2334_v58, %v2270_v35  ;;  %v2972_v41 = vpop.f32.mrb[20].mxu0  ;;  %v2362_v51 = vmax.f32 %v2332_v48, 0.0 }
 0x687   : > { %v2973_v56 = vpop.f32.mrb[21].mxu0 }
 0x688   : > { %v2363_v2 = vmax.f32 %v2335_v42, 0.0  ;;  %v2974_v1 = vadd.f32 %v2973_v56, %v2972_v41  ;;  %v2975_v31 = vpop.f32.mrb[22].mxu0  ;;  %v5237_v42 = vld [vmem:[#allocation39_spill] sm:$0xff] }
 0x689   : > { %v2976_v52 = vpop.f32.mrb[23].mxu0 }
 0x68a   : > { %v2370_v49 = vpack.c.bf16 %v2363_v2, %v2362_v51  ;;  %v2275_v47 = vadd.f32 %v2974_v1, %v2876_v12  ;;  %v2977_v43 = vadd.f32 %v2976_v52, %v2975_v31  ;;  %v5238_v31 = vld [vmem:[#allocation48_spill] sm:$0xff] }
 0x68c   : > { %v2340_v19 = vadd.f32 %v3014_v33, %v2275_v47  ;;  %v2278_v61 = vadd.f32 %v2977_v43, %v2876_v12  ;;  %2394 = vrot.lane.b32.xlu1 %v2370_v49, %s3303_s21  ;;  %v2375_v33 = vpop.permute.xlu1 %2374 }
 0x68e   : > { %v2343_v7 = vadd.f32 %v3015_v3, %v2278_v61  ;;  %v2978_v44 = vpop.f32.mrb[24].mxu0  ;;  %v2364_v25 = vmax.f32 %v2340_v19, 0.0  ;;  %v5235_v3 = vld [vmem:[#allocation25_spill] sm:$0xff]  ;;  %v3187_v19 = vld [vmem:[%s4958_s10] sm:$0xff]  }
 0x68f   : > { %v2979_v29 = vpop.f32.mrb[25].mxu0  ;;  %v2404_v15 = vsel %vm997_vm2, %v5235_v3, %v2375_v33  ;;  %3034 = vmatprep.subr.bf16.mxu1 %v3187_v19  ;;  %v2899_v61 = vld [vmem:[%s4957_s9] ss:$0 sm:$0xff] }
 0x690   : > { %v2365_v16 = vmax.f32 %v2343_v7, 0.0  ;;  %v2980_v45 = vadd.f32 %v2979_v29, %v2978_v44  ;;  %2386 = vrot.lane.b32.xlu1 %v4571_v53, %s3311_s3  ;;  %v2981_v38 = vpop.f32.mrb[26].mxu0  ;;  %v2383_v18 = vpop.permute.xlu1 %2382  ;;  %3035 = vmatpush3.bf16.msra.mxu1 %v3187_v19 }
 0x691   : > { %v2982_v13 = vpop.f32.mrb[27].mxu0  ;;  %v2415_v23 = vsel %vm1481_vm10, %v2404_v15, %v2383_v18 }
 0x692   : > { %v2371_v6 = vpack.c.bf16 %v2365_v16, %v2364_v25  ;;  %v2983_v60 = vadd.f32 %v2982_v13, %v2981_v38  ;;  %v2283_v26 = vadd.f32 %v2980_v45, %v2876_v12 }
 0x694   : > { %2396 = vrot.lane.b32.xlu0 %v2371_v6, %s3303_s21  ;;  %v3018_v59 = vpop.f32.mrb[20].mxu1  ;;  %v2286_v8 = vadd.f32 %v2983_v60, %v2876_v12  ;;  %v2379_v0 = vpop.permute.xlu1 %2378 }
 0x695   : > { %v2347_v10 = vpop.f32.mrb[21].mxu1  ;;  %v2410_v41 = vsel %vm997_vm2, %v5237_v42, %v2379_v0 }
 0x696   : > { %v2348_v5 = vadd.f32 %v2347_v10, %v2283_v26  ;;  %v2984_v24 = vpop.f32.mrb[28].mxu0  ;;  %v3019_v14 = vpop.f32.mrb[22].mxu1 }
 0x697   : > { %v2985_v55 = vpop.f32.mrb[29].mxu0  ;;  %v2350_v37 = vpop.f32.mrb[23].mxu1 }
 0x698   : > { %v2986_v63 = vadd.f32 %v2985_v55, %v2984_v24  ;;  %v2351_v34 = vadd.f32 %v2350_v37, %v2286_v8  ;;  %2388 = vrot.lane.b32.xlu0 %v4629_v21, %s3311_s3  ;;  %v2987_v53 = vpop.f32.mrb[30].mxu0  ;;  %v2366_v4 = vmax.f32 %v2348_v5, 0.0  ;;  %v2377_v21 = vpop.permute.xlu0 %2376 }
 0x699   : > { %v2988_v27 = vpop.f32.mrb[31].mxu0  ;;  %v2407_v9 = vsel %vm997_vm2, %v5236_v22, %v2377_v21 }
 0x69a   : > { %v2291_v62 = vadd.f32 %v2986_v63, %v2876_v12  ;;  %v2367_v20 = vmax.f32 %v2351_v34, 0.0  ;;  %v2989_v36 = vadd.f32 %v2988_v27, %v2987_v53 }
 0x69c   : > { %v2356_v50 = vadd.f32 %v3018_v59, %v2291_v62  ;;  %v2372_v17 = vpack.c.bf16 %v2367_v20, %v2366_v4  ;;  %v2294_v57 = vadd.f32 %v2989_v36, %v2876_v12  ;;  %v2385_v39 = vpop.permute.xlu0 %2384 }
 0x69d   : > { %v2417_v32 = vsel %vm1481_vm10, %v2407_v9, %v2385_v39 }
 0x69e   : > { %v2359_v54 = vadd.f32 %v3019_v14, %v2294_v57  ;;  %2398 = vrot.lane.b32.xlu1 %v2372_v17, %s3303_s21  ;;  %v2368_v40 = vmax.f32 %v2356_v50, 0.0  ;;  %v2915_v17 = vld [vmem:[%s4959_s11] ss:$0 sm:$0xff] }
 0x6a0   : > { %v2369_v28 = vmax.f32 %v2359_v54, 0.0  ;;  %v2381_v46 = vpop.permute.xlu0 %2380 }
 0x6a1   : > { %v2413_v52 = vsel %vm997_vm2, %v5238_v31, %v2381_v46 }
 0x6a2   : > { %v2373_v11 = vpack.c.bf16 %v2369_v28, %v2368_v40 }
 0x6a4   : > { %2400 = vrot.lane.b32.xlu0 %v2373_v11, %s3303_s21 }
 0x6fe   : > { %v2395_v58 = vpop.permute.xlu1 %2394 }
 0x6ff   : > { %v2423_v12 = vsel %vm1010_vm3, %v2415_v23, %v2395_v58 }
 0x700   : > { %3026 = vmatprep.mubr.msk.bf16.mxu0 %vm1498_vm11, %v2423_v12 }
 0x702   : > { %v2387_v30 = vpop.permute.xlu1 %2386 }
 0x703   : > { %v2419_v56 = vsel %vm1481_vm10, %v2410_v41, %v2387_v30 }
 0x706   : > { %v2397_v48 = vpop.permute.xlu0 %2396 }
 0x707   : > { %v2425_v35 = vsel %vm1010_vm3, %v2417_v32, %v2397_v48 }
 0x708   : > { %3027 = vmatmul.mubr.msk.bf16.vlgmr.msra.gmra.mrb[32].mxu0 %vm1498_vm11, %v2425_v35 }
 0x70a   : > { %v2389_v1 = vpop.permute.xlu0 %2388 }
 0x70b   : > { %v2421_v49 = vsel %vm1481_vm10, %v2413_v52, %v2389_v1 }
 0x710   : > { %v2399_v51 = vpop.permute.xlu1 %2398 }
 0x711   : > { %v2427_v2 = vsel %vm1010_vm3, %v2419_v56, %v2399_v51 }
 0x712   : > { %3030 = vmatprep.mubr.msk.bf16.mxu0 %vm1498_vm11, %v2427_v2 }
 0x716   : > { %v2401_v47 = vpop.permute.xlu0 %2400 }
 0x717   : > { %v2429_v43 = vsel %vm1010_vm3, %v2421_v49, %v2401_v47 }
 0x718   : > { %3031 = vmatmul.mubr.msk.bf16.gmra.mrb[36].mxu0 %vm1498_vm11, %v2429_v43 }
 0x7db   : > { %v3028_v7 = vpop.f32.mrb[32].mxu0 }
 0x7dc   : > { %v2511_v44 = vadd.f32 %v3028_v7, %v2899_v61  ;;  %v2502_v29 = vpop.f32.mrb[33].mxu0 }
 0x7dd   : > { %v2503_v25 = vadd.f32 %v2899_v61, %v2502_v29  ;;  %v3029_v16 = vpop.f32.mrb[34].mxu0 }
 0x7de   : > { %v2936_v45 = vpack.c.bf16 %v2511_v44, %v2511_v44  ;;  %v2514_v38 = vadd.f32 %v3029_v16, %v2899_v61  ;;  %v2505_v13 = vpop.f32.mrb[35].mxu0 }
 0x7df   : > { %v2934_v6 = vpack.c.bf16 %v2503_v25, %v2503_v25  ;;  %v2506_v60 = vadd.f32 %v2899_v61, %v2505_v13 }
 0x7e0   : > { %2568 = vst.msk [vmem:[%s4907_s14 + $0x8] sm:$0xf] %vm2565_vm15, %v2936_v45  ;;  %v2534_v59 = vpack.c.bf16 %v2514_v38, %v2511_v44  ;;  %v2937_v26 = vpack.c.bf16 %v2514_v38, %v2514_v38 }
 0x7e1   : > { %2566 = vst.msk [vmem:[%s4907_s14] sm:$0xf] %vm2565_vm15, %v2934_v6  ;;  %v2533_v10 = vpack.c.bf16 %v2506_v60, %v2503_v25  ;;  %v2935_v5 = vpack.c.bf16 %v2506_v60, %v2506_v60 }
 0x7e2   : > { %2569 = vst.msk [vmem:[%s4907_s14 + $0xc] sm:$0xf] %vm2565_vm15, %v2937_v26 }
 0x7e3   : > { %2567 = vst.msk [vmem:[%s4907_s14 + $0x4] sm:$0xf] %vm2565_vm15, %v2935_v5  ;;  %3036 = vmatprep.mubr.msk.bf16.mxu1 %vm997_vm2, %v2533_v10 }
 0x7e4   : > { %3037 = vmatmul.mubr.msk.bf16.vlgmr.msra.gmra.mrb[24].mxu1 %vm997_vm2, %v2534_v59 }
 0x7eb   : > { %v3032_v24 = vpop.f32.mrb[36].mxu0 }
 0x7ec   : > { %v2527_v14 = vadd.f32 %v3032_v24, %v2899_v61  ;;  %v2518_v8 = vpop.f32.mrb[37].mxu0 }
 0x7ed   : > { %v2519_v55 = vadd.f32 %v2899_v61, %v2518_v8  ;;  %v3033_v37 = vpop.f32.mrb[38].mxu0 }
 0x7ee   : > { %v2940_v63 = vpack.c.bf16 %v2527_v14, %v2527_v14  ;;  %v2530_v34 = vadd.f32 %v3033_v37, %v2899_v61  ;;  %v2521_v53 = vpop.f32.mrb[39].mxu0 }
 0x7ef   : > { %v2938_v27 = vpack.c.bf16 %v2519_v55, %v2519_v55  ;;  %v2522_v4 = vadd.f32 %v2899_v61, %v2521_v53 }
 0x7f0   : > { %2572 = vst.msk [vmem:[%s4907_s14 + $0x18] sm:$0xf] %vm2565_vm15, %v2940_v63  ;;  %v2536_v62 = vpack.c.bf16 %v2530_v34, %v2527_v14  ;;  %v2941_v20 = vpack.c.bf16 %v2530_v34, %v2530_v34 }
 0x7f1   : > { %2570 = vst.msk [vmem:[%s4907_s14 + $0x10] sm:$0xf] %vm2565_vm15, %v2938_v27  ;;  %v2535_v36 = vpack.c.bf16 %v2522_v4, %v2519_v55  ;;  %v2939_v50 = vpack.c.bf16 %v2522_v4, %v2522_v4 }
 0x7f2   : > { %2573 = vst.msk [vmem:[%s4907_s14 + $0x1c] sm:$0xf] %vm2565_vm15, %v2941_v20 }
 0x7f3   : > { %2571 = vst.msk [vmem:[%s4907_s14 + $0x14] sm:$0xf] %vm2565_vm15, %v2939_v50  ;;  %3040 = vmatprep.mubr.msk.bf16.mxu1 %vm997_vm2, %v2535_v36 }
 0x7f4   : > { %3041 = vmatmul.mubr.msk.bf16.gmra.mrb[28].mxu1 %vm997_vm2, %v2536_v62 }
 0x8b7   : > { %v3038_v57 = vpop.f32.mrb[24].mxu1 }
 0x8b8   : > { %v2644_v54 = vadd.f32 %v3038_v57, %v2915_v17  ;;  %v2635_v40 = vpop.f32.mrb[25].mxu1 }
 0x8b9   : > { %v2636_v28 = vadd.f32 %v2915_v17, %v2635_v40  ;;  %v3039_v11 = vpop.f32.mrb[26].mxu1 }
 0x8ba   : > { %v2944_v33 = vpack.c.bf16 %v2644_v54, %v2644_v54  ;;  %v2647_v18 = vadd.f32 %v3039_v11, %v2915_v17  ;;  %v2638_v21 = vpop.f32.mrb[27].mxu1 }
 0x8bb   : > { %v2942_v0 = vpack.c.bf16 %v2636_v28, %v2636_v28  ;;  %v2639_v39 = vadd.f32 %v2915_v17, %v2638_v21 }
 0x8bc   : > { %2701 = vst.msk [vmem:[%s495_s17 + $0x8] sm:$0xf] %vm2698_vm0, %v2944_v33  ;;  %v2945_v3 = vpack.c.bf16 %v2647_v18, %v2647_v18 }
 0x8bd   : > { %2699 = vst.msk [vmem:[%s495_s17] sm:$0xf] %vm2698_vm0, %v2942_v0  ;;  %v2943_v15 = vpack.c.bf16 %v2639_v39, %v2639_v39 }
 0x8be   : > { %2702 = vst.msk [vmem:[%s495_s17 + $0xc] sm:$0xf] %vm2698_vm0, %v2945_v3 }
 0x8bf   : > { %2700 = vst.msk [vmem:[%s495_s17 + $0x4] sm:$0xf] %vm2698_vm0, %v2943_v15 }
 0x8c7   : > { %v3042_v23 = vpop.f32.mrb[28].mxu1 }
 0x8c8   : > { %v2660_v58 = vadd.f32 %v3042_v23, %v2915_v17  ;;  %v2651_v12 = vpop.f32.mrb[29].mxu1 }
 0x8c9   : > { %v2652_v46 = vadd.f32 %v2915_v17, %v2651_v12  ;;  %v3043_v22 = vpop.f32.mrb[30].mxu1 }
 0x8ca   : > { %v2948_v9 = vpack.c.bf16 %v2660_v58, %v2660_v58  ;;  %v2663_v32 = vadd.f32 %v3043_v22, %v2915_v17  ;;  %v2654_v48 = vpop.f32.mrb[31].mxu1 }
 0x8cb   : > { %v2946_v35 = vpack.c.bf16 %v2652_v46, %v2652_v46  ;;  %v2655_v30 = vadd.f32 %v2915_v17, %v2654_v48 }
 0x8cc   : > { %2705 = vst.msk [vmem:[%s495_s17 + $0x18] sm:$0xf] %vm2698_vm0, %v2948_v9  ;;  %v2949_v42 = vpack.c.bf16 %v2663_v32, %v2663_v32 }
 0x8cd   : > { %2703 = vst.msk [vmem:[%s495_s17 + $0x10] sm:$0xf] %vm2698_vm0, %v2946_v35  ;;  %v2947_v41 = vpack.c.bf16 %v2655_v30, %v2655_v30 }
 0x8ce   : > { %2706 = vst.msk [vmem:[%s495_s17 + $0x1c] sm:$0xf] %vm2698_vm0, %v2949_v42 }
 0x8cf   : > { %2704 = vst.msk [vmem:[%s495_s17 + $0x14] sm:$0xf] %vm2698_vm0, %v2947_v41 }
 0x8d0 PF: > { %s26_s25 = sadd.s32 1, %s3286_s25  }
 0x8d1   : > { %p23_p3 = scmp.ge.s32.totalorder %s26_s25, 4  }
 0x8d3   :  { %25 = sbr.rel (!%p23_p3) target bundleno = 4 (0x4), region = 123 }
 0x8da   :  { %2744 = vsyncpa [#allocation3], 1 }
 0x8db   :  { %2746 = vsyncpa [#allocation3 + $0x1], 1 }
 0x8dc   :  { %2747 = vsyncpa [#allocation5], 1 }

// kernel: _lambda_.9
= control target key start
LH: loop header
LB: loop body
LE: loop exit
PB: predicated region body
PF: predicated region fallthrough
CT: control target
= control target key end

     0   :  { %s3257_s29 = smov 0   ;;  %s4836_s0 = inlined_call_operand.vmem [shape: f32[2,64,16], index: 0, kind: input, shape index: {}]   ;;  %s4837_s1 = inlined_call_operand.vmem [shape: f32[2,64,16], index: 1, kind: input, shape index: {}]   ;;  %s4838_s2 = inlined_call_operand.vmem [shape: f32[64,9], index: 2, kind: input, shape index: {}]   ;;  %s4839_s3 = inlined_call_operand.vmem [shape: bf16[144,8], index: 3, kind: input, shape index: {}]   ;;  %s4840_s4 = inlined_call_operand.vmem [shape: f32[1,8], index: 4, kind: input, shape index: {}]   ;;  %s4841_s5 = inlined_call_operand.vmem [shape: bf16[216,8], index: 5, kind: input, shape index: {}]   ;;  %s4842_s6 = inlined_call_operand.vmem [shape: f32[1,8], index: 6, kind: input, shape index: {}]   ;;  %s4843_s7 = inlined_call_operand.vmem [shape: bf16[288,8], index: 7, kind: input, shape index: {}]   ;;  %s4844_s8 = inlined_call_operand.vmem [shape: f32[1,8], index: 8, kind: input, shape index: {}]   ;;  %s4845_s9 = inlined_call_operand.vmem [shape: bf16[40,16], index: 9, kind: input, shape index: {}]   ;;  %s4846_s10 = inlined_call_operand.vmem [shape: f32[1,16], index: 10, kind: input, shape index: {}]   ;;  %s4847_s11 = inlined_call_operand.vmem [shape: bf16[16,8], index: 11, kind: input, shape index: {}]   ;;  %s4848_s12 = inlined_call_operand.vmem [shape: f32[1,8], index: 12, kind: input, shape index: {}]   ;;  %s4849_s13 = inlined_call_operand.vmem [shape: bf16[2,64,16], index: 13, kind: output, shape index: {0}]   ;;  %s4850_s14 = inlined_call_operand.vmem [shape: bf16[2,64,8], index: 14, kind: output, shape index: {1}]  }
   0x1 LB: > { %s2828_s30 = sadd.s32 4294967295, %s3160_s29   ;;  %p2832_p0 = scmp.ge.s32.totalorder %s3160_s29, 1  ;;  %s3160_s29 = sphi %s3257_s29, %s25_s29  }
   0x2   : > { %p425_p1 = scmp.lt.s32.totalorder %s3160_s29, 3 }
   0x4   : > { %p426_p2 = pnand %p2832_p0, %p425_p1 }
   0x6   : > { %429 = sbr.rel (%p426_p2) target bundleno = 2173 (0x87d), region = 72 }
   0xd   : > { %v3268_v0 = vld [vmem:[%s4838_s2] sm:$0xff]  ;;  %v3162_v1 = vmov 2   ;;  %v3163_v2 = vmov 1   ;;  %v3277_v3 = vld [vmem:[%s4838_s2 + $0x8] sm:$0xff]  ;;  %v4857_v4 = vmov 0   ;;  %p481_p3 = scmp.lt.s32.totalorder %s2828_s30, 1  ;;  %v542_v18 = vlaneseq }
   0xe   : > { %3073 = vset.pattern.permute.xlu1 %v3162_v1  ;;  %3072 = vset.pattern.permute.xlu0 %v3163_v2  ;;  %v3286_v5 = vld [vmem:[%s4838_s2 + $0x18] sm:$0xff]  ;;  %v3165_v6 = vmov 3   ;;  %v3296_v7 = vld [vmem:[%s4838_s2 + $0x28] sm:$0xff]  ;;  %v3166_v9 = vmov 5   ;;  %v3167_v13 = vmov 6   ;;  %v3329_v14 = vld [vmem:[%s4838_s2 + $0x10] sm:$0xff] }
   0xf   : > { %667 = vperm.xlu1 %3073, %v3268_v0   ;;  %606 = vperm.xlu0 %3072, %v3268_v0   ;;  %s5129_s30 = smov (!%p481_p3, %s2828_s30), 1  ;;  %v3301_v8 = vld [vmem:[%s4838_s2 + $0x38] sm:$0xff]  ;;  %v3335_v15 = vld [vmem:[%s4838_s2 + $0x20] sm:$0xff]  ;;  %v3168_v16 = vmov 7   ;;  %v3343_v17 = vld [vmem:[%s4838_s2 + $0x30] sm:$0xff]  ;;  %v3349_v19 = vshrl.u32 %v542_v18, 7 }
  0x10   : > { %1180 = vmatprep.subr.bf16.mxu0 %v4857_v4  ;;  %1701 = vmatprep.subr.bf16.mxu1 %v4857_v4  ;;  %s2929_s25 = sshll.u32 %s5129_s30, 6  ;;  %s3169_s24 = smov 16   ;;  %v3109_v59 = vld [vmem:[%s4839_s3] sm:$0xff]   ;;  %v4859_v61 = vmov 8   ;;  %v3110_v63 = vld [vmem:[%s4839_s3 + $0x8] sm:$0xff]   ;;  %vm1018_vm2 = vcmask 130048  }
  0x11   : > { %s3310_s28 = scalar_lea.vmem %s4836_s0, %s2929_s25  ;;  %s3315_s17 = scalar_lea.vmem %s4837_s1, %s2929_s25  ;;  %vm544_vm0 = vcmp.lt.s32.totalorder %v3349_v19, 1  ;;  %vm657_vm1 = vcmp.lt.s32.totalorder %v3349_v19, 7  ;;  %1181 = vmatpush1.bf16.msra.mxu0 %v3109_v59  ;;  %vm1031_vm3 = vcmask 261120   ;;  %vm1040_vm4 = vcmask 392192  }
  0x12   : > { %v508_v10 = vld [vmem:[%s3310_s28 + $0x30] sm:$0xff]  ;;  %v507_v20 = vld [vmem:[%s3310_s28 + $0x28] sm:$0xff]  ;;  %v509_v29 = vld [vmem:[%s3310_s28 + $0x38] sm:$0xff]  ;;  %1182 = vmatprep.subr.bf16.mxu0 %v4857_v4  ;;  %s3171_s16 = smov 48   ;;  %s3172_s22 = smov 32   ;;  %vm1049_vm5 = vcmask 523264  }
  0x13   : > { %671 = vperm.xlu1 %3073, %v3277_v3   ;;  %610 = vperm.xlu0 %3072, %v3277_v3   ;;  %v516_v11 = vld [vmem:[%s3315_s17 + $0x30] sm:$0xff]  ;;  %v515_v21 = vld [vmem:[%s3315_s17 + $0x28] sm:$0xff]  ;;  %v517_v30 = vld [vmem:[%s3315_s17 + $0x38] sm:$0xff]  ;;  %s3173_s15 = smov 64   ;;  %s3174_s20 = smov 80   ;;  %vm1058_vm6 = vcmask 654336  }
  0x14   : > { %v3320_v12 = vadd.f32 %v516_v11, %v508_v10  ;;  %v3354_v23 = vadd.f32 %v515_v21, %v507_v20  ;;  %v502_v32 = vld [vmem:[%s3310_s28] sm:$0xff]  ;;  %v3432_v35 = vadd.f32 %v517_v30, %v509_v29  ;;  %v503_v44 = vld [vmem:[%s3310_s28 + $0x8] sm:$0xff]  ;;  %v504_v20 = vld [vmem:[%s3310_s28 + $0x10] sm:$0xff]  ;;  %s3175_s25 = smov 96   ;;  %s3176_s26 = smov 112   ;;  %vm1067_vm7 = vcmask 785408  }
  0x15   : > { %v510_v33 = vld [vmem:[%s3315_s17] sm:$0xff]  ;;  %v511_v45 = vld [vmem:[%s3315_s17 + $0x8] sm:$0xff]  ;;  %1183 = vmatpush1.bf16.msra.mxu0 %v3110_v63  ;;  %v512_v21 = vld [vmem:[%s3315_s17 + $0x10] sm:$0xff]  ;;  %vm1076_vm8 = vcmask 916480   ;;  %s3177_s19 = smov 56   ;;  %s3179_s21 = smov 40  }
  0x16   : > { %v4851_v22 = vrot.slane %v3320_v12, 7  ;;  %v4855_v24 = vrot.slane %v3354_v23, 7  ;;  %v4856_v26 = vrot.slane %v3354_v23, 1  ;;  %v4853_v27 = vrot.slane %v3320_v12, 1  ;;  %1184 = vmatprep.subr.bf16.mxu0 %v4857_v4  ;;  %v505_v63 = vld [vmem:[%s3310_s28 + $0x18] sm:$0xff]  ;;  %s3180_s23 = smov 24  }
  0x17   : > { %3074 = vset.pattern.permute.xlu1 %v3165_v6  ;;  %618 = vperm.xlu0 %3072, %v3286_v5   ;;  %v3435_v36 = vadd.f32 %v510_v33, %v502_v32  ;;  %v3457_v47 = vadd.f32 %v511_v45, %v503_v44  ;;  %v4852_v51 = vrot.slane %v3432_v35, 7  ;;  %v3112_v32 = vld [vmem:[%s4839_s3 + $0x18] sm:$0xff]   ;;  %v3543_v33 = vadd.f32 %v512_v21, %v504_v20  ;;  %v3113_v45 = vld [vmem:[%s4839_s3 + $0x20] sm:$0xff]   ;;  %v3115_v20 = vld [vmem:[%s4839_s3 + $0x30] sm:$0xff]  }
  0x18   : > { %715 = vperm.xlu1 %3074, %v3277_v3   ;;  %v3368_v25 = vsel %vm544_vm0, %v4855_v24, %v4851_v22  ;;  %v3384_v28 = vsel %vm657_vm1, %v4856_v26, %v4853_v27  ;;  %v3117_v22 = vld [vmem:[%s4839_s3 + $0x40] sm:$0xff]   ;;  %vm1481_vm9 = vcmask 64512   ;;  %vm1502_vm10 = vcmask 195584  }
  0x19   : > { %v534_v49 = vrot.slane %v3435_v36, 7  ;;  %v535_v50 = vrot.slane %v3457_v47, 7  ;;  %v3568_v59 = vpack.c.bf16 %v3457_v47, %v3435_v36  ;;  %vm1519_vm11 = vcmask 326656  }
  0x1a   : > { %vm1536_vm12 = vcmask 457728   ;;  %vm1697_vm13 = vcmask 1043456   ;;  %vm1688_vm14 = vcmask 719872   ;;  %vm2586_vm15 = vcmask 125952  }
  0x1b   : > { %626 = vperm.xlu0 %3072, %v3296_v7   ;;  %v3472_v53 = vsel %vm544_vm0, %v534_v49, %v535_v50  ;;  %v3481_v55 = vsel %vm544_vm0, %v4852_v51, %v534_v49  ;;  %4976 = vst [vmem:[#allocation20_spill] sm:$0xff] %v3568_v59 }
  0x1c   : > { %3075 = vset.pattern.permute.xlu1 %v3166_v9 }
  0x1d   : > { %759 = vperm.xlu1 %3075, %v3268_v0  }
  0x1f   : > { %634 = vperm.xlu0 %3072, %v3301_v8  }
  0x21   : > { %3076 = vset.pattern.permute.xlu1 %v3167_v13 }
  0x22   : > { %803 = vperm.xlu1 %3076, %v3268_v0  }
  0x23   : > { %3091 = vset.pattern.permute.xlu0 %v3165_v6 }
  0x24   : > { %711 = vperm.xlu0 %3091, %v3268_v0  }
  0x26   : > { %807 = vperm.xlu1 %3076, %v3277_v3  }
  0x28   : > { %719 = vperm.xlu0 %3091, %v3329_v14  }
  0x2a   : > { %3077 = vset.pattern.permute.xlu1 %v3168_v16 }
  0x2b   : > { %851 = vperm.xlu1 %3077, %v3277_v3  }
  0x2c   : > { %727 = vperm.xlu0 %3091, %v3335_v15  }
  0x2f   : > { %3078 = vset.pattern.permute.xlu1 %v3163_v2 }
  0x30   : > { %614 = vperm.xlu1 %3078, %v3329_v14   ;;  %735 = vperm.xlu0 %3091, %v3343_v17  }
  0x34   : > { %3079 = vset.pattern.permute.xlu1 %v3162_v1  ;;  %3093 = vset.pattern.permute.xlu0 %v3166_v9 }
  0x35   : > { %675 = vperm.xlu1 %3079, %v3329_v14   ;;  %763 = vperm.xlu0 %3093, %v3277_v3  }
  0x39   : > { %679 = vperm.xlu1 %3079, %v3286_v5   ;;  %771 = vperm.xlu0 %3093, %v3286_v5  }
  0x3d   : > { %3080 = vset.pattern.permute.xlu1 %v3165_v6  ;;  %779 = vperm.xlu0 %3093, %v3296_v7  }
  0x3e   : > { %723 = vperm.xlu1 %3080, %v3286_v5  }
  0x41   : > { %787 = vperm.xlu0 %3093, %v3301_v8  }
  0x42   : > { %3081 = vset.pattern.permute.xlu1 %v3166_v9 }
  0x43   : > { %767 = vperm.xlu1 %3081, %v3329_v14  }
  0x45   : > { %3096 = vset.pattern.permute.xlu0 %v3168_v16 }
  0x46   : > { %847 = vperm.xlu0 %3096, %v3268_v0  }
  0x47   : > { %3082 = vset.pattern.permute.xlu1 %v3167_v13 }
  0x48   : > { %811 = vperm.xlu1 %3082, %v3329_v14  }
  0x4a   : > { %855 = vperm.xlu0 %3096, %v3329_v14  }
  0x4c   : > { %815 = vperm.xlu1 %3082, %v3286_v5  }
  0x4e   : > { %863 = vperm.xlu0 %3096, %v3335_v15  }
  0x50   : > { %3083 = vset.pattern.permute.xlu1 %v3168_v16 }
  0x51   : > { %859 = vperm.xlu1 %3083, %v3286_v5  }
  0x52   : > { %871 = vperm.xlu0 %3096, %v3343_v17  }
  0x55   : > { %3084 = vset.pattern.permute.xlu1 %v3163_v2 }
  0x56   : > { %622 = vperm.xlu1 %3084, %v3335_v15   ;;  %3100 = vset.pattern.permute.xlu0 %v4857_v4 }
  0x57   : > { %560 = vperm.xlu0 %3100, %v3277_v3  }
  0x5a   : > { %3085 = vset.pattern.permute.xlu1 %v3162_v1 }
  0x5b   : > { %683 = vperm.xlu1 %3085, %v3335_v15   ;;  %565 = vperm.xlu0 %3100, %v3329_v14  }
  0x5f   : > { %687 = vperm.xlu1 %3085, %v3296_v7  }
  0x63   : > { %3086 = vset.pattern.permute.xlu1 %v3165_v6 }
  0x64   : > { %731 = vperm.xlu1 %3086, %v3296_v7  }
  0x68   : > { %3087 = vset.pattern.permute.xlu1 %v3166_v9 }
  0x69   : > { %775 = vperm.xlu1 %3087, %v3335_v15  }
  0x6d   : > { %3088 = vset.pattern.permute.xlu1 %v3167_v13 }
  0x6e   : > { %819 = vperm.xlu1 %3088, %v3335_v15  }
  0x72   : > { %823 = vperm.xlu1 %3088, %v3296_v7  }
  0x76   : > { %3089 = vset.pattern.permute.xlu1 %v3168_v16 }
  0x77   : > { %867 = vperm.xlu1 %3089, %v3296_v7  }
  0x7b   : > { %3090 = vset.pattern.permute.xlu1 %v3163_v2 }
  0x7c   : > { %630 = vperm.xlu1 %3090, %v3343_v17  }
  0x80   : > { %3092 = vset.pattern.permute.xlu1 %v3162_v1  ;;  %v650_v1 = vrot.slane %v3457_v47, 1 }
  0x81   : > { %691 = vperm.xlu1 %3092, %v3343_v17  }
  0x85   : > { %695 = vperm.xlu1 %3092, %v3301_v8  }
  0x89   : > { %3094 = vset.pattern.permute.xlu1 %v3165_v6  ;;  %v649_v6 = vrot.slane %v3435_v36, 1 }
  0x8a   : > { %739 = vperm.xlu1 %3094, %v3301_v8  }
  0x8b   : > { %v3514_v11 = vsel %vm657_vm1, %v649_v6, %v650_v1 }
  0x8e   : > { %3095 = vset.pattern.permute.xlu1 %v3166_v9  ;;  %v3426_v31 = vpop.permute.xlu1 %667  ;;  %v3430_v34 = vpop.permute.xlu0 %606  ;;  %v4854_v9 = vrot.slane %v3432_v35, 1 }
  0x8f   : > { %4958 = vst [vmem:[#allocation2_spill] sm:$0xff] %v3426_v31  ;;  %4959 = vst [vmem:[#allocation3_spill] sm:$0xff] %v3430_v34  ;;  %783 = vperm.xlu1 %3095, %v3343_v17   ;;  %v637_v37 = vmul.f32 %v3430_v34, %v3432_v35 }
  0x92   : > { %v3439_v38 = vpop.permute.xlu1 %671  ;;  %v3441_v39 = vpop.permute.xlu0 %610 }
  0x93   : > { %4960 = vst [vmem:[#allocation4_spill] sm:$0xff] %v3439_v38  ;;  %4961 = vst [vmem:[#allocation5_spill] sm:$0xff] %v3441_v39  ;;  %3097 = vset.pattern.permute.xlu1 %v3167_v13  ;;  %v638_v40 = vmul.f32 %v3441_v39, %v3435_v36  ;;  %v699_v18 = vmul.f32 %v3439_v38, %v3514_v11 }
  0x94   : > { %827 = vperm.xlu1 %3097, %v3343_v17  }
  0x95   : > { %v645_v41 = vpack.c.bf16 %v638_v40, %v637_v37  ;;  %v651_v40 = vrot.slane %v3543_v33, 1 }
  0x96   : > { %v3447_v42 = vpop.permute.xlu0 %618 }
  0x97   : > { %4962 = vst [vmem:[#allocation6_spill] sm:$0xff] %v3447_v42  ;;  %v3449_v43 = vpop.permute.xlu1 %715  ;;  %938 = vrot.lane.b32.xlu0 %v645_v41, %s3169_s24  ;;  %v3558_v49 = vsel %vm657_vm1, %v650_v1, %v651_v40 }
  0x98   : > { %4963 = vst [vmem:[#allocation7_spill] sm:$0xff] %v3449_v43  ;;  %831 = vperm.xlu1 %3097, %v3301_v8   ;;  %v743_v57 = vmul.f32 %v3449_v43, %v3472_v53 }
  0x9a   : > { %v3455_v46 = vpop.permute.xlu0 %626 }
  0x9b   : > { %4964 = vst [vmem:[#allocation8_spill] sm:$0xff] %v3455_v46 }
  0x9c   : > { %3098 = vset.pattern.permute.xlu1 %v3168_v16  ;;  %v3460_v48 = vpop.permute.xlu1 %759  ;;  %v3525_v16 = vsel %vm657_vm1, %v4854_v9, %v649_v6  ;;  %v513_v6 = vld [vmem:[%s3315_s17 + $0x18] sm:$0xff] }
  0x9d   : > { %4965 = vst [vmem:[#allocation9_spill] sm:$0xff] %v3460_v48  ;;  %875 = vperm.xlu1 %3098, %v3301_v8   ;;  %v698_v30 = vmul.f32 %v3426_v31, %v3525_v16  ;;  %v3588_v21 = vadd.f32 %v513_v6, %v505_v63  ;;  %v3116_v6 = vld [vmem:[%s4839_s3 + $0x38] sm:$0xff]  }
  0x9e   : > { %v3466_v52 = vpop.permute.xlu0 %634 }
  0x9f   : > { %4966 = vst [vmem:[#allocation10_spill] sm:$0xff] %v3466_v52  ;;  %v706_v37 = vpack.c.bf16 %v699_v18, %v698_v30  ;;  %v537_v51 = vrot.slane %v3588_v21, 7 }
  0xa1   : > { %3099 = vset.pattern.permute.xlu1 %v4857_v4  ;;  %v3475_v54 = vpop.permute.xlu1 %803 }
  0xa2   : > { %555 = vperm.xlu1 %3099, %v3268_v0  }
  0xa3   : > { %v3484_v56 = vpop.permute.xlu0 %711 }
  0xa4   : > { %4967 = vst [vmem:[#allocation11_spill] sm:$0xff] %v3484_v56  ;;  %v742_v58 = vmul.f32 %v3484_v56, %v3481_v55 }
  0xa5   : > { %v3493_v60 = vpop.permute.xlu1 %807 }
  0xa6   : > { %4968 = vst [vmem:[#allocation12_spill] sm:$0xff] %v3493_v60  ;;  %3101 = vset.pattern.permute.xlu1 %v4859_v61  ;;  %v750_v62 = vpack.c.bf16 %v743_v57, %v742_v58 }
  0xa7   : > { %891 = vperm.xlu1 %3101, %v3268_v0   ;;  %v3501_v2 = vpop.permute.xlu0 %719  ;;  %v3111_v0 = vld [vmem:[%s4839_s3 + $0x10] sm:$0xff]  }
  0xa8   : > { %962 = vrot.lane.b32.xlu0 %v750_v62, %s3171_s16  ;;  %1185 = vmatpush1.bf16.msra.mxu0 %v3111_v0  ;;  %v3114_v62 = vld [vmem:[%s4839_s3 + $0x28] sm:$0xff]   ;;  %v790_v0 = vmul.f32 %v3460_v48, %v3514_v11 }
  0xa9   : > { %1186 = vmatprep.subr.bf16.mxu0 %v4857_v4 }
  0xaa   : > { %v3507_v10 = vpop.permute.xlu1 %851 }
  0xab   : > { %4969 = vst [vmem:[#allocation13_spill] sm:$0xff] %v3507_v10  ;;  %895 = vperm.xlu1 %3101, %v3277_v3   ;;  %v3517_v13 = vpop.permute.xlu0 %727 }
  0xac   : > { %4970 = vst [vmem:[#allocation14_spill] sm:$0xff] %v3517_v13  ;;  %575 = vperm.xlu0 %3100, %v3335_v15   ;;  %1187 = vmatpush1.bf16.msra.mxu0 %v3112_v32 }
  0xad   : > { %1188 = vmatprep.subr.bf16.mxu0 %v4857_v4 }
  0xaf   : > { %3102 = vset.pattern.permute.xlu1 %v4857_v4  ;;  %v3532_v3 = vpop.permute.xlu1 %614  ;;  %v3534_v29 = vpop.permute.xlu0 %735 }
  0xb0   : > { %4971 = vst [vmem:[#allocation15_spill] sm:$0xff] %v3534_v29  ;;  %570 = vperm.xlu1 %3102, %v3286_v5   ;;  %1189 = vmatpush1.bf16.msra.mxu0 %v3113_v45  ;;  %v506_v45 = vld [vmem:[%s3310_s28 + $0x20] sm:$0xff]  ;;  %v639_v9 = vmul.f32 %v3532_v3, %v3457_v47 }
  0xb1   : > { %1190 = vmatprep.subr.bf16.mxu0 %v4857_v4 }
  0xb4   : > { %v3547_v41 = vpop.permute.xlu1 %675  ;;  %v3549_v44 = vpop.permute.xlu0 %763  ;;  %950 = vrot.lane.b32.xlu1 %v706_v37, %s3172_s22  ;;  %1191 = vmatpush1.bf16.msra.mxu0 %v3114_v62  ;;  %v514_v62 = vld [vmem:[%s3315_s17 + $0x20] sm:$0xff] }
  0xb5   : > { %4972 = vst [vmem:[#allocation16_spill] sm:$0xff] %v3547_v41  ;;  %4973 = vst [vmem:[#allocation17_spill] sm:$0xff] %v3549_v44  ;;  %3103 = vset.pattern.permute.xlu1 %v4859_v61  ;;  %v791_v1 = vmul.f32 %v3549_v44, %v3558_v49  ;;  %1192 = vmatprep.subr.bf16.mxu0 %v4857_v4  ;;  %v640_v61 = vmul.f32 %v3447_v42, %v3543_v33 }
  0xb7   : > { %v798_v32 = vpack.c.bf16 %v791_v1, %v790_v0  ;;  %v652_v1 = vrot.slane %v3588_v21, 1 }
  0xb8   : > { %v3561_v57 = vpop.permute.xlu1 %679  ;;  %899 = vperm.xlu1 %3103, %v3329_v14   ;;  %v3564_v58 = vpop.permute.xlu0 %771  ;;  %v536_v14 = vrot.slane %v3543_v33, 7  ;;  %1193 = vmatpush1.bf16.msra.mxu0 %v3115_v20  ;;  %v3613_v20 = vadd.f32 %v514_v62, %v506_v45 }
  0xb9   : > { %4974 = vst [vmem:[#allocation18_spill] sm:$0xff] %v3561_v57  ;;  %4975 = vst [vmem:[#allocation19_spill] sm:$0xff] %v3564_v58  ;;  %1194 = vmatprep.subr.bf16.mxu0 %v4857_v4  ;;  %v3625_v27 = vsel %vm657_vm1, %v651_v40, %v652_v1 }
  0xba   : > { %v3597_v37 = vsel %vm544_vm0, %v535_v50, %v536_v14  ;;  %v653_v45 = vrot.slane %v3613_v20, 1 }
  0xbb   : > { %v835_v0 = vmul.f32 %v3493_v60, %v3597_v37 }
  0xbc   : > { %974 = vrot.lane.b32.xlu1 %v3568_v59, %s3173_s15  ;;  %v3583_v18 = vpop.permute.xlu0 %779  ;;  %1195 = vmatpush1.bf16.msra.mxu0 %v3116_v6  ;;  %v879_v6 = vmul.f32 %v3507_v10, %v3543_v33  ;;  %v701_v59 = vmul.f32 %v3561_v57, %v3625_v27 }
  0xbd   : > { %4977 = vst [vmem:[#allocation21_spill] sm:$0xff] %v3583_v18  ;;  %v3590_v30 = vpop.permute.xlu1 %723  ;;  %3104 = vset.pattern.permute.xlu1 %v4857_v4  ;;  %1196 = vmatprep.subr.bf16.mxu0 %v4857_v4  ;;  %v3638_v4 = vsel %vm544_vm0, %v536_v14, %v537_v51  ;;  %v700_v14 = vmul.f32 %v3547_v41, %v3558_v49 }
  0xbe   : > { %4978 = vst [vmem:[#allocation22_spill] sm:$0xff] %v3590_v30 }
  0xc0   : > { %986 = vrot.lane.b32.xlu1 %v798_v32, %s3174_s20  ;;  %v3603_v63 = vpop.permute.xlu0 %787  ;;  %v834_v32 = vmul.f32 %v3475_v54, %v3472_v53  ;;  %1197 = vmatpush1.bf16.msra.mxu0 %v3117_v22  ;;  %v4982_v22 = vmov 8  }
  0xc1   : > { %4979 = vst [vmem:[#allocation23_spill] sm:$0xff] %v3603_v63 }
  0xc2   : > { %v3611_v50 = vpop.permute.xlu1 %767  ;;  %v842_v26 = vpack.c.bf16 %v835_v0, %v834_v32  ;;  %v745_v0 = vmul.f32 %v3590_v30, %v3638_v4  ;;  %v646_v32 = vpack.c.bf16 %v640_v61, %v639_v9  ;;  %v3674_v61 = vpack.c.bf16 %v3588_v21, %v3543_v33 }
  0xc3   : > { %4980 = vst [vmem:[#allocation24_spill] sm:$0xff] %v3611_v50  ;;  %v538_v9 = vrot.slane %v3613_v20, 7 }
  0xc4   : > { %580 = vperm.xlu1 %3104, %v3296_v7   ;;  %4985 = vst [vmem:[#allocation28_spill] sm:$0xff] %v3674_v61 }
  0xc5   : > { %v3628_v62 = vpop.permute.xlu0 %847 }
  0xc6   : > { %v878_v24 = vmul.f32 %v3628_v62, %v3457_v47  ;;  %v3649_v47 = vsel %vm657_vm1, %v652_v1, %v653_v45  ;;  %v792_v1 = vmul.f32 %v3611_v50, %v3625_v27 }
  0xc7   : > { %v3640_v40 = vpop.permute.xlu1 %811 }
  0xc8   : > { %4981 = vst [vmem:[#allocation25_spill] sm:$0xff] %v3640_v40  ;;  %998 = vrot.lane.b32.xlu1 %v842_v26, %s3175_s25  ;;  %v886_v56 = vpack.c.bf16 %v879_v6, %v878_v24  ;;  %v744_v24 = vmul.f32 %v3501_v2, %v3597_v37  ;;  %v793_v26 = vmul.f32 %v3564_v58, %v3649_v47 }
  0xc9   : > { %3105 = vset.pattern.permute.xlu1 %v4982_v22  ;;  %v707_v6 = vpack.c.bf16 %v701_v59, %v700_v14  ;;  %v4987_v59 = vmov 0   ;;  %v3692_v14 = vpop.permute.xlu0 %855 }
  0xca   : > { %1010 = vrot.lane.b32.xlu0 %v886_v56, %s3176_s26  ;;  %v751_v34 = vpack.c.bf16 %v745_v0, %v744_v24  ;;  %v799_v56 = vpack.c.bf16 %v793_v26, %v792_v1  ;;  %v836_v0 = vmul.f32 %v3640_v40, %v3638_v4  ;;  %v880_v26 = vmul.f32 %v3692_v14, %v3588_v21 }
  0xcb   : > { %v3657_v31 = vpop.permute.xlu1 %815 }
  0xcc   : > { %4983 = vst [vmem:[#allocation26_spill] sm:$0xff] %v3657_v31  ;;  %940 = vrot.lane.b32.xlu1 %v646_v32, %s3169_s24 }
  0xce   : > { %952 = vrot.lane.b32.xlu0 %v707_v6, %s3172_s22 }
  0xd0   : > { %v3667_v43 = vpop.permute.xlu1 %859  ;;  %964 = vrot.lane.b32.xlu1 %v751_v34, %s3171_s16  ;;  %v3684_v34 = vsel %vm544_vm0, %v537_v51, %v538_v9 }
  0xd1   : > { %4984 = vst [vmem:[#allocation27_spill] sm:$0xff] %v3667_v43  ;;  %v881_v24 = vmul.f32 %v3667_v43, %v3613_v20 }
  0xd2   : > { %988 = vrot.lane.b32.xlu0 %v799_v56, %s3174_s20  ;;  %v4990_v56 = vrot.slane %v3354_v23, 1 }
  0xd3   : > { %v887_v38 = vpack.c.bf16 %v881_v24, %v880_v26  ;;  %v3743_v24 = vpack.c.bf16 %v3354_v23, %v3613_v20 }
  0xd4   : > { %911 = vperm.xlu1 %3105, %v3296_v7   ;;  %v837_v7 = vmul.f32 %v3657_v31, %v3684_v34 }
  0xd5   : > { %v3677_v32 = vpop.permute.xlu1 %622  ;;  %4994 = vst [vmem:[#allocation34_spill] sm:$0xff] %v3743_v24 }
  0xd6   : > { %4986 = vst [vmem:[#allocation29_spill] sm:$0xff] %v3677_v32  ;;  %590 = vperm.xlu0 %3100, %v3301_v8   ;;  %v641_v51 = vmul.f32 %v3677_v32, %v3588_v21  ;;  %v843_v6 = vpack.c.bf16 %v837_v7, %v836_v0 }
  0xd8   : > { %976 = vrot.lane.b32.xlu1 %v3674_v61, %s3173_s15  ;;  %v3712_v61 = vsel %vm657_vm1, %v653_v45, %v4990_v56 }
  0xd9   : > { %3106 = vset.pattern.permute.xlu1 %v4987_v59  ;;  %v4991_v59 = vrot.slane %v3354_v23, 7 }
  0xda   : > { %v3689_v33 = vpop.permute.xlu1 %683  ;;  %3107 = vset.pattern.permute.xlu0 %v4982_v22 }
  0xdb   : > { %4988 = vst [vmem:[#allocation30_spill] sm:$0xff] %v3689_v33  ;;  %903 = vperm.xlu0 %3107, %v3286_v5   ;;  %v642_v5 = vmul.f32 %v3455_v46, %v3613_v20  ;;  %v3720_v21 = vsel %vm544_vm0, %v538_v9, %v4991_v59  ;;  %v702_v45 = vmul.f32 %v3689_v33, %v3649_v47 }
  0xdc   : > { %585 = vperm.xlu1 %3106, %v3343_v17  }
  0xdd   : > { %v647_v7 = vpack.c.bf16 %v642_v5, %v641_v51 }
  0xde   : > { %v3704_v1 = vpop.permute.xlu1 %687 }
  0xdf   : > { %4989 = vst [vmem:[#allocation31_spill] sm:$0xff] %v3704_v1  ;;  %907 = vperm.xlu0 %3107, %v3335_v15   ;;  %v703_v0 = vmul.f32 %v3704_v1, %v3712_v61  ;;  %v746_v15 = vmul.f32 %v3517_v13, %v3684_v34 }
  0xe0   : > { %1000 = vrot.lane.b32.xlu1 %v843_v6, %s3175_s25  ;;  %v795_v6 = vmul.f32 %v3583_v18, %v3384_v28 }
  0xe1   : > { %3108 = vset.pattern.permute.xlu1 %v4982_v22  ;;  %v708_v22 = vpack.c.bf16 %v703_v0, %v702_v45 }
  0xe3   : > { %v3725_v39 = vpop.permute.xlu1 %731  ;;  %942 = vrot.lane.b32.xlu0 %v647_v7, %s3169_s24  ;;  %v3760_v7 = vpop.permute.xlu0 %863 }
  0xe4   : > { %4992 = vst [vmem:[#allocation32_spill] sm:$0xff] %v3725_v39  ;;  %v747_v9 = vmul.f32 %v3725_v39, %v3720_v21  ;;  %1012 = vrot.lane.b32.xlu1 %v887_v38, %s3176_s26  ;;  %4997 = vst [vmem:[#allocation37_spill] sm:$0xff] %v3760_v7 }
  0xe6   : > { %v752_v59 = vpack.c.bf16 %v747_v9, %v746_v15  ;;  %v882_v15 = vmul.f32 %v3760_v7, %v3354_v23 }
  0xe8   : > { %v3735_v51 = vpop.permute.xlu1 %775  ;;  %954 = vrot.lane.b32.xlu1 %v708_v22, %s3172_s22  ;;  %966 = vrot.lane.b32.xlu0 %v752_v59, %s3171_s16  ;;  %v644_v59 = vmul.f32 %v3466_v52, %v3320_v12 }
  0xe9   : > { %4993 = vst [vmem:[#allocation33_spill] sm:$0xff] %v3735_v51  ;;  %v794_v38 = vmul.f32 %v3735_v51, %v3712_v61 }
  0xeb   : > { %v800_v20 = vpack.c.bf16 %v795_v6, %v794_v38 }
  0xec   : > { %915 = vperm.xlu1 %3108, %v3343_v17   ;;  %919 = vperm.xlu0 %3107, %v3301_v8  }
  0xed   : > { %v3745_v26 = vpop.permute.xlu1 %819 }
  0xee   : > { %4995 = vst [vmem:[#allocation35_spill] sm:$0xff] %v3745_v26  ;;  %v838_v8 = vmul.f32 %v3745_v26, %v3720_v21 }
  0xf0   : > { %978 = vrot.lane.b32.xlu1 %v3743_v24, %s3173_s15 }
  0xf1   : > { %v3753_v5 = vpop.permute.xlu1 %823 }
  0xf2   : > { %4996 = vst [vmem:[#allocation36_spill] sm:$0xff] %v3753_v5  ;;  %v839_v17 = vmul.f32 %v3753_v5, %v3368_v25 }
  0xf4   : > { %990 = vrot.lane.b32.xlu1 %v800_v20, %s3174_s20  ;;  %v844_v56 = vpack.c.bf16 %v839_v17, %v838_v8  ;;  %v5001_v17 = vrot.slane %v3432_v35, 1  ;;  %v5002_v20 = vrot.slane %v3320_v12, 1 }
  0xf6   : > { %v3762_v0 = vpop.permute.xlu1 %867  ;;  %1002 = vrot.lane.b32.xlu0 %v844_v56, %s3175_s25  ;;  %v3785_v56 = vsel %vm657_vm1, %v5002_v20, %v5001_v17  ;;  %v3804_v17 = vpack.c.bf16 %v3432_v35, %v3320_v12  ;;  %v748_v20 = vmul.f32 %v3534_v29, %v3368_v25 }
  0xf7   : > { %4998 = vst [vmem:[#allocation38_spill] sm:$0xff] %v3762_v0  ;;  %v883_v45 = vmul.f32 %v3762_v0, %v3320_v12 }
  0xf8   : > { %5007 = vst [vmem:[#allocation43_spill] sm:$0xff] %v3804_v17 }
  0xf9   : > { %v888_v9 = vpack.c.bf16 %v883_v45, %v882_v15 }
  0xfb   : > { %v3769_v22 = vpop.permute.xlu1 %630  ;;  %1014 = vrot.lane.b32.xlu1 %v888_v9, %s3176_s26  ;;  %v5004_v9 = vrot.slane %v3432_v35, 7 }
  0xfc   : > { %4999 = vst [vmem:[#allocation39_spill] sm:$0xff] %v3769_v22  ;;  %v643_v38 = vmul.f32 %v3769_v22, %v3354_v23 }
  0xfe   : > { %v648_v6 = vpack.c.bf16 %v644_v59, %v643_v38  ;;  %v5005_v59 = vrot.slane %v3320_v12, 7 }
 0x100   : > { %v3776_v8 = vpop.permute.xlu1 %691  ;;  %944 = vrot.lane.b32.xlu0 %v648_v6, %s3169_s24  ;;  %v545_v38 = vsel %vm544_vm0, %v5005_v59, %v5004_v9 }
 0x101   : > { %5000 = vst [vmem:[#allocation40_spill] sm:$0xff] %v3776_v8  ;;  %v704_v45 = vmul.f32 %v3776_v8, %v3384_v28 }
 0x104   : > { %v3787_v15 = vpop.permute.xlu1 %695 }
 0x105   : > { %5003 = vst [vmem:[#allocation41_spill] sm:$0xff] %v3787_v15  ;;  %v705_v23 = vmul.f32 %v3787_v15, %v3785_v56 }
 0x107   : > { %v709_v6 = vpack.c.bf16 %v705_v23, %v704_v45  ;;  %v797_v45 = vmul.f32 %v3603_v63, %v3525_v16 }
 0x109   : > { %v3799_v24 = vpop.permute.xlu1 %739  ;;  %956 = vrot.lane.b32.xlu1 %v709_v6, %s3172_s22 }
 0x10a   : > { %5006 = vst [vmem:[#allocation42_spill] sm:$0xff] %v3799_v24  ;;  %v749_v15 = vmul.f32 %v3799_v24, %v545_v38 }
 0x10c   : > { %v753_v8 = vpack.c.bf16 %v749_v15, %v748_v20  ;;  %v3826_v20 = vpop.permute.xlu0 %871 }
 0x10d   : > { %980 = vrot.lane.b32.xlu1 %v3804_v17, %s3173_s15  ;;  %5011 = vst [vmem:[#allocation47_spill] sm:$0xff] %v3826_v20 }
 0x10e   : > { %v3811_v5 = vpop.permute.xlu1 %783  ;;  %968 = vrot.lane.b32.xlu0 %v753_v8, %s3171_s16 }
 0x10f   : > { %5008 = vst [vmem:[#allocation44_spill] sm:$0xff] %v3811_v5  ;;  %v796_v12 = vmul.f32 %v3811_v5, %v3785_v56 }
 0x111   : > { %v801_v23 = vpack.c.bf16 %v797_v45, %v796_v12  ;;  %v884_v45 = vmul.f32 %v3826_v20, %v3432_v35 }
 0x113   : > { %v3818_v9 = vpop.permute.xlu1 %827  ;;  %992 = vrot.lane.b32.xlu0 %v801_v23, %s3174_s20  ;;  %s3178_s20 = smov 8  }
 0x114   : > { %5009 = vst [vmem:[#allocation45_spill] sm:$0xff] %v3818_v9  ;;  %v840_v15 = vmul.f32 %v3818_v9, %v545_v38 }
 0x117   : > { %v3821_v59 = vpop.permute.xlu1 %831 }
 0x118   : > { %5010 = vst [vmem:[#allocation46_spill] sm:$0xff] %v3821_v59  ;;  %v841_v6 = vmul.f32 %v3821_v59, %v3481_v55  ;;  %v3840_v59 = vpop.permute.xlu0 %560 }
 0x119   : > { %5013 = vst [vmem:[#allocation49_spill] sm:$0xff] %v3840_v59 }
 0x11a   : > { %v845_v8 = vpack.c.bf16 %v841_v6, %v840_v15 }
 0x11c   : > { %v3828_v17 = vpop.permute.xlu1 %875  ;;  %1004 = vrot.lane.b32.xlu1 %v845_v8, %s3175_s25  ;;  %s2931_s25 = sshll.u32 %s5129_s30, 5 }
 0x11d   : > { %v885_v12 = vmul.f32 %v3828_v17, %v3435_v36  ;;  %v3850_v36 = vpop.permute.xlu0 %565 }
 0x11f   : > { %v889_v23 = vpack.c.bf16 %v885_v12, %v884_v45 }
 0x121   : > { %1016 = vrot.lane.b32.xlu0 %v889_v23, %s3176_s26  ;;  %v3836_v9 = vpop.permute.xlu1 %555  ;;  %v939_v23 = vpop.permute.xlu0 %938  ;;  %s3181_s26 = smov 88  }
 0x122   : > { %5012 = vst [vmem:[#allocation48_spill] sm:$0xff] %v3836_v9  ;;  %v593_v5 = vmul.f32 %v3836_v9, %v545_v38 }
 0x126   : > { %v3838_v63 = vpop.permute.xlu1 %891 }
 0x127   : > { %v922_v15 = vmul.f32 %v3838_v63, %v3558_v49  ;;  %v594_v49 = vmul.f32 %v3840_v59, %v3481_v55 }
 0x12a   : > { %v3844_v6 = vpop.permute.xlu1 %895 }
 0x12b   : > { %5014 = vst [vmem:[#allocation50_spill] sm:$0xff] %v3844_v6  ;;  %v923_v35 = vmul.f32 %v3844_v6, %v3625_v27  ;;  %v963_v27 = vpop.permute.xlu0 %962 }
 0x12d   : > { %v3848_v8 = vpack.c.bf16 %v923_v35, %v922_v15  ;;  %v601_v35 = vpack.c.bf16 %v594_v49, %v593_v5 }
 0x12f   : > { %5015 = vst [vmem:[#allocation51_spill] sm:$0xff] %v3848_v8  ;;  %v3852_v45 = vpop.permute.xlu1 %570  ;;  %2851 = vmatprep.mubr.msk.bf16.mxu0 %vm1018_vm2, %v3848_v8  ;;  %v3861_v24 = vpop.permute.xlu0 %575  ;;  %v1021_v18 = vsel %vm1018_vm2, %v601_v35, %v939_v23 }
 0x130   : > { %5016 = vst [vmem:[#allocation52_spill] sm:$0xff] %v3852_v45  ;;  %5018 = vst [vmem:[#allocation54_spill] sm:$0xff] %v3861_v24 }
 0x133   : > { %v951_v12 = vpop.permute.xlu1 %950 }
 0x134   : > { %v1033_v8 = vsel %vm1031_vm3, %v1021_v18, %v951_v12 }
 0x135   : > { %v1042_v55 = vsel %vm1040_vm4, %v1033_v8, %v963_v27  ;;  %v595_v27 = vmul.f32 %v3850_v36, %v3472_v53 }
 0x137   : > { %v3856_v20 = vpop.permute.xlu1 %899 }
 0x138   : > { %5017 = vst [vmem:[#allocation53_spill] sm:$0xff] %v3856_v20 }
 0x13b   : > { %v975_v15 = vpop.permute.xlu1 %974 }
 0x13c   : > { %v1011_v59 = vpop.permute.xlu0 %1010  ;;  %v1051_v38 = vsel %vm1049_vm5, %v1042_v55, %v975_v15 }
 0x13f   : > { %v987_v29 = vpop.permute.xlu1 %986 }
 0x140   : > { %v1060_v5 = vsel %vm1058_vm6, %v1051_v38, %v987_v29  ;;  %v953_v18 = vpop.permute.xlu0 %952  ;;  %v596_v29 = vmul.f32 %v3852_v45, %v3597_v37 }
 0x142   : > { %v602_v38 = vpack.c.bf16 %v596_v29, %v595_v27 }
 0x143   : > { %v3865_v52 = vpop.permute.xlu1 %580 }
 0x144   : > { %5019 = vst [vmem:[#allocation55_spill] sm:$0xff] %v3865_v52  ;;  %v989_v22 = vpop.permute.xlu0 %988 }
 0x147   : > { %v999_v49 = vpop.permute.xlu1 %998 }
 0x148   : > { %v1069_v9 = vsel %vm1067_vm7, %v1060_v5, %v999_v49  ;;  %v924_v5 = vmul.f32 %v3856_v20, %v3649_v47 }
 0x149   : > { %v3872_v23 = vsel %vm1076_vm8, %v1069_v9, %v1011_v59 }
 0x14a   : > { %5020 = vst [vmem:[#allocation56_spill] sm:$0xff] %v3872_v23  ;;  %1213 = vmatmul.mubr.bf16.vlgmr.msra.gmra.mrb[0].mxu0 %v3872_v23 }
 0x14b   : > { %v941_v12 = vpop.permute.xlu1 %940 }
 0x14c   : > { %v1024_v9 = vsel %vm1018_vm2, %v602_v38, %v941_v12 }
 0x14d   : > { %v1035_v53 = vsel %vm1031_vm3, %v1024_v9, %v953_v18 }
 0x14f   : > { %v965_v35 = vpop.permute.xlu1 %964 }
 0x150   : > { %v1044_v37 = vsel %vm1040_vm4, %v1035_v53, %v965_v35 }
 0x153   : > { %v3875_v8 = vpop.permute.xlu1 %911 }
 0x154   : > { %v927_v27 = vmul.f32 %v3875_v8, %v3785_v56 }
 0x155   : > { %v3881_v15 = vpop.permute.xlu0 %590 }
 0x157   : > { %v977_v55 = vpop.permute.xlu1 %976 }
 0x158   : > { %v1053_v29 = vsel %vm1049_vm5, %v1044_v37, %v977_v55  ;;  %v597_v55 = vmul.f32 %v3861_v24, %v3638_v4 }
 0x15a   : > { %v3884_v59 = vpop.permute.xlu0 %903 }
 0x15b   : > { %5021 = vst [vmem:[#allocation57_spill] sm:$0xff] %v3884_v59  ;;  %v925_v49 = vmul.f32 %v3884_v59, %v3712_v61  ;;  %v3890_v23 = vpop.permute.xlu1 %585  ;;  %v1062_v61 = vsel %vm1058_vm6, %v1053_v29, %v989_v22  ;;  %v598_v22 = vmul.f32 %v3865_v52, %v3684_v34 }
 0x15d   : > { %v3893_v7 = vpack.c.bf16 %v925_v49, %v924_v5  ;;  %v603_v37 = vpack.c.bf16 %v598_v22, %v597_v55 }
 0x15e   : > { %v3898_v12 = vpop.permute.xlu0 %907 }
 0x15f   : > { %5022 = vst [vmem:[#allocation58_spill] sm:$0xff] %v3893_v7  ;;  %5023 = vst [vmem:[#allocation59_spill] sm:$0xff] %v3898_v12  ;;  %v926_v47 = vmul.f32 %v3898_v12, %v3384_v28  ;;  %v1001_v38 = vpop.permute.xlu1 %1000  ;;  %2852 = vmatprep.mubr.msk.bf16.mxu0 %vm1018_vm2, %v3893_v7 }
 0x160   : > { %v1071_v35 = vsel %vm1067_vm7, %v1062_v61, %v1001_v38 }
 0x161   : > { %v3906_v18 = vpack.c.bf16 %v927_v27, %v926_v47 }
 0x162   : > { %v943_v5 = vpop.permute.xlu0 %942 }
 0x163   : > { %5024 = vst [vmem:[#allocation60_spill] sm:$0xff] %v3906_v18  ;;  %v1013_v9 = vpop.permute.xlu1 %1012  ;;  %v1027_v27 = vsel %vm1018_vm2, %v603_v37, %v943_v5 }
 0x164   : > { %v3910_v56 = vsel %vm1076_vm8, %v1071_v35, %v1013_v9 }
 0x165   : > { %5025 = vst [vmem:[#allocation61_spill] sm:$0xff] %v3910_v56  ;;  %1221 = vmatmul.mubr.bf16.gmra.mrb[4].mxu0 %v3910_v56 }
 0x166   : > { %2853 = vmatprep.mubr.msk.bf16.mxu0 %vm1018_vm2, %v3906_v18  ;;  %v967_v49 = vpop.permute.xlu0 %966 }
 0x167   : > { %v955_v28 = vpop.permute.xlu1 %954 }
 0x168   : > { %v1037_v29 = vsel %vm1031_vm3, %v1027_v27, %v955_v28 }
 0x169   : > { %v1046_v61 = vsel %vm1040_vm4, %v1037_v29, %v967_v49  ;;  %v600_v49 = vmul.f32 %v3881_v15, %v3368_v25 }
 0x16b   : > { %v3919_v53 = vpop.permute.xlu1 %915  ;;  %v3923_v38 = vpop.permute.xlu0 %919 }
 0x16c   : > { %v928_v4 = vmul.f32 %v3919_v53, %v3525_v16  ;;  %v929_v34 = vmul.f32 %v3923_v38, %v3514_v11  ;;  %v599_v11 = vmul.f32 %v3890_v23, %v3720_v21 }
 0x16e   : > { %v3933_v37 = vpack.c.bf16 %v929_v34, %v928_v4 }
 0x16f   : > { %v979_v47 = vpop.permute.xlu1 %978  ;;  %v1003_v22 = vpop.permute.xlu0 %1002 }
 0x170   : > { %v1055_v35 = vsel %vm1049_vm5, %v1046_v61, %v979_v47  ;;  %5026 = vst [vmem:[#allocation62_spill] sm:$0xff] %v3933_v37  ;;  %v604_v61 = vpack.c.bf16 %v600_v49, %v599_v11 }
 0x173   : > { %v991_v9 = vpop.permute.xlu1 %990  ;;  %v945_v16 = vpop.permute.xlu0 %944 }
 0x174   : > { %v1064_v55 = vsel %vm1058_vm6, %v1055_v35, %v991_v9  ;;  %v1030_v35 = vsel %vm1018_vm2, %v604_v61, %v945_v16  ;;  %v3958_v16 = vld [vmem:[%s4840_s4] ss:$0 sm:$0xff] }
 0x175   : > { %v1073_v28 = vsel %vm1067_vm7, %v1064_v55, %v1003_v22 }
 0x177   : > { %v1015_v5 = vpop.permute.xlu1 %1014 }
 0x178   : > { %v3936_v27 = vsel %vm1076_vm8, %v1073_v28, %v1015_v5 }
 0x179   : > { %5027 = vst [vmem:[#allocation63_spill] sm:$0xff] %v3936_v27  ;;  %1229 = vmatmul.mubr.bf16.gmra.mrb[8].mxu0 %v3936_v27 }
 0x17a   : > { %2854 = vmatprep.mubr.msk.bf16.mxu0 %vm1018_vm2, %v3933_v37 }
 0x17b   : > { %v957_v29 = vpop.permute.xlu1 %956 }
 0x17c   : > { %v1039_v4 = vsel %vm1031_vm3, %v1030_v35, %v957_v29 }
 0x17f   : > { %v981_v9 = vpop.permute.xlu1 %980 }
 0x180   : > { %v969_v47 = vpop.permute.xlu0 %968 }
 0x181   : > { %v1048_v34 = vsel %vm1040_vm4, %v1039_v4, %v969_v47 }
 0x182   : > { %v1057_v5 = vsel %vm1049_vm5, %v1048_v34, %v981_v9 }
 0x185   : > { %v993_v55 = vpop.permute.xlu0 %992 }
 0x186   : > { %v1066_v28 = vsel %vm1058_vm6, %v1057_v5, %v993_v55 }
 0x18e   : > { %v1005_v22 = vpop.permute.xlu1 %1004 }
 0x18f   : > { %v1075_v21 = vsel %vm1067_vm7, %v1066_v28, %v1005_v22 }
 0x193   : > { %v1017_v37 = vpop.permute.xlu0 %1016 }
 0x194   : > { %v3952_v25 = vsel %vm1076_vm8, %v1075_v21, %v1017_v37 }
 0x195   : > { %5028 = vst [vmem:[#allocation64_spill] sm:$0xff] %v3952_v25  ;;  %1237 = vmatmul.mubr.bf16.gmra.mrb[12].mxu0 %v3952_v25 }
 0x21d   : > { %v1214_v11 = vpop.f32.mrb[0].mxu0 }
 0x21e   : > { %v1215_v49 = vadd.f32 %v3958_v16, %v1214_v11  ;;  %v1216_v29 = vpop.f32.mrb[1].mxu0 }
 0x21f   : > { %v1217_v47 = vpop.f32.mrb[2].mxu0 }
 0x220   : > { %v3961_v61 = vmax.f32 %v1215_v49, 0.0  ;;  %v1218_v35 = vadd.f32 %v3958_v16, %v1217_v47  ;;  %v1219_v9 = vpop.f32.mrb[3].mxu0 }
 0x222   : > { %v1246_v4 = vmax.f32 %v1218_v35, 0.0  ;;  %v4916_v37 = vrot.slane %v3961_v61, 1  ;;  %v4922_v22 = vrot.slane %v3961_v61, 7 }
 0x224   : > { %v1298_v34 = vrot.slane %v1246_v4, 1  ;;  %v3966_v55 = vpack.c.bf16 %v1246_v4, %v3961_v61  ;;  %v1258_v5 = vrot.slane %v1246_v4, 7  ;;  %v1361_v25 = vmul.f32 %v1246_v4, %v3628_v62 }
 0x226   : > { %5029 = vst [vmem:[#allocation65_spill] sm:$0xff] %v3966_v55  ;;  %1425 = vrot.lane.b32.xlu0 %v3966_v55, %s3172_s22  ;;  %v3975_v28 = vsel %vm657_vm1, %v4916_v37, %v1298_v34  ;;  %v3981_v21 = vsel %vm544_vm0, %v4922_v22, %v1258_v5  ;;  %v1287_v37 = vmul.f32 %v1246_v4, %v3532_v3 }
 0x238   : > { %v1222_v11 = vpop.f32.mrb[4].mxu0 }
 0x239   : > { %v1223_v49 = vadd.f32 %v3958_v16, %v1222_v11  ;;  %v1224_v29 = vpop.f32.mrb[5].mxu0 }
 0x23a   : > { %v1225_v47 = vpop.f32.mrb[6].mxu0 }
 0x23b   : > { %v1247_v35 = vmax.f32 %v1223_v49, 0.0  ;;  %v1226_v9 = vadd.f32 %v3958_v16, %v1225_v47  ;;  %v1227_v55 = vpop.f32.mrb[7].mxu0 }
 0x23d   : > { %v1299_v27 = vrot.slane %v1247_v35, 1  ;;  %v3987_v18 = vmax.f32 %v1226_v9, 0.0  ;;  %v1362_v56 = vmul.f32 %v1247_v35, %v3507_v10  ;;  %v1288_v22 = vmul.f32 %v1247_v35, %v3447_v42 }
 0x23e   : > { %v1259_v7 = vrot.slane %v1247_v35, 7  ;;  %v1337_v9 = vmul.f32 %v3975_v28, %v3460_v48 }
 0x23f   : > { %v1260_v11 = vrot.slane %v3987_v18, 7  ;;  %v1369_v29 = vpack.c.bf16 %v1362_v56, %v1361_v25  ;;  %v3993_v49 = vpack.c.bf16 %v3987_v18, %v1247_v35  ;;  %v1294_v47 = vpack.c.bf16 %v1288_v22, %v1287_v37 }
 0x240   : > { %v1270_v55 = vsel %vm544_vm0, %v1258_v5, %v1259_v7  ;;  %v1310_v4 = vsel %vm657_vm1, %v1298_v34, %v1299_v27  ;;  %v1300_v10 = vrot.slane %v3987_v18, 1  ;;  %v1349_v56 = vmul.f32 %v3981_v21, %v3475_v54 }
 0x241   : > { %5030 = vst [vmem:[#allocation66_spill] sm:$0xff] %v3993_v49  ;;  %1461 = vrot.lane.b32.xlu1 %v1369_v29, %s3177_s19  ;;  %1427 = vrot.lane.b32.xlu0 %v3993_v49, %s3172_s22  ;;  %v1350_v25 = vmul.f32 %v1270_v55, %v3493_v60  ;;  %v1338_v37 = vmul.f32 %v1310_v4, %v3549_v44 }
 0x242   : > { %v1309_v34 = vsel %vm657_vm1, %v1299_v27, %v1300_v10  ;;  %v1373_v22 = vmul.f32 %v1310_v4, %v3838_v63  ;;  %v4014_v5 = vsel %vm544_vm0, %v1259_v7, %v1260_v11  ;;  %v1327_v35 = vmul.f32 %v1270_v55, %v3501_v2 }
 0x243   : > { %v1357_v29 = vpack.c.bf16 %v1350_v25, %v1349_v56  ;;  %v1345_v49 = vpack.c.bf16 %v1338_v37, %v1337_v9  ;;  %v1374_v42 = vmul.f32 %v1309_v34, %v3844_v6  ;;  %v1328_v60 = vmul.f32 %v4014_v5, %v3590_v30  ;;  %v5043_v30 = vld [vmem:[#allocation11_spill] sm:$0xff] }
 0x244   : > { %v1315_v44 = vmul.f32 %v1310_v4, %v3547_v41  ;;  %v1316_v48 = vmul.f32 %v1309_v34, %v3561_v57  ;;  %v4024_v27 = vmul.f32 %v3981_v21, %v3850_v36  ;;  %v4029_v56 = vmul.f32 %v1270_v55, %v3852_v45 }
 0x245   : > { %1391 = vrot.lane.b32.xlu1 %v1294_v47, %s3178_s20  ;;  %1449 = vrot.lane.b32.xlu0 %v1357_v29, %s3171_s16  ;;  %v1381_v7 = vpack.c.bf16 %v1374_v42, %v1373_v22  ;;  %v1334_v9 = vpack.c.bf16 %v1328_v60, %v1327_v35  ;;  %v1363_v55 = vmul.f32 %v3987_v18, %v3692_v14 }
 0x246   : > { %v1322_v25 = vpack.c.bf16 %v1316_v48, %v1315_v44  ;;  %v1339_v4 = vmul.f32 %v1309_v34, %v3611_v50  ;;  %v5037_v50 = vld [vmem:[#allocation3_spill] sm:$0xff] }
 0x249   : > { %1437 = vrot.lane.b32.xlu1 %v1345_v49, %s3179_s21  ;;  %1473 = vrot.lane.b32.xlu0 %v1381_v7, %s3173_s15  ;;  %v1289_v49 = vmul.f32 %v3987_v18, %v3677_v32  ;;  %v5038_v32 = vld [vmem:[#allocation21_spill] sm:$0xff] }
 0x24c   : > { %v1230_v37 = vpop.f32.mrb[8].mxu0 }
 0x24d   : > { %v1231_v57 = vadd.f32 %v3958_v16, %v1230_v37  ;;  %v1232_v47 = vpop.f32.mrb[9].mxu0  ;;  %1415 = vrot.lane.b32.xlu1 %v1334_v9, %s3180_s23  ;;  %1403 = vrot.lane.b32.xlu0 %v1322_v25, %s3169_s24  ;;  %v1351_v9 = vmul.f32 %v4014_v5, %v3640_v40 }
 0x24e   : > { %v1233_v42 = vpop.f32.mrb[10].mxu0 }
 0x24f   : > { %v1249_v60 = vmax.f32 %v1231_v57, 0.0  ;;  %v1234_v48 = vadd.f32 %v3958_v16, %v1233_v42  ;;  %v1235_v44 = vpop.f32.mrb[11].mxu0 }
 0x251   : > { %v4043_v22 = vmax.f32 %v1234_v48, 0.0  ;;  %v1364_v35 = vmul.f32 %v1249_v60, %v3667_v43  ;;  %v1261_v29 = vrot.slane %v1249_v60, 7  ;;  %v1290_v7 = vmul.f32 %v1249_v60, %v3455_v46 }
 0x252   : > { %v1301_v57 = vrot.slane %v1249_v60, 1 }
 0x253   : > { %v1262_v25 = vrot.slane %v4043_v22, 7  ;;  %v1370_v37 = vpack.c.bf16 %v1364_v35, %v1363_v55  ;;  %v1268_v47 = vsel %vm544_vm0, %v1260_v11, %v1261_v29  ;;  %v1295_v42 = vpack.c.bf16 %v1290_v7, %v1289_v49 }
 0x254   : > { %v1352_v18 = vmul.f32 %v1268_v47, %v3657_v31  ;;  %v1302_v48 = vrot.slane %v4043_v22, 1  ;;  %v1308_v44 = vsel %vm657_vm1, %v1300_v10, %v1301_v57  ;;  %v4065_v11 = vmul.f32 %v1268_v47, %v3517_v13 }
 0x255   : > { %1463 = vrot.lane.b32.xlu1 %v1370_v37, %s3177_s19  ;;  %v1375_v45 = vmul.f32 %v1308_v44, %v3856_v20  ;;  %v1340_v46 = vmul.f32 %v1308_v44, %v3564_v58  ;;  %v4062_v55 = vsel %vm544_vm0, %v1261_v29, %v1262_v25  ;;  %v4074_v34 = vpack.c.bf16 %v4043_v22, %v1249_v60  ;;  %v5031_v60 = vld [vmem:[#allocation5_spill] sm:$0xff]  ;;  %v5035_v58 = vld [vmem:[#allocation39_spill] sm:$0xff] }
 0x256   : > { %v1358_v49 = vpack.c.bf16 %v1352_v18, %v1351_v9  ;;  %v1307_v35 = vsel %vm657_vm1, %v1301_v57, %v1302_v48  ;;  %v4071_v10 = vmul.f32 %v4062_v55, %v3725_v39  ;;  %v4078_v29 = vmul.f32 %v1308_v44, %v3689_v33 }
 0x257   : > { %v1376_v7 = vmul.f32 %v1307_v35, %v3884_v59  ;;  %v1346_v37 = vpack.c.bf16 %v1340_v46, %v1339_v4  ;;  %v4081_v13 = vmul.f32 %v1307_v35, %v3704_v1  ;;  %v4090_v18 = vmul.f32 %v1268_v47, %v3865_v52  ;;  %v5032_v4 = vld [vmem:[#allocation4_spill] sm:$0xff]  ;;  %v5034_v1 = vld [vmem:[#allocation37_spill] sm:$0xff]  ;;  %v5036_v59 = vld [vmem:[#allocation10_spill] sm:$0xff] }
 0x258   : > { %1451 = vrot.lane.b32.xlu0 %v1358_v49, %s3171_s16  ;;  %v4094_v46 = vmul.f32 %v4014_v5, %v3861_v24  ;;  %v1286_v5 = vmul.f32 %v3961_v61, %v5031_v60  ;;  %v4106_v24 = vmul.f32 %v3961_v61, %v3828_v17  ;;  %v1353_v39 = vmul.f32 %v4062_v55, %v3745_v26 }
 0x259   : > { %1393 = vrot.lane.b32.xlu1 %v1295_v42, %s3178_s20  ;;  %v1382_v57 = vpack.c.bf16 %v1376_v7, %v1375_v45  ;;  %v1365_v33 = vmul.f32 %v4043_v22, %v5034_v1 }
 0x25c   : > { %1475 = vrot.lane.b32.xlu0 %v1382_v57, %s3173_s15  ;;  %v1314_v57 = vmul.f32 %v3975_v28, %v5032_v4 }
 0x25d   : > { %1439 = vrot.lane.b32.xlu1 %v1346_v37, %s3179_s21  ;;  %v5033_v37 = vld [vmem:[#allocation7_spill] sm:$0xff] }
 0x25e   : > { %v1326_v52 = vmul.f32 %v3981_v21, %v5033_v37  ;;  %v1291_v21 = vmul.f32 %v4043_v22, %v5035_v58  ;;  %v5039_v22 = vrot.slane %v3961_v61, 1 }
 0x268   : > { %v1238_v44 = vpop.f32.mrb[12].mxu0 }
 0x269   : > { %v1239_v45 = vadd.f32 %v3958_v16, %v1238_v44  ;;  %v1240_v42 = vpop.f32.mrb[13].mxu0  ;;  %v1341_v44 = vmul.f32 %v1307_v35, %v3735_v51 }
 0x26a   : > { %v1241_v49 = vpop.f32.mrb[14].mxu0 }
 0x26b   : > { %v1251_v7 = vmax.f32 %v1239_v45, 0.0  ;;  %v1242_v47 = vadd.f32 %v3958_v16, %v1241_v49  ;;  %v1243_v9 = vpop.f32.mrb[15].mxu0  ;;  %v4115_v45 = vmul.f32 %v3975_v28, %v3923_v38 }
 0x26d   : > { %v1303_v16 = vrot.slane %v1251_v7, 1  ;;  %v1252_v9 = vmax.f32 %v1242_v47, 0.0  ;;  %v1263_v42 = vrot.slane %v1251_v7, 7  ;;  %v1366_v49 = vmul.f32 %v1251_v7, %v3762_v0 }
 0x26e   : > { %v1292_v35 = vmul.f32 %v1251_v7, %v5036_v59 }
 0x26f   : > { %v1264_v51 = vrot.slane %v1252_v9, 7  ;;  %v1285_v28 = vmul.f32 %v1252_v9, %v5037_v50  ;;  %v1304_v20 = vrot.slane %v1252_v9, 1  ;;  %v1306_v47 = vsel %vm657_vm1, %v1302_v48, %v1303_v16  ;;  %v5041_v48 = vld [vmem:[#allocation36_spill] sm:$0xff] }
 0x270   : > { %v1342_v0 = vmul.f32 %v1306_v47, %v5038_v32  ;;  %v1266_v26 = vsel %vm544_vm0, %v1262_v25, %v1263_v42  ;;  %v1371_v31 = vpack.c.bf16 %v1366_v49, %v1365_v33  ;;  %v4131_v40 = vpack.c.bf16 %v1252_v9, %v1251_v7  ;;  %v5042_v32 = vld [vmem:[#allocation2_spill] sm:$0xff] }
 0x271   : > { %v1293_v1 = vpack.c.bf16 %v1286_v5, %v1285_v28  ;;  %v1312_v59 = vsel %vm657_vm1, %v1304_v20, %v5039_v22  ;;  %v5040_v50 = vrot.slane %v3961_v61, 7  ;;  %v1354_v43 = vmul.f32 %v1266_v26, %v5041_v48 }
 0x272   : > { %v1313_v41 = vmul.f32 %v1312_v59, %v5042_v32  ;;  %v1347_v33 = vpack.c.bf16 %v1342_v0, %v1341_v44  ;;  %v1296_v7 = vpack.c.bf16 %v1292_v35, %v1291_v21  ;;  %v1305_v49 = vsel %vm657_vm1, %v1303_v16, %v1304_v20  ;;  %v5044_v32 = vld [vmem:[#allocation15_spill] sm:$0xff]  ;;  %v5046_v44 = vld [vmem:[#allocation40_spill] sm:$0xff] }
 0x273   : > { %v1272_v58 = vsel %vm544_vm0, %v1264_v51, %v5040_v50  ;;  %1389 = vrot.lane.b32.xlu1 %v1293_v1, %s3178_s20  ;;  %v1359_v5 = vpack.c.bf16 %v1354_v43, %v1353_v39  ;;  %v1377_v28 = vmul.f32 %v1306_v47, %v3898_v12  ;;  %v1265_v61 = vsel %vm544_vm0, %v1263_v42, %v1264_v51  ;;  %v5047_v1 = vld [vmem:[#allocation41_spill] sm:$0xff]  ;;  %v5048_v43 = vld [vmem:[#allocation44_spill] sm:$0xff]  ;;  %v5049_v16 = vld [vmem:[#allocation23_spill] sm:$0xff] }
 0x274   : > { %v1325_v25 = vmul.f32 %v1272_v58, %v5043_v30  ;;  %v1321_v50 = vpack.c.bf16 %v1314_v57, %v1313_v41  ;;  %v1378_v48 = vmul.f32 %v1305_v49, %v3875_v8  ;;  %v1331_v6 = vmul.f32 %v1266_v26, %v5044_v32  ;;  %v5045_v30 = vld [vmem:[#allocation42_spill] sm:$0xff]  ;;  %v5050_v51 = vld [vmem:[#allocation45_spill] sm:$0xff] }
 0x275   : > { %v1332_v0 = vmul.f32 %v1265_v61, %v5045_v30  ;;  %v1319_v21 = vmul.f32 %v1306_v47, %v5046_v44  ;;  %v1320_v39 = vmul.f32 %v1305_v49, %v5047_v1  ;;  %v1343_v35 = vmul.f32 %v1305_v49, %v5048_v43  ;;  %v5052_v30 = vld [vmem:[#allocation47_spill] sm:$0xff]  ;;  %v5053_v49 = vld [vmem:[#allocation48_spill] sm:$0xff] }
 0x276   : > { %v1333_v22 = vpack.c.bf16 %v1326_v52, %v1325_v25  ;;  %1401 = vrot.lane.b32.xlu0 %v1321_v50, %s3169_s24  ;;  %v1383_v20 = vpack.c.bf16 %v1378_v48, %v1377_v28  ;;  %v1344_v12 = vmul.f32 %v1312_v59, %v5049_v16  ;;  %v1355_v41 = vmul.f32 %v1265_v61, %v5050_v51  ;;  %v5051_v52 = vld [vmem:[#allocation46_spill] sm:$0xff]  ;;  %v5054_v48 = vld [vmem:[#allocation49_spill] sm:$0xff] }
 0x277   : > { %v1356_v57 = vmul.f32 %v1272_v58, %v5051_v52  ;;  %v1336_v42 = vpack.c.bf16 %v1332_v0, %v1331_v6  ;;  %v1324_v25 = vpack.c.bf16 %v1320_v39, %v1319_v21  ;;  %v1367_v32 = vmul.f32 %v1252_v9, %v5052_v30  ;;  %v3125_v39 = vld [vmem:[%s4841_s5 + $0x38] sm:$0xff]  }
 0x278   : > { %1413 = vrot.lane.b32.xlu1 %v1333_v22, %s3180_s23  ;;  %v1379_v47 = vmul.f32 %v1312_v59, %v3919_v53  ;;  %v1348_v1 = vpack.c.bf16 %v1344_v12, %v1343_v35  ;;  %v4164_v43 = vmul.f32 %v1265_v61, %v5053_v49  ;;  %v4167_v28 = vmul.f32 %v1272_v58, %v5054_v48 }
 0x279   : > { %v1360_v44 = vpack.c.bf16 %v1356_v57, %v1355_v41  ;;  %v1372_v50 = vpack.c.bf16 %v4106_v24, %v1367_v32  ;;  %v4173_v6 = vmul.f32 %v4062_v55, %v3890_v23  ;;  %v4176_v9 = vmul.f32 %v1266_v26, %v3881_v15  ;;  %v3119_v26 = vld [vmem:[%s4841_s5 + $0x8] sm:$0xff]   ;;  %v3121_v55 = vld [vmem:[%s4841_s5 + $0x18] sm:$0xff]   ;;  %v3126_v41 = vld [vmem:[%s4841_s5 + $0x40] sm:$0xff]  }
 0x27a   : > { %v1384_v16 = vpack.c.bf16 %v4115_v45, %v1379_v47  ;;  %v5055_v59 = vpack.c.bf16 %v4081_v13, %v4078_v29  ;;  %v1281_v58 = vpack.c.bf16 %v4167_v28, %v4164_v43  ;;  %v5056_v32 = vpack.c.bf16 %v4071_v10, %v4065_v11  ;;  %v3118_v13 = vld [vmem:[%s4841_s5] sm:$0xff]   ;;  %v3123_v10 = vld [vmem:[%s4841_s5 + $0x28] sm:$0xff]   ;;  %v3124_v29 = vld [vmem:[%s4841_s5 + $0x30] sm:$0xff]  }
 0x27b   : > { %v1284_v24 = vpack.c.bf16 %v4176_v9, %v4173_v6  ;;  %1702 = vmatpush1.bf16.msra.mxu1 %v3118_v13  ;;  %v5057_v12 = vmov 0   ;;  %v3122_v11 = vld [vmem:[%s4841_s5 + $0x20] sm:$0xff]   ;;  %v5058_v35 = vpack.c.bf16 %v4029_v56, %v4024_v27  ;;  %v3127_v27 = vld [vmem:[%s4841_s5 + $0x48] sm:$0xff]   ;;  %v5059_v28 = vpack.c.bf16 %v4090_v18, %v4094_v46 }
 0x27c   : > { %1405 = vrot.lane.b32.xlu0 %v5055_v59, %s3169_s24  ;;  %1417 = vrot.lane.b32.xlu1 %v5056_v32, %s3180_s23  ;;  %v3128_v32 = vld [vmem:[%s4841_s5 + $0x50] sm:$0xff]  }
 0x27d   : > { %1703 = vmatprep.subr.bf16.mxu1 %v5057_v12 }
 0x27f   : > { %1704 = vmatpush1.bf16.msra.mxu1 %v3119_v26 }
 0x280   : > { %1429 = vrot.lane.b32.xlu0 %v4074_v34, %s3172_s22  ;;  %1441 = vrot.lane.b32.xlu1 %v1347_v33, %s3179_s21 }
 0x281   : > { %1705 = vmatprep.subr.bf16.mxu1 %v5057_v12 }
 0x284   : > { %1453 = vrot.lane.b32.xlu0 %v1359_v5, %s3171_s16  ;;  %1465 = vrot.lane.b32.xlu1 %v1371_v31, %s3177_s19  ;;  %v3120_v31 = vld [vmem:[%s4841_s5 + $0x10] sm:$0xff]  }
 0x285   : > { %1706 = vmatpush1.bf16.msra.mxu1 %v3120_v31 }
 0x286   : > { %1707 = vmatprep.subr.bf16.mxu1 %v5057_v12 }
 0x288   : > { %1431 = vrot.lane.b32.xlu0 %v4131_v40, %s3172_s22  ;;  %1395 = vrot.lane.b32.xlu1 %v1296_v7, %s3178_s20 }
 0x289   : > { %1708 = vmatpush1.bf16.msra.mxu1 %v3121_v55  ;;  %v3129_v55 = vld [vmem:[%s4841_s5 + $0x58] sm:$0xff]  }
 0x28a   : > { %1709 = vmatprep.subr.bf16.mxu1 %v5057_v12 }
 0x28c   : > { %1477 = vrot.lane.b32.xlu0 %v1383_v20, %s3173_s15  ;;  %1419 = vrot.lane.b32.xlu1 %v1336_v42, %s3180_s23 }
 0x28d   : > { %1710 = vmatpush1.bf16.msra.mxu1 %v3122_v11  ;;  %v3130_v11 = vld [vmem:[%s4841_s5 + $0x60] sm:$0xff]  }
 0x28e   : > { %1711 = vmatprep.subr.bf16.mxu1 %v5057_v12 }
 0x290   : > { %1407 = vrot.lane.b32.xlu0 %v1324_v25, %s3169_s24  ;;  %1443 = vrot.lane.b32.xlu1 %v1348_v1, %s3179_s21 }
 0x291   : > { %1712 = vmatpush1.bf16.msra.mxu1 %v3123_v10  ;;  %v3131_v10 = vld [vmem:[%s4841_s5 + $0x68] ss:$0 sps:$4 sm:$0xff]  }
 0x292   : > { %1713 = vmatprep.subr.bf16.mxu1 %v5057_v12 }
 0x294   : > { %1455 = vrot.lane.b32.xlu0 %v1360_v44, %s3171_s16  ;;  %1467 = vrot.lane.b32.xlu1 %v1372_v50, %s3177_s19 }
 0x295   : > { %1714 = vmatpush1.bf16.msra.mxu1 %v3124_v29  ;;  %v1699_v29 = vsel %vm1697_vm13, %v3131_v10, 0 }
 0x296   : > { %1715 = vmatprep.subr.bf16.mxu1 %v5057_v12 }
 0x298   : > { %1479 = vrot.lane.b32.xlu0 %v1384_v16, %s3173_s15  ;;  %v1426_v45 = vpop.permute.xlu0 %1425 }
 0x299   : > { %1716 = vmatpush1.bf16.msra.mxu1 %v3125_v39 }
 0x29a   : > { %1717 = vmatprep.subr.bf16.mxu1 %v5057_v12 }
 0x29d   : > { %1718 = vmatpush1.bf16.msra.mxu1 %v3126_v41 }
 0x29e   : > { %1719 = vmatprep.subr.bf16.mxu1 %v5057_v12 }
 0x2a1   : > { %1720 = vmatpush1.bf16.msra.mxu1 %v3127_v27 }
 0x2a2   : > { %1721 = vmatprep.subr.bf16.mxu1 %v5057_v12 }
 0x2a5   : > { %1722 = vmatpush1.bf16.msra.mxu1 %v3128_v32 }
 0x2a6   : > { %1723 = vmatprep.subr.bf16.mxu1 %v5057_v12 }
 0x2a9   : > { %1724 = vmatpush1.bf16.msra.mxu1 %v3129_v55 }
 0x2aa   : > { %1725 = vmatprep.subr.bf16.mxu1 %v5057_v12 }
 0x2ad   : > { %1726 = vmatpush1.bf16.msra.mxu1 %v3130_v11 }
 0x2ae   : > { %1727 = vmatprep.subr.bf16.mxu1 %v5057_v12 }
 0x2b1   : > { %1728 = vmatpush1.bf16.msra.mxu1 %v1699_v29 }
 0x2b3   : > { %v1462_v33 = vpop.permute.xlu1 %1461  ;;  %v1428_v7 = vpop.permute.xlu0 %1427 }
 0x2b7   : > { %v1392_v5 = vpop.permute.xlu1 %1391  ;;  %v1450_v61 = vpop.permute.xlu0 %1449 }
 0x2b8   : > { %v1487_v20 = vsel %vm1481_vm9, %v5058_v35, %v1392_v5 }
 0x2bb   : > { %v1438_v22 = vpop.permute.xlu1 %1437  ;;  %v1474_v0 = vpop.permute.xlu0 %1473 }
 0x2bf   : > { %v1416_v44 = vpop.permute.xlu1 %1415  ;;  %v1404_v21 = vpop.permute.xlu0 %1403 }
 0x2c0   : > { %v1497_v16 = vsel %vm1018_vm2, %v1487_v20, %v1404_v21 }
 0x2c1   : > { %v1506_v42 = vsel %vm1502_vm10, %v1497_v16, %v1416_v44 }
 0x2c2   : > { %v1514_v47 = vsel %vm1031_vm3, %v1506_v42, %v1428_v7 }
 0x2c7   : > { %v1464_v1 = vpop.permute.xlu1 %1463 }
 0x2ca   : > { %v1452_v25 = vpop.permute.xlu0 %1451 }
 0x2cb   : > { %v1394_v57 = vpop.permute.xlu1 %1393 }
 0x2ce   : > { %v1476_v13 = vpop.permute.xlu0 %1475 }
 0x2cf   : > { %v1440_v56 = vpop.permute.xlu1 %1439 }
 0x2d0   : > { %v1523_v50 = vsel %vm1519_vm11, %v1514_v47, %v1440_v56 }
 0x2d1   : > { %v1531_v59 = vsel %vm1040_vm4, %v1523_v50, %v1452_v25 }
 0x2d2   : > { %v1540_v26 = vsel %vm1536_vm12, %v1531_v59, %v1464_v1 }
 0x2d3   : > { %v1548_v31 = vsel %vm1049_vm5, %v1540_v26, %v1476_v13 }
 0x2d4   : > { %1559 = vrot.lane.b32.xlu0 %v1548_v31, %s3169_s24 }
 0x2e5   : > { %v1390_v7 = vpop.permute.xlu1 %1389 }
 0x2e6   : > { %v1484_v5 = vsel %vm1481_vm9, %v1281_v58, %v1390_v7  ;;  %v1490_v58 = vsel %vm1481_vm9, %v5059_v28, %v1394_v57 }
 0x2e8   : > { %v1402_v44 = vpop.permute.xlu0 %1401 }
 0x2e9   : > { %v1495_v21 = vsel %vm1018_vm2, %v1484_v5, %v1402_v44 }
 0x2ea   : > { %v1414_v1 = vpop.permute.xlu1 %1413 }
 0x2eb   : > { %v1504_v39 = vsel %vm1502_vm10, %v1495_v21, %v1414_v1 }
 0x2ec   : > { %v1512_v35 = vsel %vm1031_vm3, %v1504_v39, %v1426_v45  ;;  %v5060_v39 = vld [vmem:[#allocation51_spill] sm:$0xff] }
 0x2ed   : > { %v1521_v20 = vsel %vm1519_vm11, %v1512_v35, %v1438_v22 }
 0x2ee   : > { %v1406_v12 = vpop.permute.xlu0 %1405  ;;  %v1418_v16 = vpop.permute.xlu1 %1417  ;;  %v1529_v41 = vsel %vm1040_vm4, %v1521_v20, %v1450_v61  ;;  %v5061_v20 = vld [vmem:[#allocation58_spill] sm:$0xff] }
 0x2ef   : > { %v1538_v42 = vsel %vm1536_vm12, %v1529_v41, %v1462_v33  ;;  %v1499_v45 = vsel %vm1018_vm2, %v1490_v58, %v1406_v12  ;;  %v5063_v41 = vld [vmem:[#allocation61_spill] sm:$0xff]  ;;  %v5066_v58 = vld [vmem:[#allocation63_spill] sm:$0xff] }
 0x2f0   : > { %v1546_v43 = vsel %vm1049_vm5, %v1538_v42, %v1474_v0  ;;  %v1508_v22 = vsel %vm1502_vm10, %v1499_v45, %v1418_v16  ;;  %v5062_v16 = vld [vmem:[#allocation56_spill] sm:$0xff]  ;;  %v5067_v45 = vld [vmem:[#allocation62_spill] sm:$0xff] }
 0x2f1   : > { %1557 = vrot.lane.b32.xlu1 %v1546_v43, %s3169_s24  ;;  %v5064_v43 = vld [vmem:[#allocation60_spill] sm:$0xff] }
 0x2f2   : > { %v1430_v25 = vpop.permute.xlu0 %1429  ;;  %v1442_v27 = vpop.permute.xlu1 %1441 }
 0x2f3   : > { %v1516_v61 = vsel %vm1031_vm3, %v1508_v22, %v1430_v25  ;;  %v5069_v22 = vld [vmem:[#allocation64_spill] sm:$0xff] }
 0x2f4   : > { %v1525_v33 = vsel %vm1519_vm11, %v1516_v61, %v1442_v27 }
 0x2f6   : > { %v1454_v56 = vpop.permute.xlu0 %1453  ;;  %v1466_v47 = vpop.permute.xlu1 %1465 }
 0x2f7   : > { %v1533_v50 = vsel %vm1040_vm4, %v1525_v33, %v1454_v56  ;;  %v4340_v56 = vld [vmem:[%s4842_s6] ss:$0 sm:$0xff] }
 0x2f8   : > { %v1542_v46 = vsel %vm1536_vm12, %v1533_v50, %v1466_v47 }
 0x2fa   : > { %v1432_v0 = vpop.permute.xlu0 %1431  ;;  %v1396_v18 = vpop.permute.xlu1 %1395 }
 0x2fb   : > { %v1493_v13 = vsel %vm1481_vm9, %v1284_v24, %v1396_v18 }
 0x2fe   : > { %v1478_v57 = vpop.permute.xlu0 %1477  ;;  %v1420_v32 = vpop.permute.xlu1 %1419 }
 0x2ff   : > { %v1550_v59 = vsel %vm1049_vm5, %v1542_v46, %v1478_v57 }
 0x300   : > { %1561 = vrot.lane.b32.xlu1 %v1550_v59, %s3169_s24 }
 0x302   : > { %v1408_v26 = vpop.permute.xlu0 %1407  ;;  %v1444_v55 = vpop.permute.xlu1 %1443 }
 0x303   : > { %v1501_v31 = vsel %vm1018_vm2, %v1493_v13, %v1408_v26 }
 0x304   : > { %v1510_v11 = vsel %vm1502_vm10, %v1501_v31, %v1420_v32 }
 0x305   : > { %v1518_v10 = vsel %vm1031_vm3, %v1510_v11, %v1432_v0 }
 0x306   : > { %v1527_v29 = vsel %vm1519_vm11, %v1518_v10, %v1444_v55  ;;  %v1456_v7 = vpop.permute.xlu0 %1455  ;;  %v1468_v44 = vpop.permute.xlu1 %1467 }
 0x307   : > { %v1535_v5 = vsel %vm1040_vm4, %v1527_v29, %v1456_v7 }
 0x308   : > { %v1544_v21 = vsel %vm1536_vm12, %v1535_v5, %v1468_v44 }
 0x30a   : > { %v1480_v1 = vpop.permute.xlu0 %1479 }
 0x30b   : > { %v1552_v6 = vsel %vm1049_vm5, %v1544_v21, %v1480_v1 }
 0x30c   : > { %1563 = vrot.lane.b32.xlu0 %v1552_v6, %s3169_s24 }
 0x346   : > { %v1560_v9 = vpop.permute.xlu0 %1559 }
 0x347   : > { %v4317_v12 = vsel %vm1018_vm2, %v5061_v20, %v1560_v9 }
 0x363   : > { %v1558_v24 = vpop.permute.xlu1 %1557 }
 0x364   : > { %v4311_v35 = vsel %vm1018_vm2, %v5060_v39, %v1558_v24 }
 0x365   : > { %2870 = vmatprep.mubr.msk.bf16.mxu1 %vm1688_vm14, %v4311_v35 }
 0x366   : > { %1734 = vmatmul.mubr.bf16.vlgmr.msra.gmra.mrb[0].mxu1 %v5062_v16 }
 0x367   : > { %2871 = vmatprep.mubr.msk.bf16.mxu1 %vm1688_vm14, %v4317_v12 }
 0x36e   : > { %1742 = vmatmul.mubr.bf16.gmra.mrb[4].mxu1 %v5063_v41 }
 0x372   : > { %v1562_v42 = vpop.permute.xlu1 %1561 }
 0x373   : > { %v4325_v28 = vsel %vm1018_vm2, %v5064_v43, %v1562_v42  ;;  %v5070_v42 = vld [vmem:[#allocation9_spill] sm:$0xff] }
 0x374   : > { %5065 = vst [vmem:[#allocation5_spill] sm:$0xff] %v4325_v28  ;;  %2872 = vmatprep.mubr.msk.bf16.mxu1 %vm1688_vm14, %v4325_v28  ;;  %v5106_v28 = vld [vmem:[#allocation11_spill] sm:$0xff] }
 0x376   : > { %1750 = vmatmul.mubr.bf16.gmra.mrb[8].mxu1 %v5066_v58 }
 0x37e   : > { %v1564_v25 = vpop.permute.xlu0 %1563 }
 0x37f   : > { %v4332_v27 = vsel %vm1018_vm2, %v5067_v45, %v1564_v25 }
 0x380   : > { %5068 = vst [vmem:[#allocation4_spill] sm:$0xff] %v4332_v27  ;;  %2873 = vmatprep.mubr.msk.bf16.mxu1 %vm1688_vm14, %v4332_v27 }
 0x381   : > { %1758 = vmatmul.mubr.bf16.gmra.mrb[12].mxu1 %v5069_v22 }
 0x439   : > { %v1735_v61 = vpop.f32.mrb[0].mxu1 }
 0x43a   : > { %v1736_v47 = vadd.f32 %v4340_v56, %v1735_v61  ;;  %v1737_v33 = vpop.f32.mrb[1].mxu1 }
 0x43b   : > { %v1738_v0 = vpop.f32.mrb[2].mxu1 }
 0x43c   : > { %v4343_v50 = vmax.f32 %v1736_v47, 0.0  ;;  %v1739_v18 = vadd.f32 %v4340_v56, %v1738_v0  ;;  %v1740_v46 = vpop.f32.mrb[3].mxu1  ;;  %v5071_v47 = vld [vmem:[#allocation13_spill] sm:$0xff]  ;;  %v5072_v0 = vld [vmem:[#allocation6_spill] sm:$0xff] }
 0x43e   : > { %v1767_v57 = vmax.f32 %v1739_v18, 0.0  ;;  %v4954_v59 = vrot.slane %v4343_v50, 7  ;;  %v4955_v32 = vrot.slane %v4343_v50, 1  ;;  %v4364_v44 = vmul.f32 %v4343_v50, %v5031_v60 }
 0x43f   : > { %v4370_v24 = vmul.f32 %v4343_v50, %v3828_v17 }
 0x440   : > { %v1779_v13 = vrot.slane %v1767_v57, 7  ;;  %v1819_v26 = vrot.slane %v1767_v57, 1  ;;  %v4349_v31 = vpack.c.bf16 %v1767_v57, %v4343_v50  ;;  %v1882_v9 = vmul.f32 %v1767_v57, %v3628_v62 }
 0x441   : > { %v1743_v55 = vpop.f32.mrb[4].mxu1  ;;  %v1808_v39 = vmul.f32 %v1767_v57, %v3532_v3 }
 0x442   : > { %v1744_v11 = vadd.f32 %v4340_v56, %v1743_v55  ;;  %1946 = vrot.lane.b32.xlu0 %v4349_v31, %s3172_s22  ;;  %v1745_v10 = vpop.f32.mrb[5].mxu1  ;;  %v1792_v29 = vsel %vm544_vm0, %v4954_v59, %v1779_v13  ;;  %v1832_v7 = vsel %vm657_vm1, %v4955_v32, %v1819_v26 }
 0x443   : > { %v1746_v5 = vpop.f32.mrb[6].mxu1  ;;  %v1870_v20 = vmul.f32 %v1792_v29, %v3475_v54  ;;  %v1858_v43 = vmul.f32 %v1832_v7, %v5070_v42  ;;  %v4376_v25 = vmul.f32 %v1832_v7, %v5032_v4  ;;  %v4381_v18 = vmul.f32 %v1792_v29, %v5033_v37 }
 0x444   : > { %v1768_v21 = vmax.f32 %v1744_v11, 0.0  ;;  %v1747_v1 = vadd.f32 %v4340_v56, %v1746_v5  ;;  %v1748_v6 = vpop.f32.mrb[7].mxu1  ;;  %v4384_v17 = vmul.f32 %v1832_v7, %v3923_v38  ;;  %v4387_v54 = vmul.f32 %v1792_v29, %v3850_v36  ;;  %v5073_v7 = vld [vmem:[#allocation12_spill] sm:$0xff] }
 0x446   : > { %v1780_v60 = vrot.slane %v1768_v21, 7  ;;  %v1820_v45 = vrot.slane %v1768_v21, 1  ;;  %v1769_v61 = vmax.f32 %v1747_v1, 0.0  ;;  %v1883_v33 = vmul.f32 %v1768_v21, %v5071_v47 }
 0x447   : > { %v1809_v62 = vmul.f32 %v1768_v21, %v5072_v0 }
 0x448   : > { %v1781_v3 = vrot.slane %v1769_v61, 7  ;;  %v1821_v46 = vrot.slane %v1769_v61, 1  ;;  %v1890_v4 = vpack.c.bf16 %v1883_v33, %v1882_v9  ;;  %v4389_v57 = vpack.c.bf16 %v1769_v61, %v1768_v21  ;;  %v5074_v21 = vld [vmem:[#allocation17_spill] sm:$0xff] }
 0x449   : > { %v1751_v55 = vpop.f32.mrb[8].mxu1  ;;  %v1815_v11 = vpack.c.bf16 %v1809_v62, %v1808_v39  ;;  %v4393_v10 = vsel %vm544_vm0, %v1779_v13, %v1780_v60  ;;  %v1831_v37 = vsel %vm657_vm1, %v1819_v26, %v1820_v45  ;;  %v4398_v38 = vmul.f32 %v1769_v61, %v3692_v14  ;;  %v5075_v62 = vld [vmem:[#allocation50_spill] sm:$0xff] }
 0x44a   : > { %v1752_v36 = vadd.f32 %v4340_v56, %v1751_v55  ;;  %v1753_v29 = vpop.f32.mrb[9].mxu1  ;;  %1982 = vrot.lane.b32.xlu1 %v1890_v4, %s3177_s19  ;;  %1948 = vrot.lane.b32.xlu0 %v4389_v57, %s3172_s22  ;;  %v1871_v5 = vmul.f32 %v4393_v10, %v5073_v7  ;;  %v1859_v13 = vmul.f32 %v1831_v37, %v5074_v21  ;;  %v5076_v55 = vld [vmem:[#allocation22_spill] sm:$0xff] }
 0x44b   : > { %v1754_v1 = vpop.f32.mrb[10].mxu1  ;;  %v1830_v26 = vsel %vm657_vm1, %v1820_v45, %v1821_v46  ;;  %v1894_v14 = vmul.f32 %v1831_v37, %v3838_v63  ;;  %v4412_v6 = vsel %vm544_vm0, %v1780_v60, %v1781_v3  ;;  %v1848_v9 = vmul.f32 %v4393_v10, %v3501_v2  ;;  %v5077_v29 = vld [vmem:[#allocation16_spill] sm:$0xff]  ;;  %v5078_v7 = vld [vmem:[#allocation18_spill] sm:$0xff]  ;;  %v5079_v2 = vld [vmem:[#allocation27_spill] sm:$0xff] }
 0x44c   : > { %v1770_v39 = vmax.f32 %v1752_v36, 0.0  ;;  %v1755_v42 = vadd.f32 %v4340_v56, %v1754_v1  ;;  %v1756_v47 = vpop.f32.mrb[11].mxu1  ;;  %v1878_v33 = vpack.c.bf16 %v1871_v5, %v1870_v20  ;;  %v1866_v0 = vpack.c.bf16 %v1859_v13, %v1858_v43  ;;  %v5080_v13 = vld [vmem:[#allocation25_spill] sm:$0xff] }
 0x44d   : > { %v1895_v4 = vmul.f32 %v1830_v26, %v5075_v62  ;;  %v1849_v45 = vmul.f32 %v4412_v6, %v5076_v55  ;;  %v1836_v63 = vmul.f32 %v1831_v37, %v5077_v29  ;;  %v1837_v21 = vmul.f32 %v1830_v26, %v5078_v7  ;;  %v5083_v7 = vld [vmem:[#allocation8_spill] sm:$0xff] }
 0x44e   : > { %v1782_v60 = vrot.slane %v1770_v39, 7  ;;  %v1822_v59 = vrot.slane %v1770_v39, 1  ;;  %v4422_v32 = vmax.f32 %v1755_v42, 0.0  ;;  %1912 = vrot.lane.b32.xlu1 %v1815_v11, %s3178_s20  ;;  %1970 = vrot.lane.b32.xlu0 %v1878_v33, %s3171_s16  ;;  %v1885_v20 = vmul.f32 %v1770_v39, %v5079_v2  ;;  %v5081_v11 = vld [vmem:[#allocation26_spill] sm:$0xff]  ;;  %v5082_v33 = vld [vmem:[#allocation29_spill] sm:$0xff] }
 0x44f   : > { %v1902_v43 = vpack.c.bf16 %v1895_v4, %v1894_v14  ;;  %v1855_v36 = vpack.c.bf16 %v1849_v45, %v1848_v9  ;;  %v1843_v5 = vpack.c.bf16 %v1837_v21, %v1836_v63  ;;  %v1872_v1 = vmul.f32 %v4412_v6, %v5080_v13  ;;  %v5085_v63 = vld [vmem:[#allocation24_spill] sm:$0xff] }
 0x450   : > { %v1783_v37 = vrot.slane %v4422_v32, 7  ;;  %v1823_v47 = vrot.slane %v4422_v32, 1  ;;  %v1891_v62 = vpack.c.bf16 %v1885_v20, %v4398_v38  ;;  %v1789_v42 = vsel %vm544_vm0, %v1781_v3, %v1782_v60  ;;  %v5084_v38 = vld [vmem:[#allocation53_spill] sm:$0xff] }
 0x451   : > { %v1873_v55 = vmul.f32 %v1789_v42, %v5081_v11  ;;  %v1810_v29 = vmul.f32 %v1769_v61, %v5082_v33  ;;  %v1811_v14 = vmul.f32 %v1770_v39, %v5083_v7  ;;  %v1829_v9 = vsel %vm657_vm1, %v1821_v46, %v1822_v59  ;;  %v5086_v20 = vld [vmem:[#allocation57_spill] sm:$0xff]  ;;  %v5087_v11 = vld [vmem:[#allocation19_spill] sm:$0xff] }
 0x452   : > { %1958 = vrot.lane.b32.xlu1 %v1866_v0, %s3179_s21  ;;  %1994 = vrot.lane.b32.xlu0 %v1902_v43, %s3173_s15  ;;  %v1828_v4 = vsel %vm657_vm1, %v1822_v59, %v1823_v47  ;;  %v1896_v45 = vmul.f32 %v1829_v9, %v5084_v38  ;;  %v4445_v3 = vmul.f32 %v1830_v26, %v5085_v63  ;;  %v5088_v43 = vld [vmem:[#allocation30_spill] sm:$0xff]  ;;  %v5089_v59 = vld [vmem:[#allocation31_spill] sm:$0xff] }
 0x453   : > { %v1879_v2 = vpack.c.bf16 %v1873_v55, %v1872_v1  ;;  %v1816_v61 = vpack.c.bf16 %v1811_v14, %v1810_v29  ;;  %v1897_v13 = vmul.f32 %v1828_v4, %v5086_v20  ;;  %v4449_v33 = vmul.f32 %v1829_v9, %v5087_v11  ;;  %v5090_v14 = vld [vmem:[#allocation14_spill] sm:$0xff]  ;;  %v5091_v20 = vld [vmem:[#allocation32_spill] sm:$0xff]  ;;  %v5093_v11 = vld [vmem:[#allocation33_spill] sm:$0xff] }
 0x454   : > { %v1759_v21 = vpop.f32.mrb[12].mxu1  ;;  %v4453_v7 = vmul.f32 %v1829_v9, %v5088_v43  ;;  %v4456_v22 = vmul.f32 %v1828_v4, %v5089_v59  ;;  %v4459_v26 = vpack.c.bf16 %v4422_v32, %v1770_v39  ;;  %v4465_v29 = vsel %vm544_vm0, %v1782_v60, %v1783_v37  ;;  %v5092_v60 = vld [vmem:[#allocation35_spill] sm:$0xff] }
 0x455   : > { %v1760_v46 = vadd.f32 %v4340_v56, %v1759_v21  ;;  %v1761_v0 = vpop.f32.mrb[13].mxu1  ;;  %v1903_v1 = vpack.c.bf16 %v1897_v13, %v1896_v45  ;;  %v1867_v55 = vpack.c.bf16 %v4449_v33, %v4445_v3  ;;  %v4468_v63 = vmul.f32 %v1789_v42, %v5090_v14  ;;  %v5096_v14 = vld [vmem:[#allocation38_spill] sm:$0xff] }
 0x456   : > { %v1762_v38 = vpop.f32.mrb[14].mxu1  ;;  %1936 = vrot.lane.b32.xlu1 %v1855_v36, %s3180_s23  ;;  %1924 = vrot.lane.b32.xlu0 %v1843_v5, %s3169_s24  ;;  %v4477_v3 = vmul.f32 %v4465_v29, %v5091_v20  ;;  %v4481_v13 = vmul.f32 %v4465_v29, %v5092_v60  ;;  %v4484_v33 = vmul.f32 %v1828_v4, %v5093_v11  ;;  %v5095_v5 = vld [vmem:[#allocation39_spill] sm:$0xff]  ;;  %v5097_v20 = vld [vmem:[#allocation10_spill] sm:$0xff]  ;;  %v5098_v60 = vld [vmem:[#allocation52_spill] sm:$0xff] }
 0x457   : > { %v1772_v9 = vmax.f32 %v1760_v46, 0.0  ;;  %v1763_v21 = vadd.f32 %v4340_v56, %v1762_v38  ;;  %v1764_v39 = vpop.f32.mrb[15].mxu1  ;;  %v5094_v56 = vld [vmem:[#allocation37_spill] sm:$0xff]  ;;  %v4492_v46 = vmul.f32 %v4422_v32, %v5095_v5  ;;  %v4504_v11 = vmul.f32 %v4393_v10, %v5098_v60 }
 0x458   : > { %v4488_v36 = vmul.f32 %v4422_v32, %v5094_v56  ;;  %v5099_v56 = vld [vmem:[#allocation55_spill] sm:$0xff] }
 0x459   : > { %v1784_v0 = vrot.slane %v1772_v9, 7  ;;  %v1824_v43 = vrot.slane %v1772_v9, 1  ;;  %v1773_v59 = vmax.f32 %v1763_v21, 0.0  ;;  %v4497_v39 = vmul.f32 %v1772_v9, %v5096_v14  ;;  %v5100_v21 = vld [vmem:[#allocation3_spill] sm:$0xff] }
 0x45a   : > { %v4500_v4 = vmul.f32 %v1772_v9, %v5097_v20  ;;  %v4507_v45 = vmul.f32 %v1789_v42, %v5099_v56  ;;  %1984 = vrot.lane.b32.xlu1 %v1891_v62, %s3177_s19  ;;  %1972 = vrot.lane.b32.xlu0 %v1879_v2, %s3171_s16  ;;  %v5101_v20 = vld [vmem:[#allocation36_spill] sm:$0xff]  ;;  %v5102_v56 = vrot.slane %v4343_v50, 1 }
 0x45b   : > { %v1785_v32 = vrot.slane %v1773_v59, 7  ;;  %v1825_v5 = vrot.slane %v1773_v59, 1  ;;  %v1806_v38 = vmul.f32 %v1773_v59, %v5100_v21  ;;  %v1787_v14 = vsel %vm544_vm0, %v1783_v37, %v1784_v0 }
 0x45c   : > { %v1875_v27 = vmul.f32 %v1787_v14, %v5101_v20  ;;  %v1827_v10 = vsel %vm657_vm1, %v1823_v47, %v1824_v43  ;;  %v4517_v60 = vpack.c.bf16 %v1773_v59, %v1772_v9  ;;  %v1892_v42 = vpack.c.bf16 %v4497_v39, %v4488_v36  ;;  %v5104_v20 = vld [vmem:[#allocation21_spill] sm:$0xff]  ;;  %v5105_v47 = vld [vmem:[#allocation2_spill] sm:$0xff] }
 0x45d   : > { %v1833_v62 = vsel %vm657_vm1, %v1825_v5, %v5102_v56  ;;  %v1814_v2 = vpack.c.bf16 %v4364_v44, %v1806_v38  ;;  %v5103_v21 = vrot.slane %v4343_v50, 7  ;;  %v1863_v58 = vmul.f32 %v1827_v10, %v5104_v20  ;;  %v5107_v44 = vld [vmem:[#allocation59_spill] sm:$0xff] }
 0x45e   : > { %v1834_v9 = vmul.f32 %v1833_v62, %v5105_v47  ;;  %v1880_v36 = vpack.c.bf16 %v1875_v27, %v4481_v13  ;;  %v1826_v39 = vsel %vm657_vm1, %v1824_v43, %v1825_v5  ;;  %1914 = vrot.lane.b32.xlu1 %v1816_v61, %s3178_s20  ;;  %1996 = vrot.lane.b32.xlu0 %v1903_v1, %s3173_s15  ;;  %v5108_v27 = vld [vmem:[#allocation40_spill] sm:$0xff]  ;;  %v5109_v5 = vld [vmem:[#allocation41_spill] sm:$0xff]  ;;  %v5111_v47 = vld [vmem:[#allocation42_spill] sm:$0xff] }
 0x45f   : > { %v1793_v37 = vsel %vm544_vm0, %v1785_v32, %v5103_v21  ;;  %v1868_v50 = vpack.c.bf16 %v1863_v58, %v4484_v33  ;;  %v1898_v38 = vmul.f32 %v1827_v10, %v5107_v44  ;;  %v1899_v56 = vmul.f32 %v1826_v39, %v3875_v8  ;;  %v5110_v58 = vld [vmem:[#allocation15_spill] sm:$0xff] }
 0x460   : > { %v1846_v41 = vmul.f32 %v1793_v37, %v5106_v28  ;;  %v1842_v21 = vpack.c.bf16 %v4376_v25, %v1834_v9  ;;  %v1817_v28 = vpack.c.bf16 %v4500_v4, %v4492_v46  ;;  %v1840_v13 = vmul.f32 %v1827_v10, %v5108_v27  ;;  %v5113_v4 = vld [vmem:[#allocation23_spill] sm:$0xff] }
 0x461   : > { %v1904_v43 = vpack.c.bf16 %v1899_v56, %v1898_v38  ;;  %v1841_v61 = vmul.f32 %v1826_v39, %v5109_v5  ;;  %v1786_v1 = vsel %vm544_vm0, %v1784_v0, %v1785_v32  ;;  %v1852_v33 = vmul.f32 %v1787_v14, %v5110_v58  ;;  %v3145_v58 = vld [vmem:[%s4843_s7 + $0x70] sm:$0xff]  }
 0x462   : > { %v1854_v20 = vpack.c.bf16 %v4381_v18, %v1846_v41  ;;  %v1853_v44 = vmul.f32 %v1786_v1, %v5111_v47  ;;  %v1876_v8 = vmul.f32 %v1786_v1, %v5050_v51  ;;  %v1877_v25 = vmul.f32 %v1793_v37, %v5051_v52  ;;  %v5112_v41 = vld [vmem:[#allocation44_spill] sm:$0xff]  ;;  %1960 = vrot.lane.b32.xlu1 %v1867_v55, %s3179_s21 }
 0x463   : > { %v1864_v18 = vmul.f32 %v1826_v39, %v5112_v41  ;;  %1922 = vrot.lane.b32.xlu0 %v1842_v21, %s3169_s24  ;;  %v1845_v46 = vpack.c.bf16 %v1841_v61, %v1840_v13  ;;  %v1865_v10 = vmul.f32 %v1833_v62, %v5113_v4  ;;  %v1900_v19 = vmul.f32 %v1833_v62, %v3919_v53  ;;  %v5114_v39 = vld [vmem:[#allocation54_spill] sm:$0xff] }
 0x464   : > { %v1857_v0 = vpack.c.bf16 %v1853_v44, %v1852_v33  ;;  %v1881_v32 = vpack.c.bf16 %v1877_v25, %v1876_v8  ;;  %v1888_v9 = vmul.f32 %v1773_v59, %v5052_v30  ;;  %v1803_v51 = vpack.c.bf16 %v4504_v11, %v4387_v54  ;;  %v3140_v62 = vld [vmem:[%s4843_s7 + $0x60] sm:$0xff]   ;;  %v3148_v44 = vld [vmem:[%s4843_s7 + $0x88] sm:$0xff]   ;;  %v3146_v25 = vld [vmem:[%s4843_s7 + $0x30] sm:$0xff]  }
 0x465   : > { %v1869_v38 = vpack.c.bf16 %v1865_v10, %v1864_v18  ;;  %v1905_v52 = vpack.c.bf16 %v4384_v17, %v1900_v19  ;;  %v4564_v55 = vmul.f32 %v4412_v6, %v5114_v39  ;;  %v4567_v56 = vmul.f32 %v1786_v1, %v5053_v49  ;;  %v3134_v6 = vld [vmem:[%s4843_s7 + $0x48] sm:$0xff]   ;;  %v3147_v18 = vld [vmem:[%s4843_s7 + $0x78] sm:$0xff]  }
 0x466   : > { %v1893_v21 = vpack.c.bf16 %v4370_v24, %v1888_v9  ;;  %v4571_v53 = vmul.f32 %v1793_v37, %v5054_v48  ;;  %v4575_v30 = vmul.f32 %v4465_v29, %v3890_v23  ;;  %v4578_v59 = vmul.f32 %v1787_v14, %v3881_v15  ;;  %1910 = vrot.lane.b32.xlu1 %v1814_v2, %s3178_s20  ;;  %v3133_v24 = vld [vmem:[%s4843_s7] sm:$0xff]   ;;  %v3138_v14 = vld [vmem:[%s4843_s7 + $0x58] sm:$0xff]   ;;  %v3143_v37 = vld [vmem:[%s4843_s7 + $0x68] sm:$0xff]  }
 0x467   : > { %v5115_v17 = vpack.c.bf16 %v4456_v22, %v4453_v7  ;;  %v1804_v49 = vpack.c.bf16 %v4507_v45, %v4564_v55  ;;  %v5116_v15 = vpack.c.bf16 %v4477_v3, %v4468_v63  ;;  %v3132_v22 = vld [vmem:[%s4843_s7 + $0x40] sm:$0xff]   ;;  %v3135_v7 = vld [vmem:[%s4843_s7 + $0x8] sm:$0xff]   ;;  %v3136_v63 = vld [vmem:[%s4843_s7 + $0x50] sm:$0xff]   ;;  %vm2719_vm0 = vcmask 60416  }
 0x468   : > { %v1802_v48 = vpack.c.bf16 %v4571_v53, %v4567_v56  ;;  %v1805_v23 = vpack.c.bf16 %v4578_v59, %v4575_v30  ;;  %2949 = vmatprep.subr.bf16.mxu0 %v3132_v22  ;;  %v3142_v29 = vld [vmem:[%s4843_s7 + $0x80] sm:$0xff]   ;;  %v3137_v3 = vld [vmem:[%s4843_s7 + $0x10] sm:$0xff]   ;;  %v3144_v1 = vld [vmem:[%s4843_s7 + $0x28] sm:$0xff]  }
 0x469   : > { %1926 = vrot.lane.b32.xlu0 %v5115_v17, %s3169_s24  ;;  %2950 = vmatpush3.bf16.msra.mxu0 %v3133_v24  ;;  %v3141_v2 = vld [vmem:[%s4843_s7 + $0x20] sm:$0xff]   ;;  %v3149_v11 = vld [vmem:[%s4843_s7 + $0x38] sm:$0xff]  }
 0x46a   : > { %1934 = vrot.lane.b32.xlu1 %v1854_v20, %s3180_s23  ;;  %2951 = vmatprep.subr.bf16.mxu0 %v3134_v6 }
 0x46b   : > { %3007 = vmatprep.subr.bf16.mxu1 %v3142_v29 }
 0x46c   : > { %3008 = vmatpush3.bf16.msra.mxu1 %v3142_v29 }
 0x46d   : > { %1950 = vrot.lane.b32.xlu0 %v4459_v26, %s3172_s22  ;;  %2952 = vmatpush3.bf16.msra.mxu0 %v3135_v7 }
 0x46e   : > { %1938 = vrot.lane.b32.xlu1 %v5116_v15, %s3180_s23  ;;  %2953 = vmatprep.subr.bf16.mxu0 %v3136_v63 }
 0x46f   : > { %3009 = vmatprep.subr.bf16.mxu1 %v3148_v44 }
 0x470   : > { %3010 = vmatpush3.bf16.msra.mxu1 %v3148_v44 }
 0x471   : > { %1974 = vrot.lane.b32.xlu0 %v1880_v36, %s3171_s16  ;;  %2954 = vmatpush3.bf16.msra.mxu0 %v3137_v3 }
 0x472   : > { %1962 = vrot.lane.b32.xlu1 %v1868_v50, %s3179_s21  ;;  %2955 = vmatprep.subr.bf16.mxu0 %v3138_v14 }
 0x475   : > { %1952 = vrot.lane.b32.xlu0 %v4517_v60, %s3172_s22 }
 0x476   : > { %1986 = vrot.lane.b32.xlu1 %v1892_v42, %s3177_s19  ;;  %v3139_v42 = vld [vmem:[%s4843_s7 + $0x18] sm:$0xff]  }
 0x477   : > { %2956 = vmatpush3.bf16.msra.mxu0 %v3139_v42 }
 0x478   : > { %2957 = vmatprep.subr.bf16.mxu0 %v3140_v62 }
 0x479   : > { %1998 = vrot.lane.b32.xlu0 %v1904_v43, %s3173_s15 }
 0x47a   : > { %1916 = vrot.lane.b32.xlu1 %v1817_v28, %s3178_s20  ;;  %s4795_s20 = scalar_lea.vmem %s4849_s13, %s2931_s25 }
 0x47b   : > { %2958 = vmatpush3.bf16.msra.mxu0 %v3141_v2 }
 0x47c   : > { %2959 = vmatprep.subr.bf16.mxu0 %v3143_v37 }
 0x47d   : > { %1928 = vrot.lane.b32.xlu0 %v1845_v46, %s3169_s24 }
 0x47e   : > { %1940 = vrot.lane.b32.xlu1 %v1857_v0, %s3180_s23 }
 0x47f   : > { %2960 = vmatpush3.bf16.msra.mxu0 %v3144_v1 }
 0x480   : > { %2961 = vmatprep.subr.bf16.mxu0 %v3145_v58 }
 0x481   : > { %1976 = vrot.lane.b32.xlu0 %v1881_v32, %s3171_s16 }
 0x482   : > { %1964 = vrot.lane.b32.xlu1 %v1869_v38, %s3179_s21 }
 0x483   : > { %2962 = vmatpush3.bf16.msra.mxu0 %v3146_v25 }
 0x484   : > { %2963 = vmatprep.subr.bf16.mxu0 %v3147_v18 }
 0x485   : > { %2000 = vrot.lane.b32.xlu0 %v1905_v52, %s3173_s15 }
 0x486   : > { %1988 = vrot.lane.b32.xlu1 %v1893_v21, %s3177_s19  ;;  %s500_s19 = scalar_lea.vmem %s4850_s14, %s2931_s25 }
 0x487   : > { %2964 = vmatpush3.bf16.msra.mxu0 %v3149_v11  ;;  %v5121_v11 = vld [vmem:[#allocation63_spill] sm:$0xff] }
 0x4b4   : > { %v1947_v36 = vpop.permute.xlu0 %1946 }
 0x4bc   : > { %v1983_v50 = vpop.permute.xlu1 %1982  ;;  %v1949_v20 = vpop.permute.xlu0 %1948 }
 0x4c0   : > { %v1913_v28 = vpop.permute.xlu1 %1912  ;;  %v1971_v27 = vpop.permute.xlu0 %1970 }
 0x4c1   : > { %v2007_v8 = vsel %vm1481_vm9, %v1803_v51, %v1913_v28 }
 0x4c4   : > { %v1959_v13 = vpop.permute.xlu1 %1958  ;;  %v1995_v43 = vpop.permute.xlu0 %1994 }
 0x4c8   : > { %v1937_v5 = vpop.permute.xlu1 %1936  ;;  %v1925_v61 = vpop.permute.xlu0 %1924 }
 0x4c9   : > { %v2017_v41 = vsel %vm1018_vm2, %v2007_v8, %v1925_v61 }
 0x4ca   : > { %v2025_v54 = vsel %vm1502_vm10, %v2017_v41, %v1937_v5 }
 0x4cb   : > { %v2033_v19 = vsel %vm1031_vm3, %v2025_v54, %v1949_v20 }
 0x4cc   : > { %v1985_v33 = vpop.permute.xlu1 %1984  ;;  %v1973_v47 = vpop.permute.xlu0 %1972 }
 0x4d0   : > { %v1915_v46 = vpop.permute.xlu1 %1914  ;;  %v1997_v4 = vpop.permute.xlu0 %1996 }
 0x4d1   : > { %v2010_v7 = vsel %vm1481_vm9, %v1804_v49, %v1915_v46 }
 0x4d4   : > { %v1961_v10 = vpop.permute.xlu1 %1960 }
 0x4d5   : > { %v1923_v0 = vpop.permute.xlu0 %1922  ;;  %v2041_v32 = vsel %vm1519_vm11, %v2033_v19, %v1961_v10  ;;  %v5122_v10 = vld [vmem:[#allocation4_spill] sm:$0xff]  ;;  %v3150_v19 = vld [vmem:[%s4845_s9] sm:$0xff]  }
 0x4d6   : > { %v2049_v9 = vsel %vm1040_vm4, %v2041_v32, %v1973_v47  ;;  %3019 = vmatprep.subr.bf16.mxu0 %v3150_v19 }
 0x4d7   : > { %v2057_v51 = vsel %vm1536_vm12, %v2049_v9, %v1985_v33 }
 0x4d8   : > { %v1911_v38 = vpop.permute.xlu1 %1910  ;;  %v2065_v39 = vsel %vm1049_vm5, %v2057_v51, %v1997_v4  ;;  %v5120_v4 = vld [vmem:[#allocation5_spill] sm:$0xff] }
 0x4d9   : > { %v2004_v21 = vsel %vm1481_vm9, %v1802_v48, %v1911_v38  ;;  %2076 = vrot.lane.b32.xlu0 %v2065_v39, %s3181_s26  ;;  %v2874_v38 = vld [vmem:[%s4844_s8] ss:$0 sm:$0xff] }
 0x4da   : > { %v2015_v15 = vsel %vm1018_vm2, %v2004_v21, %v1923_v0  ;;  %v3151_v0 = vld [vmem:[%s4845_s9 + $0x8] sm:$0xff]  }
 0x4db   : > { %v1927_v52 = vpop.permute.xlu0 %1926 }
 0x4dc   : > { %v1935_v17 = vpop.permute.xlu1 %1934  ;;  %v2019_v53 = vsel %vm1018_vm2, %v2010_v7, %v1927_v52  ;;  %v3152_v7 = vld [vmem:[%s4845_s9 + $0x10] ss:$0 sps:$4 sm:$0xff]  }
 0x4dd   : > { %v2023_v24 = vsel %vm1502_vm10, %v2015_v15, %v1935_v17 }
 0x4de   : > { %v2031_v6 = vsel %vm1031_vm3, %v2023_v24, %v1947_v36 }
 0x4df   : > { %v1951_v22 = vpop.permute.xlu0 %1950  ;;  %v2039_v56 = vsel %vm1519_vm11, %v2031_v6, %v1959_v13 }
 0x4e0   : > { %v1939_v48 = vpop.permute.xlu1 %1938  ;;  %v2047_v63 = vsel %vm1040_vm4, %v2039_v56, %v1971_v27 }
 0x4e1   : > { %v2027_v3 = vsel %vm1502_vm10, %v2019_v53, %v1939_v48  ;;  %v2055_v14 = vsel %vm1536_vm12, %v2047_v63, %v1983_v50  ;;  %v2487_v48 = vsel %vm1697_vm13, %v3152_v7, 0 }
 0x4e2   : > { %v2063_v42 = vsel %vm1049_vm5, %v2055_v14, %v1995_v43  ;;  %v2035_v45 = vsel %vm1031_vm3, %v2027_v3, %v1951_v22  ;;  %v5117_v43 = vld [vmem:[#allocation65_spill] sm:$0xff] }
 0x4e3   : > { %v1975_v29 = vpop.permute.xlu0 %1974  ;;  %2074 = vrot.lane.b32.xlu1 %v2063_v42, %s3181_s26 }
 0x4e4   : > { %v1963_v62 = vpop.permute.xlu1 %1962 }
 0x4e5   : > { %v2043_v49 = vsel %vm1519_vm11, %v2035_v45, %v1963_v62 }
 0x4e6   : > { %v2051_v37 = vsel %vm1040_vm4, %v2043_v49, %v1975_v29 }
 0x4e7   : > { %v1953_v55 = vpop.permute.xlu0 %1952 }
 0x4e8   : > { %v1987_v2 = vpop.permute.xlu1 %1986 }
 0x4e9   : > { %v2059_v20 = vsel %vm1536_vm12, %v2051_v37, %v1987_v2 }
 0x4eb   : > { %v1999_v36 = vpop.permute.xlu0 %1998 }
 0x4ec   : > { %v2067_v28 = vsel %vm1049_vm5, %v2059_v20, %v1999_v36  ;;  %v1917_v50 = vpop.permute.xlu1 %1916 }
 0x4ed   : > { %2078 = vrot.lane.b32.xlu1 %v2067_v28, %s3181_s26  ;;  %v2013_v27 = vsel %vm1481_vm9, %v1805_v23, %v1917_v50 }
 0x4ef   : > { %v1929_v13 = vpop.permute.xlu0 %1928 }
 0x4f0   : > { %v2021_v5 = vsel %vm1018_vm2, %v2013_v27, %v1929_v13  ;;  %v1941_v61 = vpop.permute.xlu1 %1940 }
 0x4f1   : > { %2395 = vrot.lane.b32.xlu1 %v5117_v43, %s3169_s24  ;;  %v2029_v1 = vsel %vm1502_vm10, %v2021_v5, %v1941_v61 }
 0x4f2   : > { %v2037_v47 = vsel %vm1031_vm3, %v2029_v1, %v1953_v55 }
 0x4f3   : > { %v1977_v58 = vpop.permute.xlu0 %1976 }
 0x4f4   : > { %v1965_v33 = vpop.permute.xlu1 %1964 }
 0x4f5   : > { %2403 = vrot.lane.b32.xlu1 %v4349_v31, %s3180_s23  ;;  %v2045_v30 = vsel %vm1519_vm11, %v2037_v47, %v1965_v33  ;;  %v5118_v31 = vld [vmem:[#allocation66_spill] sm:$0xff] }
 0x4f6   : > { %v2053_v23 = vsel %vm1040_vm4, %v2045_v30, %v1977_v58 }
 0x4f7   : > { %v2001_v44 = vpop.permute.xlu0 %2000 }
 0x4f8   : > { %v1989_v59 = vpop.permute.xlu1 %1988 }
 0x4f9   : > { %2399 = vrot.lane.b32.xlu1 %v4074_v34, %s3169_s24  ;;  %v2061_v8 = vsel %vm1536_vm12, %v2053_v23, %v1989_v59 }
 0x4fa   : > { %v2069_v25 = vsel %vm1049_vm5, %v2061_v8, %v2001_v44 }
 0x4fb   : > { %2080 = vrot.lane.b32.xlu0 %v2069_v25, %s3181_s26 }
 0x4ff   : > { %2397 = vrot.lane.b32.xlu0 %v5118_v31, %s3169_s24 }
 0x503   : > { %2405 = vrot.lane.b32.xlu0 %v4389_v57, %s3180_s23 }
 0x507   : > { %2401 = vrot.lane.b32.xlu0 %v4131_v40, %s3169_s24  ;;  %v5119_v40 = vld [vmem:[#allocation61_spill] sm:$0xff] }
 0x54b   : > { %v2077_v34 = vpop.permute.xlu0 %2076 }
 0x54c   : > { %v2086_v46 = vsel %vm1688_vm14, %v4317_v12, %v2077_v34  ;;  %v5123_v12 = vld [vmem:[#allocation64_spill] sm:$0xff] }
 0x555   : > { %v2075_v41 = vpop.permute.xlu1 %2074 }
 0x556   : > { %3011 = vmatprep.mubr.msk.bf16.mxu1 %vm1031_vm3, %v2075_v41  ;;  %v2083_v18 = vsel %vm1688_vm14, %v4311_v35, %v2075_v41 }
 0x557   : > { %2285 = vmatprep.mubr.bf16.mxu0 %v2083_v18  ;;  %3012 = vmatmul.mubr.msk.bf16.vlgmr.msra.gmra.mrb[16].mxu1 %vm1031_vm3, %v2077_v34 }
 0x558   : > { %2286 = vmatmul.mubr.bf16.vlgmr.msra.gmra.mrb[16].mxu0 %v5062_v16 }
 0x559   : > { %2293 = vmatprep.mubr.bf16.mxu0 %v2086_v46  ;;  %3020 = vmatpush3.bf16.msra.mxu0 %v3150_v19 }
 0x55a   : > { %3021 = vmatprep.subr.bf16.mxu0 %v3151_v0 }
 0x55d   : > { %3022 = vmatpush3.bf16.msra.mxu0 %v3151_v0 }
 0x55e   : > { %3043 = vmatprep.subr.msk.bf16.mxu0 %vm1697_vm13, %v3152_v7 }
 0x55f   : > { %v2079_v57 = vpop.permute.xlu1 %2078 }
 0x560   : > { %3015 = vmatprep.mubr.msk.bf16.mxu1 %vm1031_vm3, %v2079_v57  ;;  %2294 = vmatmul.mubr.bf16.gmra.mrb[20].mxu0 %v5119_v40  ;;  %v2089_v54 = vsel %vm1688_vm14, %v5120_v4, %v2079_v57 }
 0x561   : > { %2301 = vmatprep.mubr.bf16.mxu0 %v2089_v54  ;;  %3024 = vmatpush3.bf16.msra.mxu0 %v2487_v48 }
 0x568   : > { %2302 = vmatmul.mubr.bf16.gmra.mrb[24].mxu0 %v5121_v11 }
 0x56d   : > { %v2081_v35 = vpop.permute.xlu0 %2080 }
 0x56e   : > { %3016 = vmatmul.mubr.msk.bf16.gmra.mrb[20].mxu1 %vm1031_vm3, %v2081_v35  ;;  %v2092_v16 = vsel %vm1688_vm14, %v5122_v10, %v2081_v35 }
 0x56f   : > { %2309 = vmatprep.mubr.bf16.mxu0 %v2092_v16 }
 0x570   : > { %2310 = vmatmul.mubr.bf16.gmra.mrb[28].mxu0 %v5123_v12 }
 0x62a   : > { %v3013_v32 = vpop.f32.mrb[16].mxu1 }
 0x62b   : > { %v2965_v9 = vpop.f32.mrb[16].mxu0  ;;  %v2352_v51 = vpop.f32.mrb[17].mxu1 }
 0x62c   : > { %v2966_v52 = vpop.f32.mrb[17].mxu0  ;;  %v3014_v39 = vpop.f32.mrb[18].mxu1 }
 0x62d   : > { %v2967_v21 = vadd.f32 %v2966_v52, %v2965_v9  ;;  %v2968_v17 = vpop.f32.mrb[18].mxu0  ;;  %v2355_v15 = vpop.f32.mrb[19].mxu1 }
 0x62e   : > { %v2969_v22 = vpop.f32.mrb[19].mxu0 }
 0x62f   : > { %v2288_v24 = vadd.f32 %v2967_v21, %v2874_v38  ;;  %v2970_v6 = vadd.f32 %v2969_v22, %v2968_v17 }
 0x631   : > { %v2353_v56 = vadd.f32 %v2352_v51, %v2288_v24  ;;  %v2291_v53 = vadd.f32 %v2970_v6, %v2874_v38  ;;  %v5125_v24 = vld [vmem:[#allocation28_spill] sm:$0xff] }
 0x633   : > { %v2356_v29 = vadd.f32 %v2355_v15, %v2291_v53  ;;  %v2971_v63 = vpop.f32.mrb[20].mxu0  ;;  %v2383_v14 = vmax.f32 %v2353_v56, 0.0 }
 0x634   : > { %v2972_v3 = vpop.f32.mrb[21].mxu0 }
 0x635   : > { %v2384_v42 = vmax.f32 %v2356_v29, 0.0  ;;  %v2973_v62 = vadd.f32 %v2972_v3, %v2971_v63  ;;  %v2974_v45 = vpop.f32.mrb[22].mxu0  ;;  %v5126_v29 = vld [vmem:[#allocation34_spill] sm:$0xff] }
 0x636   : > { %v2975_v55 = vpop.f32.mrb[23].mxu0 }
 0x637   : > { %v2391_v49 = vpack.c.bf16 %v2384_v42, %v2383_v14  ;;  %v2296_v2 = vadd.f32 %v2973_v62, %v2874_v38  ;;  %v2976_v37 = vadd.f32 %v2975_v55, %v2974_v45  ;;  %v5127_v45 = vld [vmem:[#allocation43_spill] sm:$0xff] }
 0x639   : > { %v2361_v36 = vadd.f32 %v3013_v32, %v2296_v2  ;;  %v2299_v20 = vadd.f32 %v2976_v37, %v2874_v38  ;;  %2415 = vrot.lane.b32.xlu1 %v2391_v49, %s3172_s22  ;;  %v2396_v32 = vpop.permute.xlu1 %2395 }
 0x63b   : > { %v2364_v28 = vadd.f32 %v3014_v39, %v2299_v20  ;;  %v2977_v50 = vpop.f32.mrb[24].mxu0  ;;  %v2385_v13 = vmax.f32 %v2361_v36, 0.0  ;;  %v5124_v39 = vld [vmem:[#allocation20_spill] sm:$0xff]  ;;  %v3153_v36 = vld [vmem:[%s4847_s11] sm:$0xff]  }
 0x63c   : > { %v2978_v27 = vpop.f32.mrb[25].mxu0  ;;  %v2425_v21 = vsel %vm1018_vm2, %v5124_v39, %v2396_v32  ;;  %3033 = vmatprep.subr.bf16.mxu1 %v3153_v36  ;;  %v2897_v20 = vld [vmem:[%s4846_s10] ss:$0 sm:$0xff] }
 0x63d   : > { %v2386_v43 = vmax.f32 %v2364_v28, 0.0  ;;  %v2979_v5 = vadd.f32 %v2978_v27, %v2977_v50  ;;  %2407 = vrot.lane.b32.xlu1 %v4459_v26, %s3180_s23  ;;  %v2980_v61 = vpop.f32.mrb[26].mxu0  ;;  %v2404_v9 = vpop.permute.xlu1 %2403  ;;  %3034 = vmatpush3.bf16.msra.mxu1 %v3153_v36 }
 0x63e   : > { %v2981_v1 = vpop.f32.mrb[27].mxu0  ;;  %v2436_v17 = vsel %vm1502_vm10, %v2425_v21, %v2404_v9 }
 0x63f   : > { %v2392_v58 = vpack.c.bf16 %v2386_v43, %v2385_v13  ;;  %v2982_v33 = vadd.f32 %v2981_v1, %v2980_v61  ;;  %v2304_v30 = vadd.f32 %v2979_v5, %v2874_v38 }
 0x641   : > { %2417 = vrot.lane.b32.xlu0 %v2392_v58, %s3172_s22  ;;  %v3017_v47 = vpop.f32.mrb[20].mxu1  ;;  %v2307_v25 = vadd.f32 %v2982_v33, %v2874_v38  ;;  %v2400_v51 = vpop.permute.xlu1 %2399 }
 0x642   : > { %v2368_v59 = vpop.f32.mrb[21].mxu1  ;;  %v2431_v63 = vsel %vm1018_vm2, %v5126_v29, %v2400_v51 }
 0x643   : > { %v2369_v23 = vadd.f32 %v2368_v59, %v2304_v30  ;;  %v2983_v44 = vpop.f32.mrb[28].mxu0  ;;  %v3018_v8 = vpop.f32.mrb[22].mxu1 }
 0x644   : > { %v2984_v31 = vpop.f32.mrb[29].mxu0  ;;  %v2371_v34 = vpop.f32.mrb[23].mxu1 }
 0x645   : > { %v2985_v41 = vadd.f32 %v2984_v31, %v2983_v44  ;;  %v2372_v18 = vadd.f32 %v2371_v34, %v2307_v25  ;;  %2409 = vrot.lane.b32.xlu0 %v4517_v60, %s3180_s23  ;;  %v2986_v26 = vpop.f32.mrb[30].mxu0  ;;  %v2387_v57 = vmax.f32 %v2369_v23, 0.0  ;;  %v2398_v60 = vpop.permute.xlu0 %2397 }
 0x646   : > { %v2987_v46 = vpop.f32.mrb[31].mxu0  ;;  %v2428_v6 = vsel %vm1018_vm2, %v5125_v24, %v2398_v60 }
 0x647   : > { %v2312_v40 = vadd.f32 %v2985_v41, %v2874_v38  ;;  %v2388_v4 = vmax.f32 %v2372_v18, 0.0  ;;  %v2988_v54 = vadd.f32 %v2987_v46, %v2986_v26 }
 0x649   : > { %v2377_v11 = vadd.f32 %v3017_v47, %v2312_v40  ;;  %v2393_v35 = vpack.c.bf16 %v2388_v4, %v2387_v57  ;;  %v2315_v10 = vadd.f32 %v2988_v54, %v2874_v38  ;;  %v2406_v52 = vpop.permute.xlu0 %2405 }
 0x64a   : > { %v2438_v7 = vsel %vm1502_vm10, %v2428_v6, %v2406_v52 }
 0x64b   : > { %v2380_v16 = vadd.f32 %v3018_v8, %v2315_v10  ;;  %2419 = vrot.lane.b32.xlu1 %v2393_v35, %s3172_s22  ;;  %v2389_v12 = vmax.f32 %v2377_v11, 0.0  ;;  %v2913_v35 = vld [vmem:[%s4848_s12] ss:$0 sm:$0xff] }
 0x64d   : > { %v2390_v19 = vmax.f32 %v2380_v16, 0.0  ;;  %v2402_v22 = vpop.permute.xlu0 %2401 }
 0x64e   : > { %v2434_v55 = vsel %vm1018_vm2, %v5127_v45, %v2402_v22 }
 0x64f   : > { %v2394_v0 = vpack.c.bf16 %v2390_v19, %v2389_v12 }
 0x651   : > { %2421 = vrot.lane.b32.xlu0 %v2394_v0, %s3172_s22 }
 0x6ab   : > { %v2416_v15 = vpop.permute.xlu1 %2415 }
 0x6ac   : > { %v2444_v38 = vsel %vm1031_vm3, %v2436_v17, %v2416_v15 }
 0x6ad   : > { %3025 = vmatprep.mubr.msk.bf16.mxu0 %vm1519_vm11, %v2444_v38 }
 0x6af   : > { %v2408_v48 = vpop.permute.xlu1 %2407 }
 0x6b0   : > { %v2440_v3 = vsel %vm1502_vm10, %v2431_v63, %v2408_v48 }
 0x6b3   : > { %v2418_v56 = vpop.permute.xlu0 %2417 }
 0x6b4   : > { %v2446_v53 = vsel %vm1031_vm3, %v2438_v7, %v2418_v56 }
 0x6b5   : > { %3026 = vmatmul.mubr.msk.bf16.vlgmr.msra.gmra.mrb[32].mxu0 %vm1519_vm11, %v2446_v53 }
 0x6b7   : > { %v2410_v62 = vpop.permute.xlu0 %2409 }
 0x6b8   : > { %v2442_v49 = vsel %vm1502_vm10, %v2434_v55, %v2410_v62 }
 0x6bd   : > { %v2420_v14 = vpop.permute.xlu1 %2419 }
 0x6be   : > { %v2448_v42 = vsel %vm1031_vm3, %v2440_v3, %v2420_v14 }
 0x6bf   : > { %3029 = vmatprep.mubr.msk.bf16.mxu0 %vm1519_vm11, %v2448_v42 }
 0x6c3   : > { %v2422_v2 = vpop.permute.xlu0 %2421 }
 0x6c4   : > { %v2450_v37 = vsel %vm1031_vm3, %v2442_v49, %v2422_v2 }
 0x6c5   : > { %3030 = vmatmul.mubr.msk.bf16.gmra.mrb[36].mxu0 %vm1519_vm11, %v2450_v37 }
 0x788   : > { %v3027_v28 = vpop.f32.mrb[32].mxu0 }
 0x789   : > { %v2532_v50 = vadd.f32 %v3027_v28, %v2897_v20  ;;  %v2523_v27 = vpop.f32.mrb[33].mxu0 }
 0x78a   : > { %v2524_v13 = vadd.f32 %v2897_v20, %v2523_v27  ;;  %v3028_v43 = vpop.f32.mrb[34].mxu0 }
 0x78b   : > { %v2935_v5 = vpack.c.bf16 %v2532_v50, %v2532_v50  ;;  %v2535_v61 = vadd.f32 %v3028_v43, %v2897_v20  ;;  %v2526_v1 = vpop.f32.mrb[35].mxu0 }
 0x78c   : > { %v2933_v58 = vpack.c.bf16 %v2524_v13, %v2524_v13  ;;  %v2527_v33 = vadd.f32 %v2897_v20, %v2526_v1 }
 0x78d   : > { %2589 = vst.msk [vmem:[%s4795_s20 + $0x8] sm:$0xf] %vm2586_vm15, %v2935_v5  ;;  %v2555_v47 = vpack.c.bf16 %v2535_v61, %v2532_v50  ;;  %v2936_v30 = vpack.c.bf16 %v2535_v61, %v2535_v61 }
 0x78e   : > { %2587 = vst.msk [vmem:[%s4795_s20] sm:$0xf] %vm2586_vm15, %v2933_v58  ;;  %v2554_v59 = vpack.c.bf16 %v2527_v33, %v2524_v13  ;;  %v2934_v23 = vpack.c.bf16 %v2527_v33, %v2527_v33 }
 0x78f   : > { %2590 = vst.msk [vmem:[%s4795_s20 + $0xc] sm:$0xf] %vm2586_vm15, %v2936_v30 }
 0x790   : > { %2588 = vst.msk [vmem:[%s4795_s20 + $0x4] sm:$0xf] %vm2586_vm15, %v2934_v23  ;;  %3035 = vmatprep.mubr.msk.bf16.mxu1 %vm1018_vm2, %v2554_v59 }
 0x791   : > { %3036 = vmatmul.mubr.msk.bf16.vlgmr.msra.gmra.mrb[24].mxu1 %vm1018_vm2, %v2555_v47 }
 0x798   : > { %v3031_v44 = vpop.f32.mrb[36].mxu0 }
 0x799   : > { %v2548_v8 = vadd.f32 %v3031_v44, %v2897_v20  ;;  %v2539_v25 = vpop.f32.mrb[37].mxu0 }
 0x79a   : > { %v2540_v31 = vadd.f32 %v2897_v20, %v2539_v25  ;;  %v3032_v34 = vpop.f32.mrb[38].mxu0 }
 0x79b   : > { %v2939_v41 = vpack.c.bf16 %v2548_v8, %v2548_v8  ;;  %v2551_v18 = vadd.f32 %v3032_v34, %v2897_v20  ;;  %v2542_v26 = vpop.f32.mrb[39].mxu0 }
 0x79c   : > { %v2937_v46 = vpack.c.bf16 %v2540_v31, %v2540_v31  ;;  %v2543_v57 = vadd.f32 %v2897_v20, %v2542_v26 }
 0x79d   : > { %2593 = vst.msk [vmem:[%s4795_s20 + $0x18] sm:$0xf] %vm2586_vm15, %v2939_v41  ;;  %v2557_v40 = vpack.c.bf16 %v2551_v18, %v2548_v8  ;;  %v2940_v4 = vpack.c.bf16 %v2551_v18, %v2551_v18 }
 0x79e   : > { %2591 = vst.msk [vmem:[%s4795_s20 + $0x10] sm:$0xf] %vm2586_vm15, %v2937_v46  ;;  %v2556_v54 = vpack.c.bf16 %v2543_v57, %v2540_v31  ;;  %v2938_v11 = vpack.c.bf16 %v2543_v57, %v2543_v57 }
 0x79f   : > { %2594 = vst.msk [vmem:[%s4795_s20 + $0x1c] sm:$0xf] %vm2586_vm15, %v2940_v4 }
 0x7a0   : > { %2592 = vst.msk [vmem:[%s4795_s20 + $0x14] sm:$0xf] %vm2586_vm15, %v2938_v11  ;;  %3039 = vmatprep.mubr.msk.bf16.mxu1 %vm1018_vm2, %v2556_v54 }
 0x7a1   : > { %3040 = vmatmul.mubr.msk.bf16.gmra.mrb[28].mxu1 %vm1018_vm2, %v2557_v40 }
 0x864   : > { %v3037_v10 = vpop.f32.mrb[24].mxu1 }
 0x865   : > { %v2665_v16 = vadd.f32 %v3037_v10, %v2913_v35  ;;  %v2656_v12 = vpop.f32.mrb[25].mxu1 }
 0x866   : > { %v2657_v19 = vadd.f32 %v2913_v35, %v2656_v12  ;;  %v3038_v0 = vpop.f32.mrb[26].mxu1 }
 0x867   : > { %v2943_v32 = vpack.c.bf16 %v2665_v16, %v2665_v16  ;;  %v2668_v9 = vadd.f32 %v3038_v0, %v2913_v35  ;;  %v2659_v60 = vpop.f32.mrb[27].mxu1 }
 0x868   : > { %v2941_v51 = vpack.c.bf16 %v2657_v19, %v2657_v19  ;;  %v2660_v52 = vadd.f32 %v2913_v35, %v2659_v60 }
 0x869   : > { %2722 = vst.msk [vmem:[%s500_s19 + $0x8] sm:$0xf] %vm2719_vm0, %v2943_v32  ;;  %v2944_v39 = vpack.c.bf16 %v2668_v9, %v2668_v9 }
 0x86a   : > { %2720 = vst.msk [vmem:[%s500_s19] sm:$0xf] %vm2719_vm0, %v2941_v51  ;;  %v2942_v21 = vpack.c.bf16 %v2660_v52, %v2660_v52 }
 0x86b   : > { %2723 = vst.msk [vmem:[%s500_s19 + $0xc] sm:$0xf] %vm2719_vm0, %v2944_v39 }
 0x86c   : > { %2721 = vst.msk [vmem:[%s500_s19 + $0x4] sm:$0xf] %vm2719_vm0, %v2942_v21 }
 0x874   : > { %v3041_v17 = vpop.f32.mrb[28].mxu1 }
 0x875   : > { %v2681_v15 = vadd.f32 %v3041_v17, %v2913_v35  ;;  %v2672_v38 = vpop.f32.mrb[29].mxu1 }
 0x876   : > { %v2673_v22 = vadd.f32 %v2913_v35, %v2672_v38  ;;  %v3042_v24 = vpop.f32.mrb[30].mxu1 }
 0x877   : > { %v2947_v6 = vpack.c.bf16 %v2681_v15, %v2681_v15  ;;  %v2684_v7 = vadd.f32 %v3042_v24, %v2913_v35  ;;  %v2675_v56 = vpop.f32.mrb[31].mxu1 }
 0x878   : > { %v2945_v53 = vpack.c.bf16 %v2673_v22, %v2673_v22  ;;  %v2676_v48 = vadd.f32 %v2913_v35, %v2675_v56 }
 0x879   : > { %2726 = vst.msk [vmem:[%s500_s19 + $0x18] sm:$0xf] %vm2719_vm0, %v2947_v6  ;;  %v2948_v29 = vpack.c.bf16 %v2684_v7, %v2684_v7 }
 0x87a   : > { %2724 = vst.msk [vmem:[%s500_s19 + $0x10] sm:$0xf] %vm2719_vm0, %v2945_v53  ;;  %v2946_v63 = vpack.c.bf16 %v2676_v48, %v2676_v48 }
 0x87b   : > { %2727 = vst.msk [vmem:[%s500_s19 + $0x1c] sm:$0xf] %vm2719_vm0, %v2948_v29 }
 0x87c   : > { %2725 = vst.msk [vmem:[%s500_s19 + $0x14] sm:$0xf] %vm2719_vm0, %v2946_v63 }
 0x87d PF: > { %s25_s29 = sadd.s32 1, %s3160_s29  }
 0x87e   : > { %p22_p4 = scmp.ge.s32.totalorder %s25_s29, 4  }
 0x880   :  { %24 = sbr.rel (!%p22_p4) target bundleno = 1 (0x1), region = 117 }

</bundles_post_ra>
